<compile_context>
chip_gen: v5e
topology: v5e:2x2
jax: 0.10.0
libtpu: 0.0.40
codegen_flags: <defaults>
</compile_context>

<pallas_src>
import functools

import jax
import jax.numpy as jnp
from jax.experimental import pallas as pl
from jax.experimental.pallas import tpu as pltpu

H = 32        # hidden size == embedding size
V = 48        # vocab size
T = 8         # source sequence length
B = 2         # batch size
MAX_LEN = 6   # max decode length
SOS = 1       # start-of-sequence token id

_VMEM = pl.BlockSpec(memory_space=pltpu.MemorySpace.VMEM)
_SMEM = pl.BlockSpec(memory_space=pltpu.MemorySpace.SMEM)


# ---------------- fused-gate GRU combine (PyTorch semantics) ----------------

def _gru_combine(gi, gh, h, hd):
    """PyTorch GRU cell from fused gate pre-activations.
    gi = x @ Wi_all + bi, gh = h @ Wh_all + bh, both (B, 3H), gate order (r, z, n)."""
    r = jax.nn.sigmoid(gi[:, :hd] + gh[:, :hd])
    z = jax.nn.sigmoid(gi[:, hd:2 * hd] + gh[:, hd:2 * hd])
    n = jnp.tanh(gi[:, 2 * hd:] + r * gh[:, 2 * hd:])
    return (1.0 - z) * n + z * h


# ---------------- single fused kernel: encoder + greedy decoder ----------------

def _attnet_greedy_kernel(seq_ref, emb_ref,
                          wi_f_ref, wh_f_ref, bi_f_ref, bh_f_ref,
                          wi_b_ref, wh_b_ref, bi_b_ref, bh_b_ref,
                          wi_d_ref, wh_d_ref, bi_d_ref, bh_d_ref,
                          wc_ref, bc_ref, wout_ref, bout_ref,
                          tok_ref, score_ref, *, sos):
    t_len, b = seq_ref.shape
    vocab, hd = emb_ref.shape
    max_len = tok_ref.shape[0]
    f32 = jnp.float32

    biota = jax.lax.broadcasted_iota(jnp.int32, (b, vocab), 0)        # batch-row index (B,V)
    viota = jax.lax.broadcasted_iota(jnp.int32, (b, vocab), 1)        # vocab index     (B,V)
    viota_row = jax.lax.broadcasted_iota(jnp.int32, (1, vocab), 1)    # vocab index     (1,V)

    emb_tbl = emb_ref[...]                                            # (V, H)

    # ======== encoder: bidirectional GRU, direction-sum ========
    # embedding lookup folded into the input projection, hoisted out of the recurrences
    embwi_f = jnp.dot(emb_tbl, wi_f_ref[...], preferred_element_type=f32)   # (V, 3H)
    embwi_b = jnp.dot(emb_tbl, wi_b_ref[...], preferred_element_type=f32)   # (V, 3H)
    bi_f = bi_f_ref[...]
    bi_b = bi_b_ref[...]

    onehots = []
    for t in range(t_len):
        oh = jnp.zeros((b, vocab), f32)
        for j in range(b):
            oh = oh + ((biota == j) & (viota == seq_ref[t, j])).astype(f32)
        onehots.append(oh)                                            # (B, V)

    gi_f = [jnp.dot(oh, embwi_f, preferred_element_type=f32) + bi_f for oh in onehots]
    gi_b = [jnp.dot(oh, embwi_b, preferred_element_type=f32) + bi_b for oh in onehots]

    # TODO(synk): on v7x the two directions could run on separate TensorCores via pl.core_map;
    # kept single-core here (v5e/v6e have one TC and the whole encoder is tiny).

    # forward direction — only gh = h @ Wh_all remains on the serial dependence chain
    wh_f = wh_f_ref[...]
    bh_f = bh_f_ref[...]
    h = jnp.zeros((b, hd), f32)
    hf = []
    for t in range(t_len):
        gh = jnp.dot(h, wh_f, preferred_element_type=f32) + bh_f
        h = _gru_combine(gi_f[t], gh, h, hd)
        hf.append(h)

    # backward direction (processes the sequence reversed)
    wh_b = wh_b_ref[...]
    bh_b = bh_b_ref[...]
    h = jnp.zeros((b, hd), f32)
    hb = []
    for t in range(t_len):
        gh = jnp.dot(h, wh_b, preferred_element_type=f32) + bh_b
        h = _gru_combine(gi_b[t_len - 1 - t], gh, h, hd)
        hb.append(h)

    # direction-sum, time-aligned: outputs[:,:,:H] + outputs[:,:,H:]
    enc = [hf[t] + hb[t_len - 1 - t] for t in range(t_len)]           # list of (B, H)

    # ======== greedy decoder ========
    embwi_d = jnp.dot(emb_tbl, wi_d_ref[...], preferred_element_type=f32)   # (V, 3H)
    bi_d = bi_d_ref[...]

    h = hf[-1]                                                        # forward final hidden
    tok_row = jnp.full((1, b), sos, jnp.int32)                        # carried token (1, B)

    for step in range(max_len):
        # one-hot of the carried token, built purely with elementwise masks (no relayout)
        oh = jnp.zeros((b, vocab), f32)
        for j in range(b):
            row = (viota_row == tok_row[:, j:j + 1]).astype(f32)       # (1, V)
            oh = oh + jnp.where(biota == j, row, 0.0)

        # decoder GRU cell: embedding folded into input projection (one matmul), fused gates
        gi = jnp.dot(oh, embwi_d, preferred_element_type=f32) + bi_d
        gh = jnp.dot(h, wh_d_ref[...], preferred_element_type=f32) + bh_d_ref[...]
        h = _gru_combine(gi, gh, h, hd)                                # (B, H)

        # Luong 'dot' attention on the VPU/XLU (tiny shapes: MXU round-trips are slower)
        e_cols = [jnp.sum(h * enc[t], axis=1, keepdims=True) for t in range(t_len)]
        energies = jnp.concatenate(e_cols, axis=1)                     # (B, T)
        em = jnp.max(energies, axis=1, keepdims=True)
        pe = jnp.exp(energies - em)
        attn = pe * pl.reciprocal(jnp.sum(pe, axis=1, keepdims=True), approx=True)
        ctx = attn[:, 0:1] * enc[0]
        for t in range(1, t_len):
            ctx = ctx + attn[:, t:t + 1] * enc[t]                      # (B, H)

        # fused concat layer + output projection
        hc = jnp.concatenate([h, ctx], axis=1)                         # (B, 2H)
        c = jnp.tanh(jnp.dot(hc, wc_ref[...], preferred_element_type=f32) + bc_ref[...])
        logits = jnp.dot(c, wout_ref[...], preferred_element_type=f32) + bout_ref[...]  # (B, V)

        # greedy head per batch row: first-index argmax on logits; score = max softmax prob
        tok_parts, score_parts = [], []
        for j in range(b):
            lg = logits[j:j + 1, :]                                    # (1, V)
            lm = jnp.max(lg, axis=1, keepdims=True)
            idx = jnp.min(jnp.where(lg == lm, viota_row, vocab), axis=1, keepdims=True)
            sc = 1.0 / jnp.sum(jnp.exp(lg - lm), axis=1, keepdims=True)   # == max softmax prob
            tok_parts.append(idx)
            score_parts.append(sc)
        tok_row = jnp.concatenate(tok_parts, axis=1).astype(jnp.int32)     # (1, B)
        score_row = jnp.concatenate(score_parts, axis=1)                   # (1, B)

        # outputs emitted directly in torch's (max_length, batch) orientation
        tok_ref[step:step + 1, :] = tok_row
        score_ref[step:step + 1, :] = score_row


# ---------------- model forward (single pallas_call, no surrounding XLA ops) ----------------

def greedy_search_decoder(params, input_seq, input_length, max_length, batch_size, sos):
    # TODO(synk): pack_padded_sequence ragged-length masking is not modeled; input_length is
    # assumed to equal the full sequence length (semantics are identical in that case).
    del input_length, batch_size
    t_len, b = input_seq.shape
    f = params['enc_fwd']
    bw = params['enc_bwd']
    d = params['dec_gru']
    kernel = functools.partial(_attnet_greedy_kernel, sos=sos)
    tokens, scores = pl.pallas_call(
        kernel,
        out_shape=(jax.ShapeDtypeStruct((max_length, b), jnp.int32),
                   jax.ShapeDtypeStruct((max_length, b), jnp.float32)),
        in_specs=[_SMEM] + [_VMEM] * 17,
        out_specs=(_VMEM, _VMEM),
    )(input_seq, params['embedding'],
      f['wi'], f['wh'], f['bi'], f['bh'],
      bw['wi'], bw['wh'], bw['bi'], bw['bh'],
      d['wi'], d['wh'], d['bi'], d['bh'],
      params['wc'], params['bc'], params['wout'], params['bout'])
    return tokens, scores   # torch returns (max_length, batch) tokens and scores


# ---------------- parameters (deterministic, in-script) ----------------

def _uniform(key, shape, scale=0.1):
    return jax.random.uniform(key, shape, jnp.float32, -scale, scale)


def init_params(key):
    ks = jax.random.split(key, 17)

    def gru_params(k0, k1, k2, k3):
        # fused-gate layout, gate order (r, z, n), pre-transposed so x @ wi == x @ W_ih.T
        return dict(
            wi=_uniform(k0, (H, 3 * H)),
            wh=_uniform(k1, (H, 3 * H)),
            bi=_uniform(k2, (1, 3 * H)),
            bh=_uniform(k3, (1, 3 * H)),
        )

    return dict(
        embedding=_uniform(ks[0], (V, H)),      # shared embedding (attnet chatbot setup)
        enc_fwd=gru_params(ks[1], ks[2], ks[3], ks[4]),
        enc_bwd=gru_params(ks[5], ks[6], ks[7], ks[8]),
        dec_gru=gru_params(ks[9], ks[10], ks[11], ks[12]),
        wc=_uniform(ks[13], (2 * H, H)),        # concat Linear(2H->H), transposed, [h ; ctx] order
        bc=_uniform(ks[14], (1, H)),
        wout=_uniform(ks[15], (H, V)),          # out Linear(H->V), transposed
        bout=_uniform(ks[16], (1, V)),
    )


if __name__ == "__main__":
    key = jax.random.PRNGKey(0)
    pkey, dkey = jax.random.split(key)
    params = init_params(pkey)

    input_seq = jax.random.randint(dkey, (T, B), 0, V, dtype=jnp.int32)
    input_length = jnp.full((B,), T, jnp.int32)

    fwd = jax.jit(functools.partial(greedy_search_decoder,
                                    max_length=MAX_LEN, batch_size=B, sos=SOS))
    all_tokens, all_scores = fwd(params, input_seq, input_length)
    jax.block_until_ready((all_tokens, all_scores))

    assert all_tokens.shape == (MAX_LEN, B) and all_tokens.dtype == jnp.int32
    assert all_scores.shape == (MAX_LEN, B) and all_scores.dtype == jnp.float32
    print("KERNEL_OK")
</pallas_src>

<mosaic_0001>
module attributes {stable_mosaic.version = 11 : i64} {
  func.func @_attnet_greedy_kernel(%arg0: memref<8x2xi32, #tpu.memory_space<smem>>, %arg1: memref<48x32xf32, #tpu.memory_space<vmem>>, %arg2: memref<32x96xf32, #tpu.memory_space<vmem>>, %arg3: memref<32x96xf32, #tpu.memory_space<vmem>>, %arg4: memref<1x96xf32, #tpu.memory_space<vmem>>, %arg5: memref<1x96xf32, #tpu.memory_space<vmem>>, %arg6: memref<32x96xf32, #tpu.memory_space<vmem>>, %arg7: memref<32x96xf32, #tpu.memory_space<vmem>>, %arg8: memref<1x96xf32, #tpu.memory_space<vmem>>, %arg9: memref<1x96xf32, #tpu.memory_space<vmem>>, %arg10: memref<32x96xf32, #tpu.memory_space<vmem>>, %arg11: memref<32x96xf32, #tpu.memory_space<vmem>>, %arg12: memref<1x96xf32, #tpu.memory_space<vmem>>, %arg13: memref<1x96xf32, #tpu.memory_space<vmem>>, %arg14: memref<64x32xf32, #tpu.memory_space<vmem>>, %arg15: memref<1x32xf32, #tpu.memory_space<vmem>>, %arg16: memref<32x48xf32, #tpu.memory_space<vmem>>, %arg17: memref<1x48xf32, #tpu.memory_space<vmem>>, %arg18: memref<6x2xi32, #tpu.memory_space<vmem>>, %arg19: memref<6x2xf32, #tpu.memory_space<vmem>>) attributes {dimension_semantics = [], scalar_prefetch = 0 : i64, scratch_operands = 0 : i64, tpu.core_type = #tpu.core_type<tc>} {
    %0 = tpu.iota {dimensions = array<i32: 0>} : vector<2x48xi32>
    %1 = tpu.iota {dimensions = array<i32: 1>} : vector<2x48xi32>
    %2 = tpu.iota {dimensions = array<i32: 1>} : vector<1x48xi32>
    %c0 = arith.constant 0 : index
    %c0_0 = arith.constant 0 : index
    %3 = vector.load %arg1[%c0, %c0_0] : memref<48x32xf32, #tpu.memory_space<vmem>>, vector<48x32xf32>
    %c0_1 = arith.constant 0 : index
    %c0_2 = arith.constant 0 : index
    %4 = vector.load %arg2[%c0_1, %c0_2] : memref<32x96xf32, #tpu.memory_space<vmem>>, vector<32x96xf32>
    %cst = arith.constant dense<0.000000e+00> : vector<48x96xf32>
    %5 = tpu.matmul %3, %4, %cst {dimension_numbers = #tpu.dot_dimension_numbers<[1], [0], [0], [1], [0, 0, 1, 1], [], []>} : vector<48x32xf32>, vector<32x96xf32>, vector<48x96xf32> -> vector<48x96xf32>
    %c0_3 = arith.constant 0 : index
    %c0_4 = arith.constant 0 : index
    %6 = vector.load %arg6[%c0_3, %c0_4] : memref<32x96xf32, #tpu.memory_space<vmem>>, vector<32x96xf32>
    %cst_5 = arith.constant dense<0.000000e+00> : vector<48x96xf32>
    %7 = tpu.matmul %3, %6, %cst_5 {dimension_numbers = #tpu.dot_dimension_numbers<[1], [0], [0], [1], [0, 0, 1, 1], [], []>} : vector<48x32xf32>, vector<32x96xf32>, vector<48x96xf32> -> vector<48x96xf32>
    %c0_6 = arith.constant 0 : index
    %c0_7 = arith.constant 0 : index
    %8 = vector.load %arg4[%c0_6, %c0_7] : memref<1x96xf32, #tpu.memory_space<vmem>>, vector<1x96xf32>
    %c0_8 = arith.constant 0 : index
    %c0_9 = arith.constant 0 : index
    %9 = vector.load %arg8[%c0_8, %c0_9] : memref<1x96xf32, #tpu.memory_space<vmem>>, vector<1x96xf32>
    %cst_10 = arith.constant 0.000000e+00 : f32
    %10 = vector.broadcast %cst_10 : f32 to vector<2x48xf32>
    %c0_i32 = arith.constant 0 : i32
    %11 = vector.broadcast %c0_i32 : i32 to vector<2x48xi32>
    %12 = arith.cmpi eq, %0, %11 : vector<2x48xi32>
    %c0_11 = arith.constant 0 : index
    %c0_12 = arith.constant 0 : index
    %13 = memref.load %arg0[%c0_11, %c0_12] : memref<8x2xi32, #tpu.memory_space<smem>>
    %14 = vector.broadcast %13 : i32 to vector<2x48xi32>
    %15 = arith.cmpi eq, %1, %14 : vector<2x48xi32>
    %16 = arith.andi %12, %15 : vector<2x48xi1>
    %17 = arith.extui %16 : vector<2x48xi1> to vector<2x48xi32>
    %18 = arith.sitofp %17 : vector<2x48xi32> to vector<2x48xf32>
    %19 = arith.addf %10, %18 : vector<2x48xf32>
    %c1_i32 = arith.constant 1 : i32
    %20 = vector.broadcast %c1_i32 : i32 to vector<2x48xi32>
    %21 = arith.cmpi eq, %0, %20 : vector<2x48xi32>
    %c0_13 = arith.constant 0 : index
    %c1 = arith.constant 1 : index
    %22 = memref.load %arg0[%c0_13, %c1] : memref<8x2xi32, #tpu.memory_space<smem>>
    %23 = vector.broadcast %22 : i32 to vector<2x48xi32>
    %24 = arith.cmpi eq, %1, %23 : vector<2x48xi32>
    %25 = arith.andi %21, %24 : vector<2x48xi1>
    %26 = arith.extui %25 : vector<2x48xi1> to vector<2x48xi32>
    %27 = arith.sitofp %26 : vector<2x48xi32> to vector<2x48xf32>
    %28 = arith.addf %19, %27 : vector<2x48xf32>
    %cst_14 = arith.constant 0.000000e+00 : f32
    %29 = vector.broadcast %cst_14 : f32 to vector<2x48xf32>
    %c0_i32_15 = arith.constant 0 : i32
    %30 = vector.broadcast %c0_i32_15 : i32 to vector<2x48xi32>
    %31 = arith.cmpi eq, %0, %30 : vector<2x48xi32>
    %c1_16 = arith.constant 1 : index
    %c0_17 = arith.constant 0 : index
    %32 = memref.load %arg0[%c1_16, %c0_17] : memref<8x2xi32, #tpu.memory_space<smem>>
    %33 = vector.broadcast %32 : i32 to vector<2x48xi32>
    %34 = arith.cmpi eq, %1, %33 : vector<2x48xi32>
    %35 = arith.andi %31, %34 : vector<2x48xi1>
    %36 = arith.extui %35 : vector<2x48xi1> to vector<2x48xi32>
    %37 = arith.sitofp %36 : vector<2x48xi32> to vector<2x48xf32>
    %38 = arith.addf %29, %37 : vector<2x48xf32>
    %c1_i32_18 = arith.constant 1 : i32
    %39 = vector.broadcast %c1_i32_18 : i32 to vector<2x48xi32>
    %40 = arith.cmpi eq, %0, %39 : vector<2x48xi32>
    %c1_19 = arith.constant 1 : index
    %c1_20 = arith.constant 1 : index
    %41 = memref.load %arg0[%c1_19, %c1_20] : memref<8x2xi32, #tpu.memory_space<smem>>
    %42 = vector.broadcast %41 : i32 to vector<2x48xi32>
    %43 = arith.cmpi eq, %1, %42 : vector<2x48xi32>
    %44 = arith.andi %40, %43 : vector<2x48xi1>
    %45 = arith.extui %44 : vector<2x48xi1> to vector<2x48xi32>
    %46 = arith.sitofp %45 : vector<2x48xi32> to vector<2x48xf32>
    %47 = arith.addf %38, %46 : vector<2x48xf32>
    %cst_21 = arith.constant 0.000000e+00 : f32
    %48 = vector.broadcast %cst_21 : f32 to vector<2x48xf32>
    %c0_i32_22 = arith.constant 0 : i32
    %49 = vector.broadcast %c0_i32_22 : i32 to vector<2x48xi32>
    %50 = arith.cmpi eq, %0, %49 : vector<2x48xi32>
    %c2 = arith.constant 2 : index
    %c0_23 = arith.constant 0 : index
    %51 = memref.load %arg0[%c2, %c0_23] : memref<8x2xi32, #tpu.memory_space<smem>>
    %52 = vector.broadcast %51 : i32 to vector<2x48xi32>
    %53 = arith.cmpi eq, %1, %52 : vector<2x48xi32>
    %54 = arith.andi %50, %53 : vector<2x48xi1>
    %55 = arith.extui %54 : vector<2x48xi1> to vector<2x48xi32>
    %56 = arith.sitofp %55 : vector<2x48xi32> to vector<2x48xf32>
    %57 = arith.addf %48, %56 : vector<2x48xf32>
    %c1_i32_24 = arith.constant 1 : i32
    %58 = vector.broadcast %c1_i32_24 : i32 to vector<2x48xi32>
    %59 = arith.cmpi eq, %0, %58 : vector<2x48xi32>
    %c2_25 = arith.constant 2 : index
    %c1_26 = arith.constant 1 : index
    %60 = memref.load %arg0[%c2_25, %c1_26] : memref<8x2xi32, #tpu.memory_space<smem>>
    %61 = vector.broadcast %60 : i32 to vector<2x48xi32>
    %62 = arith.cmpi eq, %1, %61 : vector<2x48xi32>
    %63 = arith.andi %59, %62 : vector<2x48xi1>
    %64 = arith.extui %63 : vector<2x48xi1> to vector<2x48xi32>
    %65 = arith.sitofp %64 : vector<2x48xi32> to vector<2x48xf32>
    %66 = arith.addf %57, %65 : vector<2x48xf32>
    %cst_27 = arith.constant 0.000000e+00 : f32
    %67 = vector.broadcast %cst_27 : f32 to vector<2x48xf32>
    %c0_i32_28 = arith.constant 0 : i32
    %68 = vector.broadcast %c0_i32_28 : i32 to vector<2x48xi32>
    %69 = arith.cmpi eq, %0, %68 : vector<2x48xi32>
    %c3 = arith.constant 3 : index
    %c0_29 = arith.constant 0 : index
    %70 = memref.load %arg0[%c3, %c0_29] : memref<8x2xi32, #tpu.memory_space<smem>>
    %71 = vector.broadcast %70 : i32 to vector<2x48xi32>
    %72 = arith.cmpi eq, %1, %71 : vector<2x48xi32>
    %73 = arith.andi %69, %72 : vector<2x48xi1>
    %74 = arith.extui %73 : vector<2x48xi1> to vector<2x48xi32>
    %75 = arith.sitofp %74 : vector<2x48xi32> to vector<2x48xf32>
    %76 = arith.addf %67, %75 : vector<2x48xf32>
    %c1_i32_30 = arith.constant 1 : i32
    %77 = vector.broadcast %c1_i32_30 : i32 to vector<2x48xi32>
    %78 = arith.cmpi eq, %0, %77 : vector<2x48xi32>
    %c3_31 = arith.constant 3 : index
    %c1_32 = arith.constant 1 : index
    %79 = memref.load %arg0[%c3_31, %c1_32] : memref<8x2xi32, #tpu.memory_space<smem>>
    %80 = vector.broadcast %79 : i32 to vector<2x48xi32>
    %81 = arith.cmpi eq, %1, %80 : vector<2x48xi32>
    %82 = arith.andi %78, %81 : vector<2x48xi1>
    %83 = arith.extui %82 : vector<2x48xi1> to vector<2x48xi32>
    %84 = arith.sitofp %83 : vector<2x48xi32> to vector<2x48xf32>
    %85 = arith.addf %76, %84 : vector<2x48xf32>
    %cst_33 = arith.constant 0.000000e+00 : f32
    %86 = vector.broadcast %cst_33 : f32 to vector<2x48xf32>
    %c0_i32_34 = arith.constant 0 : i32
    %87 = vector.broadcast %c0_i32_34 : i32 to vector<2x48xi32>
    %88 = arith.cmpi eq, %0, %87 : vector<2x48xi32>
    %c4 = arith.constant 4 : index
    %c0_35 = arith.constant 0 : index
    %89 = memref.load %arg0[%c4, %c0_35] : memref<8x2xi32, #tpu.memory_space<smem>>
    %90 = vector.broadcast %89 : i32 to vector<2x48xi32>
    %91 = arith.cmpi eq, %1, %90 : vector<2x48xi32>
    %92 = arith.andi %88, %91 : vector<2x48xi1>
    %93 = arith.extui %92 : vector<2x48xi1> to vector<2x48xi32>
    %94 = arith.sitofp %93 : vector<2x48xi32> to vector<2x48xf32>
    %95 = arith.addf %86, %94 : vector<2x48xf32>
    %c1_i32_36 = arith.constant 1 : i32
    %96 = vector.broadcast %c1_i32_36 : i32 to vector<2x48xi32>
    %97 = arith.cmpi eq, %0, %96 : vector<2x48xi32>
    %c4_37 = arith.constant 4 : index
    %c1_38 = arith.constant 1 : index
    %98 = memref.load %arg0[%c4_37, %c1_38] : memref<8x2xi32, #tpu.memory_space<smem>>
    %99 = vector.broadcast %98 : i32 to vector<2x48xi32>
    %100 = arith.cmpi eq, %1, %99 : vector<2x48xi32>
    %101 = arith.andi %97, %100 : vector<2x48xi1>
    %102 = arith.extui %101 : vector<2x48xi1> to vector<2x48xi32>
    %103 = arith.sitofp %102 : vector<2x48xi32> to vector<2x48xf32>
    %104 = arith.addf %95, %103 : vector<2x48xf32>
    %cst_39 = arith.constant 0.000000e+00 : f32
    %105 = vector.broadcast %cst_39 : f32 to vector<2x48xf32>
    %c0_i32_40 = arith.constant 0 : i32
    %106 = vector.broadcast %c0_i32_40 : i32 to vector<2x48xi32>
    %107 = arith.cmpi eq, %0, %106 : vector<2x48xi32>
    %c5 = arith.constant 5 : index
    %c0_41 = arith.constant 0 : index
    %108 = memref.load %arg0[%c5, %c0_41] : memref<8x2xi32, #tpu.memory_space<smem>>
    %109 = vector.broadcast %108 : i32 to vector<2x48xi32>
    %110 = arith.cmpi eq, %1, %109 : vector<2x48xi32>
    %111 = arith.andi %107, %110 : vector<2x48xi1>
    %112 = arith.extui %111 : vector<2x48xi1> to vector<2x48xi32>
    %113 = arith.sitofp %112 : vector<2x48xi32> to vector<2x48xf32>
    %114 = arith.addf %105, %113 : vector<2x48xf32>
    %c1_i32_42 = arith.constant 1 : i32
    %115 = vector.broadcast %c1_i32_42 : i32 to vector<2x48xi32>
    %116 = arith.cmpi eq, %0, %115 : vector<2x48xi32>
    %c5_43 = arith.constant 5 : index
    %c1_44 = arith.constant 1 : index
    %117 = memref.load %arg0[%c5_43, %c1_44] : memref<8x2xi32, #tpu.memory_space<smem>>
    %118 = vector.broadcast %117 : i32 to vector<2x48xi32>
    %119 = arith.cmpi eq, %1, %118 : vector<2x48xi32>
    %120 = arith.andi %116, %119 : vector<2x48xi1>
    %121 = arith.extui %120 : vector<2x48xi1> to vector<2x48xi32>
    %122 = arith.sitofp %121 : vector<2x48xi32> to vector<2x48xf32>
    %123 = arith.addf %114, %122 : vector<2x48xf32>
    %cst_45 = arith.constant 0.000000e+00 : f32
    %124 = vector.broadcast %cst_45 : f32 to vector<2x48xf32>
    %c0_i32_46 = arith.constant 0 : i32
    %125 = vector.broadcast %c0_i32_46 : i32 to vector<2x48xi32>
    %126 = arith.cmpi eq, %0, %125 : vector<2x48xi32>
    %c6 = arith.constant 6 : index
    %c0_47 = arith.constant 0 : index
    %127 = memref.load %arg0[%c6, %c0_47] : memref<8x2xi32, #tpu.memory_space<smem>>
    %128 = vector.broadcast %127 : i32 to vector<2x48xi32>
    %129 = arith.cmpi eq, %1, %128 : vector<2x48xi32>
    %130 = arith.andi %126, %129 : vector<2x48xi1>
    %131 = arith.extui %130 : vector<2x48xi1> to vector<2x48xi32>
    %132 = arith.sitofp %131 : vector<2x48xi32> to vector<2x48xf32>
    %133 = arith.addf %124, %132 : vector<2x48xf32>
    %c1_i32_48 = arith.constant 1 : i32
    %134 = vector.broadcast %c1_i32_48 : i32 to vector<2x48xi32>
    %135 = arith.cmpi eq, %0, %134 : vector<2x48xi32>
    %c6_49 = arith.constant 6 : index
    %c1_50 = arith.constant 1 : index
    %136 = memref.load %arg0[%c6_49, %c1_50] : memref<8x2xi32, #tpu.memory_space<smem>>
    %137 = vector.broadcast %136 : i32 to vector<2x48xi32>
    %138 = arith.cmpi eq, %1, %137 : vector<2x48xi32>
    %139 = arith.andi %135, %138 : vector<2x48xi1>
    %140 = arith.extui %139 : vector<2x48xi1> to vector<2x48xi32>
    %141 = arith.sitofp %140 : vector<2x48xi32> to vector<2x48xf32>
    %142 = arith.addf %133, %141 : vector<2x48xf32>
    %cst_51 = arith.constant 0.000000e+00 : f32
    %143 = vector.broadcast %cst_51 : f32 to vector<2x48xf32>
    %c0_i32_52 = arith.constant 0 : i32
    %144 = vector.broadcast %c0_i32_52 : i32 to vector<2x48xi32>
    %145 = arith.cmpi eq, %0, %144 : vector<2x48xi32>
    %c7 = arith.constant 7 : index
    %c0_53 = arith.constant 0 : index
    %146 = memref.load %arg0[%c7, %c0_53] : memref<8x2xi32, #tpu.memory_space<smem>>
    %147 = vector.broadcast %146 : i32 to vector<2x48xi32>
    %148 = arith.cmpi eq, %1, %147 : vector<2x48xi32>
    %149 = arith.andi %145, %148 : vector<2x48xi1>
    %150 = arith.extui %149 : vector<2x48xi1> to vector<2x48xi32>
    %151 = arith.sitofp %150 : vector<2x48xi32> to vector<2x48xf32>
    %152 = arith.addf %143, %151 : vector<2x48xf32>
    %c1_i32_54 = arith.constant 1 : i32
    %153 = vector.broadcast %c1_i32_54 : i32 to vector<2x48xi32>
    %154 = arith.cmpi eq, %0, %153 : vector<2x48xi32>
    %c7_55 = arith.constant 7 : index
    %c1_56 = arith.constant 1 : index
    %155 = memref.load %arg0[%c7_55, %c1_56] : memref<8x2xi32, #tpu.memory_space<smem>>
    %156 = vector.broadcast %155 : i32 to vector<2x48xi32>
    %157 = arith.cmpi eq, %1, %156 : vector<2x48xi32>
    %158 = arith.andi %154, %157 : vector<2x48xi1>
    %159 = arith.extui %158 : vector<2x48xi1> to vector<2x48xi32>
    %160 = arith.sitofp %159 : vector<2x48xi32> to vector<2x48xf32>
    %161 = arith.addf %152, %160 : vector<2x48xf32>
    %cst_57 = arith.constant dense<0.000000e+00> : vector<2x96xf32>
    %162 = tpu.matmul %28, %5, %cst_57 {dimension_numbers = #tpu.dot_dimension_numbers<[1], [0], [0], [1], [0, 0, 1, 1], [], []>} : vector<2x48xf32>, vector<48x96xf32>, vector<2x96xf32> -> vector<2x96xf32>
    %163 = vector.broadcast %8 : vector<1x96xf32> to vector<2x96xf32>
    %164 = arith.addf %162, %163 : vector<2x96xf32>
    %cst_58 = arith.constant dense<0.000000e+00> : vector<2x96xf32>
    %165 = tpu.matmul %47, %5, %cst_58 {dimension_numbers = #tpu.dot_dimension_numbers<[1], [0], [0], [1], [0, 0, 1, 1], [], []>} : vector<2x48xf32>, vector<48x96xf32>, vector<2x96xf32> -> vector<2x96xf32>
    %166 = vector.broadcast %8 : vector<1x96xf32> to vector<2x96xf32>
    %167 = arith.addf %165, %166 : vector<2x96xf32>
    %cst_59 = arith.constant dense<0.000000e+00> : vector<2x96xf32>
    %168 = tpu.matmul %66, %5, %cst_59 {dimension_numbers = #tpu.dot_dimension_numbers<[1], [0], [0], [1], [0, 0, 1, 1], [], []>} : vector<2x48xf32>, vector<48x96xf32>, vector<2x96xf32> -> vector<2x96xf32>
    %169 = vector.broadcast %8 : vector<1x96xf32> to vector<2x96xf32>
    %170 = arith.addf %168, %169 : vector<2x96xf32>
    %cst_60 = arith.constant dense<0.000000e+00> : vector<2x96xf32>
    %171 = tpu.matmul %85, %5, %cst_60 {dimension_numbers = #tpu.dot_dimension_numbers<[1], [0], [0], [1], [0, 0, 1, 1], [], []>} : vector<2x48xf32>, vector<48x96xf32>, vector<2x96xf32> -> vector<2x96xf32>
    %172 = vector.broadcast %8 : vector<1x96xf32> to vector<2x96xf32>
    %173 = arith.addf %171, %172 : vector<2x96xf32>
    %cst_61 = arith.constant dense<0.000000e+00> : vector<2x96xf32>
    %174 = tpu.matmul %104, %5, %cst_61 {dimension_numbers = #tpu.dot_dimension_numbers<[1], [0], [0], [1], [0, 0, 1, 1], [], []>} : vector<2x48xf32>, vector<48x96xf32>, vector<2x96xf32> -> vector<2x96xf32>
    %175 = vector.broadcast %8 : vector<1x96xf32> to vector<2x96xf32>
    %176 = arith.addf %174, %175 : vector<2x96xf32>
    %cst_62 = arith.constant dense<0.000000e+00> : vector<2x96xf32>
    %177 = tpu.matmul %123, %5, %cst_62 {dimension_numbers = #tpu.dot_dimension_numbers<[1], [0], [0], [1], [0, 0, 1, 1], [], []>} : vector<2x48xf32>, vector<48x96xf32>, vector<2x96xf32> -> vector<2x96xf32>
    %178 = vector.broadcast %8 : vector<1x96xf32> to vector<2x96xf32>
    %179 = arith.addf %177, %178 : vector<2x96xf32>
    %cst_63 = arith.constant dense<0.000000e+00> : vector<2x96xf32>
    %180 = tpu.matmul %142, %5, %cst_63 {dimension_numbers = #tpu.dot_dimension_numbers<[1], [0], [0], [1], [0, 0, 1, 1], [], []>} : vector<2x48xf32>, vector<48x96xf32>, vector<2x96xf32> -> vector<2x96xf32>
    %181 = vector.broadcast %8 : vector<1x96xf32> to vector<2x96xf32>
    %182 = arith.addf %180, %181 : vector<2x96xf32>
    %cst_64 = arith.constant dense<0.000000e+00> : vector<2x96xf32>
    %183 = tpu.matmul %161, %5, %cst_64 {dimension_numbers = #tpu.dot_dimension_numbers<[1], [0], [0], [1], [0, 0, 1, 1], [], []>} : vector<2x48xf32>, vector<48x96xf32>, vector<2x96xf32> -> vector<2x96xf32>
    %184 = vector.broadcast %8 : vector<1x96xf32> to vector<2x96xf32>
    %185 = arith.addf %183, %184 : vector<2x96xf32>
    %cst_65 = arith.constant dense<0.000000e+00> : vector<2x96xf32>
    %186 = tpu.matmul %28, %7, %cst_65 {dimension_numbers = #tpu.dot_dimension_numbers<[1], [0], [0], [1], [0, 0, 1, 1], [], []>} : vector<2x48xf32>, vector<48x96xf32>, vector<2x96xf32> -> vector<2x96xf32>
    %187 = vector.broadcast %9 : vector<1x96xf32> to vector<2x96xf32>
    %188 = arith.addf %186, %187 : vector<2x96xf32>
    %cst_66 = arith.constant dense<0.000000e+00> : vector<2x96xf32>
    %189 = tpu.matmul %47, %7, %cst_66 {dimension_numbers = #tpu.dot_dimension_numbers<[1], [0], [0], [1], [0, 0, 1, 1], [], []>} : vector<2x48xf32>, vector<48x96xf32>, vector<2x96xf32> -> vector<2x96xf32>
    %190 = vector.broadcast %9 : vector<1x96xf32> to vector<2x96xf32>
    %191 = arith.addf %189, %190 : vector<2x96xf32>
    %cst_67 = arith.constant dense<0.000000e+00> : vector<2x96xf32>
    %192 = tpu.matmul %66, %7, %cst_67 {dimension_numbers = #tpu.dot_dimension_numbers<[1], [0], [0], [1], [0, 0, 1, 1], [], []>} : vector<2x48xf32>, vector<48x96xf32>, vector<2x96xf32> -> vector<2x96xf32>
    %193 = vector.broadcast %9 : vector<1x96xf32> to vector<2x96xf32>
    %194 = arith.addf %192, %193 : vector<2x96xf32>
    %cst_68 = arith.constant dense<0.000000e+00> : vector<2x96xf32>
    %195 = tpu.matmul %85, %7, %cst_68 {dimension_numbers = #tpu.dot_dimension_numbers<[1], [0], [0], [1], [0, 0, 1, 1], [], []>} : vector<2x48xf32>, vector<48x96xf32>, vector<2x96xf32> -> vector<2x96xf32>
    %196 = vector.broadcast %9 : vector<1x96xf32> to vector<2x96xf32>
    %197 = arith.addf %195, %196 : vector<2x96xf32>
    %cst_69 = arith.constant dense<0.000000e+00> : vector<2x96xf32>
    %198 = tpu.matmul %104, %7, %cst_69 {dimension_numbers = #tpu.dot_dimension_numbers<[1], [0], [0], [1], [0, 0, 1, 1], [], []>} : vector<2x48xf32>, vector<48x96xf32>, vector<2x96xf32> -> vector<2x96xf32>
    %199 = vector.broadcast %9 : vector<1x96xf32> to vector<2x96xf32>
    %200 = arith.addf %198, %199 : vector<2x96xf32>
    %cst_70 = arith.constant dense<0.000000e+00> : vector<2x96xf32>
    %201 = tpu.matmul %123, %7, %cst_70 {dimension_numbers = #tpu.dot_dimension_numbers<[1], [0], [0], [1], [0, 0, 1, 1], [], []>} : vector<2x48xf32>, vector<48x96xf32>, vector<2x96xf32> -> vector<2x96xf32>
    %202 = vector.broadcast %9 : vector<1x96xf32> to vector<2x96xf32>
    %203 = arith.addf %201, %202 : vector<2x96xf32>
    %cst_71 = arith.constant dense<0.000000e+00> : vector<2x96xf32>
    %204 = tpu.matmul %142, %7, %cst_71 {dimension_numbers = #tpu.dot_dimension_numbers<[1], [0], [0], [1], [0, 0, 1, 1], [], []>} : vector<2x48xf32>, vector<48x96xf32>, vector<2x96xf32> -> vector<2x96xf32>
    %205 = vector.broadcast %9 : vector<1x96xf32> to vector<2x96xf32>
    %206 = arith.addf %204, %205 : vector<2x96xf32>
    %cst_72 = arith.constant dense<0.000000e+00> : vector<2x96xf32>
    %207 = tpu.matmul %161, %7, %cst_72 {dimension_numbers = #tpu.dot_dimension_numbers<[1], [0], [0], [1], [0, 0, 1, 1], [], []>} : vector<2x48xf32>, vector<48x96xf32>, vector<2x96xf32> -> vector<2x96xf32>
    %208 = vector.broadcast %9 : vector<1x96xf32> to vector<2x96xf32>
    %209 = arith.addf %207, %208 : vector<2x96xf32>
    %c0_73 = arith.constant 0 : index
    %c0_74 = arith.constant 0 : index
    %210 = vector.load %arg3[%c0_73, %c0_74] : memref<32x96xf32, #tpu.memory_space<vmem>>, vector<32x96xf32>
    %c0_75 = arith.constant 0 : index
    %c0_76 = arith.constant 0 : index
    %211 = vector.load %arg5[%c0_75, %c0_76] : memref<1x96xf32, #tpu.memory_space<vmem>>, vector<1x96xf32>
    %cst_77 = arith.constant 0.000000e+00 : f32
    %212 = vector.broadcast %cst_77 : f32 to vector<2x32xf32>
    %cst_78 = arith.constant dense<0.000000e+00> : vector<2x96xf32>
    %213 = tpu.matmul %212, %210, %cst_78 {dimension_numbers = #tpu.dot_dimension_numbers<[1], [0], [0], [1], [0, 0, 1, 1], [], []>} : vector<2x32xf32>, vector<32x96xf32>, vector<2x96xf32> -> vector<2x96xf32>
    %214 = vector.broadcast %211 : vector<1x96xf32> to vector<2x96xf32>
    %215 = arith.addf %213, %214 : vector<2x96xf32>
    %216 = vector.extract_strided_slice %164 {offsets = [0, 0], sizes = [2, 32], strides = [1, 1]} : vector<2x96xf32> to vector<2x32xf32>
    %217 = vector.extract_strided_slice %215 {offsets = [0, 0], sizes = [2, 32], strides = [1, 1]} : vector<2x96xf32> to vector<2x32xf32>
    %218 = arith.addf %216, %217 : vector<2x32xf32>
    %219 = arith.negf %218 : vector<2x32xf32>
    %220 = math.exp %219 : vector<2x32xf32>
    %cst_79 = arith.constant 1.000000e+00 : f32
    %221 = vector.broadcast %cst_79 : f32 to vector<2x32xf32>
    %222 = arith.addf %221, %220 : vector<2x32xf32>
    %223 = arith.divf %221, %222 : vector<2x32xf32>
    %224 = vector.extract_strided_slice %164 {offsets = [0, 32], sizes = [2, 32], strides = [1, 1]} : vector<2x96xf32> to vector<2x32xf32>
    %225 = vector.extract_strided_slice %215 {offsets = [0, 32], sizes = [2, 32], strides = [1, 1]} : vector<2x96xf32> to vector<2x32xf32>
    %226 = arith.addf %224, %225 : vector<2x32xf32>
    %227 = arith.negf %226 : vector<2x32xf32>
    %228 = math.exp %227 : vector<2x32xf32>
    %cst_80 = arith.constant 1.000000e+00 : f32
    %229 = vector.broadcast %cst_80 : f32 to vector<2x32xf32>
    %230 = arith.addf %229, %228 : vector<2x32xf32>
    %231 = arith.divf %229, %230 : vector<2x32xf32>
    %232 = vector.extract_strided_slice %164 {offsets = [0, 64], sizes = [2, 32], strides = [1, 1]} : vector<2x96xf32> to vector<2x32xf32>
    %233 = vector.extract_strided_slice %215 {offsets = [0, 64], sizes = [2, 32], strides = [1, 1]} : vector<2x96xf32> to vector<2x32xf32>
    %234 = arith.mulf %223, %233 : vector<2x32xf32>
    %235 = arith.addf %232, %234 : vector<2x32xf32>
    %236 = math.tanh %235 : vector<2x32xf32>
    %cst_81 = arith.constant 1.000000e+00 : f32
    %237 = vector.broadcast %cst_81 : f32 to vector<2x32xf32>
    %238 = arith.subf %237, %231 : vector<2x32xf32>
    %239 = arith.mulf %238, %236 : vector<2x32xf32>
    %240 = arith.mulf %231, %212 : vector<2x32xf32>
    %241 = arith.addf %239, %240 : vector<2x32xf32>
    %cst_82 = arith.constant dense<0.000000e+00> : vector<2x96xf32>
    %242 = tpu.matmul %241, %210, %cst_82 {dimension_numbers = #tpu.dot_dimension_numbers<[1], [0], [0], [1], [0, 0, 1, 1], [], []>} : vector<2x32xf32>, vector<32x96xf32>, vector<2x96xf32> -> vector<2x96xf32>
    %243 = vector.broadcast %211 : vector<1x96xf32> to vector<2x96xf32>
    %244 = arith.addf %242, %243 : vector<2x96xf32>
    %245 = vector.extract_strided_slice %167 {offsets = [0, 0], sizes = [2, 32], strides = [1, 1]} : vector<2x96xf32> to vector<2x32xf32>
    %246 = vector.extract_strided_slice %244 {offsets = [0, 0], sizes = [2, 32], strides = [1, 1]} : vector<2x96xf32> to vector<2x32xf32>
    %247 = arith.addf %245, %246 : vector<2x32xf32>
    %248 = arith.negf %247 : vector<2x32xf32>
    %249 = math.exp %248 : vector<2x32xf32>
    %cst_83 = arith.constant 1.000000e+00 : f32
    %250 = vector.broadcast %cst_83 : f32 to vector<2x32xf32>
    %251 = arith.addf %250, %249 : vector<2x32xf32>
    %252 = arith.divf %250, %251 : vector<2x32xf32>
    %253 = vector.extract_strided_slice %167 {offsets = [0, 32], sizes = [2, 32], strides = [1, 1]} : vector<2x96xf32> to vector<2x32xf32>
    %254 = vector.extract_strided_slice %244 {offsets = [0, 32], sizes = [2, 32], strides = [1, 1]} : vector<2x96xf32> to vector<2x32xf32>
    %255 = arith.addf %253, %254 : vector<2x32xf32>
    %256 = arith.negf %255 : vector<2x32xf32>
    %257 = math.exp %256 : vector<2x32xf32>
    %cst_84 = arith.constant 1.000000e+00 : f32
    %258 = vector.broadcast %cst_84 : f32 to vector<2x32xf32>
    %259 = arith.addf %258, %257 : vector<2x32xf32>
    %260 = arith.divf %258, %259 : vector<2x32xf32>
    %261 = vector.extract_strided_slice %167 {offsets = [0, 64], sizes = [2, 32], strides = [1, 1]} : vector<2x96xf32> to vector<2x32xf32>
    %262 = vector.extract_strided_slice %244 {offsets = [0, 64], sizes = [2, 32], strides = [1, 1]} : vector<2x96xf32> to vector<2x32xf32>
    %263 = arith.mulf %252, %262 : vector<2x32xf32>
    %264 = arith.addf %261, %263 : vector<2x32xf32>
    %265 = math.tanh %264 : vector<2x32xf32>
    %cst_85 = arith.constant 1.000000e+00 : f32
    %266 = vector.broadcast %cst_85 : f32 to vector<2x32xf32>
    %267 = arith.subf %266, %260 : vector<2x32xf32>
    %268 = arith.mulf %267, %265 : vector<2x32xf32>
    %269 = arith.mulf %260, %241 : vector<2x32xf32>
    %270 = arith.addf %268, %269 : vector<2x32xf32>
    %cst_86 = arith.constant dense<0.000000e+00> : vector<2x96xf32>
    %271 = tpu.matmul %270, %210, %cst_86 {dimension_numbers = #tpu.dot_dimension_numbers<[1], [0], [0], [1], [0, 0, 1, 1], [], []>} : vector<2x32xf32>, vector<32x96xf32>, vector<2x96xf32> -> vector<2x96xf32>
    %272 = vector.broadcast %211 : vector<1x96xf32> to vector<2x96xf32>
    %273 = arith.addf %271, %272 : vector<2x96xf32>
    %274 = vector.extract_strided_slice %170 {offsets = [0, 0], sizes = [2, 32], strides = [1, 1]} : vector<2x96xf32> to vector<2x32xf32>
    %275 = vector.extract_strided_slice %273 {offsets = [0, 0], sizes = [2, 32], strides = [1, 1]} : vector<2x96xf32> to vector<2x32xf32>
    %276 = arith.addf %274, %275 : vector<2x32xf32>
    %277 = arith.negf %276 : vector<2x32xf32>
    %278 = math.exp %277 : vector<2x32xf32>
    %cst_87 = arith.constant 1.000000e+00 : f32
    %279 = vector.broadcast %cst_87 : f32 to vector<2x32xf32>
    %280 = arith.addf %279, %278 : vector<2x32xf32>
    %281 = arith.divf %279, %280 : vector<2x32xf32>
    %282 = vector.extract_strided_slice %170 {offsets = [0, 32], sizes = [2, 32], strides = [1, 1]} : vector<2x96xf32> to vector<2x32xf32>
    %283 = vector.extract_strided_slice %273 {offsets = [0, 32], sizes = [2, 32], strides = [1, 1]} : vector<2x96xf32> to vector<2x32xf32>
    %284 = arith.addf %282, %283 : vector<2x32xf32>
    %285 = arith.negf %284 : vector<2x32xf32>
    %286 = math.exp %285 : vector<2x32xf32>
    %cst_88 = arith.constant 1.000000e+00 : f32
    %287 = vector.broadcast %cst_88 : f32 to vector<2x32xf32>
    %288 = arith.addf %287, %286 : vector<2x32xf32>
    %289 = arith.divf %287, %288 : vector<2x32xf32>
    %290 = vector.extract_strided_slice %170 {offsets = [0, 64], sizes = [2, 32], strides = [1, 1]} : vector<2x96xf32> to vector<2x32xf32>
    %291 = vector.extract_strided_slice %273 {offsets = [0, 64], sizes = [2, 32], strides = [1, 1]} : vector<2x96xf32> to vector<2x32xf32>
    %292 = arith.mulf %281, %291 : vector<2x32xf32>
    %293 = arith.addf %290, %292 : vector<2x32xf32>
    %294 = math.tanh %293 : vector<2x32xf32>
    %cst_89 = arith.constant 1.000000e+00 : f32
    %295 = vector.broadcast %cst_89 : f32 to vector<2x32xf32>
    %296 = arith.subf %295, %289 : vector<2x32xf32>
    %297 = arith.mulf %296, %294 : vector<2x32xf32>
    %298 = arith.mulf %289, %270 : vector<2x32xf32>
    %299 = arith.addf %297, %298 : vector<2x32xf32>
    %cst_90 = arith.constant dense<0.000000e+00> : vector<2x96xf32>
    %300 = tpu.matmul %299, %210, %cst_90 {dimension_numbers = #tpu.dot_dimension_numbers<[1], [0], [0], [1], [0, 0, 1, 1], [], []>} : vector<2x32xf32>, vector<32x96xf32>, vector<2x96xf32> -> vector<2x96xf32>
    %301 = vector.broadcast %211 : vector<1x96xf32> to vector<2x96xf32>
    %302 = arith.addf %300, %301 : vector<2x96xf32>
    %303 = vector.extract_strided_slice %173 {offsets = [0, 0], sizes = [2, 32], strides = [1, 1]} : vector<2x96xf32> to vector<2x32xf32>
    %304 = vector.extract_strided_slice %302 {offsets = [0, 0], sizes = [2, 32], strides = [1, 1]} : vector<2x96xf32> to vector<2x32xf32>
    %305 = arith.addf %303, %304 : vector<2x32xf32>
    %306 = arith.negf %305 : vector<2x32xf32>
    %307 = math.exp %306 : vector<2x32xf32>
    %cst_91 = arith.constant 1.000000e+00 : f32
    %308 = vector.broadcast %cst_91 : f32 to vector<2x32xf32>
    %309 = arith.addf %308, %307 : vector<2x32xf32>
    %310 = arith.divf %308, %309 : vector<2x32xf32>
    %311 = vector.extract_strided_slice %173 {offsets = [0, 32], sizes = [2, 32], strides = [1, 1]} : vector<2x96xf32> to vector<2x32xf32>
    %312 = vector.extract_strided_slice %302 {offsets = [0, 32], sizes = [2, 32], strides = [1, 1]} : vector<2x96xf32> to vector<2x32xf32>
    %313 = arith.addf %311, %312 : vector<2x32xf32>
    %314 = arith.negf %313 : vector<2x32xf32>
    %315 = math.exp %314 : vector<2x32xf32>
    %cst_92 = arith.constant 1.000000e+00 : f32
    %316 = vector.broadcast %cst_92 : f32 to vector<2x32xf32>
    %317 = arith.addf %316, %315 : vector<2x32xf32>
    %318 = arith.divf %316, %317 : vector<2x32xf32>
    %319 = vector.extract_strided_slice %173 {offsets = [0, 64], sizes = [2, 32], strides = [1, 1]} : vector<2x96xf32> to vector<2x32xf32>
    %320 = vector.extract_strided_slice %302 {offsets = [0, 64], sizes = [2, 32], strides = [1, 1]} : vector<2x96xf32> to vector<2x32xf32>
    %321 = arith.mulf %310, %320 : vector<2x32xf32>
    %322 = arith.addf %319, %321 : vector<2x32xf32>
    %323 = math.tanh %322 : vector<2x32xf32>
    %cst_93 = arith.constant 1.000000e+00 : f32
    %324 = vector.broadcast %cst_93 : f32 to vector<2x32xf32>
    %325 = arith.subf %324, %318 : vector<2x32xf32>
    %326 = arith.mulf %325, %323 : vector<2x32xf32>
    %327 = arith.mulf %318, %299 : vector<2x32xf32>
    %328 = arith.addf %326, %327 : vector<2x32xf32>
    %cst_94 = arith.constant dense<0.000000e+00> : vector<2x96xf32>
    %329 = tpu.matmul %328, %210, %cst_94 {dimension_numbers = #tpu.dot_dimension_numbers<[1], [0], [0], [1], [0, 0, 1, 1], [], []>} : vector<2x32xf32>, vector<32x96xf32>, vector<2x96xf32> -> vector<2x96xf32>
    %330 = vector.broadcast %211 : vector<1x96xf32> to vector<2x96xf32>
    %331 = arith.addf %329, %330 : vector<2x96xf32>
    %332 = vector.extract_strided_slice %176 {offsets = [0, 0], sizes = [2, 32], strides = [1, 1]} : vector<2x96xf32> to vector<2x32xf32>
    %333 = vector.extract_strided_slice %331 {offsets = [0, 0], sizes = [2, 32], strides = [1, 1]} : vector<2x96xf32> to vector<2x32xf32>
    %334 = arith.addf %332, %333 : vector<2x32xf32>
    %335 = arith.negf %334 : vector<2x32xf32>
    %336 = math.exp %335 : vector<2x32xf32>
    %cst_95 = arith.constant 1.000000e+00 : f32
    %337 = vector.broadcast %cst_95 : f32 to vector<2x32xf32>
    %338 = arith.addf %337, %336 : vector<2x32xf32>
    %339 = arith.divf %337, %338 : vector<2x32xf32>
    %340 = vector.extract_strided_slice %176 {offsets = [0, 32], sizes = [2, 32], strides = [1, 1]} : vector<2x96xf32> to vector<2x32xf32>
    %341 = vector.extract_strided_slice %331 {offsets = [0, 32], sizes = [2, 32], strides = [1, 1]} : vector<2x96xf32> to vector<2x32xf32>
    %342 = arith.addf %340, %341 : vector<2x32xf32>
    %343 = arith.negf %342 : vector<2x32xf32>
    %344 = math.exp %343 : vector<2x32xf32>
    %cst_96 = arith.constant 1.000000e+00 : f32
    %345 = vector.broadcast %cst_96 : f32 to vector<2x32xf32>
    %346 = arith.addf %345, %344 : vector<2x32xf32>
    %347 = arith.divf %345, %346 : vector<2x32xf32>
    %348 = vector.extract_strided_slice %176 {offsets = [0, 64], sizes = [2, 32], strides = [1, 1]} : vector<2x96xf32> to vector<2x32xf32>
    %349 = vector.extract_strided_slice %331 {offsets = [0, 64], sizes = [2, 32], strides = [1, 1]} : vector<2x96xf32> to vector<2x32xf32>
    %350 = arith.mulf %339, %349 : vector<2x32xf32>
    %351 = arith.addf %348, %350 : vector<2x32xf32>
    %352 = math.tanh %351 : vector<2x32xf32>
    %cst_97 = arith.constant 1.000000e+00 : f32
    %353 = vector.broadcast %cst_97 : f32 to vector<2x32xf32>
    %354 = arith.subf %353, %347 : vector<2x32xf32>
    %355 = arith.mulf %354, %352 : vector<2x32xf32>
    %356 = arith.mulf %347, %328 : vector<2x32xf32>
    %357 = arith.addf %355, %356 : vector<2x32xf32>
    %cst_98 = arith.constant dense<0.000000e+00> : vector<2x96xf32>
    %358 = tpu.matmul %357, %210, %cst_98 {dimension_numbers = #tpu.dot_dimension_numbers<[1], [0], [0], [1], [0, 0, 1, 1], [], []>} : vector<2x32xf32>, vector<32x96xf32>, vector<2x96xf32> -> vector<2x96xf32>
    %359 = vector.broadcast %211 : vector<1x96xf32> to vector<2x96xf32>
    %360 = arith.addf %358, %359 : vector<2x96xf32>
    %361 = vector.extract_strided_slice %179 {offsets = [0, 0], sizes = [2, 32], strides = [1, 1]} : vector<2x96xf32> to vector<2x32xf32>
    %362 = vector.extract_strided_slice %360 {offsets = [0, 0], sizes = [2, 32], strides = [1, 1]} : vector<2x96xf32> to vector<2x32xf32>
    %363 = arith.addf %361, %362 : vector<2x32xf32>
    %364 = arith.negf %363 : vector<2x32xf32>
    %365 = math.exp %364 : vector<2x32xf32>
    %cst_99 = arith.constant 1.000000e+00 : f32
    %366 = vector.broadcast %cst_99 : f32 to vector<2x32xf32>
    %367 = arith.addf %366, %365 : vector<2x32xf32>
    %368 = arith.divf %366, %367 : vector<2x32xf32>
    %369 = vector.extract_strided_slice %179 {offsets = [0, 32], sizes = [2, 32], strides = [1, 1]} : vector<2x96xf32> to vector<2x32xf32>
    %370 = vector.extract_strided_slice %360 {offsets = [0, 32], sizes = [2, 32], strides = [1, 1]} : vector<2x96xf32> to vector<2x32xf32>
    %371 = arith.addf %369, %370 : vector<2x32xf32>
    %372 = arith.negf %371 : vector<2x32xf32>
    %373 = math.exp %372 : vector<2x32xf32>
    %cst_100 = arith.constant 1.000000e+00 : f32
    %374 = vector.broadcast %cst_100 : f32 to vector<2x32xf32>
    %375 = arith.addf %374, %373 : vector<2x32xf32>
    %376 = arith.divf %374, %375 : vector<2x32xf32>
    %377 = vector.extract_strided_slice %179 {offsets = [0, 64], sizes = [2, 32], strides = [1, 1]} : vector<2x96xf32> to vector<2x32xf32>
    %378 = vector.extract_strided_slice %360 {offsets = [0, 64], sizes = [2, 32], strides = [1, 1]} : vector<2x96xf32> to vector<2x32xf32>
    %379 = arith.mulf %368, %378 : vector<2x32xf32>
    %380 = arith.addf %377, %379 : vector<2x32xf32>
    %381 = math.tanh %380 : vector<2x32xf32>
    %cst_101 = arith.constant 1.000000e+00 : f32
    %382 = vector.broadcast %cst_101 : f32 to vector<2x32xf32>
    %383 = arith.subf %382, %376 : vector<2x32xf32>
    %384 = arith.mulf %383, %381 : vector<2x32xf32>
    %385 = arith.mulf %376, %357 : vector<2x32xf32>
    %386 = arith.addf %384, %385 : vector<2x32xf32>
    %cst_102 = arith.constant dense<0.000000e+00> : vector<2x96xf32>
    %387 = tpu.matmul %386, %210, %cst_102 {dimension_numbers = #tpu.dot_dimension_numbers<[1], [0], [0], [1], [0, 0, 1, 1], [], []>} : vector<2x32xf32>, vector<32x96xf32>, vector<2x96xf32> -> vector<2x96xf32>
    %388 = vector.broadcast %211 : vector<1x96xf32> to vector<2x96xf32>
    %389 = arith.addf %387, %388 : vector<2x96xf32>
    %390 = vector.extract_strided_slice %182 {offsets = [0, 0], sizes = [2, 32], strides = [1, 1]} : vector<2x96xf32> to vector<2x32xf32>
    %391 = vector.extract_strided_slice %389 {offsets = [0, 0], sizes = [2, 32], strides = [1, 1]} : vector<2x96xf32> to vector<2x32xf32>
    %392 = arith.addf %390, %391 : vector<2x32xf32>
    %393 = arith.negf %392 : vector<2x32xf32>
    %394 = math.exp %393 : vector<2x32xf32>
    %cst_103 = arith.constant 1.000000e+00 : f32
    %395 = vector.broadcast %cst_103 : f32 to vector<2x32xf32>
    %396 = arith.addf %395, %394 : vector<2x32xf32>
    %397 = arith.divf %395, %396 : vector<2x32xf32>
    %398 = vector.extract_strided_slice %182 {offsets = [0, 32], sizes = [2, 32], strides = [1, 1]} : vector<2x96xf32> to vector<2x32xf32>
    %399 = vector.extract_strided_slice %389 {offsets = [0, 32], sizes = [2, 32], strides = [1, 1]} : vector<2x96xf32> to vector<2x32xf32>
    %400 = arith.addf %398, %399 : vector<2x32xf32>
    %401 = arith.negf %400 : vector<2x32xf32>
    %402 = math.exp %401 : vector<2x32xf32>
    %cst_104 = arith.constant 1.000000e+00 : f32
    %403 = vector.broadcast %cst_104 : f32 to vector<2x32xf32>
    %404 = arith.addf %403, %402 : vector<2x32xf32>
    %405 = arith.divf %403, %404 : vector<2x32xf32>
    %406 = vector.extract_strided_slice %182 {offsets = [0, 64], sizes = [2, 32], strides = [1, 1]} : vector<2x96xf32> to vector<2x32xf32>
    %407 = vector.extract_strided_slice %389 {offsets = [0, 64], sizes = [2, 32], strides = [1, 1]} : vector<2x96xf32> to vector<2x32xf32>
    %408 = arith.mulf %397, %407 : vector<2x32xf32>
    %409 = arith.addf %406, %408 : vector<2x32xf32>
    %410 = math.tanh %409 : vector<2x32xf32>
    %cst_105 = arith.constant 1.000000e+00 : f32
    %411 = vector.broadcast %cst_105 : f32 to vector<2x32xf32>
    %412 = arith.subf %411, %405 : vector<2x32xf32>
    %413 = arith.mulf %412, %410 : vector<2x32xf32>
    %414 = arith.mulf %405, %386 : vector<2x32xf32>
    %415 = arith.addf %413, %414 : vector<2x32xf32>
    %cst_106 = arith.constant dense<0.000000e+00> : vector<2x96xf32>
    %416 = tpu.matmul %415, %210, %cst_106 {dimension_numbers = #tpu.dot_dimension_numbers<[1], [0], [0], [1], [0, 0, 1, 1], [], []>} : vector<2x32xf32>, vector<32x96xf32>, vector<2x96xf32> -> vector<2x96xf32>
    %417 = vector.broadcast %211 : vector<1x96xf32> to vector<2x96xf32>
    %418 = arith.addf %416, %417 : vector<2x96xf32>
    %419 = vector.extract_strided_slice %185 {offsets = [0, 0], sizes = [2, 32], strides = [1, 1]} : vector<2x96xf32> to vector<2x32xf32>
    %420 = vector.extract_strided_slice %418 {offsets = [0, 0], sizes = [2, 32], strides = [1, 1]} : vector<2x96xf32> to vector<2x32xf32>
    %421 = arith.addf %419, %420 : vector<2x32xf32>
    %422 = arith.negf %421 : vector<2x32xf32>
    %423 = math.exp %422 : vector<2x32xf32>
    %cst_107 = arith.constant 1.000000e+00 : f32
    %424 = vector.broadcast %cst_107 : f32 to vector<2x32xf32>
    %425 = arith.addf %424, %423 : vector<2x32xf32>
    %426 = arith.divf %424, %425 : vector<2x32xf32>
    %427 = vector.extract_strided_slice %185 {offsets = [0, 32], sizes = [2, 32], strides = [1, 1]} : vector<2x96xf32> to vector<2x32xf32>
    %428 = vector.extract_strided_slice %418 {offsets = [0, 32], sizes = [2, 32], strides = [1, 1]} : vector<2x96xf32> to vector<2x32xf32>
    %429 = arith.addf %427, %428 : vector<2x32xf32>
    %430 = arith.negf %429 : vector<2x32xf32>
    %431 = math.exp %430 : vector<2x32xf32>
    %cst_108 = arith.constant 1.000000e+00 : f32
    %432 = vector.broadcast %cst_108 : f32 to vector<2x32xf32>
    %433 = arith.addf %432, %431 : vector<2x32xf32>
    %434 = arith.divf %432, %433 : vector<2x32xf32>
    %435 = vector.extract_strided_slice %185 {offsets = [0, 64], sizes = [2, 32], strides = [1, 1]} : vector<2x96xf32> to vector<2x32xf32>
    %436 = vector.extract_strided_slice %418 {offsets = [0, 64], sizes = [2, 32], strides = [1, 1]} : vector<2x96xf32> to vector<2x32xf32>
    %437 = arith.mulf %426, %436 : vector<2x32xf32>
    %438 = arith.addf %435, %437 : vector<2x32xf32>
    %439 = math.tanh %438 : vector<2x32xf32>
    %cst_109 = arith.constant 1.000000e+00 : f32
    %440 = vector.broadcast %cst_109 : f32 to vector<2x32xf32>
    %441 = arith.subf %440, %434 : vector<2x32xf32>
    %442 = arith.mulf %441, %439 : vector<2x32xf32>
    %443 = arith.mulf %434, %415 : vector<2x32xf32>
    %444 = arith.addf %442, %443 : vector<2x32xf32>
    %c0_110 = arith.constant 0 : index
    %c0_111 = arith.constant 0 : index
    %445 = vector.load %arg7[%c0_110, %c0_111] : memref<32x96xf32, #tpu.memory_space<vmem>>, vector<32x96xf32>
    %c0_112 = arith.constant 0 : index
    %c0_113 = arith.constant 0 : index
    %446 = vector.load %arg9[%c0_112, %c0_113] : memref<1x96xf32, #tpu.memory_space<vmem>>, vector<1x96xf32>
    %cst_114 = arith.constant 0.000000e+00 : f32
    %447 = vector.broadcast %cst_114 : f32 to vector<2x32xf32>
    %cst_115 = arith.constant dense<0.000000e+00> : vector<2x96xf32>
    %448 = tpu.matmul %447, %445, %cst_115 {dimension_numbers = #tpu.dot_dimension_numbers<[1], [0], [0], [1], [0, 0, 1, 1], [], []>} : vector<2x32xf32>, vector<32x96xf32>, vector<2x96xf32> -> vector<2x96xf32>
    %449 = vector.broadcast %446 : vector<1x96xf32> to vector<2x96xf32>
    %450 = arith.addf %448, %449 : vector<2x96xf32>
    %451 = vector.extract_strided_slice %209 {offsets = [0, 0], sizes = [2, 32], strides = [1, 1]} : vector<2x96xf32> to vector<2x32xf32>
    %452 = vector.extract_strided_slice %450 {offsets = [0, 0], sizes = [2, 32], strides = [1, 1]} : vector<2x96xf32> to vector<2x32xf32>
    %453 = arith.addf %451, %452 : vector<2x32xf32>
    %454 = arith.negf %453 : vector<2x32xf32>
    %455 = math.exp %454 : vector<2x32xf32>
    %cst_116 = arith.constant 1.000000e+00 : f32
    %456 = vector.broadcast %cst_116 : f32 to vector<2x32xf32>
    %457 = arith.addf %456, %455 : vector<2x32xf32>
    %458 = arith.divf %456, %457 : vector<2x32xf32>
    %459 = vector.extract_strided_slice %209 {offsets = [0, 32], sizes = [2, 32], strides = [1, 1]} : vector<2x96xf32> to vector<2x32xf32>
    %460 = vector.extract_strided_slice %450 {offsets = [0, 32], sizes = [2, 32], strides = [1, 1]} : vector<2x96xf32> to vector<2x32xf32>
    %461 = arith.addf %459, %460 : vector<2x32xf32>
    %462 = arith.negf %461 : vector<2x32xf32>
    %463 = math.exp %462 : vector<2x32xf32>
    %cst_117 = arith.constant 1.000000e+00 : f32
    %464 = vector.broadcast %cst_117 : f32 to vector<2x32xf32>
    %465 = arith.addf %464, %463 : vector<2x32xf32>
    %466 = arith.divf %464, %465 : vector<2x32xf32>
    %467 = vector.extract_strided_slice %209 {offsets = [0, 64], sizes = [2, 32], strides = [1, 1]} : vector<2x96xf32> to vector<2x32xf32>
    %468 = vector.extract_strided_slice %450 {offsets = [0, 64], sizes = [2, 32], strides = [1, 1]} : vector<2x96xf32> to vector<2x32xf32>
    %469 = arith.mulf %458, %468 : vector<2x32xf32>
    %470 = arith.addf %467, %469 : vector<2x32xf32>
    %471 = math.tanh %470 : vector<2x32xf32>
    %cst_118 = arith.constant 1.000000e+00 : f32
    %472 = vector.broadcast %cst_118 : f32 to vector<2x32xf32>
    %473 = arith.subf %472, %466 : vector<2x32xf32>
    %474 = arith.mulf %473, %471 : vector<2x32xf32>
    %475 = arith.mulf %466, %447 : vector<2x32xf32>
    %476 = arith.addf %474, %475 : vector<2x32xf32>
    %cst_119 = arith.constant dense<0.000000e+00> : vector<2x96xf32>
    %477 = tpu.matmul %476, %445, %cst_119 {dimension_numbers = #tpu.dot_dimension_numbers<[1], [0], [0], [1], [0, 0, 1, 1], [], []>} : vector<2x32xf32>, vector<32x96xf32>, vector<2x96xf32> -> vector<2x96xf32>
    %478 = vector.broadcast %446 : vector<1x96xf32> to vector<2x96xf32>
    %479 = arith.addf %477, %478 : vector<2x96xf32>
    %480 = vector.extract_strided_slice %206 {offsets = [0, 0], sizes = [2, 32], strides = [1, 1]} : vector<2x96xf32> to vector<2x32xf32>
    %481 = vector.extract_strided_slice %479 {offsets = [0, 0], sizes = [2, 32], strides = [1, 1]} : vector<2x96xf32> to vector<2x32xf32>
    %482 = arith.addf %480, %481 : vector<2x32xf32>
    %483 = arith.negf %482 : vector<2x32xf32>
    %484 = math.exp %483 : vector<2x32xf32>
    %cst_120 = arith.constant 1.000000e+00 : f32
    %485 = vector.broadcast %cst_120 : f32 to vector<2x32xf32>
    %486 = arith.addf %485, %484 : vector<2x32xf32>
    %487 = arith.divf %485, %486 : vector<2x32xf32>
    %488 = vector.extract_strided_slice %206 {offsets = [0, 32], sizes = [2, 32], strides = [1, 1]} : vector<2x96xf32> to vector<2x32xf32>
    %489 = vector.extract_strided_slice %479 {offsets = [0, 32], sizes = [2, 32], strides = [1, 1]} : vector<2x96xf32> to vector<2x32xf32>
    %490 = arith.addf %488, %489 : vector<2x32xf32>
    %491 = arith.negf %490 : vector<2x32xf32>
    %492 = math.exp %491 : vector<2x32xf32>
    %cst_121 = arith.constant 1.000000e+00 : f32
    %493 = vector.broadcast %cst_121 : f32 to vector<2x32xf32>
    %494 = arith.addf %493, %492 : vector<2x32xf32>
    %495 = arith.divf %493, %494 : vector<2x32xf32>
    %496 = vector.extract_strided_slice %206 {offsets = [0, 64], sizes = [2, 32], strides = [1, 1]} : vector<2x96xf32> to vector<2x32xf32>
    %497 = vector.extract_strided_slice %479 {offsets = [0, 64], sizes = [2, 32], strides = [1, 1]} : vector<2x96xf32> to vector<2x32xf32>
    %498 = arith.mulf %487, %497 : vector<2x32xf32>
    %499 = arith.addf %496, %498 : vector<2x32xf32>
    %500 = math.tanh %499 : vector<2x32xf32>
    %cst_122 = arith.constant 1.000000e+00 : f32
    %501 = vector.broadcast %cst_122 : f32 to vector<2x32xf32>
    %502 = arith.subf %501, %495 : vector<2x32xf32>
    %503 = arith.mulf %502, %500 : vector<2x32xf32>
    %504 = arith.mulf %495, %476 : vector<2x32xf32>
    %505 = arith.addf %503, %504 : vector<2x32xf32>
    %cst_123 = arith.constant dense<0.000000e+00> : vector<2x96xf32>
    %506 = tpu.matmul %505, %445, %cst_123 {dimension_numbers = #tpu.dot_dimension_numbers<[1], [0], [0], [1], [0, 0, 1, 1], [], []>} : vector<2x32xf32>, vector<32x96xf32>, vector<2x96xf32> -> vector<2x96xf32>
    %507 = vector.broadcast %446 : vector<1x96xf32> to vector<2x96xf32>
    %508 = arith.addf %506, %507 : vector<2x96xf32>
    %509 = vector.extract_strided_slice %203 {offsets = [0, 0], sizes = [2, 32], strides = [1, 1]} : vector<2x96xf32> to vector<2x32xf32>
    %510 = vector.extract_strided_slice %508 {offsets = [0, 0], sizes = [2, 32], strides = [1, 1]} : vector<2x96xf32> to vector<2x32xf32>
    %511 = arith.addf %509, %510 : vector<2x32xf32>
    %512 = arith.negf %511 : vector<2x32xf32>
    %513 = math.exp %512 : vector<2x32xf32>
    %cst_124 = arith.constant 1.000000e+00 : f32
    %514 = vector.broadcast %cst_124 : f32 to vector<2x32xf32>
    %515 = arith.addf %514, %513 : vector<2x32xf32>
    %516 = arith.divf %514, %515 : vector<2x32xf32>
    %517 = vector.extract_strided_slice %203 {offsets = [0, 32], sizes = [2, 32], strides = [1, 1]} : vector<2x96xf32> to vector<2x32xf32>
    %518 = vector.extract_strided_slice %508 {offsets = [0, 32], sizes = [2, 32], strides = [1, 1]} : vector<2x96xf32> to vector<2x32xf32>
    %519 = arith.addf %517, %518 : vector<2x32xf32>
    %520 = arith.negf %519 : vector<2x32xf32>
    %521 = math.exp %520 : vector<2x32xf32>
    %cst_125 = arith.constant 1.000000e+00 : f32
    %522 = vector.broadcast %cst_125 : f32 to vector<2x32xf32>
    %523 = arith.addf %522, %521 : vector<2x32xf32>
    %524 = arith.divf %522, %523 : vector<2x32xf32>
    %525 = vector.extract_strided_slice %203 {offsets = [0, 64], sizes = [2, 32], strides = [1, 1]} : vector<2x96xf32> to vector<2x32xf32>
    %526 = vector.extract_strided_slice %508 {offsets = [0, 64], sizes = [2, 32], strides = [1, 1]} : vector<2x96xf32> to vector<2x32xf32>
    %527 = arith.mulf %516, %526 : vector<2x32xf32>
    %528 = arith.addf %525, %527 : vector<2x32xf32>
    %529 = math.tanh %528 : vector<2x32xf32>
    %cst_126 = arith.constant 1.000000e+00 : f32
    %530 = vector.broadcast %cst_126 : f32 to vector<2x32xf32>
    %531 = arith.subf %530, %524 : vector<2x32xf32>
    %532 = arith.mulf %531, %529 : vector<2x32xf32>
    %533 = arith.mulf %524, %505 : vector<2x32xf32>
    %534 = arith.addf %532, %533 : vector<2x32xf32>
    %cst_127 = arith.constant dense<0.000000e+00> : vector<2x96xf32>
    %535 = tpu.matmul %534, %445, %cst_127 {dimension_numbers = #tpu.dot_dimension_numbers<[1], [0], [0], [1], [0, 0, 1, 1], [], []>} : vector<2x32xf32>, vector<32x96xf32>, vector<2x96xf32> -> vector<2x96xf32>
    %536 = vector.broadcast %446 : vector<1x96xf32> to vector<2x96xf32>
    %537 = arith.addf %535, %536 : vector<2x96xf32>
    %538 = vector.extract_strided_slice %200 {offsets = [0, 0], sizes = [2, 32], strides = [1, 1]} : vector<2x96xf32> to vector<2x32xf32>
    %539 = vector.extract_strided_slice %537 {offsets = [0, 0], sizes = [2, 32], strides = [1, 1]} : vector<2x96xf32> to vector<2x32xf32>
    %540 = arith.addf %538, %539 : vector<2x32xf32>
    %541 = arith.negf %540 : vector<2x32xf32>
    %542 = math.exp %541 : vector<2x32xf32>
    %cst_128 = arith.constant 1.000000e+00 : f32
    %543 = vector.broadcast %cst_128 : f32 to vector<2x32xf32>
    %544 = arith.addf %543, %542 : vector<2x32xf32>
    %545 = arith.divf %543, %544 : vector<2x32xf32>
    %546 = vector.extract_strided_slice %200 {offsets = [0, 32], sizes = [2, 32], strides = [1, 1]} : vector<2x96xf32> to vector<2x32xf32>
    %547 = vector.extract_strided_slice %537 {offsets = [0, 32], sizes = [2, 32], strides = [1, 1]} : vector<2x96xf32> to vector<2x32xf32>
    %548 = arith.addf %546, %547 : vector<2x32xf32>
    %549 = arith.negf %548 : vector<2x32xf32>
    %550 = math.exp %549 : vector<2x32xf32>
    %cst_129 = arith.constant 1.000000e+00 : f32
    %551 = vector.broadcast %cst_129 : f32 to vector<2x32xf32>
    %552 = arith.addf %551, %550 : vector<2x32xf32>
    %553 = arith.divf %551, %552 : vector<2x32xf32>
    %554 = vector.extract_strided_slice %200 {offsets = [0, 64], sizes = [2, 32], strides = [1, 1]} : vector<2x96xf32> to vector<2x32xf32>
    %555 = vector.extract_strided_slice %537 {offsets = [0, 64], sizes = [2, 32], strides = [1, 1]} : vector<2x96xf32> to vector<2x32xf32>
    %556 = arith.mulf %545, %555 : vector<2x32xf32>
    %557 = arith.addf %554, %556 : vector<2x32xf32>
    %558 = math.tanh %557 : vector<2x32xf32>
    %cst_130 = arith.constant 1.000000e+00 : f32
    %559 = vector.broadcast %cst_130 : f32 to vector<2x32xf32>
    %560 = arith.subf %559, %553 : vector<2x32xf32>
    %561 = arith.mulf %560, %558 : vector<2x32xf32>
    %562 = arith.mulf %553, %534 : vector<2x32xf32>
    %563 = arith.addf %561, %562 : vector<2x32xf32>
    %cst_131 = arith.constant dense<0.000000e+00> : vector<2x96xf32>
    %564 = tpu.matmul %563, %445, %cst_131 {dimension_numbers = #tpu.dot_dimension_numbers<[1], [0], [0], [1], [0, 0, 1, 1], [], []>} : vector<2x32xf32>, vector<32x96xf32>, vector<2x96xf32> -> vector<2x96xf32>
    %565 = vector.broadcast %446 : vector<1x96xf32> to vector<2x96xf32>
    %566 = arith.addf %564, %565 : vector<2x96xf32>
    %567 = vector.extract_strided_slice %197 {offsets = [0, 0], sizes = [2, 32], strides = [1, 1]} : vector<2x96xf32> to vector<2x32xf32>
    %568 = vector.extract_strided_slice %566 {offsets = [0, 0], sizes = [2, 32], strides = [1, 1]} : vector<2x96xf32> to vector<2x32xf32>
    %569 = arith.addf %567, %568 : vector<2x32xf32>
    %570 = arith.negf %569 : vector<2x32xf32>
    %571 = math.exp %570 : vector<2x32xf32>
    %cst_132 = arith.constant 1.000000e+00 : f32
    %572 = vector.broadcast %cst_132 : f32 to vector<2x32xf32>
    %573 = arith.addf %572, %571 : vector<2x32xf32>
    %574 = arith.divf %572, %573 : vector<2x32xf32>
    %575 = vector.extract_strided_slice %197 {offsets = [0, 32], sizes = [2, 32], strides = [1, 1]} : vector<2x96xf32> to vector<2x32xf32>
    %576 = vector.extract_strided_slice %566 {offsets = [0, 32], sizes = [2, 32], strides = [1, 1]} : vector<2x96xf32> to vector<2x32xf32>
    %577 = arith.addf %575, %576 : vector<2x32xf32>
    %578 = arith.negf %577 : vector<2x32xf32>
    %579 = math.exp %578 : vector<2x32xf32>
    %cst_133 = arith.constant 1.000000e+00 : f32
    %580 = vector.broadcast %cst_133 : f32 to vector<2x32xf32>
    %581 = arith.addf %580, %579 : vector<2x32xf32>
    %582 = arith.divf %580, %581 : vector<2x32xf32>
    %583 = vector.extract_strided_slice %197 {offsets = [0, 64], sizes = [2, 32], strides = [1, 1]} : vector<2x96xf32> to vector<2x32xf32>
    %584 = vector.extract_strided_slice %566 {offsets = [0, 64], sizes = [2, 32], strides = [1, 1]} : vector<2x96xf32> to vector<2x32xf32>
    %585 = arith.mulf %574, %584 : vector<2x32xf32>
    %586 = arith.addf %583, %585 : vector<2x32xf32>
    %587 = math.tanh %586 : vector<2x32xf32>
    %cst_134 = arith.constant 1.000000e+00 : f32
    %588 = vector.broadcast %cst_134 : f32 to vector<2x32xf32>
    %589 = arith.subf %588, %582 : vector<2x32xf32>
    %590 = arith.mulf %589, %587 : vector<2x32xf32>
    %591 = arith.mulf %582, %563 : vector<2x32xf32>
    %592 = arith.addf %590, %591 : vector<2x32xf32>
    %cst_135 = arith.constant dense<0.000000e+00> : vector<2x96xf32>
    %593 = tpu.matmul %592, %445, %cst_135 {dimension_numbers = #tpu.dot_dimension_numbers<[1], [0], [0], [1], [0, 0, 1, 1], [], []>} : vector<2x32xf32>, vector<32x96xf32>, vector<2x96xf32> -> vector<2x96xf32>
    %594 = vector.broadcast %446 : vector<1x96xf32> to vector<2x96xf32>
    %595 = arith.addf %593, %594 : vector<2x96xf32>
    %596 = vector.extract_strided_slice %194 {offsets = [0, 0], sizes = [2, 32], strides = [1, 1]} : vector<2x96xf32> to vector<2x32xf32>
    %597 = vector.extract_strided_slice %595 {offsets = [0, 0], sizes = [2, 32], strides = [1, 1]} : vector<2x96xf32> to vector<2x32xf32>
    %598 = arith.addf %596, %597 : vector<2x32xf32>
    %599 = arith.negf %598 : vector<2x32xf32>
    %600 = math.exp %599 : vector<2x32xf32>
    %cst_136 = arith.constant 1.000000e+00 : f32
    %601 = vector.broadcast %cst_136 : f32 to vector<2x32xf32>
    %602 = arith.addf %601, %600 : vector<2x32xf32>
    %603 = arith.divf %601, %602 : vector<2x32xf32>
    %604 = vector.extract_strided_slice %194 {offsets = [0, 32], sizes = [2, 32], strides = [1, 1]} : vector<2x96xf32> to vector<2x32xf32>
    %605 = vector.extract_strided_slice %595 {offsets = [0, 32], sizes = [2, 32], strides = [1, 1]} : vector<2x96xf32> to vector<2x32xf32>
    %606 = arith.addf %604, %605 : vector<2x32xf32>
    %607 = arith.negf %606 : vector<2x32xf32>
    %608 = math.exp %607 : vector<2x32xf32>
    %cst_137 = arith.constant 1.000000e+00 : f32
    %609 = vector.broadcast %cst_137 : f32 to vector<2x32xf32>
    %610 = arith.addf %609, %608 : vector<2x32xf32>
    %611 = arith.divf %609, %610 : vector<2x32xf32>
    %612 = vector.extract_strided_slice %194 {offsets = [0, 64], sizes = [2, 32], strides = [1, 1]} : vector<2x96xf32> to vector<2x32xf32>
    %613 = vector.extract_strided_slice %595 {offsets = [0, 64], sizes = [2, 32], strides = [1, 1]} : vector<2x96xf32> to vector<2x32xf32>
    %614 = arith.mulf %603, %613 : vector<2x32xf32>
    %615 = arith.addf %612, %614 : vector<2x32xf32>
    %616 = math.tanh %615 : vector<2x32xf32>
    %cst_138 = arith.constant 1.000000e+00 : f32
    %617 = vector.broadcast %cst_138 : f32 to vector<2x32xf32>
    %618 = arith.subf %617, %611 : vector<2x32xf32>
    %619 = arith.mulf %618, %616 : vector<2x32xf32>
    %620 = arith.mulf %611, %592 : vector<2x32xf32>
    %621 = arith.addf %619, %620 : vector<2x32xf32>
    %cst_139 = arith.constant dense<0.000000e+00> : vector<2x96xf32>
    %622 = tpu.matmul %621, %445, %cst_139 {dimension_numbers = #tpu.dot_dimension_numbers<[1], [0], [0], [1], [0, 0, 1, 1], [], []>} : vector<2x32xf32>, vector<32x96xf32>, vector<2x96xf32> -> vector<2x96xf32>
    %623 = vector.broadcast %446 : vector<1x96xf32> to vector<2x96xf32>
    %624 = arith.addf %622, %623 : vector<2x96xf32>
    %625 = vector.extract_strided_slice %191 {offsets = [0, 0], sizes = [2, 32], strides = [1, 1]} : vector<2x96xf32> to vector<2x32xf32>
    %626 = vector.extract_strided_slice %624 {offsets = [0, 0], sizes = [2, 32], strides = [1, 1]} : vector<2x96xf32> to vector<2x32xf32>
    %627 = arith.addf %625, %626 : vector<2x32xf32>
    %628 = arith.negf %627 : vector<2x32xf32>
    %629 = math.exp %628 : vector<2x32xf32>
    %cst_140 = arith.constant 1.000000e+00 : f32
    %630 = vector.broadcast %cst_140 : f32 to vector<2x32xf32>
    %631 = arith.addf %630, %629 : vector<2x32xf32>
    %632 = arith.divf %630, %631 : vector<2x32xf32>
    %633 = vector.extract_strided_slice %191 {offsets = [0, 32], sizes = [2, 32], strides = [1, 1]} : vector<2x96xf32> to vector<2x32xf32>
    %634 = vector.extract_strided_slice %624 {offsets = [0, 32], sizes = [2, 32], strides = [1, 1]} : vector<2x96xf32> to vector<2x32xf32>
    %635 = arith.addf %633, %634 : vector<2x32xf32>
    %636 = arith.negf %635 : vector<2x32xf32>
    %637 = math.exp %636 : vector<2x32xf32>
    %cst_141 = arith.constant 1.000000e+00 : f32
    %638 = vector.broadcast %cst_141 : f32 to vector<2x32xf32>
    %639 = arith.addf %638, %637 : vector<2x32xf32>
    %640 = arith.divf %638, %639 : vector<2x32xf32>
    %641 = vector.extract_strided_slice %191 {offsets = [0, 64], sizes = [2, 32], strides = [1, 1]} : vector<2x96xf32> to vector<2x32xf32>
    %642 = vector.extract_strided_slice %624 {offsets = [0, 64], sizes = [2, 32], strides = [1, 1]} : vector<2x96xf32> to vector<2x32xf32>
    %643 = arith.mulf %632, %642 : vector<2x32xf32>
    %644 = arith.addf %641, %643 : vector<2x32xf32>
    %645 = math.tanh %644 : vector<2x32xf32>
    %cst_142 = arith.constant 1.000000e+00 : f32
    %646 = vector.broadcast %cst_142 : f32 to vector<2x32xf32>
    %647 = arith.subf %646, %640 : vector<2x32xf32>
    %648 = arith.mulf %647, %645 : vector<2x32xf32>
    %649 = arith.mulf %640, %621 : vector<2x32xf32>
    %650 = arith.addf %648, %649 : vector<2x32xf32>
    %cst_143 = arith.constant dense<0.000000e+00> : vector<2x96xf32>
    %651 = tpu.matmul %650, %445, %cst_143 {dimension_numbers = #tpu.dot_dimension_numbers<[1], [0], [0], [1], [0, 0, 1, 1], [], []>} : vector<2x32xf32>, vector<32x96xf32>, vector<2x96xf32> -> vector<2x96xf32>
    %652 = vector.broadcast %446 : vector<1x96xf32> to vector<2x96xf32>
    %653 = arith.addf %651, %652 : vector<2x96xf32>
    %654 = vector.extract_strided_slice %188 {offsets = [0, 0], sizes = [2, 32], strides = [1, 1]} : vector<2x96xf32> to vector<2x32xf32>
    %655 = vector.extract_strided_slice %653 {offsets = [0, 0], sizes = [2, 32], strides = [1, 1]} : vector<2x96xf32> to vector<2x32xf32>
    %656 = arith.addf %654, %655 : vector<2x32xf32>
    %657 = arith.negf %656 : vector<2x32xf32>
    %658 = math.exp %657 : vector<2x32xf32>
    %cst_144 = arith.constant 1.000000e+00 : f32
    %659 = vector.broadcast %cst_144 : f32 to vector<2x32xf32>
    %660 = arith.addf %659, %658 : vector<2x32xf32>
    %661 = arith.divf %659, %660 : vector<2x32xf32>
    %662 = vector.extract_strided_slice %188 {offsets = [0, 32], sizes = [2, 32], strides = [1, 1]} : vector<2x96xf32> to vector<2x32xf32>
    %663 = vector.extract_strided_slice %653 {offsets = [0, 32], sizes = [2, 32], strides = [1, 1]} : vector<2x96xf32> to vector<2x32xf32>
    %664 = arith.addf %662, %663 : vector<2x32xf32>
    %665 = arith.negf %664 : vector<2x32xf32>
    %666 = math.exp %665 : vector<2x32xf32>
    %cst_145 = arith.constant 1.000000e+00 : f32
    %667 = vector.broadcast %cst_145 : f32 to vector<2x32xf32>
    %668 = arith.addf %667, %666 : vector<2x32xf32>
    %669 = arith.divf %667, %668 : vector<2x32xf32>
    %670 = vector.extract_strided_slice %188 {offsets = [0, 64], sizes = [2, 32], strides = [1, 1]} : vector<2x96xf32> to vector<2x32xf32>
    %671 = vector.extract_strided_slice %653 {offsets = [0, 64], sizes = [2, 32], strides = [1, 1]} : vector<2x96xf32> to vector<2x32xf32>
    %672 = arith.mulf %661, %671 : vector<2x32xf32>
    %673 = arith.addf %670, %672 : vector<2x32xf32>
    %674 = math.tanh %673 : vector<2x32xf32>
    %cst_146 = arith.constant 1.000000e+00 : f32
    %675 = vector.broadcast %cst_146 : f32 to vector<2x32xf32>
    %676 = arith.subf %675, %669 : vector<2x32xf32>
    %677 = arith.mulf %676, %674 : vector<2x32xf32>
    %678 = arith.mulf %669, %650 : vector<2x32xf32>
    %679 = arith.addf %677, %678 : vector<2x32xf32>
    %680 = arith.addf %241, %679 : vector<2x32xf32>
    %681 = arith.addf %270, %650 : vector<2x32xf32>
    %682 = arith.addf %299, %621 : vector<2x32xf32>
    %683 = arith.addf %328, %592 : vector<2x32xf32>
    %684 = arith.addf %357, %563 : vector<2x32xf32>
    %685 = arith.addf %386, %534 : vector<2x32xf32>
    %686 = arith.addf %415, %505 : vector<2x32xf32>
    %687 = arith.addf %444, %476 : vector<2x32xf32>
    %c0_147 = arith.constant 0 : index
    %c0_148 = arith.constant 0 : index
    %688 = vector.load %arg10[%c0_147, %c0_148] : memref<32x96xf32, #tpu.memory_space<vmem>>, vector<32x96xf32>
    %cst_149 = arith.constant dense<0.000000e+00> : vector<48x96xf32>
    %689 = tpu.matmul %3, %688, %cst_149 {dimension_numbers = #tpu.dot_dimension_numbers<[1], [0], [0], [1], [0, 0, 1, 1], [], []>} : vector<48x32xf32>, vector<32x96xf32>, vector<48x96xf32> -> vector<48x96xf32>
    %c0_150 = arith.constant 0 : index
    %c0_151 = arith.constant 0 : index
    %690 = vector.load %arg12[%c0_150, %c0_151] : memref<1x96xf32, #tpu.memory_space<vmem>>, vector<1x96xf32>
    %c1_i32_152 = arith.constant 1 : i32
    %691 = vector.broadcast %c1_i32_152 : i32 to vector<1x2xi32>
    %cst_153 = arith.constant 0.000000e+00 : f32
    %692 = vector.broadcast %cst_153 : f32 to vector<2x48xf32>
    %693 = vector.extract_strided_slice %691 {offsets = [0, 0], sizes = [1, 1], strides = [1, 1]} : vector<1x2xi32> to vector<1x1xi32>
    %694 = vector.broadcast %693 : vector<1x1xi32> to vector<1x48xi32>
    %695 = arith.cmpi eq, %2, %694 : vector<1x48xi32>
    %696 = arith.extui %695 : vector<1x48xi1> to vector<1x48xi32>
    %697 = arith.sitofp %696 : vector<1x48xi32> to vector<1x48xf32>
    %c0_i32_154 = arith.constant 0 : i32
    %698 = vector.broadcast %c0_i32_154 : i32 to vector<2x48xi32>
    %699 = arith.cmpi eq, %0, %698 : vector<2x48xi32>
    %cst_155 = arith.constant 0.000000e+00 : f32
    %700 = vector.shape_cast %697 : vector<1x48xf32> to vector<1x48xf32>
    %701 = vector.broadcast %700 : vector<1x48xf32> to vector<2x48xf32>
    %702 = vector.broadcast %cst_155 : f32 to vector<2x48xf32>
    %703 = arith.select %699, %701, %702 : vector<2x48xi1>, vector<2x48xf32>
    %704 = arith.addf %692, %703 : vector<2x48xf32>
    %705 = vector.extract_strided_slice %691 {offsets = [0, 1], sizes = [1, 1], strides = [1, 1]} : vector<1x2xi32> to vector<1x1xi32>
    %706 = vector.broadcast %705 : vector<1x1xi32> to vector<1x48xi32>
    %707 = arith.cmpi eq, %2, %706 : vector<1x48xi32>
    %708 = arith.extui %707 : vector<1x48xi1> to vector<1x48xi32>
    %709 = arith.sitofp %708 : vector<1x48xi32> to vector<1x48xf32>
    %c1_i32_156 = arith.constant 1 : i32
    %710 = vector.broadcast %c1_i32_156 : i32 to vector<2x48xi32>
    %711 = arith.cmpi eq, %0, %710 : vector<2x48xi32>
    %cst_157 = arith.constant 0.000000e+00 : f32
    %712 = vector.shape_cast %709 : vector<1x48xf32> to vector<1x48xf32>
    %713 = vector.broadcast %712 : vector<1x48xf32> to vector<2x48xf32>
    %714 = vector.broadcast %cst_157 : f32 to vector<2x48xf32>
    %715 = arith.select %711, %713, %714 : vector<2x48xi1>, vector<2x48xf32>
    %716 = arith.addf %704, %715 : vector<2x48xf32>
    %cst_158 = arith.constant dense<0.000000e+00> : vector<2x96xf32>
    %717 = tpu.matmul %716, %689, %cst_158 {dimension_numbers = #tpu.dot_dimension_numbers<[1], [0], [0], [1], [0, 0, 1, 1], [], []>} : vector<2x48xf32>, vector<48x96xf32>, vector<2x96xf32> -> vector<2x96xf32>
    %718 = vector.broadcast %690 : vector<1x96xf32> to vector<2x96xf32>
    %719 = arith.addf %717, %718 : vector<2x96xf32>
    %c0_159 = arith.constant 0 : index
    %c0_160 = arith.constant 0 : index
    %720 = vector.load %arg11[%c0_159, %c0_160] : memref<32x96xf32, #tpu.memory_space<vmem>>, vector<32x96xf32>
    %cst_161 = arith.constant dense<0.000000e+00> : vector<2x96xf32>
    %721 = tpu.matmul %444, %720, %cst_161 {dimension_numbers = #tpu.dot_dimension_numbers<[1], [0], [0], [1], [0, 0, 1, 1], [], []>} : vector<2x32xf32>, vector<32x96xf32>, vector<2x96xf32> -> vector<2x96xf32>
    %c0_162 = arith.constant 0 : index
    %c0_163 = arith.constant 0 : index
    %722 = vector.load %arg13[%c0_162, %c0_163] : memref<1x96xf32, #tpu.memory_space<vmem>>, vector<1x96xf32>
    %723 = vector.broadcast %722 : vector<1x96xf32> to vector<2x96xf32>
    %724 = arith.addf %721, %723 : vector<2x96xf32>
    %725 = vector.extract_strided_slice %719 {offsets = [0, 0], sizes = [2, 32], strides = [1, 1]} : vector<2x96xf32> to vector<2x32xf32>
    %726 = vector.extract_strided_slice %724 {offsets = [0, 0], sizes = [2, 32], strides = [1, 1]} : vector<2x96xf32> to vector<2x32xf32>
    %727 = arith.addf %725, %726 : vector<2x32xf32>
    %728 = arith.negf %727 : vector<2x32xf32>
    %729 = math.exp %728 : vector<2x32xf32>
    %cst_164 = arith.constant 1.000000e+00 : f32
    %730 = vector.broadcast %cst_164 : f32 to vector<2x32xf32>
    %731 = arith.addf %730, %729 : vector<2x32xf32>
    %732 = arith.divf %730, %731 : vector<2x32xf32>
    %733 = vector.extract_strided_slice %719 {offsets = [0, 32], sizes = [2, 32], strides = [1, 1]} : vector<2x96xf32> to vector<2x32xf32>
    %734 = vector.extract_strided_slice %724 {offsets = [0, 32], sizes = [2, 32], strides = [1, 1]} : vector<2x96xf32> to vector<2x32xf32>
    %735 = arith.addf %733, %734 : vector<2x32xf32>
    %736 = arith.negf %735 : vector<2x32xf32>
    %737 = math.exp %736 : vector<2x32xf32>
    %cst_165 = arith.constant 1.000000e+00 : f32
    %738 = vector.broadcast %cst_165 : f32 to vector<2x32xf32>
    %739 = arith.addf %738, %737 : vector<2x32xf32>
    %740 = arith.divf %738, %739 : vector<2x32xf32>
    %741 = vector.extract_strided_slice %719 {offsets = [0, 64], sizes = [2, 32], strides = [1, 1]} : vector<2x96xf32> to vector<2x32xf32>
    %742 = vector.extract_strided_slice %724 {offsets = [0, 64], sizes = [2, 32], strides = [1, 1]} : vector<2x96xf32> to vector<2x32xf32>
    %743 = arith.mulf %732, %742 : vector<2x32xf32>
    %744 = arith.addf %741, %743 : vector<2x32xf32>
    %745 = math.tanh %744 : vector<2x32xf32>
    %cst_166 = arith.constant 1.000000e+00 : f32
    %746 = vector.broadcast %cst_166 : f32 to vector<2x32xf32>
    %747 = arith.subf %746, %740 : vector<2x32xf32>
    %748 = arith.mulf %747, %745 : vector<2x32xf32>
    %749 = arith.mulf %740, %444 : vector<2x32xf32>
    %750 = arith.addf %748, %749 : vector<2x32xf32>
    %751 = arith.mulf %750, %680 : vector<2x32xf32>
    %cst_167 = arith.constant dense<0.000000e+00> : vector<2xf32>
    %752 = vector.multi_reduction <add>, %751, %cst_167 [1] : vector<2x32xf32> to vector<2xf32>
    %753 = vector.shape_cast %752 : vector<2xf32> to vector<2x1xf32>
    %754 = arith.mulf %750, %681 : vector<2x32xf32>
    %cst_168 = arith.constant dense<0.000000e+00> : vector<2xf32>
    %755 = vector.multi_reduction <add>, %754, %cst_168 [1] : vector<2x32xf32> to vector<2xf32>
    %756 = vector.shape_cast %755 : vector<2xf32> to vector<2x1xf32>
    %757 = arith.mulf %750, %682 : vector<2x32xf32>
    %cst_169 = arith.constant dense<0.000000e+00> : vector<2xf32>
    %758 = vector.multi_reduction <add>, %757, %cst_169 [1] : vector<2x32xf32> to vector<2xf32>
    %759 = vector.shape_cast %758 : vector<2xf32> to vector<2x1xf32>
    %760 = arith.mulf %750, %683 : vector<2x32xf32>
    %cst_170 = arith.constant dense<0.000000e+00> : vector<2xf32>
    %761 = vector.multi_reduction <add>, %760, %cst_170 [1] : vector<2x32xf32> to vector<2xf32>
    %762 = vector.shape_cast %761 : vector<2xf32> to vector<2x1xf32>
    %763 = arith.mulf %750, %684 : vector<2x32xf32>
    %cst_171 = arith.constant dense<0.000000e+00> : vector<2xf32>
    %764 = vector.multi_reduction <add>, %763, %cst_171 [1] : vector<2x32xf32> to vector<2xf32>
    %765 = vector.shape_cast %764 : vector<2xf32> to vector<2x1xf32>
    %766 = arith.mulf %750, %685 : vector<2x32xf32>
    %cst_172 = arith.constant dense<0.000000e+00> : vector<2xf32>
    %767 = vector.multi_reduction <add>, %766, %cst_172 [1] : vector<2x32xf32> to vector<2xf32>
    %768 = vector.shape_cast %767 : vector<2xf32> to vector<2x1xf32>
    %769 = arith.mulf %750, %686 : vector<2x32xf32>
    %cst_173 = arith.constant dense<0.000000e+00> : vector<2xf32>
    %770 = vector.multi_reduction <add>, %769, %cst_173 [1] : vector<2x32xf32> to vector<2xf32>
    %771 = vector.shape_cast %770 : vector<2xf32> to vector<2x1xf32>
    %772 = arith.mulf %750, %687 : vector<2x32xf32>
    %cst_174 = arith.constant dense<0.000000e+00> : vector<2xf32>
    %773 = vector.multi_reduction <add>, %772, %cst_174 [1] : vector<2x32xf32> to vector<2xf32>
    %774 = vector.shape_cast %773 : vector<2xf32> to vector<2x1xf32>
    %775 = tpu.concatenate %753, %756, %759, %762, %765, %768, %771, %774 in 1 : vector<2x1xf32>, vector<2x1xf32>, vector<2x1xf32>, vector<2x1xf32>, vector<2x1xf32>, vector<2x1xf32>, vector<2x1xf32>, vector<2x1xf32> -> vector<2x8xf32>
    %cst_175 = arith.constant dense<0xFF800000> : vector<2xf32>
    %776 = vector.multi_reduction <maximumf>, %775, %cst_175 [1] : vector<2x8xf32> to vector<2xf32>
    %777 = vector.shape_cast %776 : vector<2xf32> to vector<2x1xf32>
    %778 = vector.broadcast %777 : vector<2x1xf32> to vector<2x8xf32>
    %779 = arith.subf %775, %778 : vector<2x8xf32>
    %780 = math.exp %779 : vector<2x8xf32>
    %cst_176 = arith.constant dense<0.000000e+00> : vector<2xf32>
    %781 = vector.multi_reduction <add>, %780, %cst_176 [1] : vector<2x8xf32> to vector<2xf32>
    %782 = vector.shape_cast %781 : vector<2xf32> to vector<2x1xf32>
    %783 = tpu.reciprocal %782 {approx = true} : vector<2x1xf32> -> vector<2x1xf32>
    %784 = vector.broadcast %783 : vector<2x1xf32> to vector<2x8xf32>
    %785 = arith.mulf %780, %784 : vector<2x8xf32>
    %786 = vector.extract_strided_slice %785 {offsets = [0, 0], sizes = [2, 1], strides = [1, 1]} : vector<2x8xf32> to vector<2x1xf32>
    %787 = vector.broadcast %786 : vector<2x1xf32> to vector<2x32xf32>
    %788 = arith.mulf %787, %680 : vector<2x32xf32>
    %789 = vector.extract_strided_slice %785 {offsets = [0, 1], sizes = [2, 1], strides = [1, 1]} : vector<2x8xf32> to vector<2x1xf32>
    %790 = vector.broadcast %789 : vector<2x1xf32> to vector<2x32xf32>
    %791 = arith.mulf %790, %681 : vector<2x32xf32>
    %792 = arith.addf %788, %791 : vector<2x32xf32>
    %793 = vector.extract_strided_slice %785 {offsets = [0, 2], sizes = [2, 1], strides = [1, 1]} : vector<2x8xf32> to vector<2x1xf32>
    %794 = vector.broadcast %793 : vector<2x1xf32> to vector<2x32xf32>
    %795 = arith.mulf %794, %682 : vector<2x32xf32>
    %796 = arith.addf %792, %795 : vector<2x32xf32>
    %797 = vector.extract_strided_slice %785 {offsets = [0, 3], sizes = [2, 1], strides = [1, 1]} : vector<2x8xf32> to vector<2x1xf32>
    %798 = vector.broadcast %797 : vector<2x1xf32> to vector<2x32xf32>
    %799 = arith.mulf %798, %683 : vector<2x32xf32>
    %800 = arith.addf %796, %799 : vector<2x32xf32>
    %801 = vector.extract_strided_slice %785 {offsets = [0, 4], sizes = [2, 1], strides = [1, 1]} : vector<2x8xf32> to vector<2x1xf32>
    %802 = vector.broadcast %801 : vector<2x1xf32> to vector<2x32xf32>
    %803 = arith.mulf %802, %684 : vector<2x32xf32>
    %804 = arith.addf %800, %803 : vector<2x32xf32>
    %805 = vector.extract_strided_slice %785 {offsets = [0, 5], sizes = [2, 1], strides = [1, 1]} : vector<2x8xf32> to vector<2x1xf32>
    %806 = vector.broadcast %805 : vector<2x1xf32> to vector<2x32xf32>
    %807 = arith.mulf %806, %685 : vector<2x32xf32>
    %808 = arith.addf %804, %807 : vector<2x32xf32>
    %809 = vector.extract_strided_slice %785 {offsets = [0, 6], sizes = [2, 1], strides = [1, 1]} : vector<2x8xf32> to vector<2x1xf32>
    %810 = vector.broadcast %809 : vector<2x1xf32> to vector<2x32xf32>
    %811 = arith.mulf %810, %686 : vector<2x32xf32>
    %812 = arith.addf %808, %811 : vector<2x32xf32>
    %813 = vector.extract_strided_slice %785 {offsets = [0, 7], sizes = [2, 1], strides = [1, 1]} : vector<2x8xf32> to vector<2x1xf32>
    %814 = vector.broadcast %813 : vector<2x1xf32> to vector<2x32xf32>
    %815 = arith.mulf %814, %687 : vector<2x32xf32>
    %816 = arith.addf %812, %815 : vector<2x32xf32>
    %817 = tpu.concatenate %750, %816 in 1 : vector<2x32xf32>, vector<2x32xf32> -> vector<2x64xf32>
    %c0_177 = arith.constant 0 : index
    %c0_178 = arith.constant 0 : index
    %818 = vector.load %arg14[%c0_177, %c0_178] : memref<64x32xf32, #tpu.memory_space<vmem>>, vector<64x32xf32>
    %cst_179 = arith.constant dense<0.000000e+00> : vector<2x32xf32>
    %819 = tpu.matmul %817, %818, %cst_179 {dimension_numbers = #tpu.dot_dimension_numbers<[1], [0], [0], [1], [0, 0, 1, 1], [], []>} : vector<2x64xf32>, vector<64x32xf32>, vector<2x32xf32> -> vector<2x32xf32>
    %c0_180 = arith.constant 0 : index
    %c0_181 = arith.constant 0 : index
    %820 = vector.load %arg15[%c0_180, %c0_181] : memref<1x32xf32, #tpu.memory_space<vmem>>, vector<1x32xf32>
    %821 = vector.broadcast %820 : vector<1x32xf32> to vector<2x32xf32>
    %822 = arith.addf %819, %821 : vector<2x32xf32>
    %823 = math.tanh %822 : vector<2x32xf32>
    %c0_182 = arith.constant 0 : index
    %c0_183 = arith.constant 0 : index
    %824 = vector.load %arg16[%c0_182, %c0_183] : memref<32x48xf32, #tpu.memory_space<vmem>>, vector<32x48xf32>
    %cst_184 = arith.constant dense<0.000000e+00> : vector<2x48xf32>
    %825 = tpu.matmul %823, %824, %cst_184 {dimension_numbers = #tpu.dot_dimension_numbers<[1], [0], [0], [1], [0, 0, 1, 1], [], []>} : vector<2x32xf32>, vector<32x48xf32>, vector<2x48xf32> -> vector<2x48xf32>
    %c0_185 = arith.constant 0 : index
    %c0_186 = arith.constant 0 : index
    %826 = vector.load %arg17[%c0_185, %c0_186] : memref<1x48xf32, #tpu.memory_space<vmem>>, vector<1x48xf32>
    %827 = vector.broadcast %826 : vector<1x48xf32> to vector<2x48xf32>
    %828 = arith.addf %825, %827 : vector<2x48xf32>
    %829 = vector.extract_strided_slice %828 {offsets = [0, 0], sizes = [1, 48], strides = [1, 1]} : vector<2x48xf32> to vector<1x48xf32>
    %cst_187 = arith.constant dense<0xFF800000> : vector<1xf32>
    %830 = vector.multi_reduction <maximumf>, %829, %cst_187 [1] : vector<1x48xf32> to vector<1xf32>
    %831 = vector.shape_cast %830 : vector<1xf32> to vector<1x1xf32>
    %832 = vector.broadcast %831 : vector<1x1xf32> to vector<1x48xf32>
    %833 = arith.cmpf oeq, %829, %832 : vector<1x48xf32>
    %c48_i32 = arith.constant 48 : i32
    %834 = vector.broadcast %c48_i32 : i32 to vector<1x48xi32>
    %835 = arith.select %833, %2, %834 : vector<1x48xi1>, vector<1x48xi32>
    %cst_188 = arith.constant dense<2147483647> : vector<1xi32>
    %836 = vector.multi_reduction <minsi>, %835, %cst_188 [1] : vector<1x48xi32> to vector<1xi32>
    %837 = vector.shape_cast %836 : vector<1xi32> to vector<1x1xi32>
    %838 = vector.broadcast %831 : vector<1x1xf32> to vector<1x48xf32>
    %839 = arith.subf %829, %838 : vector<1x48xf32>
    %840 = math.exp %839 : vector<1x48xf32>
    %cst_189 = arith.constant dense<0.000000e+00> : vector<1xf32>
    %841 = vector.multi_reduction <add>, %840, %cst_189 [1] : vector<1x48xf32> to vector<1xf32>
    %842 = vector.shape_cast %841 : vector<1xf32> to vector<1x1xf32>
    %cst_190 = arith.constant 1.000000e+00 : f32
    %843 = vector.broadcast %cst_190 : f32 to vector<1x1xf32>
    %844 = arith.divf %843, %842 : vector<1x1xf32>
    %845 = vector.extract_strided_slice %828 {offsets = [1, 0], sizes = [1, 48], strides = [1, 1]} : vector<2x48xf32> to vector<1x48xf32>
    %cst_191 = arith.constant dense<0xFF800000> : vector<1xf32>
    %846 = vector.multi_reduction <maximumf>, %845, %cst_191 [1] : vector<1x48xf32> to vector<1xf32>
    %847 = vector.shape_cast %846 : vector<1xf32> to vector<1x1xf32>
    %848 = vector.broadcast %847 : vector<1x1xf32> to vector<1x48xf32>
    %849 = arith.cmpf oeq, %845, %848 : vector<1x48xf32>
    %c48_i32_192 = arith.constant 48 : i32
    %850 = vector.broadcast %c48_i32_192 : i32 to vector<1x48xi32>
    %851 = arith.select %849, %2, %850 : vector<1x48xi1>, vector<1x48xi32>
    %cst_193 = arith.constant dense<2147483647> : vector<1xi32>
    %852 = vector.multi_reduction <minsi>, %851, %cst_193 [1] : vector<1x48xi32> to vector<1xi32>
    %853 = vector.shape_cast %852 : vector<1xi32> to vector<1x1xi32>
    %854 = vector.broadcast %847 : vector<1x1xf32> to vector<1x48xf32>
    %855 = arith.subf %845, %854 : vector<1x48xf32>
    %856 = math.exp %855 : vector<1x48xf32>
    %cst_194 = arith.constant dense<0.000000e+00> : vector<1xf32>
    %857 = vector.multi_reduction <add>, %856, %cst_194 [1] : vector<1x48xf32> to vector<1xf32>
    %858 = vector.shape_cast %857 : vector<1xf32> to vector<1x1xf32>
    %cst_195 = arith.constant 1.000000e+00 : f32
    %859 = vector.broadcast %cst_195 : f32 to vector<1x1xf32>
    %860 = arith.divf %859, %858 : vector<1x1xf32>
    %861 = tpu.concatenate %837, %853 in 1 : vector<1x1xi32>, vector<1x1xi32> -> vector<1x2xi32>
    %862 = tpu.concatenate %844, %860 in 1 : vector<1x1xf32>, vector<1x1xf32> -> vector<1x2xf32>
    %c0_196 = arith.constant 0 : index
    %c0_197 = arith.constant 0 : index
    %863 = vector.load %arg18[%c0_196, %c0_197] : memref<6x2xi32, #tpu.memory_space<vmem>>, vector<1x2xi32>
    tpu.vector_store %arg18[%c0_196, %c0_197], %861 {strides = array<i32>} : memref<6x2xi32, #tpu.memory_space<vmem>>, vector<1x2xi32>,
    %c0_198 = arith.constant 0 : index
    %c0_199 = arith.constant 0 : index
    %864 = vector.load %arg19[%c0_198, %c0_199] : memref<6x2xf32, #tpu.memory_space<vmem>>, vector<1x2xf32>
    tpu.vector_store %arg19[%c0_198, %c0_199], %862 {strides = array<i32>} : memref<6x2xf32, #tpu.memory_space<vmem>>, vector<1x2xf32>,
    %cst_200 = arith.constant 0.000000e+00 : f32
    %865 = vector.broadcast %cst_200 : f32 to vector<2x48xf32>
    %866 = vector.extract_strided_slice %861 {offsets = [0, 0], sizes = [1, 1], strides = [1, 1]} : vector<1x2xi32> to vector<1x1xi32>
    %867 = vector.broadcast %866 : vector<1x1xi32> to vector<1x48xi32>
    %868 = arith.cmpi eq, %2, %867 : vector<1x48xi32>
    %869 = arith.extui %868 : vector<1x48xi1> to vector<1x48xi32>
    %870 = arith.sitofp %869 : vector<1x48xi32> to vector<1x48xf32>
    %c0_i32_201 = arith.constant 0 : i32
    %871 = vector.broadcast %c0_i32_201 : i32 to vector<2x48xi32>
    %872 = arith.cmpi eq, %0, %871 : vector<2x48xi32>
    %cst_202 = arith.constant 0.000000e+00 : f32
    %873 = vector.shape_cast %870 : vector<1x48xf32> to vector<1x48xf32>
    %874 = vector.broadcast %873 : vector<1x48xf32> to vector<2x48xf32>
    %875 = vector.broadcast %cst_202 : f32 to vector<2x48xf32>
    %876 = arith.select %872, %874, %875 : vector<2x48xi1>, vector<2x48xf32>
    %877 = arith.addf %865, %876 : vector<2x48xf32>
    %878 = vector.extract_strided_slice %861 {offsets = [0, 1], sizes = [1, 1], strides = [1, 1]} : vector<1x2xi32> to vector<1x1xi32>
    %879 = vector.broadcast %878 : vector<1x1xi32> to vector<1x48xi32>
    %880 = arith.cmpi eq, %2, %879 : vector<1x48xi32>
    %881 = arith.extui %880 : vector<1x48xi1> to vector<1x48xi32>
    %882 = arith.sitofp %881 : vector<1x48xi32> to vector<1x48xf32>
    %c1_i32_203 = arith.constant 1 : i32
    %883 = vector.broadcast %c1_i32_203 : i32 to vector<2x48xi32>
    %884 = arith.cmpi eq, %0, %883 : vector<2x48xi32>
    %cst_204 = arith.constant 0.000000e+00 : f32
    %885 = vector.shape_cast %882 : vector<1x48xf32> to vector<1x48xf32>
    %886 = vector.broadcast %885 : vector<1x48xf32> to vector<2x48xf32>
    %887 = vector.broadcast %cst_204 : f32 to vector<2x48xf32>
    %888 = arith.select %884, %886, %887 : vector<2x48xi1>, vector<2x48xf32>
    %889 = arith.addf %877, %888 : vector<2x48xf32>
    %cst_205 = arith.constant dense<0.000000e+00> : vector<2x96xf32>
    %890 = tpu.matmul %889, %689, %cst_205 {dimension_numbers = #tpu.dot_dimension_numbers<[1], [0], [0], [1], [0, 0, 1, 1], [], []>} : vector<2x48xf32>, vector<48x96xf32>, vector<2x96xf32> -> vector<2x96xf32>
    %891 = vector.broadcast %690 : vector<1x96xf32> to vector<2x96xf32>
    %892 = arith.addf %890, %891 : vector<2x96xf32>
    %c0_206 = arith.constant 0 : index
    %c0_207 = arith.constant 0 : index
    %893 = vector.load %arg11[%c0_206, %c0_207] : memref<32x96xf32, #tpu.memory_space<vmem>>, vector<32x96xf32>
    %cst_208 = arith.constant dense<0.000000e+00> : vector<2x96xf32>
    %894 = tpu.matmul %750, %893, %cst_208 {dimension_numbers = #tpu.dot_dimension_numbers<[1], [0], [0], [1], [0, 0, 1, 1], [], []>} : vector<2x32xf32>, vector<32x96xf32>, vector<2x96xf32> -> vector<2x96xf32>
    %c0_209 = arith.constant 0 : index
    %c0_210 = arith.constant 0 : index
    %895 = vector.load %arg13[%c0_209, %c0_210] : memref<1x96xf32, #tpu.memory_space<vmem>>, vector<1x96xf32>
    %896 = vector.broadcast %895 : vector<1x96xf32> to vector<2x96xf32>
    %897 = arith.addf %894, %896 : vector<2x96xf32>
    %898 = vector.extract_strided_slice %892 {offsets = [0, 0], sizes = [2, 32], strides = [1, 1]} : vector<2x96xf32> to vector<2x32xf32>
    %899 = vector.extract_strided_slice %897 {offsets = [0, 0], sizes = [2, 32], strides = [1, 1]} : vector<2x96xf32> to vector<2x32xf32>
    %900 = arith.addf %898, %899 : vector<2x32xf32>
    %901 = arith.negf %900 : vector<2x32xf32>
    %902 = math.exp %901 : vector<2x32xf32>
    %cst_211 = arith.constant 1.000000e+00 : f32
    %903 = vector.broadcast %cst_211 : f32 to vector<2x32xf32>
    %904 = arith.addf %903, %902 : vector<2x32xf32>
    %905 = arith.divf %903, %904 : vector<2x32xf32>
    %906 = vector.extract_strided_slice %892 {offsets = [0, 32], sizes = [2, 32], strides = [1, 1]} : vector<2x96xf32> to vector<2x32xf32>
    %907 = vector.extract_strided_slice %897 {offsets = [0, 32], sizes = [2, 32], strides = [1, 1]} : vector<2x96xf32> to vector<2x32xf32>
    %908 = arith.addf %906, %907 : vector<2x32xf32>
    %909 = arith.negf %908 : vector<2x32xf32>
    %910 = math.exp %909 : vector<2x32xf32>
    %cst_212 = arith.constant 1.000000e+00 : f32
    %911 = vector.broadcast %cst_212 : f32 to vector<2x32xf32>
    %912 = arith.addf %911, %910 : vector<2x32xf32>
    %913 = arith.divf %911, %912 : vector<2x32xf32>
    %914 = vector.extract_strided_slice %892 {offsets = [0, 64], sizes = [2, 32], strides = [1, 1]} : vector<2x96xf32> to vector<2x32xf32>
    %915 = vector.extract_strided_slice %897 {offsets = [0, 64], sizes = [2, 32], strides = [1, 1]} : vector<2x96xf32> to vector<2x32xf32>
    %916 = arith.mulf %905, %915 : vector<2x32xf32>
    %917 = arith.addf %914, %916 : vector<2x32xf32>
    %918 = math.tanh %917 : vector<2x32xf32>
    %cst_213 = arith.constant 1.000000e+00 : f32
    %919 = vector.broadcast %cst_213 : f32 to vector<2x32xf32>
    %920 = arith.subf %919, %913 : vector<2x32xf32>
    %921 = arith.mulf %920, %918 : vector<2x32xf32>
    %922 = arith.mulf %913, %750 : vector<2x32xf32>
    %923 = arith.addf %921, %922 : vector<2x32xf32>
    %924 = arith.mulf %923, %680 : vector<2x32xf32>
    %cst_214 = arith.constant dense<0.000000e+00> : vector<2xf32>
    %925 = vector.multi_reduction <add>, %924, %cst_214 [1] : vector<2x32xf32> to vector<2xf32>
    %926 = vector.shape_cast %925 : vector<2xf32> to vector<2x1xf32>
    %927 = arith.mulf %923, %681 : vector<2x32xf32>
    %cst_215 = arith.constant dense<0.000000e+00> : vector<2xf32>
    %928 = vector.multi_reduction <add>, %927, %cst_215 [1] : vector<2x32xf32> to vector<2xf32>
    %929 = vector.shape_cast %928 : vector<2xf32> to vector<2x1xf32>
    %930 = arith.mulf %923, %682 : vector<2x32xf32>
    %cst_216 = arith.constant dense<0.000000e+00> : vector<2xf32>
    %931 = vector.multi_reduction <add>, %930, %cst_216 [1] : vector<2x32xf32> to vector<2xf32>
    %932 = vector.shape_cast %931 : vector<2xf32> to vector<2x1xf32>
    %933 = arith.mulf %923, %683 : vector<2x32xf32>
    %cst_217 = arith.constant dense<0.000000e+00> : vector<2xf32>
    %934 = vector.multi_reduction <add>, %933, %cst_217 [1] : vector<2x32xf32> to vector<2xf32>
    %935 = vector.shape_cast %934 : vector<2xf32> to vector<2x1xf32>
    %936 = arith.mulf %923, %684 : vector<2x32xf32>
    %cst_218 = arith.constant dense<0.000000e+00> : vector<2xf32>
    %937 = vector.multi_reduction <add>, %936, %cst_218 [1] : vector<2x32xf32> to vector<2xf32>
    %938 = vector.shape_cast %937 : vector<2xf32> to vector<2x1xf32>
    %939 = arith.mulf %923, %685 : vector<2x32xf32>
    %cst_219 = arith.constant dense<0.000000e+00> : vector<2xf32>
    %940 = vector.multi_reduction <add>, %939, %cst_219 [1] : vector<2x32xf32> to vector<2xf32>
    %941 = vector.shape_cast %940 : vector<2xf32> to vector<2x1xf32>
    %942 = arith.mulf %923, %686 : vector<2x32xf32>
    %cst_220 = arith.constant dense<0.000000e+00> : vector<2xf32>
    %943 = vector.multi_reduction <add>, %942, %cst_220 [1] : vector<2x32xf32> to vector<2xf32>
    %944 = vector.shape_cast %943 : vector<2xf32> to vector<2x1xf32>
    %945 = arith.mulf %923, %687 : vector<2x32xf32>
    %cst_221 = arith.constant dense<0.000000e+00> : vector<2xf32>
    %946 = vector.multi_reduction <add>, %945, %cst_221 [1] : vector<2x32xf32> to vector<2xf32>
    %947 = vector.shape_cast %946 : vector<2xf32> to vector<2x1xf32>
    %948 = tpu.concatenate %926, %929, %932, %935, %938, %941, %944, %947 in 1 : vector<2x1xf32>, vector<2x1xf32>, vector<2x1xf32>, vector<2x1xf32>, vector<2x1xf32>, vector<2x1xf32>, vector<2x1xf32>, vector<2x1xf32> -> vector<2x8xf32>
    %cst_222 = arith.constant dense<0xFF800000> : vector<2xf32>
    %949 = vector.multi_reduction <maximumf>, %948, %cst_222 [1] : vector<2x8xf32> to vector<2xf32>
    %950 = vector.shape_cast %949 : vector<2xf32> to vector<2x1xf32>
    %951 = vector.broadcast %950 : vector<2x1xf32> to vector<2x8xf32>
    %952 = arith.subf %948, %951 : vector<2x8xf32>
    %953 = math.exp %952 : vector<2x8xf32>
    %cst_223 = arith.constant dense<0.000000e+00> : vector<2xf32>
    %954 = vector.multi_reduction <add>, %953, %cst_223 [1] : vector<2x8xf32> to vector<2xf32>
    %955 = vector.shape_cast %954 : vector<2xf32> to vector<2x1xf32>
    %956 = tpu.reciprocal %955 {approx = true} : vector<2x1xf32> -> vector<2x1xf32>
    %957 = vector.broadcast %956 : vector<2x1xf32> to vector<2x8xf32>
    %958 = arith.mulf %953, %957 : vector<2x8xf32>
    %959 = vector.extract_strided_slice %958 {offsets = [0, 0], sizes = [2, 1], strides = [1, 1]} : vector<2x8xf32> to vector<2x1xf32>
    %960 = vector.broadcast %959 : vector<2x1xf32> to vector<2x32xf32>
    %961 = arith.mulf %960, %680 : vector<2x32xf32>
    %962 = vector.extract_strided_slice %958 {offsets = [0, 1], sizes = [2, 1], strides = [1, 1]} : vector<2x8xf32> to vector<2x1xf32>
    %963 = vector.broadcast %962 : vector<2x1xf32> to vector<2x32xf32>
    %964 = arith.mulf %963, %681 : vector<2x32xf32>
    %965 = arith.addf %961, %964 : vector<2x32xf32>
    %966 = vector.extract_strided_slice %958 {offsets = [0, 2], sizes = [2, 1], strides = [1, 1]} : vector<2x8xf32> to vector<2x1xf32>
    %967 = vector.broadcast %966 : vector<2x1xf32> to vector<2x32xf32>
    %968 = arith.mulf %967, %682 : vector<2x32xf32>
    %969 = arith.addf %965, %968 : vector<2x32xf32>
    %970 = vector.extract_strided_slice %958 {offsets = [0, 3], sizes = [2, 1], strides = [1, 1]} : vector<2x8xf32> to vector<2x1xf32>
    %971 = vector.broadcast %970 : vector<2x1xf32> to vector<2x32xf32>
    %972 = arith.mulf %971, %683 : vector<2x32xf32>
    %973 = arith.addf %969, %972 : vector<2x32xf32>
    %974 = vector.extract_strided_slice %958 {offsets = [0, 4], sizes = [2, 1], strides = [1, 1]} : vector<2x8xf32> to vector<2x1xf32>
    %975 = vector.broadcast %974 : vector<2x1xf32> to vector<2x32xf32>
    %976 = arith.mulf %975, %684 : vector<2x32xf32>
    %977 = arith.addf %973, %976 : vector<2x32xf32>
    %978 = vector.extract_strided_slice %958 {offsets = [0, 5], sizes = [2, 1], strides = [1, 1]} : vector<2x8xf32> to vector<2x1xf32>
    %979 = vector.broadcast %978 : vector<2x1xf32> to vector<2x32xf32>
    %980 = arith.mulf %979, %685 : vector<2x32xf32>
    %981 = arith.addf %977, %980 : vector<2x32xf32>
    %982 = vector.extract_strided_slice %958 {offsets = [0, 6], sizes = [2, 1], strides = [1, 1]} : vector<2x8xf32> to vector<2x1xf32>
    %983 = vector.broadcast %982 : vector<2x1xf32> to vector<2x32xf32>
    %984 = arith.mulf %983, %686 : vector<2x32xf32>
    %985 = arith.addf %981, %984 : vector<2x32xf32>
    %986 = vector.extract_strided_slice %958 {offsets = [0, 7], sizes = [2, 1], strides = [1, 1]} : vector<2x8xf32> to vector<2x1xf32>
    %987 = vector.broadcast %986 : vector<2x1xf32> to vector<2x32xf32>
    %988 = arith.mulf %987, %687 : vector<2x32xf32>
    %989 = arith.addf %985, %988 : vector<2x32xf32>
    %990 = tpu.concatenate %923, %989 in 1 : vector<2x32xf32>, vector<2x32xf32> -> vector<2x64xf32>
    %c0_224 = arith.constant 0 : index
    %c0_225 = arith.constant 0 : index
    %991 = vector.load %arg14[%c0_224, %c0_225] : memref<64x32xf32, #tpu.memory_space<vmem>>, vector<64x32xf32>
    %cst_226 = arith.constant dense<0.000000e+00> : vector<2x32xf32>
    %992 = tpu.matmul %990, %991, %cst_226 {dimension_numbers = #tpu.dot_dimension_numbers<[1], [0], [0], [1], [0, 0, 1, 1], [], []>} : vector<2x64xf32>, vector<64x32xf32>, vector<2x32xf32> -> vector<2x32xf32>
    %c0_227 = arith.constant 0 : index
    %c0_228 = arith.constant 0 : index
    %993 = vector.load %arg15[%c0_227, %c0_228] : memref<1x32xf32, #tpu.memory_space<vmem>>, vector<1x32xf32>
    %994 = vector.broadcast %993 : vector<1x32xf32> to vector<2x32xf32>
    %995 = arith.addf %992, %994 : vector<2x32xf32>
    %996 = math.tanh %995 : vector<2x32xf32>
    %c0_229 = arith.constant 0 : index
    %c0_230 = arith.constant 0 : index
    %997 = vector.load %arg16[%c0_229, %c0_230] : memref<32x48xf32, #tpu.memory_space<vmem>>, vector<32x48xf32>
    %cst_231 = arith.constant dense<0.000000e+00> : vector<2x48xf32>
    %998 = tpu.matmul %996, %997, %cst_231 {dimension_numbers = #tpu.dot_dimension_numbers<[1], [0], [0], [1], [0, 0, 1, 1], [], []>} : vector<2x32xf32>, vector<32x48xf32>, vector<2x48xf32> -> vector<2x48xf32>
    %c0_232 = arith.constant 0 : index
    %c0_233 = arith.constant 0 : index
    %999 = vector.load %arg17[%c0_232, %c0_233] : memref<1x48xf32, #tpu.memory_space<vmem>>, vector<1x48xf32>
    %1000 = vector.broadcast %999 : vector<1x48xf32> to vector<2x48xf32>
    %1001 = arith.addf %998, %1000 : vector<2x48xf32>
    %1002 = vector.extract_strided_slice %1001 {offsets = [0, 0], sizes = [1, 48], strides = [1, 1]} : vector<2x48xf32> to vector<1x48xf32>
    %cst_234 = arith.constant dense<0xFF800000> : vector<1xf32>
    %1003 = vector.multi_reduction <maximumf>, %1002, %cst_234 [1] : vector<1x48xf32> to vector<1xf32>
    %1004 = vector.shape_cast %1003 : vector<1xf32> to vector<1x1xf32>
    %1005 = vector.broadcast %1004 : vector<1x1xf32> to vector<1x48xf32>
    %1006 = arith.cmpf oeq, %1002, %1005 : vector<1x48xf32>
    %c48_i32_235 = arith.constant 48 : i32
    %1007 = vector.broadcast %c48_i32_235 : i32 to vector<1x48xi32>
    %1008 = arith.select %1006, %2, %1007 : vector<1x48xi1>, vector<1x48xi32>
    %cst_236 = arith.constant dense<2147483647> : vector<1xi32>
    %1009 = vector.multi_reduction <minsi>, %1008, %cst_236 [1] : vector<1x48xi32> to vector<1xi32>
    %1010 = vector.shape_cast %1009 : vector<1xi32> to vector<1x1xi32>
    %1011 = vector.broadcast %1004 : vector<1x1xf32> to vector<1x48xf32>
    %1012 = arith.subf %1002, %1011 : vector<1x48xf32>
    %1013 = math.exp %1012 : vector<1x48xf32>
    %cst_237 = arith.constant dense<0.000000e+00> : vector<1xf32>
    %1014 = vector.multi_reduction <add>, %1013, %cst_237 [1] : vector<1x48xf32> to vector<1xf32>
    %1015 = vector.shape_cast %1014 : vector<1xf32> to vector<1x1xf32>
    %cst_238 = arith.constant 1.000000e+00 : f32
    %1016 = vector.broadcast %cst_238 : f32 to vector<1x1xf32>
    %1017 = arith.divf %1016, %1015 : vector<1x1xf32>
    %1018 = vector.extract_strided_slice %1001 {offsets = [1, 0], sizes = [1, 48], strides = [1, 1]} : vector<2x48xf32> to vector<1x48xf32>
    %cst_239 = arith.constant dense<0xFF800000> : vector<1xf32>
    %1019 = vector.multi_reduction <maximumf>, %1018, %cst_239 [1] : vector<1x48xf32> to vector<1xf32>
    %1020 = vector.shape_cast %1019 : vector<1xf32> to vector<1x1xf32>
    %1021 = vector.broadcast %1020 : vector<1x1xf32> to vector<1x48xf32>
    %1022 = arith.cmpf oeq, %1018, %1021 : vector<1x48xf32>
    %c48_i32_240 = arith.constant 48 : i32
    %1023 = vector.broadcast %c48_i32_240 : i32 to vector<1x48xi32>
    %1024 = arith.select %1022, %2, %1023 : vector<1x48xi1>, vector<1x48xi32>
    %cst_241 = arith.constant dense<2147483647> : vector<1xi32>
    %1025 = vector.multi_reduction <minsi>, %1024, %cst_241 [1] : vector<1x48xi32> to vector<1xi32>
    %1026 = vector.shape_cast %1025 : vector<1xi32> to vector<1x1xi32>
    %1027 = vector.broadcast %1020 : vector<1x1xf32> to vector<1x48xf32>
    %1028 = arith.subf %1018, %1027 : vector<1x48xf32>
    %1029 = math.exp %1028 : vector<1x48xf32>
    %cst_242 = arith.constant dense<0.000000e+00> : vector<1xf32>
    %1030 = vector.multi_reduction <add>, %1029, %cst_242 [1] : vector<1x48xf32> to vector<1xf32>
    %1031 = vector.shape_cast %1030 : vector<1xf32> to vector<1x1xf32>
    %cst_243 = arith.constant 1.000000e+00 : f32
    %1032 = vector.broadcast %cst_243 : f32 to vector<1x1xf32>
    %1033 = arith.divf %1032, %1031 : vector<1x1xf32>
    %1034 = tpu.concatenate %1010, %1026 in 1 : vector<1x1xi32>, vector<1x1xi32> -> vector<1x2xi32>
    %1035 = tpu.concatenate %1017, %1033 in 1 : vector<1x1xf32>, vector<1x1xf32> -> vector<1x2xf32>
    %c1_244 = arith.constant 1 : index
    %c0_245 = arith.constant 0 : index
    %1036 = vector.load %arg18[%c1_244, %c0_245] : memref<6x2xi32, #tpu.memory_space<vmem>>, vector<1x2xi32>
    tpu.vector_store %arg18[%c1_244, %c0_245], %1034 {strides = array<i32>} : memref<6x2xi32, #tpu.memory_space<vmem>>, vector<1x2xi32>,
    %c1_246 = arith.constant 1 : index
    %c0_247 = arith.constant 0 : index
    %1037 = vector.load %arg19[%c1_246, %c0_247] : memref<6x2xf32, #tpu.memory_space<vmem>>, vector<1x2xf32>
    tpu.vector_store %arg19[%c1_246, %c0_247], %1035 {strides = array<i32>} : memref<6x2xf32, #tpu.memory_space<vmem>>, vector<1x2xf32>,
    %cst_248 = arith.constant 0.000000e+00 : f32
    %1038 = vector.broadcast %cst_248 : f32 to vector<2x48xf32>
    %1039 = vector.extract_strided_slice %1034 {offsets = [0, 0], sizes = [1, 1], strides = [1, 1]} : vector<1x2xi32> to vector<1x1xi32>
    %1040 = vector.broadcast %1039 : vector<1x1xi32> to vector<1x48xi32>
    %1041 = arith.cmpi eq, %2, %1040 : vector<1x48xi32>
    %1042 = arith.extui %1041 : vector<1x48xi1> to vector<1x48xi32>
    %1043 = arith.sitofp %1042 : vector<1x48xi32> to vector<1x48xf32>
    %c0_i32_249 = arith.constant 0 : i32
    %1044 = vector.broadcast %c0_i32_249 : i32 to vector<2x48xi32>
    %1045 = arith.cmpi eq, %0, %1044 : vector<2x48xi32>
    %cst_250 = arith.constant 0.000000e+00 : f32
    %1046 = vector.shape_cast %1043 : vector<1x48xf32> to vector<1x48xf32>
    %1047 = vector.broadcast %1046 : vector<1x48xf32> to vector<2x48xf32>
    %1048 = vector.broadcast %cst_250 : f32 to vector<2x48xf32>
    %1049 = arith.select %1045, %1047, %1048 : vector<2x48xi1>, vector<2x48xf32>
    %1050 = arith.addf %1038, %1049 : vector<2x48xf32>
    %1051 = vector.extract_strided_slice %1034 {offsets = [0, 1], sizes = [1, 1], strides = [1, 1]} : vector<1x2xi32> to vector<1x1xi32>
    %1052 = vector.broadcast %1051 : vector<1x1xi32> to vector<1x48xi32>
    %1053 = arith.cmpi eq, %2, %1052 : vector<1x48xi32>
    %1054 = arith.extui %1053 : vector<1x48xi1> to vector<1x48xi32>
    %1055 = arith.sitofp %1054 : vector<1x48xi32> to vector<1x48xf32>
    %c1_i32_251 = arith.constant 1 : i32
    %1056 = vector.broadcast %c1_i32_251 : i32 to vector<2x48xi32>
    %1057 = arith.cmpi eq, %0, %1056 : vector<2x48xi32>
    %cst_252 = arith.constant 0.000000e+00 : f32
    %1058 = vector.shape_cast %1055 : vector<1x48xf32> to vector<1x48xf32>
    %1059 = vector.broadcast %1058 : vector<1x48xf32> to vector<2x48xf32>
    %1060 = vector.broadcast %cst_252 : f32 to vector<2x48xf32>
    %1061 = arith.select %1057, %1059, %1060 : vector<2x48xi1>, vector<2x48xf32>
    %1062 = arith.addf %1050, %1061 : vector<2x48xf32>
    %cst_253 = arith.constant dense<0.000000e+00> : vector<2x96xf32>
    %1063 = tpu.matmul %1062, %689, %cst_253 {dimension_numbers = #tpu.dot_dimension_numbers<[1], [0], [0], [1], [0, 0, 1, 1], [], []>} : vector<2x48xf32>, vector<48x96xf32>, vector<2x96xf32> -> vector<2x96xf32>
    %1064 = vector.broadcast %690 : vector<1x96xf32> to vector<2x96xf32>
    %1065 = arith.addf %1063, %1064 : vector<2x96xf32>
    %c0_254 = arith.constant 0 : index
    %c0_255 = arith.constant 0 : index
    %1066 = vector.load %arg11[%c0_254, %c0_255] : memref<32x96xf32, #tpu.memory_space<vmem>>, vector<32x96xf32>
    %cst_256 = arith.constant dense<0.000000e+00> : vector<2x96xf32>
    %1067 = tpu.matmul %923, %1066, %cst_256 {dimension_numbers = #tpu.dot_dimension_numbers<[1], [0], [0], [1], [0, 0, 1, 1], [], []>} : vector<2x32xf32>, vector<32x96xf32>, vector<2x96xf32> -> vector<2x96xf32>
    %c0_257 = arith.constant 0 : index
    %c0_258 = arith.constant 0 : index
    %1068 = vector.load %arg13[%c0_257, %c0_258] : memref<1x96xf32, #tpu.memory_space<vmem>>, vector<1x96xf32>
    %1069 = vector.broadcast %1068 : vector<1x96xf32> to vector<2x96xf32>
    %1070 = arith.addf %1067, %1069 : vector<2x96xf32>
    %1071 = vector.extract_strided_slice %1065 {offsets = [0, 0], sizes = [2, 32], strides = [1, 1]} : vector<2x96xf32> to vector<2x32xf32>
    %1072 = vector.extract_strided_slice %1070 {offsets = [0, 0], sizes = [2, 32], strides = [1, 1]} : vector<2x96xf32> to vector<2x32xf32>
    %1073 = arith.addf %1071, %1072 : vector<2x32xf32>
    %1074 = arith.negf %1073 : vector<2x32xf32>
    %1075 = math.exp %1074 : vector<2x32xf32>
    %cst_259 = arith.constant 1.000000e+00 : f32
    %1076 = vector.broadcast %cst_259 : f32 to vector<2x32xf32>
    %1077 = arith.addf %1076, %1075 : vector<2x32xf32>
    %1078 = arith.divf %1076, %1077 : vector<2x32xf32>
    %1079 = vector.extract_strided_slice %1065 {offsets = [0, 32], sizes = [2, 32], strides = [1, 1]} : vector<2x96xf32> to vector<2x32xf32>
    %1080 = vector.extract_strided_slice %1070 {offsets = [0, 32], sizes = [2, 32], strides = [1, 1]} : vector<2x96xf32> to vector<2x32xf32>
    %1081 = arith.addf %1079, %1080 : vector<2x32xf32>
    %1082 = arith.negf %1081 : vector<2x32xf32>
    %1083 = math.exp %1082 : vector<2x32xf32>
    %cst_260 = arith.constant 1.000000e+00 : f32
    %1084 = vector.broadcast %cst_260 : f32 to vector<2x32xf32>
    %1085 = arith.addf %1084, %1083 : vector<2x32xf32>
    %1086 = arith.divf %1084, %1085 : vector<2x32xf32>
    %1087 = vector.extract_strided_slice %1065 {offsets = [0, 64], sizes = [2, 32], strides = [1, 1]} : vector<2x96xf32> to vector<2x32xf32>
    %1088 = vector.extract_strided_slice %1070 {offsets = [0, 64], sizes = [2, 32], strides = [1, 1]} : vector<2x96xf32> to vector<2x32xf32>
    %1089 = arith.mulf %1078, %1088 : vector<2x32xf32>
    %1090 = arith.addf %1087, %1089 : vector<2x32xf32>
    %1091 = math.tanh %1090 : vector<2x32xf32>
    %cst_261 = arith.constant 1.000000e+00 : f32
    %1092 = vector.broadcast %cst_261 : f32 to vector<2x32xf32>
    %1093 = arith.subf %1092, %1086 : vector<2x32xf32>
    %1094 = arith.mulf %1093, %1091 : vector<2x32xf32>
    %1095 = arith.mulf %1086, %923 : vector<2x32xf32>
    %1096 = arith.addf %1094, %1095 : vector<2x32xf32>
    %1097 = arith.mulf %1096, %680 : vector<2x32xf32>
    %cst_262 = arith.constant dense<0.000000e+00> : vector<2xf32>
    %1098 = vector.multi_reduction <add>, %1097, %cst_262 [1] : vector<2x32xf32> to vector<2xf32>
    %1099 = vector.shape_cast %1098 : vector<2xf32> to vector<2x1xf32>
    %1100 = arith.mulf %1096, %681 : vector<2x32xf32>
    %cst_263 = arith.constant dense<0.000000e+00> : vector<2xf32>
    %1101 = vector.multi_reduction <add>, %1100, %cst_263 [1] : vector<2x32xf32> to vector<2xf32>
    %1102 = vector.shape_cast %1101 : vector<2xf32> to vector<2x1xf32>
    %1103 = arith.mulf %1096, %682 : vector<2x32xf32>
    %cst_264 = arith.constant dense<0.000000e+00> : vector<2xf32>
    %1104 = vector.multi_reduction <add>, %1103, %cst_264 [1] : vector<2x32xf32> to vector<2xf32>
    %1105 = vector.shape_cast %1104 : vector<2xf32> to vector<2x1xf32>
    %1106 = arith.mulf %1096, %683 : vector<2x32xf32>
    %cst_265 = arith.constant dense<0.000000e+00> : vector<2xf32>
    %1107 = vector.multi_reduction <add>, %1106, %cst_265 [1] : vector<2x32xf32> to vector<2xf32>
    %1108 = vector.shape_cast %1107 : vector<2xf32> to vector<2x1xf32>
    %1109 = arith.mulf %1096, %684 : vector<2x32xf32>
    %cst_266 = arith.constant dense<0.000000e+00> : vector<2xf32>
    %1110 = vector.multi_reduction <add>, %1109, %cst_266 [1] : vector<2x32xf32> to vector<2xf32>
    %1111 = vector.shape_cast %1110 : vector<2xf32> to vector<2x1xf32>
    %1112 = arith.mulf %1096, %685 : vector<2x32xf32>
    %cst_267 = arith.constant dense<0.000000e+00> : vector<2xf32>
    %1113 = vector.multi_reduction <add>, %1112, %cst_267 [1] : vector<2x32xf32> to vector<2xf32>
    %1114 = vector.shape_cast %1113 : vector<2xf32> to vector<2x1xf32>
    %1115 = arith.mulf %1096, %686 : vector<2x32xf32>
    %cst_268 = arith.constant dense<0.000000e+00> : vector<2xf32>
    %1116 = vector.multi_reduction <add>, %1115, %cst_268 [1] : vector<2x32xf32> to vector<2xf32>
    %1117 = vector.shape_cast %1116 : vector<2xf32> to vector<2x1xf32>
    %1118 = arith.mulf %1096, %687 : vector<2x32xf32>
    %cst_269 = arith.constant dense<0.000000e+00> : vector<2xf32>
    %1119 = vector.multi_reduction <add>, %1118, %cst_269 [1] : vector<2x32xf32> to vector<2xf32>
    %1120 = vector.shape_cast %1119 : vector<2xf32> to vector<2x1xf32>
    %1121 = tpu.concatenate %1099, %1102, %1105, %1108, %1111, %1114, %1117, %1120 in 1 : vector<2x1xf32>, vector<2x1xf32>, vector<2x1xf32>, vector<2x1xf32>, vector<2x1xf32>, vector<2x1xf32>, vector<2x1xf32>, vector<2x1xf32> -> vector<2x8xf32>
    %cst_270 = arith.constant dense<0xFF800000> : vector<2xf32>
    %1122 = vector.multi_reduction <maximumf>, %1121, %cst_270 [1] : vector<2x8xf32> to vector<2xf32>
    %1123 = vector.shape_cast %1122 : vector<2xf32> to vector<2x1xf32>
    %1124 = vector.broadcast %1123 : vector<2x1xf32> to vector<2x8xf32>
    %1125 = arith.subf %1121, %1124 : vector<2x8xf32>
    %1126 = math.exp %1125 : vector<2x8xf32>
    %cst_271 = arith.constant dense<0.000000e+00> : vector<2xf32>
    %1127 = vector.multi_reduction <add>, %1126, %cst_271 [1] : vector<2x8xf32> to vector<2xf32>
    %1128 = vector.shape_cast %1127 : vector<2xf32> to vector<2x1xf32>
    %1129 = tpu.reciprocal %1128 {approx = true} : vector<2x1xf32> -> vector<2x1xf32>
    %1130 = vector.broadcast %1129 : vector<2x1xf32> to vector<2x8xf32>
    %1131 = arith.mulf %1126, %1130 : vector<2x8xf32>
    %1132 = vector.extract_strided_slice %1131 {offsets = [0, 0], sizes = [2, 1], strides = [1, 1]} : vector<2x8xf32> to vector<2x1xf32>
    %1133 = vector.broadcast %1132 : vector<2x1xf32> to vector<2x32xf32>
    %1134 = arith.mulf %1133, %680 : vector<2x32xf32>
    %1135 = vector.extract_strided_slice %1131 {offsets = [0, 1], sizes = [2, 1], strides = [1, 1]} : vector<2x8xf32> to vector<2x1xf32>
    %1136 = vector.broadcast %1135 : vector<2x1xf32> to vector<2x32xf32>
    %1137 = arith.mulf %1136, %681 : vector<2x32xf32>
    %1138 = arith.addf %1134, %1137 : vector<2x32xf32>
    %1139 = vector.extract_strided_slice %1131 {offsets = [0, 2], sizes = [2, 1], strides = [1, 1]} : vector<2x8xf32> to vector<2x1xf32>
    %1140 = vector.broadcast %1139 : vector<2x1xf32> to vector<2x32xf32>
    %1141 = arith.mulf %1140, %682 : vector<2x32xf32>
    %1142 = arith.addf %1138, %1141 : vector<2x32xf32>
    %1143 = vector.extract_strided_slice %1131 {offsets = [0, 3], sizes = [2, 1], strides = [1, 1]} : vector<2x8xf32> to vector<2x1xf32>
    %1144 = vector.broadcast %1143 : vector<2x1xf32> to vector<2x32xf32>
    %1145 = arith.mulf %1144, %683 : vector<2x32xf32>
    %1146 = arith.addf %1142, %1145 : vector<2x32xf32>
    %1147 = vector.extract_strided_slice %1131 {offsets = [0, 4], sizes = [2, 1], strides = [1, 1]} : vector<2x8xf32> to vector<2x1xf32>
    %1148 = vector.broadcast %1147 : vector<2x1xf32> to vector<2x32xf32>
    %1149 = arith.mulf %1148, %684 : vector<2x32xf32>
    %1150 = arith.addf %1146, %1149 : vector<2x32xf32>
    %1151 = vector.extract_strided_slice %1131 {offsets = [0, 5], sizes = [2, 1], strides = [1, 1]} : vector<2x8xf32> to vector<2x1xf32>
    %1152 = vector.broadcast %1151 : vector<2x1xf32> to vector<2x32xf32>
    %1153 = arith.mulf %1152, %685 : vector<2x32xf32>
    %1154 = arith.addf %1150, %1153 : vector<2x32xf32>
    %1155 = vector.extract_strided_slice %1131 {offsets = [0, 6], sizes = [2, 1], strides = [1, 1]} : vector<2x8xf32> to vector<2x1xf32>
    %1156 = vector.broadcast %1155 : vector<2x1xf32> to vector<2x32xf32>
    %1157 = arith.mulf %1156, %686 : vector<2x32xf32>
    %1158 = arith.addf %1154, %1157 : vector<2x32xf32>
    %1159 = vector.extract_strided_slice %1131 {offsets = [0, 7], sizes = [2, 1], strides = [1, 1]} : vector<2x8xf32> to vector<2x1xf32>
    %1160 = vector.broadcast %1159 : vector<2x1xf32> to vector<2x32xf32>
    %1161 = arith.mulf %1160, %687 : vector<2x32xf32>
    %1162 = arith.addf %1158, %1161 : vector<2x32xf32>
    %1163 = tpu.concatenate %1096, %1162 in 1 : vector<2x32xf32>, vector<2x32xf32> -> vector<2x64xf32>
    %c0_272 = arith.constant 0 : index
    %c0_273 = arith.constant 0 : index
    %1164 = vector.load %arg14[%c0_272, %c0_273] : memref<64x32xf32, #tpu.memory_space<vmem>>, vector<64x32xf32>
    %cst_274 = arith.constant dense<0.000000e+00> : vector<2x32xf32>
    %1165 = tpu.matmul %1163, %1164, %cst_274 {dimension_numbers = #tpu.dot_dimension_numbers<[1], [0], [0], [1], [0, 0, 1, 1], [], []>} : vector<2x64xf32>, vector<64x32xf32>, vector<2x32xf32> -> vector<2x32xf32>
    %c0_275 = arith.constant 0 : index
    %c0_276 = arith.constant 0 : index
    %1166 = vector.load %arg15[%c0_275, %c0_276] : memref<1x32xf32, #tpu.memory_space<vmem>>, vector<1x32xf32>
    %1167 = vector.broadcast %1166 : vector<1x32xf32> to vector<2x32xf32>
    %1168 = arith.addf %1165, %1167 : vector<2x32xf32>
    %1169 = math.tanh %1168 : vector<2x32xf32>
    %c0_277 = arith.constant 0 : index
    %c0_278 = arith.constant 0 : index
    %1170 = vector.load %arg16[%c0_277, %c0_278] : memref<32x48xf32, #tpu.memory_space<vmem>>, vector<32x48xf32>
    %cst_279 = arith.constant dense<0.000000e+00> : vector<2x48xf32>
    %1171 = tpu.matmul %1169, %1170, %cst_279 {dimension_numbers = #tpu.dot_dimension_numbers<[1], [0], [0], [1], [0, 0, 1, 1], [], []>} : vector<2x32xf32>, vector<32x48xf32>, vector<2x48xf32> -> vector<2x48xf32>
    %c0_280 = arith.constant 0 : index
    %c0_281 = arith.constant 0 : index
    %1172 = vector.load %arg17[%c0_280, %c0_281] : memref<1x48xf32, #tpu.memory_space<vmem>>, vector<1x48xf32>
    %1173 = vector.broadcast %1172 : vector<1x48xf32> to vector<2x48xf32>
    %1174 = arith.addf %1171, %1173 : vector<2x48xf32>
    %1175 = vector.extract_strided_slice %1174 {offsets = [0, 0], sizes = [1, 48], strides = [1, 1]} : vector<2x48xf32> to vector<1x48xf32>
    %cst_282 = arith.constant dense<0xFF800000> : vector<1xf32>
    %1176 = vector.multi_reduction <maximumf>, %1175, %cst_282 [1] : vector<1x48xf32> to vector<1xf32>
    %1177 = vector.shape_cast %1176 : vector<1xf32> to vector<1x1xf32>
    %1178 = vector.broadcast %1177 : vector<1x1xf32> to vector<1x48xf32>
    %1179 = arith.cmpf oeq, %1175, %1178 : vector<1x48xf32>
    %c48_i32_283 = arith.constant 48 : i32
    %1180 = vector.broadcast %c48_i32_283 : i32 to vector<1x48xi32>
    %1181 = arith.select %1179, %2, %1180 : vector<1x48xi1>, vector<1x48xi32>
    %cst_284 = arith.constant dense<2147483647> : vector<1xi32>
    %1182 = vector.multi_reduction <minsi>, %1181, %cst_284 [1] : vector<1x48xi32> to vector<1xi32>
    %1183 = vector.shape_cast %1182 : vector<1xi32> to vector<1x1xi32>
    %1184 = vector.broadcast %1177 : vector<1x1xf32> to vector<1x48xf32>
    %1185 = arith.subf %1175, %1184 : vector<1x48xf32>
    %1186 = math.exp %1185 : vector<1x48xf32>
    %cst_285 = arith.constant dense<0.000000e+00> : vector<1xf32>
    %1187 = vector.multi_reduction <add>, %1186, %cst_285 [1] : vector<1x48xf32> to vector<1xf32>
    %1188 = vector.shape_cast %1187 : vector<1xf32> to vector<1x1xf32>
    %cst_286 = arith.constant 1.000000e+00 : f32
    %1189 = vector.broadcast %cst_286 : f32 to vector<1x1xf32>
    %1190 = arith.divf %1189, %1188 : vector<1x1xf32>
    %1191 = vector.extract_strided_slice %1174 {offsets = [1, 0], sizes = [1, 48], strides = [1, 1]} : vector<2x48xf32> to vector<1x48xf32>
    %cst_287 = arith.constant dense<0xFF800000> : vector<1xf32>
    %1192 = vector.multi_reduction <maximumf>, %1191, %cst_287 [1] : vector<1x48xf32> to vector<1xf32>
    %1193 = vector.shape_cast %1192 : vector<1xf32> to vector<1x1xf32>
    %1194 = vector.broadcast %1193 : vector<1x1xf32> to vector<1x48xf32>
    %1195 = arith.cmpf oeq, %1191, %1194 : vector<1x48xf32>
    %c48_i32_288 = arith.constant 48 : i32
    %1196 = vector.broadcast %c48_i32_288 : i32 to vector<1x48xi32>
    %1197 = arith.select %1195, %2, %1196 : vector<1x48xi1>, vector<1x48xi32>
    %cst_289 = arith.constant dense<2147483647> : vector<1xi32>
    %1198 = vector.multi_reduction <minsi>, %1197, %cst_289 [1] : vector<1x48xi32> to vector<1xi32>
    %1199 = vector.shape_cast %1198 : vector<1xi32> to vector<1x1xi32>
    %1200 = vector.broadcast %1193 : vector<1x1xf32> to vector<1x48xf32>
    %1201 = arith.subf %1191, %1200 : vector<1x48xf32>
    %1202 = math.exp %1201 : vector<1x48xf32>
    %cst_290 = arith.constant dense<0.000000e+00> : vector<1xf32>
    %1203 = vector.multi_reduction <add>, %1202, %cst_290 [1] : vector<1x48xf32> to vector<1xf32>
    %1204 = vector.shape_cast %1203 : vector<1xf32> to vector<1x1xf32>
    %cst_291 = arith.constant 1.000000e+00 : f32
    %1205 = vector.broadcast %cst_291 : f32 to vector<1x1xf32>
    %1206 = arith.divf %1205, %1204 : vector<1x1xf32>
    %1207 = tpu.concatenate %1183, %1199 in 1 : vector<1x1xi32>, vector<1x1xi32> -> vector<1x2xi32>
    %1208 = tpu.concatenate %1190, %1206 in 1 : vector<1x1xf32>, vector<1x1xf32> -> vector<1x2xf32>
    %c2_292 = arith.constant 2 : index
    %c0_293 = arith.constant 0 : index
    %1209 = vector.load %arg18[%c2_292, %c0_293] : memref<6x2xi32, #tpu.memory_space<vmem>>, vector<1x2xi32>
    tpu.vector_store %arg18[%c2_292, %c0_293], %1207 {strides = array<i32>} : memref<6x2xi32, #tpu.memory_space<vmem>>, vector<1x2xi32>,
    %c2_294 = arith.constant 2 : index
    %c0_295 = arith.constant 0 : index
    %1210 = vector.load %arg19[%c2_294, %c0_295] : memref<6x2xf32, #tpu.memory_space<vmem>>, vector<1x2xf32>
    tpu.vector_store %arg19[%c2_294, %c0_295], %1208 {strides = array<i32>} : memref<6x2xf32, #tpu.memory_space<vmem>>, vector<1x2xf32>,
    %cst_296 = arith.constant 0.000000e+00 : f32
    %1211 = vector.broadcast %cst_296 : f32 to vector<2x48xf32>
    %1212 = vector.extract_strided_slice %1207 {offsets = [0, 0], sizes = [1, 1], strides = [1, 1]} : vector<1x2xi32> to vector<1x1xi32>
    %1213 = vector.broadcast %1212 : vector<1x1xi32> to vector<1x48xi32>
    %1214 = arith.cmpi eq, %2, %1213 : vector<1x48xi32>
    %1215 = arith.extui %1214 : vector<1x48xi1> to vector<1x48xi32>
    %1216 = arith.sitofp %1215 : vector<1x48xi32> to vector<1x48xf32>
    %c0_i32_297 = arith.constant 0 : i32
    %1217 = vector.broadcast %c0_i32_297 : i32 to vector<2x48xi32>
    %1218 = arith.cmpi eq, %0, %1217 : vector<2x48xi32>
    %cst_298 = arith.constant 0.000000e+00 : f32
    %1219 = vector.shape_cast %1216 : vector<1x48xf32> to vector<1x48xf32>
    %1220 = vector.broadcast %1219 : vector<1x48xf32> to vector<2x48xf32>
    %1221 = vector.broadcast %cst_298 : f32 to vector<2x48xf32>
    %1222 = arith.select %1218, %1220, %1221 : vector<2x48xi1>, vector<2x48xf32>
    %1223 = arith.addf %1211, %1222 : vector<2x48xf32>
    %1224 = vector.extract_strided_slice %1207 {offsets = [0, 1], sizes = [1, 1], strides = [1, 1]} : vector<1x2xi32> to vector<1x1xi32>
    %1225 = vector.broadcast %1224 : vector<1x1xi32> to vector<1x48xi32>
    %1226 = arith.cmpi eq, %2, %1225 : vector<1x48xi32>
    %1227 = arith.extui %1226 : vector<1x48xi1> to vector<1x48xi32>
    %1228 = arith.sitofp %1227 : vector<1x48xi32> to vector<1x48xf32>
    %c1_i32_299 = arith.constant 1 : i32
    %1229 = vector.broadcast %c1_i32_299 : i32 to vector<2x48xi32>
    %1230 = arith.cmpi eq, %0, %1229 : vector<2x48xi32>
    %cst_300 = arith.constant 0.000000e+00 : f32
    %1231 = vector.shape_cast %1228 : vector<1x48xf32> to vector<1x48xf32>
    %1232 = vector.broadcast %1231 : vector<1x48xf32> to vector<2x48xf32>
    %1233 = vector.broadcast %cst_300 : f32 to vector<2x48xf32>
    %1234 = arith.select %1230, %1232, %1233 : vector<2x48xi1>, vector<2x48xf32>
    %1235 = arith.addf %1223, %1234 : vector<2x48xf32>
    %cst_301 = arith.constant dense<0.000000e+00> : vector<2x96xf32>
    %1236 = tpu.matmul %1235, %689, %cst_301 {dimension_numbers = #tpu.dot_dimension_numbers<[1], [0], [0], [1], [0, 0, 1, 1], [], []>} : vector<2x48xf32>, vector<48x96xf32>, vector<2x96xf32> -> vector<2x96xf32>
    %1237 = vector.broadcast %690 : vector<1x96xf32> to vector<2x96xf32>
    %1238 = arith.addf %1236, %1237 : vector<2x96xf32>
    %c0_302 = arith.constant 0 : index
    %c0_303 = arith.constant 0 : index
    %1239 = vector.load %arg11[%c0_302, %c0_303] : memref<32x96xf32, #tpu.memory_space<vmem>>, vector<32x96xf32>
    %cst_304 = arith.constant dense<0.000000e+00> : vector<2x96xf32>
    %1240 = tpu.matmul %1096, %1239, %cst_304 {dimension_numbers = #tpu.dot_dimension_numbers<[1], [0], [0], [1], [0, 0, 1, 1], [], []>} : vector<2x32xf32>, vector<32x96xf32>, vector<2x96xf32> -> vector<2x96xf32>
    %c0_305 = arith.constant 0 : index
    %c0_306 = arith.constant 0 : index
    %1241 = vector.load %arg13[%c0_305, %c0_306] : memref<1x96xf32, #tpu.memory_space<vmem>>, vector<1x96xf32>
    %1242 = vector.broadcast %1241 : vector<1x96xf32> to vector<2x96xf32>
    %1243 = arith.addf %1240, %1242 : vector<2x96xf32>
    %1244 = vector.extract_strided_slice %1238 {offsets = [0, 0], sizes = [2, 32], strides = [1, 1]} : vector<2x96xf32> to vector<2x32xf32>
    %1245 = vector.extract_strided_slice %1243 {offsets = [0, 0], sizes = [2, 32], strides = [1, 1]} : vector<2x96xf32> to vector<2x32xf32>
    %1246 = arith.addf %1244, %1245 : vector<2x32xf32>
    %1247 = arith.negf %1246 : vector<2x32xf32>
    %1248 = math.exp %1247 : vector<2x32xf32>
    %cst_307 = arith.constant 1.000000e+00 : f32
    %1249 = vector.broadcast %cst_307 : f32 to vector<2x32xf32>
    %1250 = arith.addf %1249, %1248 : vector<2x32xf32>
    %1251 = arith.divf %1249, %1250 : vector<2x32xf32>
    %1252 = vector.extract_strided_slice %1238 {offsets = [0, 32], sizes = [2, 32], strides = [1, 1]} : vector<2x96xf32> to vector<2x32xf32>
    %1253 = vector.extract_strided_slice %1243 {offsets = [0, 32], sizes = [2, 32], strides = [1, 1]} : vector<2x96xf32> to vector<2x32xf32>
    %1254 = arith.addf %1252, %1253 : vector<2x32xf32>
    %1255 = arith.negf %1254 : vector<2x32xf32>
    %1256 = math.exp %1255 : vector<2x32xf32>
    %cst_308 = arith.constant 1.000000e+00 : f32
    %1257 = vector.broadcast %cst_308 : f32 to vector<2x32xf32>
    %1258 = arith.addf %1257, %1256 : vector<2x32xf32>
    %1259 = arith.divf %1257, %1258 : vector<2x32xf32>
    %1260 = vector.extract_strided_slice %1238 {offsets = [0, 64], sizes = [2, 32], strides = [1, 1]} : vector<2x96xf32> to vector<2x32xf32>
    %1261 = vector.extract_strided_slice %1243 {offsets = [0, 64], sizes = [2, 32], strides = [1, 1]} : vector<2x96xf32> to vector<2x32xf32>
    %1262 = arith.mulf %1251, %1261 : vector<2x32xf32>
    %1263 = arith.addf %1260, %1262 : vector<2x32xf32>
    %1264 = math.tanh %1263 : vector<2x32xf32>
    %cst_309 = arith.constant 1.000000e+00 : f32
    %1265 = vector.broadcast %cst_309 : f32 to vector<2x32xf32>
    %1266 = arith.subf %1265, %1259 : vector<2x32xf32>
    %1267 = arith.mulf %1266, %1264 : vector<2x32xf32>
    %1268 = arith.mulf %1259, %1096 : vector<2x32xf32>
    %1269 = arith.addf %1267, %1268 : vector<2x32xf32>
    %1270 = arith.mulf %1269, %680 : vector<2x32xf32>
    %cst_310 = arith.constant dense<0.000000e+00> : vector<2xf32>
    %1271 = vector.multi_reduction <add>, %1270, %cst_310 [1] : vector<2x32xf32> to vector<2xf32>
    %1272 = vector.shape_cast %1271 : vector<2xf32> to vector<2x1xf32>
    %1273 = arith.mulf %1269, %681 : vector<2x32xf32>
    %cst_311 = arith.constant dense<0.000000e+00> : vector<2xf32>
    %1274 = vector.multi_reduction <add>, %1273, %cst_311 [1] : vector<2x32xf32> to vector<2xf32>
    %1275 = vector.shape_cast %1274 : vector<2xf32> to vector<2x1xf32>
    %1276 = arith.mulf %1269, %682 : vector<2x32xf32>
    %cst_312 = arith.constant dense<0.000000e+00> : vector<2xf32>
    %1277 = vector.multi_reduction <add>, %1276, %cst_312 [1] : vector<2x32xf32> to vector<2xf32>
    %1278 = vector.shape_cast %1277 : vector<2xf32> to vector<2x1xf32>
    %1279 = arith.mulf %1269, %683 : vector<2x32xf32>
    %cst_313 = arith.constant dense<0.000000e+00> : vector<2xf32>
    %1280 = vector.multi_reduction <add>, %1279, %cst_313 [1] : vector<2x32xf32> to vector<2xf32>
    %1281 = vector.shape_cast %1280 : vector<2xf32> to vector<2x1xf32>
    %1282 = arith.mulf %1269, %684 : vector<2x32xf32>
    %cst_314 = arith.constant dense<0.000000e+00> : vector<2xf32>
    %1283 = vector.multi_reduction <add>, %1282, %cst_314 [1] : vector<2x32xf32> to vector<2xf32>
    %1284 = vector.shape_cast %1283 : vector<2xf32> to vector<2x1xf32>
    %1285 = arith.mulf %1269, %685 : vector<2x32xf32>
    %cst_315 = arith.constant dense<0.000000e+00> : vector<2xf32>
    %1286 = vector.multi_reduction <add>, %1285, %cst_315 [1] : vector<2x32xf32> to vector<2xf32>
    %1287 = vector.shape_cast %1286 : vector<2xf32> to vector<2x1xf32>
    %1288 = arith.mulf %1269, %686 : vector<2x32xf32>
    %cst_316 = arith.constant dense<0.000000e+00> : vector<2xf32>
    %1289 = vector.multi_reduction <add>, %1288, %cst_316 [1] : vector<2x32xf32> to vector<2xf32>
    %1290 = vector.shape_cast %1289 : vector<2xf32> to vector<2x1xf32>
    %1291 = arith.mulf %1269, %687 : vector<2x32xf32>
    %cst_317 = arith.constant dense<0.000000e+00> : vector<2xf32>
    %1292 = vector.multi_reduction <add>, %1291, %cst_317 [1] : vector<2x32xf32> to vector<2xf32>
    %1293 = vector.shape_cast %1292 : vector<2xf32> to vector<2x1xf32>
    %1294 = tpu.concatenate %1272, %1275, %1278, %1281, %1284, %1287, %1290, %1293 in 1 : vector<2x1xf32>, vector<2x1xf32>, vector<2x1xf32>, vector<2x1xf32>, vector<2x1xf32>, vector<2x1xf32>, vector<2x1xf32>, vector<2x1xf32> -> vector<2x8xf32>
    %cst_318 = arith.constant dense<0xFF800000> : vector<2xf32>
    %1295 = vector.multi_reduction <maximumf>, %1294, %cst_318 [1] : vector<2x8xf32> to vector<2xf32>
    %1296 = vector.shape_cast %1295 : vector<2xf32> to vector<2x1xf32>
    %1297 = vector.broadcast %1296 : vector<2x1xf32> to vector<2x8xf32>
    %1298 = arith.subf %1294, %1297 : vector<2x8xf32>
    %1299 = math.exp %1298 : vector<2x8xf32>
    %cst_319 = arith.constant dense<0.000000e+00> : vector<2xf32>
    %1300 = vector.multi_reduction <add>, %1299, %cst_319 [1] : vector<2x8xf32> to vector<2xf32>
    %1301 = vector.shape_cast %1300 : vector<2xf32> to vector<2x1xf32>
    %1302 = tpu.reciprocal %1301 {approx = true} : vector<2x1xf32> -> vector<2x1xf32>
    %1303 = vector.broadcast %1302 : vector<2x1xf32> to vector<2x8xf32>
    %1304 = arith.mulf %1299, %1303 : vector<2x8xf32>
    %1305 = vector.extract_strided_slice %1304 {offsets = [0, 0], sizes = [2, 1], strides = [1, 1]} : vector<2x8xf32> to vector<2x1xf32>
    %1306 = vector.broadcast %1305 : vector<2x1xf32> to vector<2x32xf32>
    %1307 = arith.mulf %1306, %680 : vector<2x32xf32>
    %1308 = vector.extract_strided_slice %1304 {offsets = [0, 1], sizes = [2, 1], strides = [1, 1]} : vector<2x8xf32> to vector<2x1xf32>
    %1309 = vector.broadcast %1308 : vector<2x1xf32> to vector<2x32xf32>
    %1310 = arith.mulf %1309, %681 : vector<2x32xf32>
    %1311 = arith.addf %1307, %1310 : vector<2x32xf32>
    %1312 = vector.extract_strided_slice %1304 {offsets = [0, 2], sizes = [2, 1], strides = [1, 1]} : vector<2x8xf32> to vector<2x1xf32>
    %1313 = vector.broadcast %1312 : vector<2x1xf32> to vector<2x32xf32>
    %1314 = arith.mulf %1313, %682 : vector<2x32xf32>
    %1315 = arith.addf %1311, %1314 : vector<2x32xf32>
    %1316 = vector.extract_strided_slice %1304 {offsets = [0, 3], sizes = [2, 1], strides = [1, 1]} : vector<2x8xf32> to vector<2x1xf32>
    %1317 = vector.broadcast %1316 : vector<2x1xf32> to vector<2x32xf32>
    %1318 = arith.mulf %1317, %683 : vector<2x32xf32>
    %1319 = arith.addf %1315, %1318 : vector<2x32xf32>
    %1320 = vector.extract_strided_slice %1304 {offsets = [0, 4], sizes = [2, 1], strides = [1, 1]} : vector<2x8xf32> to vector<2x1xf32>
    %1321 = vector.broadcast %1320 : vector<2x1xf32> to vector<2x32xf32>
    %1322 = arith.mulf %1321, %684 : vector<2x32xf32>
    %1323 = arith.addf %1319, %1322 : vector<2x32xf32>
    %1324 = vector.extract_strided_slice %1304 {offsets = [0, 5], sizes = [2, 1], strides = [1, 1]} : vector<2x8xf32> to vector<2x1xf32>
    %1325 = vector.broadcast %1324 : vector<2x1xf32> to vector<2x32xf32>
    %1326 = arith.mulf %1325, %685 : vector<2x32xf32>
    %1327 = arith.addf %1323, %1326 : vector<2x32xf32>
    %1328 = vector.extract_strided_slice %1304 {offsets = [0, 6], sizes = [2, 1], strides = [1, 1]} : vector<2x8xf32> to vector<2x1xf32>
    %1329 = vector.broadcast %1328 : vector<2x1xf32> to vector<2x32xf32>
    %1330 = arith.mulf %1329, %686 : vector<2x32xf32>
    %1331 = arith.addf %1327, %1330 : vector<2x32xf32>
    %1332 = vector.extract_strided_slice %1304 {offsets = [0, 7], sizes = [2, 1], strides = [1, 1]} : vector<2x8xf32> to vector<2x1xf32>
    %1333 = vector.broadcast %1332 : vector<2x1xf32> to vector<2x32xf32>
    %1334 = arith.mulf %1333, %687 : vector<2x32xf32>
    %1335 = arith.addf %1331, %1334 : vector<2x32xf32>
    %1336 = tpu.concatenate %1269, %1335 in 1 : vector<2x32xf32>, vector<2x32xf32> -> vector<2x64xf32>
    %c0_320 = arith.constant 0 : index
    %c0_321 = arith.constant 0 : index
    %1337 = vector.load %arg14[%c0_320, %c0_321] : memref<64x32xf32, #tpu.memory_space<vmem>>, vector<64x32xf32>
    %cst_322 = arith.constant dense<0.000000e+00> : vector<2x32xf32>
    %1338 = tpu.matmul %1336, %1337, %cst_322 {dimension_numbers = #tpu.dot_dimension_numbers<[1], [0], [0], [1], [0, 0, 1, 1], [], []>} : vector<2x64xf32>, vector<64x32xf32>, vector<2x32xf32> -> vector<2x32xf32>
    %c0_323 = arith.constant 0 : index
    %c0_324 = arith.constant 0 : index
    %1339 = vector.load %arg15[%c0_323, %c0_324] : memref<1x32xf32, #tpu.memory_space<vmem>>, vector<1x32xf32>
    %1340 = vector.broadcast %1339 : vector<1x32xf32> to vector<2x32xf32>
    %1341 = arith.addf %1338, %1340 : vector<2x32xf32>
    %1342 = math.tanh %1341 : vector<2x32xf32>
    %c0_325 = arith.constant 0 : index
    %c0_326 = arith.constant 0 : index
    %1343 = vector.load %arg16[%c0_325, %c0_326] : memref<32x48xf32, #tpu.memory_space<vmem>>, vector<32x48xf32>
    %cst_327 = arith.constant dense<0.000000e+00> : vector<2x48xf32>
    %1344 = tpu.matmul %1342, %1343, %cst_327 {dimension_numbers = #tpu.dot_dimension_numbers<[1], [0], [0], [1], [0, 0, 1, 1], [], []>} : vector<2x32xf32>, vector<32x48xf32>, vector<2x48xf32> -> vector<2x48xf32>
    %c0_328 = arith.constant 0 : index
    %c0_329 = arith.constant 0 : index
    %1345 = vector.load %arg17[%c0_328, %c0_329] : memref<1x48xf32, #tpu.memory_space<vmem>>, vector<1x48xf32>
    %1346 = vector.broadcast %1345 : vector<1x48xf32> to vector<2x48xf32>
    %1347 = arith.addf %1344, %1346 : vector<2x48xf32>
    %1348 = vector.extract_strided_slice %1347 {offsets = [0, 0], sizes = [1, 48], strides = [1, 1]} : vector<2x48xf32> to vector<1x48xf32>
    %cst_330 = arith.constant dense<0xFF800000> : vector<1xf32>
    %1349 = vector.multi_reduction <maximumf>, %1348, %cst_330 [1] : vector<1x48xf32> to vector<1xf32>
    %1350 = vector.shape_cast %1349 : vector<1xf32> to vector<1x1xf32>
    %1351 = vector.broadcast %1350 : vector<1x1xf32> to vector<1x48xf32>
    %1352 = arith.cmpf oeq, %1348, %1351 : vector<1x48xf32>
    %c48_i32_331 = arith.constant 48 : i32
    %1353 = vector.broadcast %c48_i32_331 : i32 to vector<1x48xi32>
    %1354 = arith.select %1352, %2, %1353 : vector<1x48xi1>, vector<1x48xi32>
    %cst_332 = arith.constant dense<2147483647> : vector<1xi32>
    %1355 = vector.multi_reduction <minsi>, %1354, %cst_332 [1] : vector<1x48xi32> to vector<1xi32>
    %1356 = vector.shape_cast %1355 : vector<1xi32> to vector<1x1xi32>
    %1357 = vector.broadcast %1350 : vector<1x1xf32> to vector<1x48xf32>
    %1358 = arith.subf %1348, %1357 : vector<1x48xf32>
    %1359 = math.exp %1358 : vector<1x48xf32>
    %cst_333 = arith.constant dense<0.000000e+00> : vector<1xf32>
    %1360 = vector.multi_reduction <add>, %1359, %cst_333 [1] : vector<1x48xf32> to vector<1xf32>
    %1361 = vector.shape_cast %1360 : vector<1xf32> to vector<1x1xf32>
    %cst_334 = arith.constant 1.000000e+00 : f32
    %1362 = vector.broadcast %cst_334 : f32 to vector<1x1xf32>
    %1363 = arith.divf %1362, %1361 : vector<1x1xf32>
    %1364 = vector.extract_strided_slice %1347 {offsets = [1, 0], sizes = [1, 48], strides = [1, 1]} : vector<2x48xf32> to vector<1x48xf32>
    %cst_335 = arith.constant dense<0xFF800000> : vector<1xf32>
    %1365 = vector.multi_reduction <maximumf>, %1364, %cst_335 [1] : vector<1x48xf32> to vector<1xf32>
    %1366 = vector.shape_cast %1365 : vector<1xf32> to vector<1x1xf32>
    %1367 = vector.broadcast %1366 : vector<1x1xf32> to vector<1x48xf32>
    %1368 = arith.cmpf oeq, %1364, %1367 : vector<1x48xf32>
    %c48_i32_336 = arith.constant 48 : i32
    %1369 = vector.broadcast %c48_i32_336 : i32 to vector<1x48xi32>
    %1370 = arith.select %1368, %2, %1369 : vector<1x48xi1>, vector<1x48xi32>
    %cst_337 = arith.constant dense<2147483647> : vector<1xi32>
    %1371 = vector.multi_reduction <minsi>, %1370, %cst_337 [1] : vector<1x48xi32> to vector<1xi32>
    %1372 = vector.shape_cast %1371 : vector<1xi32> to vector<1x1xi32>
    %1373 = vector.broadcast %1366 : vector<1x1xf32> to vector<1x48xf32>
    %1374 = arith.subf %1364, %1373 : vector<1x48xf32>
    %1375 = math.exp %1374 : vector<1x48xf32>
    %cst_338 = arith.constant dense<0.000000e+00> : vector<1xf32>
    %1376 = vector.multi_reduction <add>, %1375, %cst_338 [1] : vector<1x48xf32> to vector<1xf32>
    %1377 = vector.shape_cast %1376 : vector<1xf32> to vector<1x1xf32>
    %cst_339 = arith.constant 1.000000e+00 : f32
    %1378 = vector.broadcast %cst_339 : f32 to vector<1x1xf32>
    %1379 = arith.divf %1378, %1377 : vector<1x1xf32>
    %1380 = tpu.concatenate %1356, %1372 in 1 : vector<1x1xi32>, vector<1x1xi32> -> vector<1x2xi32>
    %1381 = tpu.concatenate %1363, %1379 in 1 : vector<1x1xf32>, vector<1x1xf32> -> vector<1x2xf32>
    %c3_340 = arith.constant 3 : index
    %c0_341 = arith.constant 0 : index
    %1382 = vector.load %arg18[%c3_340, %c0_341] : memref<6x2xi32, #tpu.memory_space<vmem>>, vector<1x2xi32>
    tpu.vector_store %arg18[%c3_340, %c0_341], %1380 {strides = array<i32>} : memref<6x2xi32, #tpu.memory_space<vmem>>, vector<1x2xi32>,
    %c3_342 = arith.constant 3 : index
    %c0_343 = arith.constant 0 : index
    %1383 = vector.load %arg19[%c3_342, %c0_343] : memref<6x2xf32, #tpu.memory_space<vmem>>, vector<1x2xf32>
    tpu.vector_store %arg19[%c3_342, %c0_343], %1381 {strides = array<i32>} : memref<6x2xf32, #tpu.memory_space<vmem>>, vector<1x2xf32>,
    %cst_344 = arith.constant 0.000000e+00 : f32
    %1384 = vector.broadcast %cst_344 : f32 to vector<2x48xf32>
    %1385 = vector.extract_strided_slice %1380 {offsets = [0, 0], sizes = [1, 1], strides = [1, 1]} : vector<1x2xi32> to vector<1x1xi32>
    %1386 = vector.broadcast %1385 : vector<1x1xi32> to vector<1x48xi32>
    %1387 = arith.cmpi eq, %2, %1386 : vector<1x48xi32>
    %1388 = arith.extui %1387 : vector<1x48xi1> to vector<1x48xi32>
    %1389 = arith.sitofp %1388 : vector<1x48xi32> to vector<1x48xf32>
    %c0_i32_345 = arith.constant 0 : i32
    %1390 = vector.broadcast %c0_i32_345 : i32 to vector<2x48xi32>
    %1391 = arith.cmpi eq, %0, %1390 : vector<2x48xi32>
    %cst_346 = arith.constant 0.000000e+00 : f32
    %1392 = vector.shape_cast %1389 : vector<1x48xf32> to vector<1x48xf32>
    %1393 = vector.broadcast %1392 : vector<1x48xf32> to vector<2x48xf32>
    %1394 = vector.broadcast %cst_346 : f32 to vector<2x48xf32>
    %1395 = arith.select %1391, %1393, %1394 : vector<2x48xi1>, vector<2x48xf32>
    %1396 = arith.addf %1384, %1395 : vector<2x48xf32>
    %1397 = vector.extract_strided_slice %1380 {offsets = [0, 1], sizes = [1, 1], strides = [1, 1]} : vector<1x2xi32> to vector<1x1xi32>
    %1398 = vector.broadcast %1397 : vector<1x1xi32> to vector<1x48xi32>
    %1399 = arith.cmpi eq, %2, %1398 : vector<1x48xi32>
    %1400 = arith.extui %1399 : vector<1x48xi1> to vector<1x48xi32>
    %1401 = arith.sitofp %1400 : vector<1x48xi32> to vector<1x48xf32>
    %c1_i32_347 = arith.constant 1 : i32
    %1402 = vector.broadcast %c1_i32_347 : i32 to vector<2x48xi32>
    %1403 = arith.cmpi eq, %0, %1402 : vector<2x48xi32>
    %cst_348 = arith.constant 0.000000e+00 : f32
    %1404 = vector.shape_cast %1401 : vector<1x48xf32> to vector<1x48xf32>
    %1405 = vector.broadcast %1404 : vector<1x48xf32> to vector<2x48xf32>
    %1406 = vector.broadcast %cst_348 : f32 to vector<2x48xf32>
    %1407 = arith.select %1403, %1405, %1406 : vector<2x48xi1>, vector<2x48xf32>
    %1408 = arith.addf %1396, %1407 : vector<2x48xf32>
    %cst_349 = arith.constant dense<0.000000e+00> : vector<2x96xf32>
    %1409 = tpu.matmul %1408, %689, %cst_349 {dimension_numbers = #tpu.dot_dimension_numbers<[1], [0], [0], [1], [0, 0, 1, 1], [], []>} : vector<2x48xf32>, vector<48x96xf32>, vector<2x96xf32> -> vector<2x96xf32>
    %1410 = vector.broadcast %690 : vector<1x96xf32> to vector<2x96xf32>
    %1411 = arith.addf %1409, %1410 : vector<2x96xf32>
    %c0_350 = arith.constant 0 : index
    %c0_351 = arith.constant 0 : index
    %1412 = vector.load %arg11[%c0_350, %c0_351] : memref<32x96xf32, #tpu.memory_space<vmem>>, vector<32x96xf32>
    %cst_352 = arith.constant dense<0.000000e+00> : vector<2x96xf32>
    %1413 = tpu.matmul %1269, %1412, %cst_352 {dimension_numbers = #tpu.dot_dimension_numbers<[1], [0], [0], [1], [0, 0, 1, 1], [], []>} : vector<2x32xf32>, vector<32x96xf32>, vector<2x96xf32> -> vector<2x96xf32>
    %c0_353 = arith.constant 0 : index
    %c0_354 = arith.constant 0 : index
    %1414 = vector.load %arg13[%c0_353, %c0_354] : memref<1x96xf32, #tpu.memory_space<vmem>>, vector<1x96xf32>
    %1415 = vector.broadcast %1414 : vector<1x96xf32> to vector<2x96xf32>
    %1416 = arith.addf %1413, %1415 : vector<2x96xf32>
    %1417 = vector.extract_strided_slice %1411 {offsets = [0, 0], sizes = [2, 32], strides = [1, 1]} : vector<2x96xf32> to vector<2x32xf32>
    %1418 = vector.extract_strided_slice %1416 {offsets = [0, 0], sizes = [2, 32], strides = [1, 1]} : vector<2x96xf32> to vector<2x32xf32>
    %1419 = arith.addf %1417, %1418 : vector<2x32xf32>
    %1420 = arith.negf %1419 : vector<2x32xf32>
    %1421 = math.exp %1420 : vector<2x32xf32>
    %cst_355 = arith.constant 1.000000e+00 : f32
    %1422 = vector.broadcast %cst_355 : f32 to vector<2x32xf32>
    %1423 = arith.addf %1422, %1421 : vector<2x32xf32>
    %1424 = arith.divf %1422, %1423 : vector<2x32xf32>
    %1425 = vector.extract_strided_slice %1411 {offsets = [0, 32], sizes = [2, 32], strides = [1, 1]} : vector<2x96xf32> to vector<2x32xf32>
    %1426 = vector.extract_strided_slice %1416 {offsets = [0, 32], sizes = [2, 32], strides = [1, 1]} : vector<2x96xf32> to vector<2x32xf32>
    %1427 = arith.addf %1425, %1426 : vector<2x32xf32>
    %1428 = arith.negf %1427 : vector<2x32xf32>
    %1429 = math.exp %1428 : vector<2x32xf32>
    %cst_356 = arith.constant 1.000000e+00 : f32
    %1430 = vector.broadcast %cst_356 : f32 to vector<2x32xf32>
    %1431 = arith.addf %1430, %1429 : vector<2x32xf32>
    %1432 = arith.divf %1430, %1431 : vector<2x32xf32>
    %1433 = vector.extract_strided_slice %1411 {offsets = [0, 64], sizes = [2, 32], strides = [1, 1]} : vector<2x96xf32> to vector<2x32xf32>
    %1434 = vector.extract_strided_slice %1416 {offsets = [0, 64], sizes = [2, 32], strides = [1, 1]} : vector<2x96xf32> to vector<2x32xf32>
    %1435 = arith.mulf %1424, %1434 : vector<2x32xf32>
    %1436 = arith.addf %1433, %1435 : vector<2x32xf32>
    %1437 = math.tanh %1436 : vector<2x32xf32>
    %cst_357 = arith.constant 1.000000e+00 : f32
    %1438 = vector.broadcast %cst_357 : f32 to vector<2x32xf32>
    %1439 = arith.subf %1438, %1432 : vector<2x32xf32>
    %1440 = arith.mulf %1439, %1437 : vector<2x32xf32>
    %1441 = arith.mulf %1432, %1269 : vector<2x32xf32>
    %1442 = arith.addf %1440, %1441 : vector<2x32xf32>
    %1443 = arith.mulf %1442, %680 : vector<2x32xf32>
    %cst_358 = arith.constant dense<0.000000e+00> : vector<2xf32>
    %1444 = vector.multi_reduction <add>, %1443, %cst_358 [1] : vector<2x32xf32> to vector<2xf32>
    %1445 = vector.shape_cast %1444 : vector<2xf32> to vector<2x1xf32>
    %1446 = arith.mulf %1442, %681 : vector<2x32xf32>
    %cst_359 = arith.constant dense<0.000000e+00> : vector<2xf32>
    %1447 = vector.multi_reduction <add>, %1446, %cst_359 [1] : vector<2x32xf32> to vector<2xf32>
    %1448 = vector.shape_cast %1447 : vector<2xf32> to vector<2x1xf32>
    %1449 = arith.mulf %1442, %682 : vector<2x32xf32>
    %cst_360 = arith.constant dense<0.000000e+00> : vector<2xf32>
    %1450 = vector.multi_reduction <add>, %1449, %cst_360 [1] : vector<2x32xf32> to vector<2xf32>
    %1451 = vector.shape_cast %1450 : vector<2xf32> to vector<2x1xf32>
    %1452 = arith.mulf %1442, %683 : vector<2x32xf32>
    %cst_361 = arith.constant dense<0.000000e+00> : vector<2xf32>
    %1453 = vector.multi_reduction <add>, %1452, %cst_361 [1] : vector<2x32xf32> to vector<2xf32>
    %1454 = vector.shape_cast %1453 : vector<2xf32> to vector<2x1xf32>
    %1455 = arith.mulf %1442, %684 : vector<2x32xf32>
    %cst_362 = arith.constant dense<0.000000e+00> : vector<2xf32>
    %1456 = vector.multi_reduction <add>, %1455, %cst_362 [1] : vector<2x32xf32> to vector<2xf32>
    %1457 = vector.shape_cast %1456 : vector<2xf32> to vector<2x1xf32>
    %1458 = arith.mulf %1442, %685 : vector<2x32xf32>
    %cst_363 = arith.constant dense<0.000000e+00> : vector<2xf32>
    %1459 = vector.multi_reduction <add>, %1458, %cst_363 [1] : vector<2x32xf32> to vector<2xf32>
    %1460 = vector.shape_cast %1459 : vector<2xf32> to vector<2x1xf32>
    %1461 = arith.mulf %1442, %686 : vector<2x32xf32>
    %cst_364 = arith.constant dense<0.000000e+00> : vector<2xf32>
    %1462 = vector.multi_reduction <add>, %1461, %cst_364 [1] : vector<2x32xf32> to vector<2xf32>
    %1463 = vector.shape_cast %1462 : vector<2xf32> to vector<2x1xf32>
    %1464 = arith.mulf %1442, %687 : vector<2x32xf32>
    %cst_365 = arith.constant dense<0.000000e+00> : vector<2xf32>
    %1465 = vector.multi_reduction <add>, %1464, %cst_365 [1] : vector<2x32xf32> to vector<2xf32>
    %1466 = vector.shape_cast %1465 : vector<2xf32> to vector<2x1xf32>
    %1467 = tpu.concatenate %1445, %1448, %1451, %1454, %1457, %1460, %1463, %1466 in 1 : vector<2x1xf32>, vector<2x1xf32>, vector<2x1xf32>, vector<2x1xf32>, vector<2x1xf32>, vector<2x1xf32>, vector<2x1xf32>, vector<2x1xf32> -> vector<2x8xf32>
    %cst_366 = arith.constant dense<0xFF800000> : vector<2xf32>
    %1468 = vector.multi_reduction <maximumf>, %1467, %cst_366 [1] : vector<2x8xf32> to vector<2xf32>
    %1469 = vector.shape_cast %1468 : vector<2xf32> to vector<2x1xf32>
    %1470 = vector.broadcast %1469 : vector<2x1xf32> to vector<2x8xf32>
    %1471 = arith.subf %1467, %1470 : vector<2x8xf32>
    %1472 = math.exp %1471 : vector<2x8xf32>
    %cst_367 = arith.constant dense<0.000000e+00> : vector<2xf32>
    %1473 = vector.multi_reduction <add>, %1472, %cst_367 [1] : vector<2x8xf32> to vector<2xf32>
    %1474 = vector.shape_cast %1473 : vector<2xf32> to vector<2x1xf32>
    %1475 = tpu.reciprocal %1474 {approx = true} : vector<2x1xf32> -> vector<2x1xf32>
    %1476 = vector.broadcast %1475 : vector<2x1xf32> to vector<2x8xf32>
    %1477 = arith.mulf %1472, %1476 : vector<2x8xf32>
    %1478 = vector.extract_strided_slice %1477 {offsets = [0, 0], sizes = [2, 1], strides = [1, 1]} : vector<2x8xf32> to vector<2x1xf32>
    %1479 = vector.broadcast %1478 : vector<2x1xf32> to vector<2x32xf32>
    %1480 = arith.mulf %1479, %680 : vector<2x32xf32>
    %1481 = vector.extract_strided_slice %1477 {offsets = [0, 1], sizes = [2, 1], strides = [1, 1]} : vector<2x8xf32> to vector<2x1xf32>
    %1482 = vector.broadcast %1481 : vector<2x1xf32> to vector<2x32xf32>
    %1483 = arith.mulf %1482, %681 : vector<2x32xf32>
    %1484 = arith.addf %1480, %1483 : vector<2x32xf32>
    %1485 = vector.extract_strided_slice %1477 {offsets = [0, 2], sizes = [2, 1], strides = [1, 1]} : vector<2x8xf32> to vector<2x1xf32>
    %1486 = vector.broadcast %1485 : vector<2x1xf32> to vector<2x32xf32>
    %1487 = arith.mulf %1486, %682 : vector<2x32xf32>
    %1488 = arith.addf %1484, %1487 : vector<2x32xf32>
    %1489 = vector.extract_strided_slice %1477 {offsets = [0, 3], sizes = [2, 1], strides = [1, 1]} : vector<2x8xf32> to vector<2x1xf32>
    %1490 = vector.broadcast %1489 : vector<2x1xf32> to vector<2x32xf32>
    %1491 = arith.mulf %1490, %683 : vector<2x32xf32>
    %1492 = arith.addf %1488, %1491 : vector<2x32xf32>
    %1493 = vector.extract_strided_slice %1477 {offsets = [0, 4], sizes = [2, 1], strides = [1, 1]} : vector<2x8xf32> to vector<2x1xf32>
    %1494 = vector.broadcast %1493 : vector<2x1xf32> to vector<2x32xf32>
    %1495 = arith.mulf %1494, %684 : vector<2x32xf32>
    %1496 = arith.addf %1492, %1495 : vector<2x32xf32>
    %1497 = vector.extract_strided_slice %1477 {offsets = [0, 5], sizes = [2, 1], strides = [1, 1]} : vector<2x8xf32> to vector<2x1xf32>
    %1498 = vector.broadcast %1497 : vector<2x1xf32> to vector<2x32xf32>
    %1499 = arith.mulf %1498, %685 : vector<2x32xf32>
    %1500 = arith.addf %1496, %1499 : vector<2x32xf32>
    %1501 = vector.extract_strided_slice %1477 {offsets = [0, 6], sizes = [2, 1], strides = [1, 1]} : vector<2x8xf32> to vector<2x1xf32>
    %1502 = vector.broadcast %1501 : vector<2x1xf32> to vector<2x32xf32>
    %1503 = arith.mulf %1502, %686 : vector<2x32xf32>
    %1504 = arith.addf %1500, %1503 : vector<2x32xf32>
    %1505 = vector.extract_strided_slice %1477 {offsets = [0, 7], sizes = [2, 1], strides = [1, 1]} : vector<2x8xf32> to vector<2x1xf32>
    %1506 = vector.broadcast %1505 : vector<2x1xf32> to vector<2x32xf32>
    %1507 = arith.mulf %1506, %687 : vector<2x32xf32>
    %1508 = arith.addf %1504, %1507 : vector<2x32xf32>
    %1509 = tpu.concatenate %1442, %1508 in 1 : vector<2x32xf32>, vector<2x32xf32> -> vector<2x64xf32>
    %c0_368 = arith.constant 0 : index
    %c0_369 = arith.constant 0 : index
    %1510 = vector.load %arg14[%c0_368, %c0_369] : memref<64x32xf32, #tpu.memory_space<vmem>>, vector<64x32xf32>
    %cst_370 = arith.constant dense<0.000000e+00> : vector<2x32xf32>
    %1511 = tpu.matmul %1509, %1510, %cst_370 {dimension_numbers = #tpu.dot_dimension_numbers<[1], [0], [0], [1], [0, 0, 1, 1], [], []>} : vector<2x64xf32>, vector<64x32xf32>, vector<2x32xf32> -> vector<2x32xf32>
    %c0_371 = arith.constant 0 : index
    %c0_372 = arith.constant 0 : index
    %1512 = vector.load %arg15[%c0_371, %c0_372] : memref<1x32xf32, #tpu.memory_space<vmem>>, vector<1x32xf32>
    %1513 = vector.broadcast %1512 : vector<1x32xf32> to vector<2x32xf32>
    %1514 = arith.addf %1511, %1513 : vector<2x32xf32>
    %1515 = math.tanh %1514 : vector<2x32xf32>
    %c0_373 = arith.constant 0 : index
    %c0_374 = arith.constant 0 : index
    %1516 = vector.load %arg16[%c0_373, %c0_374] : memref<32x48xf32, #tpu.memory_space<vmem>>, vector<32x48xf32>
    %cst_375 = arith.constant dense<0.000000e+00> : vector<2x48xf32>
    %1517 = tpu.matmul %1515, %1516, %cst_375 {dimension_numbers = #tpu.dot_dimension_numbers<[1], [0], [0], [1], [0, 0, 1, 1], [], []>} : vector<2x32xf32>, vector<32x48xf32>, vector<2x48xf32> -> vector<2x48xf32>
    %c0_376 = arith.constant 0 : index
    %c0_377 = arith.constant 0 : index
    %1518 = vector.load %arg17[%c0_376, %c0_377] : memref<1x48xf32, #tpu.memory_space<vmem>>, vector<1x48xf32>
    %1519 = vector.broadcast %1518 : vector<1x48xf32> to vector<2x48xf32>
    %1520 = arith.addf %1517, %1519 : vector<2x48xf32>
    %1521 = vector.extract_strided_slice %1520 {offsets = [0, 0], sizes = [1, 48], strides = [1, 1]} : vector<2x48xf32> to vector<1x48xf32>
    %cst_378 = arith.constant dense<0xFF800000> : vector<1xf32>
    %1522 = vector.multi_reduction <maximumf>, %1521, %cst_378 [1] : vector<1x48xf32> to vector<1xf32>
    %1523 = vector.shape_cast %1522 : vector<1xf32> to vector<1x1xf32>
    %1524 = vector.broadcast %1523 : vector<1x1xf32> to vector<1x48xf32>
    %1525 = arith.cmpf oeq, %1521, %1524 : vector<1x48xf32>
    %c48_i32_379 = arith.constant 48 : i32
    %1526 = vector.broadcast %c48_i32_379 : i32 to vector<1x48xi32>
    %1527 = arith.select %1525, %2, %1526 : vector<1x48xi1>, vector<1x48xi32>
    %cst_380 = arith.constant dense<2147483647> : vector<1xi32>
    %1528 = vector.multi_reduction <minsi>, %1527, %cst_380 [1] : vector<1x48xi32> to vector<1xi32>
    %1529 = vector.shape_cast %1528 : vector<1xi32> to vector<1x1xi32>
    %1530 = vector.broadcast %1523 : vector<1x1xf32> to vector<1x48xf32>
    %1531 = arith.subf %1521, %1530 : vector<1x48xf32>
    %1532 = math.exp %1531 : vector<1x48xf32>
    %cst_381 = arith.constant dense<0.000000e+00> : vector<1xf32>
    %1533 = vector.multi_reduction <add>, %1532, %cst_381 [1] : vector<1x48xf32> to vector<1xf32>
    %1534 = vector.shape_cast %1533 : vector<1xf32> to vector<1x1xf32>
    %cst_382 = arith.constant 1.000000e+00 : f32
    %1535 = vector.broadcast %cst_382 : f32 to vector<1x1xf32>
    %1536 = arith.divf %1535, %1534 : vector<1x1xf32>
    %1537 = vector.extract_strided_slice %1520 {offsets = [1, 0], sizes = [1, 48], strides = [1, 1]} : vector<2x48xf32> to vector<1x48xf32>
    %cst_383 = arith.constant dense<0xFF800000> : vector<1xf32>
    %1538 = vector.multi_reduction <maximumf>, %1537, %cst_383 [1] : vector<1x48xf32> to vector<1xf32>
    %1539 = vector.shape_cast %1538 : vector<1xf32> to vector<1x1xf32>
    %1540 = vector.broadcast %1539 : vector<1x1xf32> to vector<1x48xf32>
    %1541 = arith.cmpf oeq, %1537, %1540 : vector<1x48xf32>
    %c48_i32_384 = arith.constant 48 : i32
    %1542 = vector.broadcast %c48_i32_384 : i32 to vector<1x48xi32>
    %1543 = arith.select %1541, %2, %1542 : vector<1x48xi1>, vector<1x48xi32>
    %cst_385 = arith.constant dense<2147483647> : vector<1xi32>
    %1544 = vector.multi_reduction <minsi>, %1543, %cst_385 [1] : vector<1x48xi32> to vector<1xi32>
    %1545 = vector.shape_cast %1544 : vector<1xi32> to vector<1x1xi32>
    %1546 = vector.broadcast %1539 : vector<1x1xf32> to vector<1x48xf32>
    %1547 = arith.subf %1537, %1546 : vector<1x48xf32>
    %1548 = math.exp %1547 : vector<1x48xf32>
    %cst_386 = arith.constant dense<0.000000e+00> : vector<1xf32>
    %1549 = vector.multi_reduction <add>, %1548, %cst_386 [1] : vector<1x48xf32> to vector<1xf32>
    %1550 = vector.shape_cast %1549 : vector<1xf32> to vector<1x1xf32>
    %cst_387 = arith.constant 1.000000e+00 : f32
    %1551 = vector.broadcast %cst_387 : f32 to vector<1x1xf32>
    %1552 = arith.divf %1551, %1550 : vector<1x1xf32>
    %1553 = tpu.concatenate %1529, %1545 in 1 : vector<1x1xi32>, vector<1x1xi32> -> vector<1x2xi32>
    %1554 = tpu.concatenate %1536, %1552 in 1 : vector<1x1xf32>, vector<1x1xf32> -> vector<1x2xf32>
    %c4_388 = arith.constant 4 : index
    %c0_389 = arith.constant 0 : index
    %1555 = vector.load %arg18[%c4_388, %c0_389] : memref<6x2xi32, #tpu.memory_space<vmem>>, vector<1x2xi32>
    tpu.vector_store %arg18[%c4_388, %c0_389], %1553 {strides = array<i32>} : memref<6x2xi32, #tpu.memory_space<vmem>>, vector<1x2xi32>,
    %c4_390 = arith.constant 4 : index
    %c0_391 = arith.constant 0 : index
    %1556 = vector.load %arg19[%c4_390, %c0_391] : memref<6x2xf32, #tpu.memory_space<vmem>>, vector<1x2xf32>
    tpu.vector_store %arg19[%c4_390, %c0_391], %1554 {strides = array<i32>} : memref<6x2xf32, #tpu.memory_space<vmem>>, vector<1x2xf32>,
    %cst_392 = arith.constant 0.000000e+00 : f32
    %1557 = vector.broadcast %cst_392 : f32 to vector<2x48xf32>
    %1558 = vector.extract_strided_slice %1553 {offsets = [0, 0], sizes = [1, 1], strides = [1, 1]} : vector<1x2xi32> to vector<1x1xi32>
    %1559 = vector.broadcast %1558 : vector<1x1xi32> to vector<1x48xi32>
    %1560 = arith.cmpi eq, %2, %1559 : vector<1x48xi32>
    %1561 = arith.extui %1560 : vector<1x48xi1> to vector<1x48xi32>
    %1562 = arith.sitofp %1561 : vector<1x48xi32> to vector<1x48xf32>
    %c0_i32_393 = arith.constant 0 : i32
    %1563 = vector.broadcast %c0_i32_393 : i32 to vector<2x48xi32>
    %1564 = arith.cmpi eq, %0, %1563 : vector<2x48xi32>
    %cst_394 = arith.constant 0.000000e+00 : f32
    %1565 = vector.shape_cast %1562 : vector<1x48xf32> to vector<1x48xf32>
    %1566 = vector.broadcast %1565 : vector<1x48xf32> to vector<2x48xf32>
    %1567 = vector.broadcast %cst_394 : f32 to vector<2x48xf32>
    %1568 = arith.select %1564, %1566, %1567 : vector<2x48xi1>, vector<2x48xf32>
    %1569 = arith.addf %1557, %1568 : vector<2x48xf32>
    %1570 = vector.extract_strided_slice %1553 {offsets = [0, 1], sizes = [1, 1], strides = [1, 1]} : vector<1x2xi32> to vector<1x1xi32>
    %1571 = vector.broadcast %1570 : vector<1x1xi32> to vector<1x48xi32>
    %1572 = arith.cmpi eq, %2, %1571 : vector<1x48xi32>
    %1573 = arith.extui %1572 : vector<1x48xi1> to vector<1x48xi32>
    %1574 = arith.sitofp %1573 : vector<1x48xi32> to vector<1x48xf32>
    %c1_i32_395 = arith.constant 1 : i32
    %1575 = vector.broadcast %c1_i32_395 : i32 to vector<2x48xi32>
    %1576 = arith.cmpi eq, %0, %1575 : vector<2x48xi32>
    %cst_396 = arith.constant 0.000000e+00 : f32
    %1577 = vector.shape_cast %1574 : vector<1x48xf32> to vector<1x48xf32>
    %1578 = vector.broadcast %1577 : vector<1x48xf32> to vector<2x48xf32>
    %1579 = vector.broadcast %cst_396 : f32 to vector<2x48xf32>
    %1580 = arith.select %1576, %1578, %1579 : vector<2x48xi1>, vector<2x48xf32>
    %1581 = arith.addf %1569, %1580 : vector<2x48xf32>
    %cst_397 = arith.constant dense<0.000000e+00> : vector<2x96xf32>
    %1582 = tpu.matmul %1581, %689, %cst_397 {dimension_numbers = #tpu.dot_dimension_numbers<[1], [0], [0], [1], [0, 0, 1, 1], [], []>} : vector<2x48xf32>, vector<48x96xf32>, vector<2x96xf32> -> vector<2x96xf32>
    %1583 = vector.broadcast %690 : vector<1x96xf32> to vector<2x96xf32>
    %1584 = arith.addf %1582, %1583 : vector<2x96xf32>
    %c0_398 = arith.constant 0 : index
    %c0_399 = arith.constant 0 : index
    %1585 = vector.load %arg11[%c0_398, %c0_399] : memref<32x96xf32, #tpu.memory_space<vmem>>, vector<32x96xf32>
    %cst_400 = arith.constant dense<0.000000e+00> : vector<2x96xf32>
    %1586 = tpu.matmul %1442, %1585, %cst_400 {dimension_numbers = #tpu.dot_dimension_numbers<[1], [0], [0], [1], [0, 0, 1, 1], [], []>} : vector<2x32xf32>, vector<32x96xf32>, vector<2x96xf32> -> vector<2x96xf32>
    %c0_401 = arith.constant 0 : index
    %c0_402 = arith.constant 0 : index
    %1587 = vector.load %arg13[%c0_401, %c0_402] : memref<1x96xf32, #tpu.memory_space<vmem>>, vector<1x96xf32>
    %1588 = vector.broadcast %1587 : vector<1x96xf32> to vector<2x96xf32>
    %1589 = arith.addf %1586, %1588 : vector<2x96xf32>
    %1590 = vector.extract_strided_slice %1584 {offsets = [0, 0], sizes = [2, 32], strides = [1, 1]} : vector<2x96xf32> to vector<2x32xf32>
    %1591 = vector.extract_strided_slice %1589 {offsets = [0, 0], sizes = [2, 32], strides = [1, 1]} : vector<2x96xf32> to vector<2x32xf32>
    %1592 = arith.addf %1590, %1591 : vector<2x32xf32>
    %1593 = arith.negf %1592 : vector<2x32xf32>
    %1594 = math.exp %1593 : vector<2x32xf32>
    %cst_403 = arith.constant 1.000000e+00 : f32
    %1595 = vector.broadcast %cst_403 : f32 to vector<2x32xf32>
    %1596 = arith.addf %1595, %1594 : vector<2x32xf32>
    %1597 = arith.divf %1595, %1596 : vector<2x32xf32>
    %1598 = vector.extract_strided_slice %1584 {offsets = [0, 32], sizes = [2, 32], strides = [1, 1]} : vector<2x96xf32> to vector<2x32xf32>
    %1599 = vector.extract_strided_slice %1589 {offsets = [0, 32], sizes = [2, 32], strides = [1, 1]} : vector<2x96xf32> to vector<2x32xf32>
    %1600 = arith.addf %1598, %1599 : vector<2x32xf32>
    %1601 = arith.negf %1600 : vector<2x32xf32>
    %1602 = math.exp %1601 : vector<2x32xf32>
    %cst_404 = arith.constant 1.000000e+00 : f32
    %1603 = vector.broadcast %cst_404 : f32 to vector<2x32xf32>
    %1604 = arith.addf %1603, %1602 : vector<2x32xf32>
    %1605 = arith.divf %1603, %1604 : vector<2x32xf32>
    %1606 = vector.extract_strided_slice %1584 {offsets = [0, 64], sizes = [2, 32], strides = [1, 1]} : vector<2x96xf32> to vector<2x32xf32>
    %1607 = vector.extract_strided_slice %1589 {offsets = [0, 64], sizes = [2, 32], strides = [1, 1]} : vector<2x96xf32> to vector<2x32xf32>
    %1608 = arith.mulf %1597, %1607 : vector<2x32xf32>
    %1609 = arith.addf %1606, %1608 : vector<2x32xf32>
    %1610 = math.tanh %1609 : vector<2x32xf32>
    %cst_405 = arith.constant 1.000000e+00 : f32
    %1611 = vector.broadcast %cst_405 : f32 to vector<2x32xf32>
    %1612 = arith.subf %1611, %1605 : vector<2x32xf32>
    %1613 = arith.mulf %1612, %1610 : vector<2x32xf32>
    %1614 = arith.mulf %1605, %1442 : vector<2x32xf32>
    %1615 = arith.addf %1613, %1614 : vector<2x32xf32>
    %1616 = arith.mulf %1615, %680 : vector<2x32xf32>
    %cst_406 = arith.constant dense<0.000000e+00> : vector<2xf32>
    %1617 = vector.multi_reduction <add>, %1616, %cst_406 [1] : vector<2x32xf32> to vector<2xf32>
    %1618 = vector.shape_cast %1617 : vector<2xf32> to vector<2x1xf32>
    %1619 = arith.mulf %1615, %681 : vector<2x32xf32>
    %cst_407 = arith.constant dense<0.000000e+00> : vector<2xf32>
    %1620 = vector.multi_reduction <add>, %1619, %cst_407 [1] : vector<2x32xf32> to vector<2xf32>
    %1621 = vector.shape_cast %1620 : vector<2xf32> to vector<2x1xf32>
    %1622 = arith.mulf %1615, %682 : vector<2x32xf32>
    %cst_408 = arith.constant dense<0.000000e+00> : vector<2xf32>
    %1623 = vector.multi_reduction <add>, %1622, %cst_408 [1] : vector<2x32xf32> to vector<2xf32>
    %1624 = vector.shape_cast %1623 : vector<2xf32> to vector<2x1xf32>
    %1625 = arith.mulf %1615, %683 : vector<2x32xf32>
    %cst_409 = arith.constant dense<0.000000e+00> : vector<2xf32>
    %1626 = vector.multi_reduction <add>, %1625, %cst_409 [1] : vector<2x32xf32> to vector<2xf32>
    %1627 = vector.shape_cast %1626 : vector<2xf32> to vector<2x1xf32>
    %1628 = arith.mulf %1615, %684 : vector<2x32xf32>
    %cst_410 = arith.constant dense<0.000000e+00> : vector<2xf32>
    %1629 = vector.multi_reduction <add>, %1628, %cst_410 [1] : vector<2x32xf32> to vector<2xf32>
    %1630 = vector.shape_cast %1629 : vector<2xf32> to vector<2x1xf32>
    %1631 = arith.mulf %1615, %685 : vector<2x32xf32>
    %cst_411 = arith.constant dense<0.000000e+00> : vector<2xf32>
    %1632 = vector.multi_reduction <add>, %1631, %cst_411 [1] : vector<2x32xf32> to vector<2xf32>
    %1633 = vector.shape_cast %1632 : vector<2xf32> to vector<2x1xf32>
    %1634 = arith.mulf %1615, %686 : vector<2x32xf32>
    %cst_412 = arith.constant dense<0.000000e+00> : vector<2xf32>
    %1635 = vector.multi_reduction <add>, %1634, %cst_412 [1] : vector<2x32xf32> to vector<2xf32>
    %1636 = vector.shape_cast %1635 : vector<2xf32> to vector<2x1xf32>
    %1637 = arith.mulf %1615, %687 : vector<2x32xf32>
    %cst_413 = arith.constant dense<0.000000e+00> : vector<2xf32>
    %1638 = vector.multi_reduction <add>, %1637, %cst_413 [1] : vector<2x32xf32> to vector<2xf32>
    %1639 = vector.shape_cast %1638 : vector<2xf32> to vector<2x1xf32>
    %1640 = tpu.concatenate %1618, %1621, %1624, %1627, %1630, %1633, %1636, %1639 in 1 : vector<2x1xf32>, vector<2x1xf32>, vector<2x1xf32>, vector<2x1xf32>, vector<2x1xf32>, vector<2x1xf32>, vector<2x1xf32>, vector<2x1xf32> -> vector<2x8xf32>
    %cst_414 = arith.constant dense<0xFF800000> : vector<2xf32>
    %1641 = vector.multi_reduction <maximumf>, %1640, %cst_414 [1] : vector<2x8xf32> to vector<2xf32>
    %1642 = vector.shape_cast %1641 : vector<2xf32> to vector<2x1xf32>
    %1643 = vector.broadcast %1642 : vector<2x1xf32> to vector<2x8xf32>
    %1644 = arith.subf %1640, %1643 : vector<2x8xf32>
    %1645 = math.exp %1644 : vector<2x8xf32>
    %cst_415 = arith.constant dense<0.000000e+00> : vector<2xf32>
    %1646 = vector.multi_reduction <add>, %1645, %cst_415 [1] : vector<2x8xf32> to vector<2xf32>
    %1647 = vector.shape_cast %1646 : vector<2xf32> to vector<2x1xf32>
    %1648 = tpu.reciprocal %1647 {approx = true} : vector<2x1xf32> -> vector<2x1xf32>
    %1649 = vector.broadcast %1648 : vector<2x1xf32> to vector<2x8xf32>
    %1650 = arith.mulf %1645, %1649 : vector<2x8xf32>
    %1651 = vector.extract_strided_slice %1650 {offsets = [0, 0], sizes = [2, 1], strides = [1, 1]} : vector<2x8xf32> to vector<2x1xf32>
    %1652 = vector.broadcast %1651 : vector<2x1xf32> to vector<2x32xf32>
    %1653 = arith.mulf %1652, %680 : vector<2x32xf32>
    %1654 = vector.extract_strided_slice %1650 {offsets = [0, 1], sizes = [2, 1], strides = [1, 1]} : vector<2x8xf32> to vector<2x1xf32>
    %1655 = vector.broadcast %1654 : vector<2x1xf32> to vector<2x32xf32>
    %1656 = arith.mulf %1655, %681 : vector<2x32xf32>
    %1657 = arith.addf %1653, %1656 : vector<2x32xf32>
    %1658 = vector.extract_strided_slice %1650 {offsets = [0, 2], sizes = [2, 1], strides = [1, 1]} : vector<2x8xf32> to vector<2x1xf32>
    %1659 = vector.broadcast %1658 : vector<2x1xf32> to vector<2x32xf32>
    %1660 = arith.mulf %1659, %682 : vector<2x32xf32>
    %1661 = arith.addf %1657, %1660 : vector<2x32xf32>
    %1662 = vector.extract_strided_slice %1650 {offsets = [0, 3], sizes = [2, 1], strides = [1, 1]} : vector<2x8xf32> to vector<2x1xf32>
    %1663 = vector.broadcast %1662 : vector<2x1xf32> to vector<2x32xf32>
    %1664 = arith.mulf %1663, %683 : vector<2x32xf32>
    %1665 = arith.addf %1661, %1664 : vector<2x32xf32>
    %1666 = vector.extract_strided_slice %1650 {offsets = [0, 4], sizes = [2, 1], strides = [1, 1]} : vector<2x8xf32> to vector<2x1xf32>
    %1667 = vector.broadcast %1666 : vector<2x1xf32> to vector<2x32xf32>
    %1668 = arith.mulf %1667, %684 : vector<2x32xf32>
    %1669 = arith.addf %1665, %1668 : vector<2x32xf32>
    %1670 = vector.extract_strided_slice %1650 {offsets = [0, 5], sizes = [2, 1], strides = [1, 1]} : vector<2x8xf32> to vector<2x1xf32>
    %1671 = vector.broadcast %1670 : vector<2x1xf32> to vector<2x32xf32>
    %1672 = arith.mulf %1671, %685 : vector<2x32xf32>
    %1673 = arith.addf %1669, %1672 : vector<2x32xf32>
    %1674 = vector.extract_strided_slice %1650 {offsets = [0, 6], sizes = [2, 1], strides = [1, 1]} : vector<2x8xf32> to vector<2x1xf32>
    %1675 = vector.broadcast %1674 : vector<2x1xf32> to vector<2x32xf32>
    %1676 = arith.mulf %1675, %686 : vector<2x32xf32>
    %1677 = arith.addf %1673, %1676 : vector<2x32xf32>
    %1678 = vector.extract_strided_slice %1650 {offsets = [0, 7], sizes = [2, 1], strides = [1, 1]} : vector<2x8xf32> to vector<2x1xf32>
    %1679 = vector.broadcast %1678 : vector<2x1xf32> to vector<2x32xf32>
    %1680 = arith.mulf %1679, %687 : vector<2x32xf32>
    %1681 = arith.addf %1677, %1680 : vector<2x32xf32>
    %1682 = tpu.concatenate %1615, %1681 in 1 : vector<2x32xf32>, vector<2x32xf32> -> vector<2x64xf32>
    %c0_416 = arith.constant 0 : index
    %c0_417 = arith.constant 0 : index
    %1683 = vector.load %arg14[%c0_416, %c0_417] : memref<64x32xf32, #tpu.memory_space<vmem>>, vector<64x32xf32>
    %cst_418 = arith.constant dense<0.000000e+00> : vector<2x32xf32>
    %1684 = tpu.matmul %1682, %1683, %cst_418 {dimension_numbers = #tpu.dot_dimension_numbers<[1], [0], [0], [1], [0, 0, 1, 1], [], []>} : vector<2x64xf32>, vector<64x32xf32>, vector<2x32xf32> -> vector<2x32xf32>
    %c0_419 = arith.constant 0 : index
    %c0_420 = arith.constant 0 : index
    %1685 = vector.load %arg15[%c0_419, %c0_420] : memref<1x32xf32, #tpu.memory_space<vmem>>, vector<1x32xf32>
    %1686 = vector.broadcast %1685 : vector<1x32xf32> to vector<2x32xf32>
    %1687 = arith.addf %1684, %1686 : vector<2x32xf32>
    %1688 = math.tanh %1687 : vector<2x32xf32>
    %c0_421 = arith.constant 0 : index
    %c0_422 = arith.constant 0 : index
    %1689 = vector.load %arg16[%c0_421, %c0_422] : memref<32x48xf32, #tpu.memory_space<vmem>>, vector<32x48xf32>
    %cst_423 = arith.constant dense<0.000000e+00> : vector<2x48xf32>
    %1690 = tpu.matmul %1688, %1689, %cst_423 {dimension_numbers = #tpu.dot_dimension_numbers<[1], [0], [0], [1], [0, 0, 1, 1], [], []>} : vector<2x32xf32>, vector<32x48xf32>, vector<2x48xf32> -> vector<2x48xf32>
    %c0_424 = arith.constant 0 : index
    %c0_425 = arith.constant 0 : index
    %1691 = vector.load %arg17[%c0_424, %c0_425] : memref<1x48xf32, #tpu.memory_space<vmem>>, vector<1x48xf32>
    %1692 = vector.broadcast %1691 : vector<1x48xf32> to vector<2x48xf32>
    %1693 = arith.addf %1690, %1692 : vector<2x48xf32>
    %1694 = vector.extract_strided_slice %1693 {offsets = [0, 0], sizes = [1, 48], strides = [1, 1]} : vector<2x48xf32> to vector<1x48xf32>
    %cst_426 = arith.constant dense<0xFF800000> : vector<1xf32>
    %1695 = vector.multi_reduction <maximumf>, %1694, %cst_426 [1] : vector<1x48xf32> to vector<1xf32>
    %1696 = vector.shape_cast %1695 : vector<1xf32> to vector<1x1xf32>
    %1697 = vector.broadcast %1696 : vector<1x1xf32> to vector<1x48xf32>
    %1698 = arith.cmpf oeq, %1694, %1697 : vector<1x48xf32>
    %c48_i32_427 = arith.constant 48 : i32
    %1699 = vector.broadcast %c48_i32_427 : i32 to vector<1x48xi32>
    %1700 = arith.select %1698, %2, %1699 : vector<1x48xi1>, vector<1x48xi32>
    %cst_428 = arith.constant dense<2147483647> : vector<1xi32>
    %1701 = vector.multi_reduction <minsi>, %1700, %cst_428 [1] : vector<1x48xi32> to vector<1xi32>
    %1702 = vector.shape_cast %1701 : vector<1xi32> to vector<1x1xi32>
    %1703 = vector.broadcast %1696 : vector<1x1xf32> to vector<1x48xf32>
    %1704 = arith.subf %1694, %1703 : vector<1x48xf32>
    %1705 = math.exp %1704 : vector<1x48xf32>
    %cst_429 = arith.constant dense<0.000000e+00> : vector<1xf32>
    %1706 = vector.multi_reduction <add>, %1705, %cst_429 [1] : vector<1x48xf32> to vector<1xf32>
    %1707 = vector.shape_cast %1706 : vector<1xf32> to vector<1x1xf32>
    %cst_430 = arith.constant 1.000000e+00 : f32
    %1708 = vector.broadcast %cst_430 : f32 to vector<1x1xf32>
    %1709 = arith.divf %1708, %1707 : vector<1x1xf32>
    %1710 = vector.extract_strided_slice %1693 {offsets = [1, 0], sizes = [1, 48], strides = [1, 1]} : vector<2x48xf32> to vector<1x48xf32>
    %cst_431 = arith.constant dense<0xFF800000> : vector<1xf32>
    %1711 = vector.multi_reduction <maximumf>, %1710, %cst_431 [1] : vector<1x48xf32> to vector<1xf32>
    %1712 = vector.shape_cast %1711 : vector<1xf32> to vector<1x1xf32>
    %1713 = vector.broadcast %1712 : vector<1x1xf32> to vector<1x48xf32>
    %1714 = arith.cmpf oeq, %1710, %1713 : vector<1x48xf32>
    %c48_i32_432 = arith.constant 48 : i32
    %1715 = vector.broadcast %c48_i32_432 : i32 to vector<1x48xi32>
    %1716 = arith.select %1714, %2, %1715 : vector<1x48xi1>, vector<1x48xi32>
    %cst_433 = arith.constant dense<2147483647> : vector<1xi32>
    %1717 = vector.multi_reduction <minsi>, %1716, %cst_433 [1] : vector<1x48xi32> to vector<1xi32>
    %1718 = vector.shape_cast %1717 : vector<1xi32> to vector<1x1xi32>
    %1719 = vector.broadcast %1712 : vector<1x1xf32> to vector<1x48xf32>
    %1720 = arith.subf %1710, %1719 : vector<1x48xf32>
    %1721 = math.exp %1720 : vector<1x48xf32>
    %cst_434 = arith.constant dense<0.000000e+00> : vector<1xf32>
    %1722 = vector.multi_reduction <add>, %1721, %cst_434 [1] : vector<1x48xf32> to vector<1xf32>
    %1723 = vector.shape_cast %1722 : vector<1xf32> to vector<1x1xf32>
    %cst_435 = arith.constant 1.000000e+00 : f32
    %1724 = vector.broadcast %cst_435 : f32 to vector<1x1xf32>
    %1725 = arith.divf %1724, %1723 : vector<1x1xf32>
    %1726 = tpu.concatenate %1702, %1718 in 1 : vector<1x1xi32>, vector<1x1xi32> -> vector<1x2xi32>
    %1727 = tpu.concatenate %1709, %1725 in 1 : vector<1x1xf32>, vector<1x1xf32> -> vector<1x2xf32>
    %c5_436 = arith.constant 5 : index
    %c0_437 = arith.constant 0 : index
    %1728 = vector.load %arg18[%c5_436, %c0_437] : memref<6x2xi32, #tpu.memory_space<vmem>>, vector<1x2xi32>
    tpu.vector_store %arg18[%c5_436, %c0_437], %1726 {strides = array<i32>} : memref<6x2xi32, #tpu.memory_space<vmem>>, vector<1x2xi32>,
    %c5_438 = arith.constant 5 : index
    %c0_439 = arith.constant 0 : index
    %1729 = vector.load %arg19[%c5_438, %c0_439] : memref<6x2xf32, #tpu.memory_space<vmem>>, vector<1x2xf32>
    tpu.vector_store %arg19[%c5_438, %c0_439], %1727 {strides = array<i32>} : memref<6x2xf32, #tpu.memory_space<vmem>>, vector<1x2xf32>,
    return
  }
}

</mosaic_0001>

<bundles_post_ra>
// kernel: greedy_search_decoder.1
= control target key start
LH: loop header
LB: loop body
LE: loop exit
PB: predicated region body
PF: predicated region fallthrough
CT: control target
= control target key end

     0   :  { %s6571_s0 = inlined_call_operand.vmem [shape: s32[8,2], index: 0, kind: input, shape index: {}]   ;;  %s6572_s1 = inlined_call_operand.vmem [shape: f32[48,32], index: 1, kind: input, shape index: {}]   ;;  %s6573_s2 = inlined_call_operand.vmem [shape: f32[32,96], index: 2, kind: input, shape index: {}]   ;;  %s6574_s3 = inlined_call_operand.vmem [shape: f32[32,96], index: 3, kind: input, shape index: {}]   ;;  %s6575_s4 = inlined_call_operand.vmem [shape: f32[1,96], index: 4, kind: input, shape index: {}]   ;;  %s6576_s5 = inlined_call_operand.vmem [shape: f32[1,96], index: 5, kind: input, shape index: {}]   ;;  %s6577_s6 = inlined_call_operand.vmem [shape: f32[32,96], index: 6, kind: input, shape index: {}]   ;;  %s6578_s7 = inlined_call_operand.vmem [shape: f32[32,96], index: 7, kind: input, shape index: {}]   ;;  %s6579_s8 = inlined_call_operand.vmem [shape: f32[1,96], index: 8, kind: input, shape index: {}]   ;;  %s6580_s9 = inlined_call_operand.vmem [shape: f32[1,96], index: 9, kind: input, shape index: {}]   ;;  %s6581_s10 = inlined_call_operand.hbm [shape: f32[32,96], index: 10, kind: input, shape index: {}]   ;;  %s6582_s11 = inlined_call_operand.hbm [shape: f32[32,96], index: 11, kind: input, shape index: {}]   ;;  %s6583_s12 = inlined_call_operand.vmem [shape: f32[1,96], index: 12, kind: input, shape index: {}]   ;;  %s6584_s13 = inlined_call_operand.vmem [shape: f32[1,96], index: 13, kind: input, shape index: {}]   ;;  %s6585_s14 = inlined_call_operand.vmem [shape: f32[64,32], index: 14, kind: input, shape index: {}]   ;;  %s6586_s15 = inlined_call_operand.vmem [shape: f32[1,32], index: 15, kind: input, shape index: {}]   ;;  %s6587_s16 = inlined_call_operand.hbm [shape: f32[32,48], index: 16, kind: input, shape index: {}]   ;;  %s6588_s17 = inlined_call_operand.vmem [shape: f32[1,48], index: 17, kind: input, shape index: {}]   ;;  %s6589_s18 = inlined_call_operand.vmem [shape: s32[6,2], index: 18, kind: output, shape index: {0}]   ;;  %s6590_s19 = inlined_call_operand.vmem [shape: f32[6,2], index: 19, kind: output, shape index: {1}]  }
   0x1   :  { %6605 = sst [smem:[#allocation12_spill]] %s6571_s0 }
   0x2   :  { %6606 = sst [smem:[#allocation13_spill]] %s6572_s1 }
   0x3   :  { %6607 = sst [smem:[#allocation14_spill]] %s6573_s2 }
   0x4   :  { %6608 = sst [smem:[#allocation15_spill]] %s6574_s3 }
   0x5   :  { %6609 = sst [smem:[#allocation16_spill]] %s6590_s19 }
   0x6   :  { %25 = vsyncpa [#allocation4], 0 }
   0x7   :  { %26 = vsyncpa [#allocation3], 0 }
   0x8   :  { %27 = vsyncpa [#allocation7], 0  ;;  %s72_s20 = sshll.u32 %s6582_s11, 4  ;;  %s4762_s21 = smov [#allocation6]   ;;  %s73_s20 = int_to_ptr.hbm [resolvable:$true] %s72_s20 }
   0x9   :  { %s74_s1 = sshll.u32 %s4762_s21, 4  ;;  %s6610_s23 = sld [smem:[#allocation12_spill]]  ;;  %s75_s1 = int_to_ptr.vmem [resolvable:$true] %s74_s1 }
   0xa   :  { %s4763_s25 = smov 128   ;;  %s4764_s3 = smov 8  }
   0xb   :  { %80 = dma.hbm_to_vmem [thread:$0]  %s73_s20, 512, %s75_s1, [#allocation7], %s4763_s25, %s4763_s25, %s4764_s3  }
   0xc   :  { %s4765_s26 = smov [#allocation2]   ;;  %s59_s29 = sshll.u32 %s6581_s10, 4  ;;  %s60_s29 = int_to_ptr.hbm [resolvable:$true] %s59_s29 }
   0xd   :  { %s4766_s11 = smov [#allocation5]   ;;  %s93_s19 = sshll.u32 %s6587_s16, 4  ;;  %s94_s19 = int_to_ptr.hbm [resolvable:$true] %s93_s19 }
   0xe   :  { %s61_s0 = sshll.u32 %s4766_s11, 4  ;;  %s4767_s22 = smov [#allocation8]   ;;  %s62_s0 = int_to_ptr.vmem [resolvable:$true] %s61_s0 }
   0xf   :  { %s33_s24 = sshll.u32 %s6610_s23, 4  ;;  %s95_s2 = sshll.u32 %s4767_s22, 4  ;;  %s34_s24 = int_to_ptr.vmem [resolvable:$true] %s33_s24  ;;  %s96_s2 = int_to_ptr.vmem [resolvable:$true] %s95_s2 }
  0x10   :  { %36 = dma.vmem_to_smem %s34_s24, 128, %s4765_s26, [#allocation4]  }
  0x11   :  { %67 = dma.hbm_to_vmem [thread:$0]  %s60_s29, 512, %s62_s0, [#allocation3], %s4763_s25, %s4763_s25, %s4764_s3  }
  0x12   :  { %101 = dma.hbm_to_vmem [thread:$0]  %s94_s19, 512, %s96_s2, [#allocation7], %s4763_s25, %s4763_s25, %s4764_s3  }
  0x13   :  { %4756 = dma.done.wait [#allocation4], 128  }
  0x14   :  { %4757 = vsyncadd [#allocation4], 4294967168 }
  0x15   :  { %4758 = dma.done.wait [#allocation3], 512  }
  0x16   :  { %4759 = vsyncadd [#allocation3], 4294966784 }
  0x17   :  { %4760 = dma.done.wait [#allocation7], 1024  }
  0x18   :  { %4761 = vsyncadd [#allocation7], 4294966272 }
  0x19   :  { %120 = sfence }
  0x1a   :  { %s6611_s1 = sld [smem:[#allocation14_spill]]  ;;  %vm6596_vm0 = vcmask 261120   ;;  %v192_v6 = vld [vmem:[%s6577_s6 + $0x18] sm:$0xff]  ;;  %v191_v7 = vld [vmem:[%s6577_s6 + $0x10] sm:$0xff]  ;;  %v190_v8 = vld [vmem:[%s6577_s6 + $0x8] sm:$0xff]  ;;  %v121_v20 = vlaneseq  ;;  %v4768_v31 = vmov 0.0  }
  0x1b   :  { %s6612_s28 = sld [smem:[#allocation13_spill]]  ;;  %v189_v9 = vld [vmem:[%s6577_s6] sm:$0xff]  ;;  %vm6599_vm11 = vcmask 392192  }
  0x1c   :  { %s231_s27 = sld [smem:[#allocation2]]  ;;  %v4959_v21 = vshrl.u32 %v121_v20, 7  ;;  %v4961_v22 = vand.u32 127, %v121_v20 }
  0x1d   :  { %s4220_s29 = sld [smem:[#allocation2 + $0x1]] }
  0x1e   :  { %s4222_s11 = sld [smem:[#allocation2 + $0x80]]  ;;  %vm6598_vm1 = vcmp.eq.s32.totalorder %v4959_v21, 0  ;;  %vm238_vm3 = vcmp.eq.s32.totalorder %v4959_v21, 1 }
  0x1f   :  { %s4224_s0 = sld [smem:[#allocation2 + $0x81]] }
  0x20   :  { %v134_v0 = vld [vmem:[%s6611_s1 + $0x18] sm:$0xff]  ;;  %v133_v1 = vld [vmem:[%s6611_s1 + $0x10] sm:$0xff]  ;;  %v132_v2 = vld [vmem:[%s6611_s1 + $0x8] sm:$0xff]  ;;  %s4226_s30 = sld [smem:[#allocation2 + $0x100]] }
  0x21   :  { %166 = vmatpush.msra.mxu0 %v134_v0  ;;  %4343 = vmatpush.msra.mxu1 %v134_v0  ;;  %v131_v3 = vld [vmem:[%s6611_s1] sm:$0xff]  ;;  %v130_v5 = vld [vmem:[%s6612_s28 + $0x28] sm:$0xff]  ;;  %v127_v11 = vld [vmem:[%s6612_s28 + $0x10] sm:$0xff]  ;;  %s4228_s21 = sld [smem:[#allocation2 + $0x101]] }
  0x22   :  { %v125_v4 = vld [vmem:[%s6612_s28] sm:$0xff]  ;;  %v126_v10 = vld [vmem:[%s6612_s28 + $0x8] sm:$0xff]  ;;  %v128_v12 = vld [vmem:[%s6612_s28 + $0x18] sm:$0xff]  ;;  %v232_v25 = vstv %s231_s27  ;;  %s4230_s22 = sld [smem:[#allocation2 + $0x180]] }
  0x23   :  { %167 = vmatpush.msra.mxu0 %v133_v1  ;;  %4344 = vmatpush.msra.mxu1 %v133_v1  ;;  %v129_v13 = vld [vmem:[%s6612_s28 + $0x20] sm:$0xff]  ;;  %v240_v26 = vstv %s4220_s29  ;;  %vm233_vm2 = vcmp.eq.s32.totalorder %v4961_v22, %v232_v25  ;;  %s4232_s2 = sld [smem:[#allocation2 + $0x181]] }
  0x24   :  { %v247_v27 = vstv %s4222_s11  ;;  %vm241_vm4 = vcmp.eq.s32.totalorder %v4961_v22, %v240_v26  ;;  %vm234_vm6 = vmand %vm6598_vm1, %vm233_vm2  ;;  %s5021_s10 = sld [smem:[#allocation2 + $0x200]] }
  0x25   :  { %168 = vmatpush.msra.mxu0 %v132_v2  ;;  %4345 = vmatpush.msra.mxu1 %v132_v2  ;;  %v254_v28 = vstv %s4224_s0  ;;  %vm248_vm5 = vcmp.eq.s32.totalorder %v4961_v22, %v247_v27  ;;  %vm242_vm8 = vmand %vm238_vm3, %vm241_vm4  ;;  %v4219_v32 = vsel %vm234_vm6, 1.0, %v4768_v31  ;;  %s5026_s20 = sld [smem:[#allocation2 + $0x201]] }
  0x26   :  { %vm255_vm7 = vcmp.eq.s32.totalorder %v4961_v22, %v254_v28  ;;  %vm249_vm9 = vmand %vm6598_vm1, %vm248_vm5  ;;  %v4221_v33 = vsel %vm242_vm8, 1.0, %v4768_v31  ;;  %v261_v39 = vstv %s4226_s30  ;;  %s5043_s1 = sld [smem:[#allocation2 + $0x280]] }
  0x27   :  { %169 = vmatpush.msra.mxu0 %v131_v3  ;;  %4346 = vmatpush.msra.mxu1 %v131_v3  ;;  %vm256_vm10 = vmand %vm238_vm3, %vm255_vm7  ;;  %v4223_v34 = vsel %vm249_vm9, 1.0, %v4768_v31  ;;  %v4997_v36 = vadd.f32 %v4221_v33, %v4219_v32  ;;  %v268_v41 = vstv %s4228_s21  ;;  %vm262_vm12 = vcmp.eq.s32.totalorder %v4961_v22, %v261_v39  ;;  %s5049_s23 = sld [smem:[#allocation2 + $0x281]] }
  0x28   :  { %4207 = vmatmul.msk.f32.vlgmr.msra.gmra.mxu0 %vm6596_vm0, %v125_v4  ;;  %4212 = vmatmul.msk.f32.vlgmr.msra.gmra.mxu1 %vm6596_vm0, %v130_v5  ;;  %v4225_v35 = vsel %vm256_vm10, 1.0, %v4768_v31  ;;  %v275_v42 = vstv %s4230_s22  ;;  %vm269_vm13 = vcmp.eq.s32.totalorder %v4961_v22, %v268_v41  ;;  %vm5038_vm15 = vmand %vm6598_vm1, %vm262_vm12  ;;  %s5073_s24 = sld [smem:[#allocation2 + $0x300]] }
  0x29   :  { %205 = vmatpush.msrb.mxu1 %v192_v6  ;;  %v4999_v37 = vadd.f32 %v4225_v35, %v4223_v34  ;;  %v282_v43 = vstv %s4232_s2  ;;  %vm276_vm14 = vcmp.eq.s32.totalorder %v4961_v22, %v275_v42  ;;  %vm270_vm4 = vmand %vm238_vm3, %vm269_vm13  ;;  %v4227_v46 = vsel %vm5038_vm15, 1.0, %v4768_v31  ;;  %s5082_s16 = sld [smem:[#allocation2 + $0x301]] }
  0x2a   :  { %vm283_vm2 = vcmp.eq.s32.totalorder %v4961_v22, %v282_v43  ;;  %vm277_vm5 = vmand %vm6598_vm1, %vm276_vm14  ;;  %v289_v45 = vstv %s5021_s10  ;;  %v4229_v47 = vsel %vm270_vm4, 1.0, %v4768_v31  ;;  %s5090_s26 = sld [smem:[#allocation2 + $0x380]]  ;;  %s4769_s10 = smov 64  }
  0x2b   :  { %206 = vmatpush.msrb.mxu1 %v191_v7  ;;  %vm284_vm6 = vmand %vm238_vm3, %vm283_vm2  ;;  %v296_v48 = vstv %s5026_s20  ;;  %v4231_v49 = vsel %vm277_vm5, 1.0, %v4768_v31  ;;  %vm5078_vm7 = vcmp.eq.s32.totalorder %v4961_v22, %v289_v45  ;;  %v5086_v52 = vadd.f32 %v4229_v47, %v4227_v46  ;;  %s5097_s19 = sld [smem:[#allocation2 + $0x381]] }
  0x2c   :  { %v4233_v50 = vsel %vm284_vm6, 1.0, %v4768_v31  ;;  %vm297_vm8 = vcmp.eq.s32.totalorder %v4961_v22, %v296_v48  ;;  %v303_v53 = vstv %s5043_s1  ;;  %vm291_vm9 = vmand %vm6598_vm1, %vm5078_vm7  ;;  %s6619_s3 = sld [smem:[#allocation15_spill]] }
  0x2d   :  { %207 = vmatpush.msrb.mxu1 %v190_v8  ;;  %v5094_v54 = vadd.f32 %v4233_v50, %v4231_v49  ;;  %v310_v55 = vstv %s5049_s23  ;;  %vm298_vm10 = vmand %vm238_vm3, %vm297_vm8  ;;  %vm304_vm12 = vcmp.eq.s32.totalorder %v4961_v22, %v303_v53  ;;  %v4235_v56 = vsel %vm291_vm9, 1.0, %v4768_v31  ;;  %s4770_s23 = smov 96   ;;  %s6654_s20 = sld [smem:[#allocation16_spill]] }
  0x2e   :  { %vm311_vm13 = vcmp.eq.s32.totalorder %v4961_v22, %v310_v55  ;;  %v4237_v57 = vsel %vm298_vm10, 1.0, %v4768_v31  ;;  %vm5124_vm14 = vmand %vm6598_vm1, %vm304_vm12  ;;  %v317_v59 = vstv %s5073_s24 }
  0x2f   :  { %208 = vmatpush.msrb.mxu1 %v189_v9  ;;  %vm312_vm15 = vmand %vm238_vm3, %vm311_vm13  ;;  %v324_v60 = vstv %s5082_s16  ;;  %v301_v62 = vadd.f32 %v4237_v57, %v4235_v56  ;;  %vm318_vm2 = vcmp.eq.s32.totalorder %v4961_v22, %v317_v59  ;;  %v4239_v0 = vsel %vm5124_vm14, 1.0, %v4768_v31 }
  0x30   :  { %4208 = vmatmul.msk.f32.gmra.mxu0 %vm6596_vm0, %v126_v10  ;;  %4213 = vmatmul.msk.f32.vlgmr.msrb.gmra.mxu1 %vm6596_vm0, %v125_v4  ;;  %v331_v61 = vstv %s5090_s26  ;;  %v4241_v1 = vsel %vm312_vm15, 1.0, %v4768_v31  ;;  %vm325_vm4 = vcmp.eq.s32.totalorder %v4961_v22, %v324_v60  ;;  %vm5160_vm6 = vmand %vm6598_vm1, %vm318_vm2 }
  0x31   :  { %v338_v63 = vstv %s5097_s19  ;;  %vm332_vm5 = vcmp.eq.s32.totalorder %v4961_v22, %v331_v61  ;;  %v315_v4 = vadd.f32 %v4241_v1, %v4239_v0  ;;  %vm326_vm8 = vmand %vm238_vm3, %vm325_vm4  ;;  %v4243_v7 = vsel %vm5160_vm6, 1.0, %v4768_v31 }
  0x32   :  { %v5156_v2 = vld [vmem:[%s6619_s3 + $0x18] sm:$0xff]  ;;  %vm339_vm7 = vcmp.eq.s32.totalorder %v4961_v22, %v338_v63  ;;  %vm333_vm9 = vmand %vm6598_vm1, %vm332_vm5  ;;  %v5187_v6 = vld [vmem:[%s6619_s3 + $0x8] sm:$0xff]  ;;  %v4245_v8 = vsel %vm326_vm8, 1.0, %v4768_v31 }
  0x33   :  { %vm340_vm10 = vmand %vm238_vm3, %vm339_vm7  ;;  %v5200_v9 = vld [vmem:[%s6619_s3] sm:$0xff] }
  0x38   :  { %4209 = vmatmul.msk.f32.gmra.mxu0 %vm6596_vm0, %v127_v11  ;;  %4214 = vmatmul.msk.f32.gmra.mxu1 %vm6596_vm0, %v126_v10  ;;  %v4247_v10 = vsel %vm333_vm9, 1.0, %v4768_v31 }
  0x40   :  { %4210 = vmatmul.msk.f32.gmra.mxu0 %vm6596_vm0, %v128_v12  ;;  %4215 = vmatmul.msk.f32.gmra.mxu1 %vm6596_vm0, %v127_v11  ;;  %v4249_v11 = vsel %vm340_vm10, 1.0, %v4768_v31 }
  0x48   :  { %4211 = vmatmul.msk.f32.gmra.mxu0 %vm6596_vm0, %v129_v13  ;;  %4216 = vmatmul.msk.f32.gmra.mxu1 %vm6596_vm0, %v128_v12  ;;  %v329_v12 = vadd.f32 %v4245_v8, %v4243_v7 }
  0x50   :  { %4217 = vmatmul.msk.f32.gmra.mxu1 %vm6596_vm0, %v129_v13  ;;  %v343_v13 = vadd.f32 %v4249_v11, %v4247_v10 }
  0x58   :  { %4218 = vmatmul.msk.f32.gmra.mxu1 %vm6596_vm0, %v130_v5  ;;  %v5174_v5 = vld [vmem:[%s6619_s3 + $0x10] sm:$0xff] }
  0xa5   :  { %v4945_v14 = vpop.f32.mrf.mxu0  ;;  %v4947_v15 = vpop.f32.mrf.mxu1 }
  0xa6   :  { %361 = vmatpush.msra.mxu2 %v4947_v15  ;;  %384 = vmatpush.msra.mxu3 %v4947_v15 }
  0xad   :  { %v4951_v16 = vpop.f32.mrf.mxu0  ;;  %v4953_v17 = vpop.f32.mrf.mxu1 }
  0xb5   :  { %v4955_v18 = vpop.f32.mrf.mxu0  ;;  %v4957_v19 = vpop.f32.mrf.mxu1 }
  0xbd   :  { %v4963_v23 = vpop.f32.mrf.mxu0  ;;  %v4965_v24 = vpop.f32.mrf.mxu1 }
  0xc5   :  { %v4977_v29 = vpop.f32.mrf.mxu0  ;;  %v4979_v30 = vpop.f32.mrf.mxu1 }
  0xc6   :  { %362 = vmatpush.msra.mxu2 %v4977_v29  ;;  %385 = vmatpush.msra.mxu3 %v4977_v29 }
  0xc8   :  { %363 = vmatpush.msra.mxu2 %v4963_v23  ;;  %386 = vmatpush.msra.mxu3 %v4963_v23 }
  0xca   :  { %364 = vmatpush.msra.mxu2 %v4955_v18  ;;  %387 = vmatpush.msra.mxu3 %v4955_v18 }
  0xcc   :  { %365 = vmatpush.msra.mxu2 %v4951_v16  ;;  %388 = vmatpush.msra.mxu3 %v4951_v16 }
  0xcd   :  { %v5001_v38 = vpop.f32.mrf.mxu1 }
  0xce   :  { %366 = vmatpush.msra.mxu2 %v4945_v14  ;;  %389 = vmatpush.msra.mxu3 %v4945_v14 }
  0xcf   :  { %4250 = vmatmul.msk.f32.vlgmr.msra.gmra.mxu2 %vm6599_vm11, %v4997_v36  ;;  %4251 = vmatmul.msk.f32.vlgmr.msra.gmra.mxu3 %vm6599_vm11, %v4999_v37 }
  0xd0   :  { %407 = vmatpush.msrb.mxu2 %v4947_v15  ;;  %430 = vmatpush.msrb.mxu3 %v4947_v15 }
  0xd2   :  { %408 = vmatpush.msrb.mxu2 %v4977_v29  ;;  %431 = vmatpush.msrb.mxu3 %v4977_v29 }
  0xd4   :  { %409 = vmatpush.msrb.mxu2 %v4963_v23  ;;  %432 = vmatpush.msrb.mxu3 %v4963_v23 }
  0xd5   :  { %v5015_v40 = vpop.f32.mrf.mxu1 }
  0xd6   :  { %410 = vmatpush.msrb.mxu2 %v4955_v18  ;;  %433 = vmatpush.msrb.mxu3 %v4955_v18 }
  0xd7   :  { %545 = vmatpush.msrb.mxu0 %v5015_v40  ;;  %565 = vmatpush.msra.mxu1 %v5015_v40 }
  0xd8   :  { %411 = vmatpush.msrb.mxu2 %v4951_v16  ;;  %434 = vmatpush.msrb.mxu3 %v4951_v16 }
  0xd9   :  { %546 = vmatpush.msrb.mxu0 %v5001_v38  ;;  %566 = vmatpush.msra.mxu1 %v5001_v38 }
  0xda   :  { %412 = vmatpush.msrb.mxu2 %v4945_v14  ;;  %435 = vmatpush.msrb.mxu3 %v4945_v14 }
  0xdb   :  { %547 = vmatpush.msrb.mxu0 %v4979_v30  ;;  %567 = vmatpush.msra.mxu1 %v4979_v30 }
  0xdc   :  { %453 = vmatpush.msra.mxu2 %v4947_v15  ;;  %476 = vmatpush.msra.mxu3 %v4947_v15 }
  0xdd   :  { %548 = vmatpush.msrb.mxu0 %v4965_v24  ;;  %568 = vmatpush.msra.mxu1 %v4965_v24 }
  0xde   :  { %454 = vmatpush.msra.mxu2 %v4977_v29  ;;  %477 = vmatpush.msra.mxu3 %v4977_v29 }
  0xdf   :  { %549 = vmatpush.msrb.mxu0 %v4957_v19  ;;  %569 = vmatpush.msra.mxu1 %v4957_v19 }
  0xe0   :  { %455 = vmatpush.msra.mxu2 %v4963_v23  ;;  %478 = vmatpush.msra.mxu3 %v4963_v23 }
  0xe1   :  { %550 = vmatpush.msrb.mxu0 %v4953_v17  ;;  %570 = vmatpush.msra.mxu1 %v4953_v17 }
  0xe2   :  { %456 = vmatpush.msra.mxu2 %v4955_v18  ;;  %479 = vmatpush.msra.mxu3 %v4955_v18 }
  0xe3   :  { %625 = vmatpush.msra.mxu0 %v5015_v40  ;;  %645 = vmatpush.msrb.mxu1 %v5015_v40 }
  0xe4   :  { %457 = vmatpush.msra.mxu2 %v4951_v16  ;;  %480 = vmatpush.msra.mxu3 %v4951_v16 }
  0xe5   :  { %626 = vmatpush.msra.mxu0 %v5001_v38  ;;  %646 = vmatpush.msrb.mxu1 %v5001_v38 }
  0xe6   :  { %458 = vmatpush.msra.mxu2 %v4945_v14  ;;  %481 = vmatpush.msra.mxu3 %v4945_v14 }
  0xe7   :  { %4258 = vmatmul.msk.f32.vlgmr.msrb.gmra.mxu0 %vm6599_vm11, %v4997_v36  ;;  %4252 = vmatmul.msk.f32.vlgmr.msrb.gmra.mxu2 %vm6599_vm11, %v5086_v52 }
  0xe8   :  { %4253 = vmatmul.msk.f32.vlgmr.msrb.gmra.mxu3 %vm6599_vm11, %v5094_v54  ;;  %499 = vmatpush.msrb.mxu2 %v4947_v15 }
  0xe9   :  { %522 = vmatpush.msrb.mxu3 %v4947_v15  ;;  %627 = vmatpush.msra.mxu0 %v4979_v30 }
  0xea   :  { %647 = vmatpush.msrb.mxu1 %v4979_v30  ;;  %500 = vmatpush.msrb.mxu2 %v4977_v29 }
  0xeb   :  { %523 = vmatpush.msrb.mxu3 %v4977_v29  ;;  %628 = vmatpush.msra.mxu0 %v4965_v24 }
  0xec   :  { %648 = vmatpush.msrb.mxu1 %v4965_v24  ;;  %501 = vmatpush.msrb.mxu2 %v4963_v23 }
  0xed   :  { %524 = vmatpush.msrb.mxu3 %v4963_v23  ;;  %629 = vmatpush.msra.mxu0 %v4957_v19 }
  0xee   :  { %649 = vmatpush.msrb.mxu1 %v4957_v19  ;;  %502 = vmatpush.msrb.mxu2 %v4955_v18 }
  0xef   :  { %525 = vmatpush.msrb.mxu3 %v4955_v18  ;;  %630 = vmatpush.msra.mxu0 %v4953_v17 }
  0xf0   :  { %650 = vmatpush.msrb.mxu1 %v4953_v17  ;;  %4262 = vmatmul.msk.f32.vlgmr.msra.gmra.mxu0 %vm6599_vm11, %v301_v62 }
  0xf1   :  { %503 = vmatpush.msrb.mxu2 %v4951_v16  ;;  %526 = vmatpush.msrb.mxu3 %v4951_v16  ;;  %v5275_v16 = vld [vmem:[%s6576_s5] ss:$0 sm:$0xff] }
  0xf2   :  { %718 = vmatpush.msrb.mxu0 %v5156_v2  ;;  %4254 = vmatmul.msk.f32.vlgmr.msra.gmra.mxu2 %vm6599_vm11, %v301_v62 }
  0xf3   :  { %504 = vmatpush.msrb.mxu2 %v4945_v14  ;;  %527 = vmatpush.msrb.mxu3 %v4945_v14 }
  0xf4   :  { %719 = vmatpush.msrb.mxu0 %v5174_v5  ;;  %4255 = vmatmul.msk.f32.vlgmr.msra.gmra.mxu3 %vm6599_vm11, %v315_v4 }
  0xf5   :  { %585 = vmatpush.msra.mxu2 %v5015_v40  ;;  %605 = vmatpush.msra.mxu3 %v5015_v40 }
  0xf6   :  { %720 = vmatpush.msrb.mxu0 %v5187_v6  ;;  %4259 = vmatmul.msk.f32.vlgmr.msra.gmra.mxu1 %vm6599_vm11, %v4999_v37 }
  0xf7   :  { %586 = vmatpush.msra.mxu2 %v5001_v38  ;;  %606 = vmatpush.msra.mxu3 %v5001_v38 }
  0xf8   :  { %721 = vmatpush.msrb.mxu0 %v5200_v9  ;;  %782 = vmatpush.msra.mxu1 %v5156_v2 }
  0xf9   :  { %587 = vmatpush.msra.mxu2 %v4979_v30  ;;  %607 = vmatpush.msra.mxu3 %v4979_v30 }
  0xfa   :  { %722 = vmatmul.f32.vlgmr.msrb.gmra.mxu0 %v4768_v31  ;;  %4256 = vmatmul.msk.f32.vlgmr.msrb.gmra.mxu2 %vm6599_vm11, %v329_v12 }
  0xfb   :  { %588 = vmatpush.msra.mxu2 %v4965_v24  ;;  %608 = vmatpush.msra.mxu3 %v4965_v24 }
  0xfc   :  { %4257 = vmatmul.msk.f32.vlgmr.msrb.gmra.mxu3 %vm6599_vm11, %v343_v13  ;;  %783 = vmatpush.msra.mxu1 %v5174_v5 }
  0xfd   :  { %589 = vmatpush.msra.mxu2 %v4957_v19  ;;  %609 = vmatpush.msra.mxu3 %v4957_v19 }
  0xfe   :  { %4263 = vmatmul.msk.f32.vlgmr.msrb.gmra.mxu1 %vm6599_vm11, %v315_v4  ;;  %974 = vmatpush.msra.mxu0 %v5156_v2 }
  0xff   :  { %590 = vmatpush.msra.mxu2 %v4953_v17  ;;  %610 = vmatpush.msra.mxu3 %v4953_v17 }
 0x100   :  { %784 = vmatpush.msra.mxu1 %v5187_v6  ;;  %975 = vmatpush.msra.mxu0 %v5174_v5 }
 0x101   :  { %665 = vmatpush.msrb.mxu2 %v5015_v40  ;;  %685 = vmatpush.msrb.mxu3 %v5015_v40 }
 0x102   :  { %785 = vmatpush.msra.mxu1 %v5200_v9  ;;  %4260 = vmatmul.msk.f32.vlgmr.msra.gmra.mxu2 %vm6599_vm11, %v5086_v52 }
 0x103   :  { %666 = vmatpush.msrb.mxu2 %v5001_v38  ;;  %686 = vmatpush.msrb.mxu3 %v5001_v38 }
 0x104   :  { %4261 = vmatmul.msk.f32.vlgmr.msra.gmra.mxu3 %vm6599_vm11, %v5094_v54  ;;  %976 = vmatpush.msra.mxu0 %v5187_v6 }
 0x105   :  { %667 = vmatpush.msrb.mxu2 %v4979_v30  ;;  %687 = vmatpush.msrb.mxu3 %v4979_v30 }
 0x106   :  { %977 = vmatpush.msra.mxu0 %v5200_v9  ;;  %1038 = vmatpush.msrb.mxu1 %v5156_v2 }
 0x107   :  { %668 = vmatpush.msrb.mxu2 %v4965_v24  ;;  %688 = vmatpush.msrb.mxu3 %v4965_v24 }
 0x108   :  { %1039 = vmatpush.msrb.mxu1 %v5174_v5 }
 0x109   :  { %669 = vmatpush.msrb.mxu2 %v4957_v19  ;;  %689 = vmatpush.msrb.mxu3 %v4957_v19  ;;  %v5282_v19 = vld [vmem:[%s6575_s4] ss:$0 sm:$0xff] }
 0x10a   :  { %1040 = vmatpush.msrb.mxu1 %v5187_v6 }
 0x10b   :  { %670 = vmatpush.msrb.mxu2 %v4953_v17  ;;  %690 = vmatpush.msrb.mxu3 %v4953_v17 }
 0x10c   :  { %4264 = vmatmul.msk.f32.vlgmr.msrb.gmra.mxu2 %vm6599_vm11, %v329_v12  ;;  %4265 = vmatmul.msk.f32.vlgmr.msrb.gmra.mxu3 %vm6599_vm11, %v343_v13 }
 0x10d   :  { %910 = vmatpush.msra.mxu3 %v5156_v2  ;;  %846 = vmatpush.msra.mxu2 %v5156_v2 }
 0x10e   :  { %1041 = vmatpush.msrb.mxu1 %v5200_v9 }
 0x10f   :  { %847 = vmatpush.msra.mxu2 %v5174_v5  ;;  %911 = vmatpush.msra.mxu3 %v5174_v5 }
 0x111   :  { %848 = vmatpush.msra.mxu2 %v5187_v6  ;;  %912 = vmatpush.msra.mxu3 %v5187_v6 }
 0x113   :  { %849 = vmatpush.msra.mxu2 %v5200_v9  ;;  %913 = vmatpush.msra.mxu3 %v5200_v9 }
 0x115   :  { %1102 = vmatpush.msrb.mxu2 %v5156_v2  ;;  %1166 = vmatpush.msrb.mxu3 %v5156_v2 }
 0x117   :  { %1103 = vmatpush.msrb.mxu2 %v5174_v5  ;;  %1167 = vmatpush.msrb.mxu3 %v5174_v5 }
 0x119   :  { %1104 = vmatpush.msrb.mxu2 %v5187_v6  ;;  %1168 = vmatpush.msrb.mxu3 %v5187_v6 }
 0x11b   :  { %1105 = vmatpush.msrb.mxu2 %v5200_v9  ;;  %1169 = vmatpush.msrb.mxu3 %v5200_v9 }
 0x152   :  { %v368_v20 = vpop.f32.mrf.mxu2  ;;  %v391_v54 = vpop.f32.mrf.mxu3 }
 0x153   :  { %v369_v23 = vadd.f32 %v5282_v19, %v368_v20  ;;  %v392_v55 = vadd.f32 %v5282_v19, %v391_v54 }
 0x164   :  { %v5268_v14 = vpop.f32.mrf.mxu0 }
 0x16d   :  { %v5270_v15 = vpop.f32.mrf.mxu0 }
 0x173   :  { %v5292_v50 = vpop.f32.mrf.mxu1 }
 0x177   :  { %v723_v17 = vpop.f32.mrf.mxu0 }
 0x178   :  { %v724_v18 = vadd.f32 %v5275_v16, %v723_v17 }
 0x17a   :  { %747 = vrot.lane.b32.xlu0 %v724_v18, %s4769_s10  ;;  %v726_v24 = vadd.f32 %v724_v18, %v369_v23 }
 0x17b   :  { %v5294_v51 = vpop.f32.mrf.mxu1 }
 0x17c   :  { %v4266_v25 = vmul.f32 -1.442695, %v726_v24 }
 0x17e   :  { %4444 = vpow2.f32 %v4266_v25 }
 0x184   :  { %v4445_v26 = vpop.eup %4444 }
 0x185   :  { %v730_v27 = vadd.f32 1.0, %v4445_v26 }
 0x187   :  { %4446 = vrcp.f32 %v730_v27  ;;  %v742_v34 = vand.u32 2147483648, %v730_v27  ;;  %vm736_vm13 = vweird.f32 %v730_v27  ;;  %v740_v35 = vand.u32 2147483647, %v730_v27 }
 0x189   :  { %v743_v37 = vor.u32 1.1754944e-38, %v742_v34  ;;  %vm741_vm15 = vcmp.eq.f32.partialorder %v740_v35, 8.507059e+37 }
 0x18d   :  { %v4447_v28 = vpop.eup %4446 }
 0x18e   :  { %v732_v29 = vmul.f32 %v4447_v28, %v730_v27  ;;  %vm737_vm12 = vweird.f32 %v4447_v28 }
 0x18f   :  { %vm738_vm14 = vmor %vm736_vm13, %vm737_vm12 }
 0x190   :  { %v733_v30 = vsub.f32 1.0, %v732_v29 }
 0x192   :  { %v734_v32 = vmul.f32 %v4447_v28, %v733_v30 }
 0x194   :  { %v735_v33 = vadd.f32 %v4447_v28, %v734_v32 }
 0x196   :  { %v739_v36 = vsel %vm738_vm14, %v4447_v28, %v735_v33 }
 0x197   :  { %v744_v39 = vsel %vm741_vm15, %v743_v37, %v739_v36 }
 0x198   :  { %v757_v44 = vsub.f32 1.0, %v744_v39  ;;  %v763_v46 = vmul.f32 0.0, %v744_v39 }
 0x1ec   :  { %v748_v38 = vpop.permute.xlu0 %747 }
 0x1ed   :  { %v750_v40 = vmul.f32 %v748_v38, %v744_v39 }
 0x1ef   :  { %752 = vrot.lane.b32.xlu0 %v750_v40, %s4769_s10 }
 0x261   :  { %v753_v41 = vpop.permute.xlu0 %752 }
 0x262   :  { %v755_v42 = vadd.f32 %v753_v41, %v369_v23  ;;  %v414_v23 = vpop.f32.mrf.mxu2 }
 0x263   :  { %v415_v30 = vadd.f32 %v5282_v19, %v414_v23 }
 0x264   :  { %4448 = vtanh.f32 %v755_v42 }
 0x26a   :  { %v4449_v43 = vpop.eup %4448  ;;  %v5307_v24 = vpop.f32.mrf.mxu2 }
 0x26b   :  { %759 = vrot.lane.b32.xlu1 %v4449_v43, %s4770_s23 }
 0x272   :  { %v5309_v25 = vpop.f32.mrf.mxu2 }
 0x27a   :  { %v5311_v26 = vpop.f32.mrf.mxu2 }
 0x282   :  { %v5313_v27 = vpop.f32.mrf.mxu2 }
 0x2dd   :  { %v760_v45 = vpop.permute.xlu1 %759 }
 0x2de   :  { %v762_v47 = vmul.f32 %v760_v45, %v757_v44 }
 0x2e0   :  { %v5287_v48 = vadd.f32 %v763_v46, %v762_v47 }
 0x2e2   :  { %766 = vrot.lane.b32.xlu1 %v5287_v48, %s4770_s23 }
 0x354   :  { %v767_v49 = vpop.permute.xlu1 %766 }
 0x355   :  { %4267 = vmatmul.msk.f32.vlgmr.msra.gmra.mxu1 %vm6596_vm0, %v767_v49 }
 0x3d2   :  { %v787_v52 = vpop.f32.mrf.mxu1 }
 0x3d3   :  { %v788_v53 = vadd.f32 %v5275_v16, %v787_v52 }
 0x3d5   :  { %811 = vrot.lane.b32.xlu2 %v788_v53, %s4769_s10  ;;  %v790_v56 = vadd.f32 %v788_v53, %v392_v55 }
 0x3d7   :  { %v4268_v57 = vmul.f32 -1.442695, %v790_v56 }
 0x3d9   :  { %4450 = vpow2.f32 %v4268_v57 }
 0x3df   :  { %v4451_v58 = vpop.eup %4450 }
 0x3e0   :  { %v794_v59 = vadd.f32 1.0, %v4451_v58 }
 0x3e2   :  { %4452 = vrcp.f32 %v794_v59  ;;  %v806_v1 = vand.u32 2147483648, %v794_v59  ;;  %vm800_vm4 = vweird.f32 %v794_v59  ;;  %v804_v2 = vand.u32 2147483647, %v794_v59 }
 0x3e4   :  { %v807_v4 = vor.u32 1.1754944e-38, %v806_v1  ;;  %vm805_vm6 = vcmp.eq.f32.partialorder %v804_v2, 8.507059e+37 }
 0x3e8   :  { %v4453_v60 = vpop.eup %4452 }
 0x3e9   :  { %v796_v61 = vmul.f32 %v4453_v60, %v794_v59  ;;  %vm801_vm2 = vweird.f32 %v4453_v60 }
 0x3ea   :  { %vm802_vm5 = vmor %vm800_vm4, %vm801_vm2 }
 0x3eb   :  { %v797_v62 = vsub.f32 1.0, %v796_v61 }
 0x3ed   :  { %v798_v63 = vmul.f32 %v4453_v60, %v797_v62 }
 0x3ef   :  { %v799_v0 = vadd.f32 %v4453_v60, %v798_v63 }
 0x3f1   :  { %v803_v3 = vsel %vm802_vm5, %v4453_v60, %v799_v0  ;;  %v437_v60 = vpop.f32.mrf.mxu3 }
 0x3f2   :  { %v808_v6 = vsel %vm805_vm6, %v807_v4, %v803_v3  ;;  %v438_v3 = vadd.f32 %v5282_v19, %v437_v60 }
 0x3f3   :  { %v821_v11 = vsub.f32 1.0, %v808_v6  ;;  %v827_v13 = vmul.f32 %v808_v6, %v5287_v48 }
 0x3f9   :  { %v5326_v61 = vpop.f32.mrf.mxu3 }
 0x401   :  { %v5328_v62 = vpop.f32.mrf.mxu3 }
 0x409   :  { %v5330_v63 = vpop.f32.mrf.mxu3 }
 0x411   :  { %v5332_v0 = vpop.f32.mrf.mxu3 }
 0x42f   :  { %v812_v5 = vpop.permute.xlu2 %811 }
 0x430   :  { %v814_v7 = vmul.f32 %v812_v5, %v808_v6 }
 0x432   :  { %816 = vrot.lane.b32.xlu2 %v814_v7, %s4769_s10 }
 0x48c   :  { %v817_v8 = vpop.permute.xlu2 %816 }
 0x48d   :  { %v819_v9 = vadd.f32 %v817_v8, %v392_v55 }
 0x48f   :  { %4454 = vtanh.f32 %v819_v9 }
 0x495   :  { %v4455_v10 = vpop.eup %4454 }
 0x496   :  { %823 = vrot.lane.b32.xlu0 %v4455_v10, %s4770_s23 }
 0x508   :  { %v824_v12 = vpop.permute.xlu0 %823 }
 0x509   :  { %v826_v17 = vmul.f32 %v824_v12, %v821_v11 }
 0x50b   :  { %v5302_v18 = vadd.f32 %v827_v13, %v826_v17 }
 0x50d   :  { %830 = vrot.lane.b32.xlu1 %v5302_v18, %s4770_s23 }
 0x57f   :  { %v831_v20 = vpop.permute.xlu1 %830 }
 0x580   :  { %4269 = vmatmul.msk.f32.vlgmr.msra.gmra.mxu2 %vm6596_vm0, %v831_v20 }
 0x603   :  { %v851_v28 = vpop.f32.mrf.mxu2 }
 0x604   :  { %v852_v29 = vadd.f32 %v5275_v16, %v851_v28 }
 0x606   :  { %875 = vrot.lane.b32.xlu2 %v852_v29, %s4769_s10  ;;  %v854_v32 = vadd.f32 %v852_v29, %v415_v30 }
 0x608   :  { %v4270_v33 = vmul.f32 -1.442695, %v854_v32 }
 0x60a   :  { %4456 = vpow2.f32 %v4270_v33 }
 0x610   :  { %v4457_v34 = vpop.eup %4456 }
 0x611   :  { %v858_v35 = vadd.f32 1.0, %v4457_v34 }
 0x613   :  { %4458 = vrcp.f32 %v858_v35  ;;  %v870_v41 = vand.u32 2147483648, %v858_v35  ;;  %vm864_vm8 = vweird.f32 %v858_v35  ;;  %v868_v42 = vand.u32 2147483647, %v858_v35 }
 0x615   :  { %v871_v44 = vor.u32 1.1754944e-38, %v870_v41  ;;  %vm869_vm10 = vcmp.eq.f32.partialorder %v868_v42, 8.507059e+37  ;;  %v5352_v41 = vld [vmem:[%s6578_s7 + $0x10] sm:$0xff]  ;;  %v5359_v42 = vld [vmem:[%s6578_s7 + $0x8] sm:$0xff] }
 0x619   :  { %v4459_v36 = vpop.eup %4458 }
 0x61a   :  { %v860_v37 = vmul.f32 %v4459_v36, %v858_v35  ;;  %vm865_vm7 = vweird.f32 %v4459_v36 }
 0x61b   :  { %vm866_vm9 = vmor %vm864_vm8, %vm865_vm7 }
 0x61c   :  { %v861_v38 = vsub.f32 1.0, %v860_v37 }
 0x61e   :  { %v862_v39 = vmul.f32 %v4459_v36, %v861_v38 }
 0x620   :  { %v863_v40 = vadd.f32 %v4459_v36, %v862_v39 }
 0x622   :  { %v867_v43 = vsel %vm866_vm9, %v4459_v36, %v863_v40  ;;  %v5347_v40 = vld [vmem:[%s6578_s7 + $0x18] sm:$0xff] }
 0x623   :  { %v872_v46 = vsel %vm869_vm10, %v871_v44, %v867_v43  ;;  %1233 = vmatpush.msrb.mxu0 %v5347_v40  ;;  %1297 = vmatpush.msra.mxu1 %v5347_v40  ;;  %v5368_v43 = vld [vmem:[%s6578_s7] sm:$0xff] }
 0x624   :  { %v885_v54 = vsub.f32 1.0, %v872_v46  ;;  %v891_v56 = vmul.f32 %v872_v46, %v5302_v18  ;;  %1361 = vmatpush.msra.mxu2 %v5347_v40 }
 0x625   :  { %1234 = vmatpush.msrb.mxu0 %v5352_v41  ;;  %1298 = vmatpush.msra.mxu1 %v5352_v41 }
 0x626   :  { %1362 = vmatpush.msra.mxu2 %v5352_v41 }
 0x627   :  { %1235 = vmatpush.msrb.mxu0 %v5359_v42  ;;  %1299 = vmatpush.msra.mxu1 %v5359_v42 }
 0x628   :  { %1363 = vmatpush.msra.mxu2 %v5359_v42 }
 0x629   :  { %1236 = vmatpush.msrb.mxu0 %v5368_v43  ;;  %1300 = vmatpush.msra.mxu1 %v5368_v43 }
 0x62a   :  { %1364 = vmatpush.msra.mxu2 %v5368_v43 }
 0x660   :  { %v876_v45 = vpop.permute.xlu2 %875 }
 0x661   :  { %v878_v47 = vmul.f32 %v876_v45, %v872_v46 }
 0x663   :  { %880 = vrot.lane.b32.xlu0 %v878_v47, %s4769_s10  ;;  %v5391_v47 = vld [vmem:[%s6580_s9] ss:$0 sm:$0xff] }
 0x6d5   :  { %v881_v49 = vpop.permute.xlu0 %880 }
 0x6d6   :  { %v883_v52 = vadd.f32 %v881_v49, %v415_v30 }
 0x6d8   :  { %4460 = vtanh.f32 %v883_v52 }
 0x6de   :  { %v4461_v53 = vpop.eup %4460 }
 0x6df   :  { %887 = vrot.lane.b32.xlu1 %v4461_v53, %s4770_s23  ;;  %v5398_v53 = vld [vmem:[%s6579_s8] ss:$0 sm:$0xff] }
 0x751   :  { %v888_v55 = vpop.permute.xlu1 %887 }
 0x752   :  { %v890_v57 = vmul.f32 %v888_v55, %v885_v54  ;;  %v693_v54 = vadd.f32 %v5398_v53, %v5332_v0 }
 0x754   :  { %v5321_v58 = vadd.f32 %v891_v56, %v890_v57 }
 0x756   :  { %894 = vrot.lane.b32.xlu2 %v5321_v58, %s4770_s23 }
 0x7b0   :  { %v895_v59 = vpop.permute.xlu2 %894 }
 0x7b1   :  { %4271 = vmatmul.msk.f32.vlgmr.msra.gmra.mxu3 %vm6596_vm0, %v895_v59  ;;  %v461_v59 = vadd.f32 %v5282_v19, %v5307_v24 }
 0x7b2   :  { %1425 = vmatpush.msra.mxu3 %v5347_v40 }
 0x7b4   :  { %1426 = vmatpush.msra.mxu3 %v5352_v41 }
 0x7b6   :  { %1427 = vmatpush.msra.mxu3 %v5359_v42 }
 0x7b8   :  { %1428 = vmatpush.msra.mxu3 %v5368_v43 }
 0x834   :  { %v915_v1 = vpop.f32.mrf.mxu3 }
 0x835   :  { %v916_v2 = vadd.f32 %v5275_v16, %v915_v1 }
 0x837   :  { %939 = vrot.lane.b32.xlu0 %v916_v2, %s4769_s10  ;;  %v918_v4 = vadd.f32 %v916_v2, %v438_v3 }
 0x839   :  { %v4272_v5 = vmul.f32 -1.442695, %v918_v4 }
 0x83b   :  { %4462 = vpow2.f32 %v4272_v5 }
 0x841   :  { %v4463_v6 = vpop.eup %4462 }
 0x842   :  { %v922_v7 = vadd.f32 1.0, %v4463_v6 }
 0x844   :  { %4464 = vrcp.f32 %v922_v7  ;;  %v934_v13 = vand.u32 2147483648, %v922_v7  ;;  %vm928_vm13 = vweird.f32 %v922_v7  ;;  %v932_v17 = vand.u32 2147483647, %v922_v7 }
 0x846   :  { %v935_v23 = vor.u32 1.1754944e-38, %v934_v13  ;;  %vm933_vm15 = vcmp.eq.f32.partialorder %v932_v17, 8.507059e+37 }
 0x84a   :  { %v4465_v8 = vpop.eup %4464 }
 0x84b   :  { %v924_v9 = vmul.f32 %v4465_v8, %v922_v7  ;;  %vm929_vm12 = vweird.f32 %v4465_v8 }
 0x84c   :  { %vm930_vm14 = vmor %vm928_vm13, %vm929_vm12 }
 0x84d   :  { %v925_v10 = vsub.f32 1.0, %v924_v9 }
 0x84f   :  { %v926_v11 = vmul.f32 %v4465_v8, %v925_v10 }
 0x851   :  { %v927_v12 = vadd.f32 %v4465_v8, %v926_v11 }
 0x853   :  { %v931_v20 = vsel %vm930_vm14, %v4465_v8, %v927_v12 }
 0x854   :  { %v936_v29 = vsel %vm933_vm15, %v935_v23, %v931_v20 }
 0x855   :  { %v949_v35 = vsub.f32 1.0, %v936_v29  ;;  %v955_v37 = vmul.f32 %v936_v29, %v5321_v58 }
 0x8a9   :  { %v940_v28 = vpop.permute.xlu0 %939 }
 0x8aa   :  { %v942_v30 = vmul.f32 %v940_v28, %v936_v29 }
 0x8ac   :  { %944 = vrot.lane.b32.xlu1 %v942_v30, %s4769_s10 }
 0x91e   :  { %v945_v32 = vpop.permute.xlu1 %944 }
 0x91f   :  { %v947_v33 = vadd.f32 %v945_v32, %v438_v3 }
 0x921   :  { %4466 = vtanh.f32 %v947_v33 }
 0x927   :  { %v4467_v34 = vpop.eup %4466 }
 0x928   :  { %951 = vrot.lane.b32.xlu2 %v4467_v34, %s4770_s23 }
 0x982   :  { %v952_v36 = vpop.permute.xlu2 %951 }
 0x983   :  { %v954_v38 = vmul.f32 %v952_v36, %v949_v35 }
 0x985   :  { %v5340_v39 = vadd.f32 %v955_v37, %v954_v38 }
 0x987   :  { %958 = vrot.lane.b32.xlu0 %v5340_v39, %s4770_s23 }
 0x9f9   :  { %v959_v44 = vpop.permute.xlu0 %958 }
 0x9fa   :  { %4273 = vmatmul.msk.f32.vlgmr.msra.gmra.mxu0 %vm6596_vm0, %v959_v44 }
 0x9fb   :  { %1489 = vmatpush.msra.mxu0 %v5347_v40 }
 0x9fd   :  { %1490 = vmatpush.msra.mxu0 %v5352_v41 }
 0x9ff   :  { %1491 = vmatpush.msra.mxu0 %v5359_v42 }
 0xa01   :  { %1492 = vmatpush.msra.mxu0 %v5368_v43 }
 0xa02   :  { %1237 = vmatmul.f32.vlgmr.msrb.gmra.mxu0 %v4768_v31 }
 0xa77   :  { %v979_v45 = vpop.f32.mrf.mxu0 }
 0xa78   :  { %v980_v46 = vadd.f32 %v5275_v16, %v979_v45 }
 0xa7a   :  { %1003 = vrot.lane.b32.xlu1 %v980_v46, %s4769_s10  ;;  %v982_v60 = vadd.f32 %v980_v46, %v461_v59 }
 0xa7c   :  { %v4274_v2 = vmul.f32 -1.442695, %v982_v60 }
 0xa7f   :  { %v1238_v49 = vpop.f32.mrf.mxu0 }
 0xa80   :  { %v1239_v52 = vadd.f32 %v5391_v47, %v1238_v49 }
 0xa82   :  { %1262 = vrot.lane.b32.xlu2 %v1239_v52, %s4769_s10  ;;  %v1241_v55 = vadd.f32 %v1239_v52, %v693_v54 }
 0xa84   :  { %v4281_v56 = vmul.f32 -1.442695, %v1241_v55 }
 0xa86   :  { %4468 = vpow2.f32 %v4281_v56 }
 0xa8c   :  { %v4469_v57 = vpop.eup %4468 }
 0xa8d   :  { %v1245_v1 = vadd.f32 1.0, %v4469_v57 }
 0xa8f   :  { %4470 = vrcp.f32 %v1245_v1  ;;  %v1257_v10 = vand.u32 2147483648, %v1245_v1  ;;  %vm1251_vm4 = vweird.f32 %v1245_v1  ;;  %v1255_v11 = vand.u32 2147483647, %v1245_v1 }
 0xa90   :  { %4472 = vpow2.f32 %v4274_v2 }
 0xa91   :  { %v1258_v13 = vor.u32 1.1754944e-38, %v1257_v10  ;;  %vm1256_vm6 = vcmp.eq.f32.partialorder %v1255_v11, 8.507059e+37  ;;  %v484_v11 = vadd.f32 %v5282_v19, %v5326_v61 }
 0xa95   :  { %v4471_v3 = vpop.eup %4470 }
 0xa96   :  { %v4473_v4 = vpop.eup %4472  ;;  %v1247_v5 = vmul.f32 %v4471_v3, %v1245_v1  ;;  %vm1252_vm2 = vweird.f32 %v4471_v3 }
 0xa97   :  { %v986_v6 = vadd.f32 1.0, %v4473_v4  ;;  %vm1253_vm5 = vmor %vm1251_vm4, %vm1252_vm2 }
 0xa98   :  { %v1248_v7 = vsub.f32 1.0, %v1247_v5 }
 0xa99   :  { %4474 = vrcp.f32 %v986_v6  ;;  %v998_v32 = vand.u32 2147483648, %v986_v6  ;;  %vm992_vm8 = vweird.f32 %v986_v6  ;;  %v996_v33 = vand.u32 2147483647, %v986_v6 }
 0xa9a   :  { %v1249_v8 = vmul.f32 %v4471_v3, %v1248_v7 }
 0xa9b   :  { %v999_v35 = vor.u32 1.1754944e-38, %v998_v32  ;;  %vm997_vm10 = vcmp.eq.f32.partialorder %v996_v33, 8.507059e+37 }
 0xa9c   :  { %v1250_v0 = vadd.f32 %v4471_v3, %v1249_v8 }
 0xa9e   :  { %v1254_v24 = vsel %vm1253_vm5, %v4471_v3, %v1250_v0 }
 0xa9f   :  { %v4475_v9 = vpop.eup %4474  ;;  %v1259_v20 = vsel %vm1256_vm6, %v1258_v13, %v1254_v24  ;;  %v673_v13 = vadd.f32 %v5398_v53, %v5313_v27 }
 0xaa0   :  { %v988_v12 = vmul.f32 %v4475_v9, %v986_v6  ;;  %vm993_vm7 = vweird.f32 %v4475_v9  ;;  %v1278_v4 = vmul.f32 0.0, %v1259_v20 }
 0xaa1   :  { %vm994_vm9 = vmor %vm992_vm8, %vm993_vm7 }
 0xaa2   :  { %v989_v28 = vsub.f32 1.0, %v988_v12 }
 0xaa4   :  { %v990_v29 = vmul.f32 %v4475_v9, %v989_v28 }
 0xaa6   :  { %v991_v30 = vadd.f32 %v4475_v9, %v990_v29 }
 0xaa8   :  { %v995_v34 = vsel %vm994_vm9, %v4475_v9, %v991_v30 }
 0xaa9   :  { %v1000_v37 = vsel %vm997_vm10, %v999_v35, %v995_v34 }
 0xaaa   :  { %v1013_v56 = vsub.f32 1.0, %v1000_v37  ;;  %v1019_v60 = vmul.f32 %v1000_v37, %v5340_v39 }
 0xadc   :  { %v1263_v17 = vpop.permute.xlu2 %1262 }
 0xadd   :  { %v1265_v23 = vmul.f32 %v1263_v17, %v1259_v20 }
 0xadf   :  { %1267 = vrot.lane.b32.xlu1 %v1265_v23, %s4769_s10 }
 0xaec   :  { %v1004_v36 = vpop.permute.xlu1 %1003 }
 0xaed   :  { %v1006_v38 = vmul.f32 %v1004_v36, %v1000_v37 }
 0xaef   :  { %1008 = vrot.lane.b32.xlu0 %v1006_v38, %s4769_s10 }
 0xb51   :  { %v1268_v44 = vpop.permute.xlu1 %1267 }
 0xb52   :  { %v1270_v45 = vadd.f32 %v1268_v44, %v693_v54  ;;  %v1272_v54 = vsub.f32 1.0, %v1259_v20 }
 0xb54   :  { %4476 = vtanh.f32 %v1270_v45 }
 0xb5a   :  { %v4477_v46 = vpop.eup %4476 }
 0xb5b   :  { %1274 = vrot.lane.b32.xlu0 %v4477_v46, %s4770_s23 }
 0xb61   :  { %v1009_v49 = vpop.permute.xlu0 %1008 }
 0xb62   :  { %v1011_v52 = vadd.f32 %v1009_v49, %v461_v59 }
 0xb64   :  { %4478 = vtanh.f32 %v1011_v52 }
 0xb6a   :  { %v4479_v55 = vpop.eup %4478 }
 0xb6b   :  { %1015 = vrot.lane.b32.xlu2 %v4479_v55, %s4770_s23 }
 0xbc5   :  { %v1016_v57 = vpop.permute.xlu2 %1015 }
 0xbc6   :  { %v1018_v1 = vmul.f32 %v1016_v57, %v1013_v56 }
 0xbc8   :  { %v5409_v2 = vadd.f32 %v1019_v60, %v1018_v1 }
 0xbca   :  { %1022 = vrot.lane.b32.xlu1 %v5409_v2, %s4770_s23 }
 0xbcd   :  { %v1275_v3 = vpop.permute.xlu0 %1274 }
 0xbce   :  { %v1277_v5 = vmul.f32 %v1275_v3, %v1272_v54 }
 0xbd0   :  { %v5413_v6 = vadd.f32 %v1278_v4, %v1277_v5 }
 0xbd2   :  { %1281 = vrot.lane.b32.xlu2 %v5413_v6, %s4770_s23 }
 0xc2c   :  { %v1282_v7 = vpop.permute.xlu2 %1281 }
 0xc3c   :  { %v1023_v59 = vpop.permute.xlu1 %1022 }
 0xc3d   :  { %4275 = vmatmul.msk.f32.vlgmr.msrb.gmra.mxu1 %vm6596_vm0, %v1023_v59 }
 0xc3e   :  { %1553 = vmatpush.msrb.mxu1 %v5347_v40 }
 0xc40   :  { %1554 = vmatpush.msrb.mxu1 %v5352_v41 }
 0xc42   :  { %1555 = vmatpush.msrb.mxu1 %v5359_v42 }
 0xc44   :  { %1556 = vmatpush.msrb.mxu1 %v5368_v43 }
 0xc45   :  { %4282 = vmatmul.msk.f32.vlgmr.msra.gmra.mxu1 %vm6596_vm0, %v1282_v7 }
 0xcba   :  { %v1043_v8 = vpop.f32.mrf.mxu1 }
 0xcbb   :  { %v1044_v0 = vadd.f32 %v5275_v16, %v1043_v8 }
 0xcbd   :  { %1067 = vrot.lane.b32.xlu0 %v1044_v0, %s4769_s10  ;;  %v1046_v24 = vadd.f32 %v1044_v0, %v484_v11 }
 0xcbf   :  { %v4276_v12 = vmul.f32 -1.442695, %v1046_v24 }
 0xcc1   :  { %4480 = vpow2.f32 %v4276_v12 }
 0xcc2   :  { %v1302_v9 = vpop.f32.mrf.mxu1 }
 0xcc3   :  { %v1303_v10 = vadd.f32 %v5391_v47, %v1302_v9 }
 0xcc5   :  { %1326 = vrot.lane.b32.xlu1 %v1303_v10, %s4769_s10  ;;  %v1305_v17 = vadd.f32 %v1303_v10, %v673_v13 }
 0xcc7   :  { %v4283_v20 = vmul.f32 -1.442695, %v1305_v17  ;;  %v4481_v23 = vpop.eup %4480 }
 0xcc8   :  { %v1050_v28 = vadd.f32 1.0, %v4481_v23 }
 0xcc9   :  { %4482 = vpow2.f32 %v4283_v20 }
 0xcca   :  { %4484 = vrcp.f32 %v1050_v28  ;;  %v1062_v27 = vand.u32 2147483648, %v1050_v28  ;;  %vm1056_vm13 = vweird.f32 %v1050_v28  ;;  %v1060_v44 = vand.u32 2147483647, %v1050_v28 }
 0xccc   :  { %v1063_v49 = vor.u32 1.1754944e-38, %v1062_v27  ;;  %vm1061_vm15 = vcmp.eq.f32.partialorder %v1060_v44, 8.507059e+37 }
 0xccf   :  { %v4483_v29 = vpop.eup %4482 }
 0xcd0   :  { %v1309_v30 = vadd.f32 1.0, %v4483_v29  ;;  %v4485_v32 = vpop.eup %4484 }
 0xcd1   :  { %v1052_v33 = vmul.f32 %v4485_v32, %v1050_v28  ;;  %vm1057_vm12 = vweird.f32 %v4485_v32 }
 0xcd2   :  { %4486 = vrcp.f32 %v1309_v30  ;;  %vm1058_vm14 = vmor %vm1056_vm13, %vm1057_vm12  ;;  %v1321_v60 = vand.u32 2147483648, %v1309_v30  ;;  %vm1315_vm4 = vweird.f32 %v1309_v30  ;;  %v1319_v1 = vand.u32 2147483647, %v1309_v30 }
 0xcd3   :  { %v1053_v34 = vsub.f32 1.0, %v1052_v33 }
 0xcd4   :  { %v1322_v3 = vor.u32 1.1754944e-38, %v1321_v60  ;;  %vm1320_vm6 = vcmp.eq.f32.partialorder %v1319_v1, 8.507059e+37 }
 0xcd5   :  { %v1054_v61 = vmul.f32 %v4485_v32, %v1053_v34 }
 0xcd7   :  { %v1055_v37 = vadd.f32 %v4485_v32, %v1054_v61 }
 0xcd8   :  { %v4487_v35 = vpop.eup %4486 }
 0xcd9   :  { %v1311_v36 = vmul.f32 %v4487_v35, %v1309_v30  ;;  %v1059_v45 = vsel %vm1058_vm14, %v4485_v32, %v1055_v37  ;;  %vm1316_vm2 = vweird.f32 %v4487_v35 }
 0xcda   :  { %v1064_v52 = vsel %vm1061_vm15, %v1063_v49, %v1059_v45  ;;  %vm1317_vm5 = vmor %vm1315_vm4, %vm1316_vm2 }
 0xcdb   :  { %v1312_v38 = vsub.f32 1.0, %v1311_v36  ;;  %v1077_v12 = vsub.f32 1.0, %v1064_v52  ;;  %v1083_v20 = vmul.f32 %v1064_v52, %v5409_v2 }
 0xcdd   :  { %v1313_v46 = vmul.f32 %v4487_v35, %v1312_v38  ;;  %v507_v38 = vadd.f32 %v5282_v19, %v5309_v25 }
 0xcdf   :  { %v1314_v57 = vadd.f32 %v4487_v35, %v1313_v46 }
 0xce1   :  { %v1318_v54 = vsel %vm1317_vm5, %v4487_v35, %v1314_v57 }
 0xce2   :  { %v1323_v5 = vsel %vm1320_vm6, %v1322_v3, %v1318_v54 }
 0xce3   :  { %v1342_v30 = vmul.f32 %v1323_v5, %v5413_v6 }
 0xd2f   :  { %v1068_v55 = vpop.permute.xlu0 %1067 }
 0xd30   :  { %v1070_v56 = vmul.f32 %v1068_v55, %v1064_v52 }
 0xd32   :  { %1072 = vrot.lane.b32.xlu2 %v1070_v56, %s4769_s10 }
 0xd37   :  { %v1327_v4 = vpop.permute.xlu1 %1326 }
 0xd38   :  { %v1329_v59 = vmul.f32 %v1327_v4, %v1323_v5 }
 0xd3a   :  { %1331 = vrot.lane.b32.xlu0 %v1329_v59, %s4769_s10 }
 0xd8c   :  { %v1073_v7 = vpop.permute.xlu2 %1072 }
 0xd8d   :  { %v1075_v8 = vadd.f32 %v1073_v7, %v484_v11  ;;  %v1336_v11 = vsub.f32 1.0, %v1323_v5 }
 0xd8f   :  { %4488 = vtanh.f32 %v1075_v8 }
 0xd95   :  { %v4489_v0 = vpop.eup %4488 }
 0xd96   :  { %1079 = vrot.lane.b32.xlu1 %v4489_v0, %s4770_s23 }
 0xdac   :  { %v1332_v9 = vpop.permute.xlu0 %1331 }
 0xdad   :  { %v1334_v10 = vadd.f32 %v1332_v9, %v673_v13 }
 0xdaf   :  { %4490 = vtanh.f32 %v1334_v10 }
 0xdb5   :  { %v4491_v24 = vpop.eup %4490 }
 0xdb6   :  { %1338 = vrot.lane.b32.xlu2 %v4491_v24, %s4770_s23 }
 0xe08   :  { %v1080_v17 = vpop.permute.xlu1 %1079 }
 0xe09   :  { %v1082_v23 = vmul.f32 %v1080_v17, %v1077_v12 }
 0xe0b   :  { %v5436_v28 = vadd.f32 %v1083_v20, %v1082_v23 }
 0xe0d   :  { %1086 = vrot.lane.b32.xlu0 %v5436_v28, %s4770_s23 }
 0xe10   :  { %v1339_v29 = vpop.permute.xlu2 %1338 }
 0xe11   :  { %v1341_v32 = vmul.f32 %v1339_v29, %v1336_v11 }
 0xe13   :  { %v5441_v13 = vadd.f32 %v1342_v30, %v1341_v32 }
 0xe15   :  { %1345 = vrot.lane.b32.xlu1 %v5441_v13, %s4770_s23 }
 0xe7f   :  { %v1087_v33 = vpop.permute.xlu0 %1086 }
 0xe80   :  { %4277 = vmatmul.msk.f32.vlgmr.msrb.gmra.mxu2 %vm6596_vm0, %v1087_v33 }
 0xe81   :  { %1617 = vmatpush.msrb.mxu2 %v5347_v40 }
 0xe83   :  { %1618 = vmatpush.msrb.mxu2 %v5352_v41 }
 0xe85   :  { %1619 = vmatpush.msrb.mxu2 %v5359_v42 }
 0xe87   :  { %v1346_v34 = vpop.permute.xlu1 %1345  ;;  %1620 = vmatpush.msrb.mxu2 %v5368_v43 }
 0xe88   :  { %4284 = vmatmul.msk.f32.vlgmr.msra.gmra.mxu2 %vm6596_vm0, %v1346_v34 }
 0xf03   :  { %v1107_v35 = vpop.f32.mrf.mxu2 }
 0xf04   :  { %v1108_v61 = vadd.f32 %v5275_v16, %v1107_v35  ;;  %v653_v16 = vadd.f32 %v5398_v53, %v5294_v51 }
 0xf06   :  { %1131 = vrot.lane.b32.xlu2 %v1108_v61, %s4769_s10  ;;  %v1110_v27 = vadd.f32 %v1108_v61, %v507_v38 }
 0xf08   :  { %v4278_v44 = vmul.f32 -1.442695, %v1110_v27 }
 0xf0a   :  { %4492 = vpow2.f32 %v4278_v44 }
 0xf0b   :  { %v1366_v36 = vpop.f32.mrf.mxu2 }
 0xf0c   :  { %v1367_v37 = vadd.f32 %v5391_v47, %v1366_v36 }
 0xf0e   :  { %1390 = vrot.lane.b32.xlu0 %v1367_v37, %s4769_s10  ;;  %v1369_v55 = vadd.f32 %v1367_v37, %v653_v16 }
 0xf10   :  { %v4493_v45 = vpop.eup %4492  ;;  %v4285_v57 = vmul.f32 -1.442695, %v1369_v55 }
 0xf11   :  { %v1114_v46 = vadd.f32 1.0, %v4493_v45 }
 0xf13   :  { %4494 = vrcp.f32 %v1114_v46  ;;  %v1126_v54 = vand.u32 2147483648, %v1114_v46  ;;  %vm1120_vm8 = vweird.f32 %v1114_v46  ;;  %v1124_v19 = vand.u32 2147483647, %v1114_v46 }
 0xf14   :  { %4496 = vpow2.f32 %v4285_v57 }
 0xf15   :  { %v1127_v4 = vor.u32 1.1754944e-38, %v1126_v54  ;;  %vm1125_vm10 = vcmp.eq.f32.partialorder %v1124_v19, 8.507059e+37  ;;  %v633_v19 = vadd.f32 %v5398_v53, %v5270_v15 }
 0xf19   :  { %v4495_v49 = vpop.eup %4494 }
 0xf1a   :  { %v1116_v52 = vmul.f32 %v4495_v49, %v1114_v46  ;;  %vm1121_vm7 = vweird.f32 %v4495_v49  ;;  %v4497_v25 = vpop.eup %4496 }
 0xf1b   :  { %vm1122_vm9 = vmor %vm1120_vm8, %vm1121_vm7  ;;  %v1373_v5 = vadd.f32 1.0, %v4497_v25 }
 0xf1c   :  { %v1117_v56 = vsub.f32 1.0, %v1116_v52 }
 0xf1d   :  { %4498 = vrcp.f32 %v1373_v5  ;;  %v1385_v12 = vand.u32 2147483648, %v1373_v5  ;;  %vm1379_vm13 = vweird.f32 %v1373_v5  ;;  %v1383_v17 = vand.u32 2147483647, %v1373_v5 }
 0xf1e   :  { %v1118_v60 = vmul.f32 %v4495_v49, %v1117_v56 }
 0xf1f   :  { %v1386_v23 = vor.u32 1.1754944e-38, %v1385_v12  ;;  %vm1384_vm15 = vcmp.eq.f32.partialorder %v1383_v17, 8.507059e+37 }
 0xf20   :  { %v1119_v1 = vadd.f32 %v4495_v49, %v1118_v60 }
 0xf22   :  { %v1123_v3 = vsel %vm1122_vm9, %v4495_v49, %v1119_v1 }
 0xf23   :  { %v1128_v7 = vsel %vm1125_vm10, %v1127_v4, %v1123_v3  ;;  %v4499_v8 = vpop.eup %4498 }
 0xf24   :  { %v1375_v0 = vmul.f32 %v4499_v8, %v1373_v5  ;;  %vm1380_vm12 = vweird.f32 %v4499_v8  ;;  %v1141_v37 = vsub.f32 1.0, %v1128_v7  ;;  %v1147_v44 = vmul.f32 %v1128_v7, %v5436_v28 }
 0xf25   :  { %vm1381_vm14 = vmor %vm1379_vm13, %vm1380_vm12 }
 0xf26   :  { %v1376_v9 = vsub.f32 1.0, %v1375_v0 }
 0xf28   :  { %v1377_v10 = vmul.f32 %v4499_v8, %v1376_v9 }
 0xf2a   :  { %v1378_v24 = vadd.f32 %v4499_v8, %v1377_v10 }
 0xf2c   :  { %v1382_v20 = vsel %vm1381_vm14, %v4499_v8, %v1378_v24 }
 0xf2d   :  { %v1387_v29 = vsel %vm1384_vm15, %v1386_v23, %v1382_v20 }
 0xf60   :  { %v1132_v59 = vpop.permute.xlu2 %1131 }
 0xf61   :  { %v1134_v51 = vmul.f32 %v1132_v59, %v1128_v7 }
 0xf63   :  { %1136 = vrot.lane.b32.xlu1 %v1134_v51, %s4769_s10 }
 0xf80   :  { %v1391_v11 = vpop.permute.xlu0 %1390 }
 0xf81   :  { %v1393_v30 = vmul.f32 %v1391_v11, %v1387_v29 }
 0xf83   :  { %1395 = vrot.lane.b32.xlu2 %v1393_v30, %s4769_s10 }
 0xfd5   :  { %v1137_v32 = vpop.permute.xlu1 %1136 }
 0xfd6   :  { %v1139_v33 = vadd.f32 %v1137_v32, %v507_v38  ;;  %v1400_v38 = vsub.f32 1.0, %v1387_v29 }
 0xfd8   :  { %4500 = vtanh.f32 %v1139_v33 }
 0xfdd   :  { %v1396_v34 = vpop.permute.xlu2 %1395 }
 0xfde   :  { %v4501_v35 = vpop.eup %4500  ;;  %v1398_v61 = vadd.f32 %v1396_v34, %v653_v16  ;;  %v1406_v16 = vmul.f32 %v1387_v29, %v5441_v13 }
 0xfdf   :  { %1143 = vrot.lane.b32.xlu0 %v4501_v35, %s4770_s23  ;;  %v613_v35 = vadd.f32 %v5398_v53, %v5330_v63 }
 0xfe0   :  { %4502 = vtanh.f32 %v1398_v61 }
 0xfe6   :  { %v4503_v36 = vpop.eup %4502 }
 0xfe7   :  { %1402 = vrot.lane.b32.xlu1 %v4503_v36, %s4770_s23 }
0x1051   :  { %v1144_v27 = vpop.permute.xlu0 %1143 }
0x1052   :  { %v1146_v45 = vmul.f32 %v1144_v27, %v1141_v37 }
0x1054   :  { %v5464_v46 = vadd.f32 %v1147_v44, %v1146_v45 }
0x1056   :  { %1150 = vrot.lane.b32.xlu2 %v5464_v46, %s4770_s23 }
0x1059   :  { %v1403_v49 = vpop.permute.xlu1 %1402 }
0x105a   :  { %v1405_v52 = vmul.f32 %v1403_v49, %v1400_v38 }
0x105c   :  { %v5469_v55 = vadd.f32 %v1406_v16, %v1405_v52 }
0x105e   :  { %1409 = vrot.lane.b32.xlu0 %v5469_v55, %s4770_s23 }
0x10b0   :  { %v1151_v56 = vpop.permute.xlu2 %1150 }
0x10b1   :  { %4279 = vmatmul.msk.f32.vlgmr.msrb.gmra.mxu3 %vm6596_vm0, %v1151_v56 }
0x10b2   :  { %1681 = vmatpush.msrb.mxu3 %v5347_v40 }
0x10b4   :  { %1682 = vmatpush.msrb.mxu3 %v5352_v41 }
0x10b6   :  { %1683 = vmatpush.msrb.mxu3 %v5359_v42 }
0x10b8   :  { %1684 = vmatpush.msrb.mxu3 %v5368_v43 }
0x10d0   :  { %v1410_v57 = vpop.permute.xlu0 %1409 }
0x10d1   :  { %4286 = vmatmul.msk.f32.vlgmr.msra.gmra.mxu3 %vm6596_vm0, %v1410_v57 }
0x1134   :  { %v5479_v60 = vpop.f32.mrf.mxu3 }
0x1154   :  { %v1430_v1 = vpop.f32.mrf.mxu3 }
0x1155   :  { %v1431_v54 = vadd.f32 %v5391_v47, %v1430_v1 }
0x1157   :  { %1454 = vrot.lane.b32.xlu1 %v1431_v54, %s4769_s10  ;;  %v1433_v40 = vadd.f32 %v1431_v54, %v633_v19 }
0x1159   :  { %v4287_v25 = vmul.f32 -1.442695, %v1433_v40 }
0x115b   :  { %4504 = vpow2.f32 %v4287_v25 }
0x1161   :  { %v4505_v41 = vpop.eup %4504 }
0x1162   :  { %v1437_v42 = vadd.f32 1.0, %v4505_v41 }
0x1164   :  { %4506 = vrcp.f32 %v1437_v42  ;;  %v1449_v7 = vand.u32 2147483648, %v1437_v42  ;;  %vm1443_vm4 = vweird.f32 %v1437_v42  ;;  %v1447_v51 = vand.u32 2147483647, %v1437_v42 }
0x1166   :  { %v1450_v0 = vor.u32 1.1754944e-38, %v1449_v7  ;;  %vm1448_vm6 = vcmp.eq.f32.partialorder %v1447_v51, 8.507059e+37 }
0x116a   :  { %v4507_v43 = vpop.eup %4506 }
0x116b   :  { %v1439_v3 = vmul.f32 %v4507_v43, %v1437_v42  ;;  %vm1444_vm2 = vweird.f32 %v4507_v43 }
0x116c   :  { %vm1445_vm5 = vmor %vm1443_vm4, %vm1444_vm2 }
0x116d   :  { %v1440_v4 = vsub.f32 1.0, %v1439_v3 }
0x116f   :  { %v1441_v5 = vmul.f32 %v4507_v43, %v1440_v4 }
0x1171   :  { %v1442_v59 = vadd.f32 %v4507_v43, %v1441_v5 }
0x1173   :  { %v1446_v8 = vsel %vm1445_vm5, %v4507_v43, %v1442_v59 }
0x1174   :  { %v1451_v9 = vsel %vm1448_vm6, %v1450_v0, %v1446_v8  ;;  %v593_v8 = vadd.f32 %v5398_v53, %v5311_v26 }
0x1175   :  { %v1464_v20 = vsub.f32 1.0, %v1451_v9  ;;  %v1470_v11 = vmul.f32 %v1451_v9, %v5469_v55 }
0x11c9   :  { %v1455_v15 = vpop.permute.xlu1 %1454 }
0x11ca   :  { %v1457_v10 = vmul.f32 %v1455_v15, %v1451_v9 }
0x11cc   :  { %1459 = vrot.lane.b32.xlu2 %v1457_v10, %s4769_s10 }
0x1226   :  { %v1460_v24 = vpop.permute.xlu2 %1459 }
0x1227   :  { %v1462_v12 = vadd.f32 %v1460_v24, %v633_v19 }
0x1229   :  { %4508 = vtanh.f32 %v1462_v12 }
0x122f   :  { %v4509_v17 = vpop.eup %4508 }
0x1230   :  { %1466 = vrot.lane.b32.xlu0 %v4509_v17, %s4770_s23 }
0x12a2   :  { %v1467_v23 = vpop.permute.xlu0 %1466 }
0x12a3   :  { %v1469_v29 = vmul.f32 %v1467_v23, %v1464_v20 }
0x12a5   :  { %v5488_v30 = vadd.f32 %v1470_v11, %v1469_v29 }
0x12a7   :  { %1473 = vrot.lane.b32.xlu1 %v5488_v30, %s4770_s23 }
0x1319   :  { %v1474_v32 = vpop.permute.xlu1 %1473 }
0x131a   :  { %4288 = vmatmul.msk.f32.vlgmr.msra.gmra.mxu0 %vm6596_vm0, %v1474_v32 }
0x1397   :  { %v1494_v33 = vpop.f32.mrf.mxu0 }
0x1398   :  { %v1495_v34 = vadd.f32 %v5391_v47, %v1494_v33 }
0x139a   :  { %1518 = vrot.lane.b32.xlu2 %v1495_v34, %s4769_s10  ;;  %v1497_v61 = vadd.f32 %v1495_v34, %v613_v35 }
0x139c   :  { %v4289_v36 = vmul.f32 -1.442695, %v1497_v61 }
0x139e   :  { %4510 = vpow2.f32 %v4289_v36 }
0x13a4   :  { %v4511_v37 = vpop.eup %4510 }
0x13a5   :  { %v1501_v27 = vadd.f32 1.0, %v4511_v37 }
0x13a7   :  { %4512 = vrcp.f32 %v1501_v27  ;;  %v1513_v52 = vand.u32 2147483648, %v1501_v27  ;;  %vm1507_vm8 = vweird.f32 %v1501_v27  ;;  %v1511_v56 = vand.u32 2147483647, %v1501_v27 }
0x13a9   :  { %v1514_v1 = vor.u32 1.1754944e-38, %v1513_v52  ;;  %vm1512_vm10 = vcmp.eq.f32.partialorder %v1511_v56, 8.507059e+37 }
0x13ad   :  { %v4513_v44 = vpop.eup %4512 }
0x13ae   :  { %v1503_v45 = vmul.f32 %v4513_v44, %v1501_v27  ;;  %vm1508_vm7 = vweird.f32 %v4513_v44  ;;  %v4660_v27 = vld [vmem:[%s6576_s5] ss:$0 sm:$0xff] }
0x13af   :  { %vm1509_vm9 = vmor %vm1507_vm8, %vm1508_vm7 }
0x13b0   :  { %v1504_v38 = vsub.f32 1.0, %v1503_v45 }
0x13b2   :  { %v1505_v49 = vmul.f32 %v4513_v44, %v1504_v38 }
0x13b4   :  { %v1506_v16 = vadd.f32 %v4513_v44, %v1505_v49 }
0x13b6   :  { %v1510_v57 = vsel %vm1509_vm9, %v4513_v44, %v1506_v16  ;;  %v1172_v44 = vadd.f32 %v4660_v27, %v5479_v60 }
0x13b7   :  { %v1515_v54 = vsel %vm1512_vm10, %v1514_v1, %v1510_v57  ;;  %v4661_v57 = vld [vmem:[%s6575_s4] ss:$0 sm:$0xff] }
0x13b8   :  { %v1528_v42 = vsub.f32 1.0, %v1515_v54  ;;  %v1534_v3 = vmul.f32 %v1515_v54, %v5488_v30  ;;  %v5526_v60 = vadd.f32 %v4661_v57, %v5328_v62  ;;  %v4665_v57 = vld [vmem:[%s6612_s28 + $0x18] sm:$0xff] }
0x13ba   :  { %v1174_v1 = vadd.f32 %v1172_v44, %v5526_v60 }
0x13f4   :  { %v1519_v63 = vpop.permute.xlu2 %1518 }
0x13f5   :  { %v1521_v19 = vmul.f32 %v1519_v63, %v1515_v54  ;;  %v4280_v63 = vmul.f32 -1.442695, %v1174_v1  ;;  %v4667_v1 = vld [vmem:[%s6612_s28 + $0x28] sm:$0xff] }
0x13f7   :  { %1523 = vrot.lane.b32.xlu0 %v1521_v19, %s4769_s10 }
0x1469   :  { %v1524_v40 = vpop.permute.xlu0 %1523 }
0x146a   :  { %v1526_v25 = vadd.f32 %v1524_v40, %v613_v35 }
0x146c   :  { %4514 = vtanh.f32 %v1526_v25 }
0x1472   :  { %v4515_v41 = vpop.eup %4514 }
0x1473   :  { %1530 = vrot.lane.b32.xlu1 %v4515_v41, %s4770_s23 }
0x14e5   :  { %v1531_v43 = vpop.permute.xlu1 %1530 }
0x14e6   :  { %v1533_v4 = vmul.f32 %v1531_v43, %v1528_v42 }
0x14e8   :  { %v5500_v5 = vadd.f32 %v1534_v3, %v1533_v4 }
0x14ea   :  { %1537 = vrot.lane.b32.xlu2 %v5500_v5, %s4770_s23 }
0x1544   :  { %v1538_v59 = vpop.permute.xlu2 %1537 }
0x1545   :  { %4290 = vmatmul.msk.f32.vlgmr.msrb.gmra.mxu1 %vm6596_vm0, %v1538_v59 }
0x15c2   :  { %v1558_v7 = vpop.f32.mrf.mxu1 }
0x15c3   :  { %v1559_v51 = vadd.f32 %v5391_v47, %v1558_v7 }
0x15c5   :  { %1582 = vrot.lane.b32.xlu0 %v1559_v51, %s4769_s10  ;;  %v1561_v0 = vadd.f32 %v1559_v51, %v593_v8 }
0x15c7   :  { %v4291_v15 = vmul.f32 -1.442695, %v1561_v0 }
0x15c9   :  { %4516 = vpow2.f32 %v4291_v15 }
0x15cf   :  { %v4517_v9 = vpop.eup %4516 }
0x15d0   :  { %v1565_v10 = vadd.f32 1.0, %v4517_v9  ;;  %v573_v9 = vadd.f32 %v5398_v53, %v5292_v50  ;;  %v4662_v53 = vld [vmem:[%s6612_s28] sm:$0xff] }
0x15d2   :  { %4518 = vrcp.f32 %v1565_v10  ;;  %v1577_v11 = vand.u32 2147483648, %v1565_v10  ;;  %vm1571_vm13 = vweird.f32 %v1565_v10  ;;  %v1575_v29 = vand.u32 2147483647, %v1565_v10 }
0x15d4   :  { %v1578_v33 = vor.u32 1.1754944e-38, %v1577_v11  ;;  %vm1576_vm15 = vcmp.eq.f32.partialorder %v1575_v29, 8.507059e+37  ;;  %v1739_v11 = vld [vmem:[#allocation5 + $0x18] sm:$0xff]  ;;  %v1738_v29 = vld [vmem:[#allocation5 + $0x10] sm:$0xff] }
0x15d5   :  { %1752 = vmatpush.msrb.mxu0 %v1739_v11 }
0x15d7   :  { %1753 = vmatpush.msrb.mxu0 %v1738_v29 }
0x15d8   :  { %v4519_v24 = vpop.eup %4518 }
0x15d9   :  { %v1567_v12 = vmul.f32 %v4519_v24, %v1565_v10  ;;  %vm1572_vm12 = vweird.f32 %v4519_v24 }
0x15da   :  { %vm1573_vm14 = vmor %vm1571_vm13, %vm1572_vm12  ;;  %vm1776_vm12 = vcmp.eq.s32.totalorder %v4961_v22, 1 }
0x15db   :  { %v1568_v17 = vsub.f32 1.0, %v1567_v12 }
0x15dd   :  { %v1569_v20 = vmul.f32 %v4519_v24, %v1568_v17 }
0x15df   :  { %v1570_v23 = vadd.f32 %v4519_v24, %v1569_v20 }
0x15e1   :  { %v1574_v32 = vsel %vm1573_vm14, %v4519_v24, %v1570_v23 }
0x15e2   :  { %v1579_v34 = vsel %vm1576_vm15, %v1578_v33, %v1574_v32  ;;  %v1737_v32 = vld [vmem:[#allocation5 + $0x8] sm:$0xff] }
0x15e3   :  { %v1592_v45 = vsub.f32 1.0, %v1579_v34  ;;  %v1598_v49 = vmul.f32 %v1579_v34, %v5500_v5  ;;  %1754 = vmatpush.msrb.mxu0 %v1737_v32 }
0x1637   :  { %v1583_v26 = vpop.permute.xlu0 %1582 }
0x1638   :  { %v1585_v35 = vmul.f32 %v1583_v26, %v1579_v34  ;;  %v1736_v26 = vld [vmem:[#allocation5] sm:$0xff] }
0x1639   :  { %1755 = vmatpush.msrb.mxu0 %v1736_v26  ;;  %v4426_v26 = vld [vmem:[%s6584_s13] ss:$0 sm:$0xff] }
0x163a   :  { %1587 = vrot.lane.b32.xlu1 %v1585_v35, %s4769_s10  ;;  %4296 = vmatmul.msk.f32.vlgmr.msrb.gmra.mxu0 %vm6596_vm0, %v4662_v53  ;;  %v5629_v53 = vld [vmem:[%s6583_s12] ss:$0 sm:$0xff] }
0x16ac   :  { %v1588_v61 = vpop.permute.xlu1 %1587 }
0x16ad   :  { %v1590_v36 = vadd.f32 %v1588_v61, %v593_v8 }
0x16af   :  { %4520 = vtanh.f32 %v1590_v36 }
0x16b0   :  { %4522 = vpow2.f32 %v4280_v63 }
0x16b5   :  { %v4521_v37 = vpop.eup %4520 }
0x16b6   :  { %1594 = vrot.lane.b32.xlu2 %v4521_v37, %s4770_s23  ;;  %v4523_v54 = vpop.eup %4522 }
0x16b7   :  { %v1178_v19 = vadd.f32 1.0, %v4523_v54 }
0x16b9   :  { %4524 = vrcp.f32 %v1178_v19  ;;  %v1190_v59 = vand.u32 2147483648, %v1178_v19  ;;  %vm1184_vm4 = vweird.f32 %v1178_v19  ;;  %v1188_v62 = vand.u32 2147483647, %v1178_v19 }
0x16bb   :  { %v1191_v51 = vor.u32 1.1754944e-38, %v1190_v59  ;;  %vm1189_vm6 = vcmp.eq.f32.partialorder %v1188_v62, 8.507059e+37 }
0x16be   :  { %1195 = vrot.lane.b32.xlu2 %v1172_v44, %s4769_s10 }
0x16bf   :  { %v4525_v40 = vpop.eup %4524 }
0x16c0   :  { %v1180_v25 = vmul.f32 %v4525_v40, %v1178_v19  ;;  %vm1185_vm2 = vweird.f32 %v4525_v40 }
0x16c1   :  { %vm1186_vm5 = vmor %vm1184_vm4, %vm1185_vm2 }
0x16c2   :  { %v1181_v41 = vsub.f32 1.0, %v1180_v25 }
0x16c4   :  { %v1182_v42 = vmul.f32 %v4525_v40, %v1181_v41 }
0x16c6   :  { %v1183_v3 = vadd.f32 %v4525_v40, %v1182_v42 }
0x16c8   :  { %v1187_v7 = vsel %vm1186_vm5, %v4525_v40, %v1183_v3  ;;  %v5570_v3 = vpop.f32.mrf.mxu0 }
0x16c9   :  { %v1192_v0 = vsel %vm1189_vm6, %v1191_v51, %v1187_v7  ;;  %v5580_v51 = vld [vmem:[#allocation6 + $0x18] sm:$0xff] }
0x16ca   :  { %v1205_v40 = vsub.f32 1.0, %v1192_v0  ;;  %v1211_v41 = vmul.f32 %v1192_v0, %v5464_v46  ;;  %1834 = vmatpush.msra.mxu2 %v5580_v51 }
0x1710   :  { %v1595_v38 = vpop.permute.xlu2 %1594 }
0x1711   :  { %v1597_v16 = vmul.f32 %v1595_v38, %v1592_v45  ;;  %v4663_v45 = vld [vmem:[%s6612_s28 + $0x8] sm:$0xff] }
0x1712   :  { %4297 = vmatmul.msk.f32.gmra.mxu0 %vm6596_vm0, %v4663_v45 }
0x1713   :  { %v5517_v52 = vadd.f32 %v1598_v49, %v1597_v16  ;;  %v4664_v16 = vld [vmem:[%s6612_s28 + $0x10] sm:$0xff] }
0x1715   :  { %1601 = vrot.lane.b32.xlu0 %v5517_v52, %s4770_s23 }
0x1718   :  { %v1196_v8 = vpop.permute.xlu2 %1195 }
0x1719   :  { %v1198_v15 = vmul.f32 %v1196_v8, %v1192_v0  ;;  %v5585_v0 = vld [vmem:[#allocation6 + $0x10] sm:$0xff] }
0x171a   :  { %4298 = vmatmul.msk.f32.gmra.mxu0 %vm6596_vm0, %v4664_v16  ;;  %1835 = vmatpush.msra.mxu2 %v5585_v0 }
0x1722   :  { %4299 = vmatmul.msk.f32.gmra.mxu0 %vm6596_vm0, %v4665_v57  ;;  %v4668_v57 = vld [vmem:[%s6580_s9] ss:$0 sm:$0xff] }
0x1787   :  { %v1602_v56 = vpop.permute.xlu0 %1601 }
0x1788   :  { %4292 = vmatmul.msk.f32.vlgmr.msrb.gmra.mxu2 %vm6596_vm0, %v1602_v56 }
0x180b   :  { %v1622_v43 = vpop.f32.mrf.mxu2 }
0x180c   :  { %v1623_v4 = vadd.f32 %v5391_v47, %v1622_v43 }
0x180e   :  { %1646 = vrot.lane.b32.xlu1 %v1623_v4, %s4769_s10  ;;  %v1625_v10 = vadd.f32 %v1623_v4, %v573_v9  ;;  %v5572_v4 = vpop.f32.mrf.mxu0 }
0x1810   :  { %v4293_v24 = vmul.f32 -1.442695, %v1625_v10  ;;  %v4302_v10 = vsel %vm1776_vm12, 1.0, %v4768_v31  ;;  %vm1950_vm12 = vcmask 23552  }
0x1812   :  { %4526 = vpow2.f32 %v4293_v24  ;;  %v1779_v24 = vsel %vm6598_vm1, %v4302_v10, 0.0 }
0x1816   :  { %1200 = vrot.lane.b32.xlu1 %v1198_v15, %s4769_s10  ;;  %v5574_v59 = vpop.f32.mrf.mxu0  ;;  %v5587_v15 = vld [vmem:[#allocation6 + $0x8] sm:$0xff] }
0x1817   :  { %1836 = vmatpush.msra.mxu2 %v5587_v15 }
0x1818   :  { %v4527_v47 = vpop.eup %4526 }
0x1819   :  { %v1629_v12 = vadd.f32 1.0, %v4527_v47  ;;  %v1781_v47 = vsel %vm238_vm3, %v4302_v10, 0.0  ;;  %v4669_v10 = vld [vmem:[%s6579_s8] ss:$0 sm:$0xff] }
0x181b   :  { %4528 = vrcp.f32 %v1629_v12  ;;  %v1641_v50 = vand.u32 2147483648, %v1629_v12  ;;  %vm1635_vm8 = vweird.f32 %v1629_v12  ;;  %v1639_v35 = vand.u32 2147483647, %v1629_v12 }
0x181d   :  { %v1642_v36 = vor.u32 1.1754944e-38, %v1641_v50  ;;  %vm1640_vm10 = vcmp.eq.f32.partialorder %v1639_v35, 8.507059e+37 }
0x181e   :  { %v5576_v62 = vpop.f32.mrf.mxu0 }
0x1821   :  { %v4529_v17 = vpop.eup %4528 }
0x1822   :  { %v1631_v20 = vmul.f32 %v4529_v17, %v1629_v12  ;;  %vm1636_vm7 = vweird.f32 %v4529_v17  ;;  %v1782_v12 = vadd.f32 %v1781_v47, %v1779_v24  ;;  %v553_v24 = vadd.f32 %v4669_v10, %v5268_v14 }
0x1823   :  { %vm1637_vm9 = vmor %vm1635_vm8, %vm1636_vm7  ;;  %vm1886_vm8 = vcmask 254976  }
0x1824   :  { %v1632_v23 = vsub.f32 1.0, %v1631_v20 }
0x1826   :  { %v1633_v33 = vmul.f32 %v4529_v17, %v1632_v23 }
0x1828   :  { %v1634_v34 = vadd.f32 %v4529_v17, %v1633_v33 }
0x182a   :  { %v1638_v61 = vsel %vm1637_vm9, %v4529_v17, %v1634_v34  ;;  %vm1946_vm9 = vcmask 7168  }
0x182b   :  { %v5538_v27 = vsel %vm1640_vm10, %v1642_v36, %v1638_v61  ;;  %vm1948_vm10 = vcmask 15360  }
0x182c   :  { %v1656_v17 = vsub.f32 1.0, %v5538_v27  ;;  %v1662_v23 = vmul.f32 %v5538_v27, %v5517_v52 }
0x1880   :  { %v1647_v37 = vpop.permute.xlu1 %1646 }
0x1881   :  { %v1649_v44 = vmul.f32 %v1647_v37, %v5538_v27 }
0x1883   :  { %1651 = vrot.lane.b32.xlu0 %v1649_v44, %s4769_s10 }
0x1888   :  { %v1201_v38 = vpop.permute.xlu1 %1200 }
0x1889   :  { %v1203_v49 = vadd.f32 %v1201_v38, %v5526_v60  ;;  %v4666_v60 = vld [vmem:[%s6612_s28 + $0x20] sm:$0xff] }
0x188a   :  { %4300 = vmatmul.msk.f32.gmra.mxu0 %vm6596_vm0, %v4666_v60 }
0x188b   :  { %4530 = vtanh.f32 %v1203_v49 }
0x1891   :  { %v4531_v56 = vpop.eup %4530 }
0x1892   :  { %1207 = vrot.lane.b32.xlu0 %v4531_v56, %s4770_s23  ;;  %4301 = vmatmul.msk.f32.gmra.mxu0 %vm6596_vm0, %v4667_v1 }
0x18f5   :  { %v1652_v63 = vpop.permute.xlu0 %1651 }
0x18f6   :  { %v1654_v54 = vadd.f32 %v1652_v63, %v573_v9  ;;  %v5591_v9 = vld [vmem:[#allocation6] sm:$0xff] }
0x18f7   :  { %1837 = vmatpush.msra.mxu2 %v5591_v9 }
0x18f8   :  { %4532 = vtanh.f32 %v1654_v54 }
0x18fe   :  { %v4533_v19 = vpop.eup %4532 }
0x18ff   :  { %1658 = vrot.lane.b32.xlu2 %v4533_v19, %s4770_s23 }
0x1904   :  { %v1208_v25 = vpop.permute.xlu0 %1207 }
0x1905   :  { %v1210_v42 = vmul.f32 %v1208_v25, %v1205_v40 }
0x1907   :  { %v5566_v43 = vadd.f32 %v1211_v41, %v1210_v42  ;;  %v5578_v7 = vpop.f32.mrf.mxu0 }
0x1909   :  { %1818 = vrot.lane.b32.xlu2 %v5566_v43, %s4770_s23 }
0x190f   :  { %v5583_v8 = vpop.f32.mrf.mxu0 }
0x1910   :  { %1799 = vmatpush.msra.mxu1 %v5583_v8  ;;  %2217 = vmatpush.msrb.mxu2 %v5583_v8 }
0x1912   :  { %1800 = vmatpush.msra.mxu1 %v5578_v7  ;;  %2218 = vmatpush.msrb.mxu2 %v5578_v7 }
0x1914   :  { %1801 = vmatpush.msra.mxu1 %v5576_v62  ;;  %2219 = vmatpush.msrb.mxu2 %v5576_v62 }
0x1916   :  { %1802 = vmatpush.msra.mxu1 %v5574_v59  ;;  %2220 = vmatpush.msrb.mxu2 %v5574_v59 }
0x1918   :  { %1803 = vmatpush.msra.mxu1 %v5572_v4  ;;  %2221 = vmatpush.msrb.mxu2 %v5572_v4 }
0x191a   :  { %1804 = vmatpush.msra.mxu1 %v5570_v3  ;;  %2222 = vmatpush.msrb.mxu2 %v5570_v3 }
0x191b   :  { %4303 = vmatmul.msk.f32.vlgmr.msra.gmra.mxu1 %vm6599_vm11, %v1782_v12 }
0x1959   :  { %v1659_v20 = vpop.permute.xlu2 %1658 }
0x195a   :  { %v1661_v11 = vmul.f32 %v1659_v20, %v1656_v17 }
0x195c   :  { %v5616_v29 = vadd.f32 %v1662_v23, %v1661_v11 }
0x195e   :  { %1665 = vrot.lane.b32.xlu1 %v5616_v29, %s4770_s23 }
0x1963   :  { %v1819_v32 = vpop.permute.xlu2 %1818 }
0x1964   :  { %4304 = vmatmul.msk.f32.vlgmr.msra.gmra.mxu2 %vm6596_vm0, %v1819_v32 }
0x1998   :  { %v1806_v35 = vpop.f32.mrf.mxu1 }
0x1999   :  { %v1807_v61 = vadd.f32 %v5629_v53, %v1806_v35 }
0x19d0   :  { %v1666_v33 = vpop.permute.xlu1 %1665 }
0x19d1   :  { %4294 = vmatmul.msk.f32.vlgmr.msrb.gmra.mxu3 %vm6596_vm0, %v1666_v33 }
0x19e7   :  { %v1839_v34 = vpop.f32.mrf.mxu2 }
0x19e8   :  { %v1840_v50 = vadd.f32 %v4426_v26, %v1839_v34 }
0x19ea   :  { %1863 = vrot.lane.b32.xlu1 %v1840_v50, %s4769_s10  ;;  %v1842_v36 = vadd.f32 %v1840_v50, %v1807_v61 }
0x19ec   :  { %v4305_v37 = vmul.f32 -1.442695, %v1842_v36 }
0x19ee   :  { %4534 = vpow2.f32 %v4305_v37 }
0x19f4   :  { %v4535_v27 = vpop.eup %4534 }
0x19f5   :  { %v1846_v44 = vadd.f32 1.0, %v4535_v27 }
0x19f7   :  { %4536 = vrcp.f32 %v1846_v44  ;;  %v1858_v63 = vand.u32 2147483648, %v1846_v44  ;;  %vm1852_vm14 = vweird.f32 %v1846_v44  ;;  %v1856_v54 = vand.u32 2147483647, %v1846_v44 }
0x19f9   :  { %v1859_v40 = vor.u32 1.1754944e-38, %v1858_v63  ;;  %vm1857_vm2 = vcmp.eq.f32.partialorder %v1856_v54, 8.507059e+37  ;;  %v5647_v54 = vadd.f32 %v5500_v5, %v5340_v39 }
0x19fd   :  { %v4537_v45 = vpop.eup %4536 }
0x19fe   :  { %v1848_v38 = vmul.f32 %v4537_v45, %v1846_v44  ;;  %vm1853_vm13 = vweird.f32 %v4537_v45 }
0x19ff   :  { %vm1854_vm15 = vmor %vm1852_vm14, %vm1853_vm13  ;;  %vm1952_vm13 = vcmask 31744   ;;  %vm6602_vm14 = vcmask 39936  }
0x1a00   :  { %v1849_v49 = vsub.f32 1.0, %v1848_v38 }
0x1a02   :  { %v1850_v16 = vmul.f32 %v4537_v45, %v1849_v49 }
0x1a04   :  { %v1851_v1 = vadd.f32 %v4537_v45, %v1850_v16 }
0x1a06   :  { %v1855_v19 = vsel %vm1854_vm15, %v4537_v45, %v1851_v1  ;;  %vm6601_vm15 = vcmask 48128  }
0x1a07   :  { %v1860_v41 = vsel %vm1857_vm2, %v1859_v40, %v1855_v19  ;;  %v5655_v19 = vadd.f32 %v5616_v29, %v5302_v18  ;;  %v5670_v18 = vadd.f32 %v5469_v55, %v5436_v28  ;;  %vm6600_vm2 = vcmask 56320  }
0x1a08   :  { %v1879_v1 = vmul.f32 %v1860_v41, %v5566_v43 }
0x1a54   :  { %v1686_v56 = vpop.f32.mrf.mxu3 }
0x1a55   :  { %v1687_v60 = vadd.f32 %v4668_v57, %v1686_v56  ;;  %v1873_v57 = vsub.f32 1.0, %v1860_v41 }
0x1a57   :  { %1710 = vrot.lane.b32.xlu0 %v1687_v60, %s4769_s10  ;;  %v1689_v47 = vadd.f32 %v1687_v60, %v553_v24 }
0x1a59   :  { %v4295_v12 = vmul.f32 -1.442695, %v1689_v47 }
0x1a5b   :  { %4538 = vpow2.f32 %v4295_v12 }
0x1a5c   :  { %v1864_v25 = vpop.permute.xlu1 %1863 }
0x1a5d   :  { %v1866_v42 = vmul.f32 %v1864_v25, %v1860_v41 }
0x1a5f   :  { %1868 = vrot.lane.b32.xlu0 %v1866_v42, %s4769_s10  ;;  %v5684_v42 = vadd.f32 %v5413_v6, %v5566_v43 }
0x1a61   :  { %v4539_v17 = vpop.eup %4538 }
0x1a62   :  { %v1693_v20 = vadd.f32 1.0, %v4539_v17 }
0x1a64   :  { %4540 = vrcp.f32 %v1693_v20  ;;  %v1705_v34 = vand.u32 2147483648, %v1693_v20  ;;  %vm1699_vm5 = vweird.f32 %v1693_v20  ;;  %v1703_v50 = vand.u32 2147483647, %v1693_v20 }
0x1a66   :  { %v1706_v36 = vor.u32 1.1754944e-38, %v1705_v34  ;;  %vm1704_vm7 = vcmp.eq.f32.partialorder %v1703_v50, 8.507059e+37 }
0x1a6a   :  { %v4541_v23 = vpop.eup %4540 }
0x1a6b   :  { %v1695_v11 = vmul.f32 %v4541_v23, %v1693_v20  ;;  %vm1700_vm4 = vweird.f32 %v4541_v23  ;;  %v5699_v20 = vadd.f32 %v5441_v13, %v5464_v46 }
0x1a6c   :  { %vm1701_vm6 = vmor %vm1699_vm5, %vm1700_vm4  ;;  %vm6597_vm4 = vcmask 58368   ;;  %vm6595_vm5 = vcmask 523264  }
0x1a6d   :  { %v1696_v32 = vsub.f32 1.0, %v1695_v11 }
0x1a6f   :  { %v1697_v33 = vmul.f32 %v4541_v23, %v1696_v32 }
0x1a71   :  { %v1698_v26 = vadd.f32 %v4541_v23, %v1697_v33 }
0x1a73   :  { %v1702_v35 = vsel %vm1701_vm6, %v4541_v23, %v1698_v26  ;;  %vm6603_vm6 = vcmask 386049  }
0x1a74   :  { %v1707_v37 = vsel %vm1704_vm7, %v1706_v36, %v1702_v35  ;;  %vm6604_vm7 = vcmask 385024  }
0x1ac9   :  { %v1711_v14 = vpop.permute.xlu0 %1710 }
0x1aca   :  { %v1713_v27 = vmul.f32 %v1711_v14, %v1707_v37 }
0x1acc   :  { %1715 = vrot.lane.b32.xlu2 %v1713_v27, %s4769_s10 }
0x1ad1   :  { %v1869_v44 = vpop.permute.xlu0 %1868 }
0x1ad2   :  { %v1871_v45 = vadd.f32 %v1869_v44, %v1807_v61  ;;  %v5651_v61 = vadd.f32 %v5517_v52, %v5321_v58  ;;  %v5674_v58 = vadd.f32 %v5488_v30, %v5409_v2  ;;  %v1720_v30 = vsub.f32 1.0, %v1707_v37 }
0x1ad4   :  { %4542 = vtanh.f32 %v1871_v45 }
0x1ada   :  { %v4543_v38 = vpop.eup %4542 }
0x1adb   :  { %1875 = vrot.lane.b32.xlu2 %v4543_v38, %s4770_s23 }
0x1b26   :  { %v1716_v49 = vpop.permute.xlu2 %1715 }
0x1b27   :  { %v1718_v16 = vadd.f32 %v1716_v49, %v553_v24  ;;  %v1726_v24 = vmul.f32 %v1707_v37, %v5616_v29 }
0x1b29   :  { %4544 = vtanh.f32 %v1718_v16 }
0x1b2f   :  { %v4545_v56 = vpop.eup %4544 }
0x1b30   :  { %1722 = vrot.lane.b32.xlu1 %v4545_v56, %s4770_s23 }
0x1b35   :  { %v1876_v60 = vpop.permute.xlu2 %1875 }
0x1b36   :  { %v1878_v63 = vmul.f32 %v1876_v60, %v1873_v57 }
0x1b38   :  { %v5657_v40 = vadd.f32 %v1879_v1, %v1878_v63 }
0x1b3a   :  { %v1898_v25 = vmul.f32 %v5657_v40, %v5651_v61  ;;  %v1890_v41 = vmul.f32 %v5657_v40, %v5655_v19  ;;  %v1906_v39 = vmul.f32 %v5657_v40, %v5647_v54  ;;  %v1914_v5 = vmul.f32 %v5657_v40, %v5674_v58 }
0x1b3b   :  { %v1922_v52 = vmul.f32 %v5657_v40, %v5670_v18  ;;  %v1938_v28 = vmul.f32 %v5657_v40, %v5684_v42  ;;  %v1930_v29 = vmul.f32 %v5657_v40, %v5699_v20 }
0x1b3c   :  { %1900 = vrot.lane.b32.xlu2 %v1898_v25, %s4770_s23  ;;  %1892 = vrot.lane.b32.xlu1 %v1890_v41, %s4770_s23 }
0x1b3d   :  { %1908 = vrot.lane.b32.xlu0 %v1906_v39, %s4770_s23 }
0x1b44   :  { %1916 = vrot.lane.b32.xlu1 %v1914_v5, %s4770_s23  ;;  %1924 = vrot.lane.b32.xlu2 %v1922_v52, %s4770_s23 }
0x1b4c   :  { %1940 = vrot.lane.b32.xlu1 %v1938_v28, %s4770_s23 }
0x1b96   :  { %v1901_v2 = vpop.permute.xlu2 %1900 }
0x1b97   :  { %v1903_v55 = vsel %vm1886_vm8, %v1901_v2, 0.0 }
0x1b98   :  { %1904 = vadd.xlane.f32.xlu1 %v1903_v55 }
0x1b9e   :  { %v1925_v26 = vpop.permute.xlu2 %1924 }
0x1b9f   :  { %v1927_v13 = vsel %vm1886_vm8, %v1925_v26, 0.0  ;;  %v2031_v26 = vld [vmem:[%s6585_s14 + $0x30] sm:$0xff] }
0x1ba2   :  { %v1723_v10 = vpop.permute.xlu1 %1722 }
0x1ba3   :  { %v1725_v47 = vmul.f32 %v1723_v10, %v1720_v30  ;;  %v4771_v10 = vmov 2  }
0x1ba4   :  { %4366 = vset.pattern.permute.xlu1 %v4771_v10 }
0x1ba5   :  { %v1727_v12 = vadd.f32 %v1726_v24, %v1725_v47  ;;  %v4772_v24 = vmov 1   ;;  %v4773_v47 = vmov 0  }
0x1ba6   :  { %4365 = vset.pattern.permute.xlu0 %v4772_v24  ;;  %4364 = vset.pattern.permute.xlu2 %v4773_v47 }
0x1ba7   :  { %v5692_v17 = vadd.f32 %v1727_v12, %v5287_v48 }
0x1ba9   :  { %v1881_v6 = vmul.f32 %v5657_v40, %v5692_v17 }
0x1bab   :  { %1883 = vrot.lane.b32.xlu0 %v1881_v6, %s4770_s23 }
0x1bae   :  { %v1893_v43 = vpop.permute.xlu1 %1892 }
0x1baf   :  { %v1909_v23 = vpop.permute.xlu0 %1908  ;;  %v1895_v33 = vsel %vm1886_vm8, %v1893_v43, 0.0 }
0x1bb0   :  { %v1911_v11 = vsel %vm1886_vm8, %v1909_v23, 0.0  ;;  %v4774_v23 = vmov 4  }
0x1bb1   :  { %1912 = vadd.xlane.f32.xlu2 %v1911_v11  ;;  %v4775_v11 = vmov 3  }
0x1bb3   :  { %1932 = vrot.lane.b32.xlu0 %v1930_v29, %s4770_s23  ;;  %v4776_v29 = vmov 6  }
0x1bb6   :  { %v1917_v48 = vpop.permute.xlu1 %1916 }
0x1bb7   :  { %v1919_v32 = vsel %vm1886_vm8, %v1917_v48, 0.0  ;;  %v4777_v48 = vmov 5  }
0x1bb9   :  { %1920 = vadd.xlane.f32.xlu2 %v1919_v32  ;;  %v4778_v32 = vmov 7  }
0x1bbe   :  { %v1941_v50 = vpop.permute.xlu1 %1940 }
0x1bbf   :  { %v1943_v14 = vsel %vm1886_vm8, %v1941_v50, 0.0 }
0x1bdd   :  { %1896 = vadd.xlane.f32.xlu0 %v1895_v33  ;;  %v2032_v33 = vld [vmem:[%s6585_s14 + $0x38] sm:$0xff] }
0x1bde   :  { %2049 = vmatpush.msra.mxu3 %v2032_v33 }
0x1be0   :  { %2050 = vmatpush.msra.mxu3 %v2031_v26 }
0x1be5   :  { %1928 = vadd.xlane.f32.xlu0 %v1927_v13  ;;  %v2030_v13 = vld [vmem:[%s6585_s14 + $0x28] sm:$0xff] }
0x1be6   :  { %2051 = vmatpush.msra.mxu3 %v2030_v13 }
0x1c0b   :  { %v1905_v45 = vpop.xlane.xlu1 %1904 }
0x1c1d   :  { %v1884_v46 = vpop.permute.xlu0 %1883 }
0x1c1e   :  { %v1887_v34 = vsel %vm1886_vm8, %v1884_v46, 0.0  ;;  %v2029_v46 = vld [vmem:[%s6585_s14 + $0x20] sm:$0xff] }
0x1c1f   :  { %1888 = vadd.xlane.f32.xlu2 %v1887_v34  ;;  %2052 = vmatpush.msra.mxu3 %v2029_v46  ;;  %v2028_v34 = vld [vmem:[%s6585_s14 + $0x18] sm:$0xff] }
0x1c21   :  { %2053 = vmatpush.msra.mxu3 %v2028_v34 }
0x1c24   :  { %v1913_v37 = vpop.xlane.xlu2 %1912 }
0x1c25   :  { %v1933_v35 = vpop.permute.xlu0 %1932 }
0x1c26   :  { %v1935_v36 = vsel %vm1886_vm8, %v1933_v35, 0.0  ;;  %v2027_v35 = vld [vmem:[%s6585_s14 + $0x10] sm:$0xff] }
0x1c27   :  { %1936 = vadd.xlane.f32.xlu1 %v1935_v36  ;;  %1944 = vadd.xlane.f32.xlu2 %v1943_v14  ;;  %v2026_v36 = vld [vmem:[%s6585_s14 + $0x8] sm:$0xff]  ;;  %v2025_v14 = vld [vmem:[%s6585_s14] sm:$0xff] }
0x1c28   :  { %2054 = vmatpush.msra.mxu3 %v2027_v35 }
0x1c2a   :  { %2055 = vmatpush.msra.mxu3 %v2026_v36 }
0x1c2c   :  { %v1921_v27 = vpop.xlane.xlu2 %1920  ;;  %2056 = vmatpush.msra.mxu3 %v2025_v14 }
0x1c2e   :  { %2454 = vmatpush.msrb.mxu3 %v2032_v33 }
0x1c30   :  { %2455 = vmatpush.msrb.mxu3 %v2031_v26 }
0x1c32   :  { %2456 = vmatpush.msrb.mxu3 %v2030_v13 }
0x1c34   :  { %2457 = vmatpush.msrb.mxu3 %v2029_v46 }
0x1c36   :  { %2458 = vmatpush.msrb.mxu3 %v2028_v34 }
0x1c38   :  { %2459 = vmatpush.msrb.mxu3 %v2027_v35 }
0x1c3a   :  { %2460 = vmatpush.msrb.mxu3 %v2026_v36 }
0x1c3c   :  { %2461 = vmatpush.msrb.mxu3 %v2025_v14 }
0x1c50   :  { %v1897_v44 = vpop.xlane.xlu0 %1896 }
0x1c58   :  { %v1929_v60 = vpop.xlane.xlu0 %1928 }
0x1c92   :  { %v1889_v38 = vpop.xlane.xlu2 %1888 }
0x1c93   :  { %v1947_v49 = vsel %vm1946_vm9, %v1889_v38, %v1897_v44 }
0x1c94   :  { %v1949_v16 = vsel %vm1948_vm10, %v1947_v49, %v1905_v45 }
0x1c95   :  { %v1951_v56 = vsel %vm1950_vm12, %v1949_v16, %v1913_v37  ;;  %v2065_v37 = vld [vmem:[#allocation8 + $0x18] sm:$0xff] }
0x1c96   :  { %v1953_v57 = vsel %vm1952_vm13, %v1951_v56, %v1921_v27  ;;  %v2064_v27 = vld [vmem:[#allocation8 + $0x10] sm:$0xff]  ;;  %2085 = vmatpush.msrb.mxu1 %v2065_v37  ;;  %2490 = vmatpush.msra.mxu2 %v2065_v37 }
0x1c97   :  { %v1955_v63 = vsel %vm6602_vm14, %v1953_v57, %v1929_v60 }
0x1c98   :  { %2086 = vmatpush.msrb.mxu1 %v2064_v27  ;;  %2491 = vmatpush.msra.mxu2 %v2064_v27  ;;  %v2063_v27 = vld [vmem:[#allocation8 + $0x8] sm:$0xff] }
0x1c9a   :  { %v1937_v1 = vpop.xlane.xlu1 %1936  ;;  %v1945_v25 = vpop.xlane.xlu2 %1944  ;;  %2087 = vmatpush.msrb.mxu1 %v2063_v27  ;;  %2492 = vmatpush.msra.mxu2 %v2063_v27 }
0x1c9b   :  { %v1957_v41 = vsel %vm6601_vm15, %v1955_v63, %v1937_v1 }
0x1c9c   :  { %v1959_v39 = vsel %vm6600_vm2, %v1957_v41, %v1945_v25 }
0x1c9d   :  { %v1961_v5 = vsel %vm6597_vm4, %v1959_v39, -inf }
0x1c9e   :  { %1962 = vmax.xlane.f32.xlu0 %v1961_v5 }
0x1d11   :  { %v1963_v52 = vpop.xlane.xlu0 %1962 }
0x1d12   :  { %v1964_v28 = vsub.f32 %v1959_v39, %v1963_v52 }
0x1d14   :  { %v1965_v2 = vmul.f32 1.442695, %v1964_v28 }
0x1d16   :  { %4546 = vpow2.f32 %v1965_v2 }
0x1d1c   :  { %v4547_v55 = vpop.eup %4546 }
0x1d1d   :  { %v1967_v30 = vsel %vm6597_vm4, %v4547_v55, 0.0 }
0x1d1e   :  { %1968 = vadd.xlane.f32.xlu1 %v1967_v30 }
0x1d91   :  { %v1969_v12 = vpop.xlane.xlu1 %1968 }
0x1d92   :  { %4548 = vrcp.f32 %v1969_v12 }
0x1d98   :  { %v4549_v6 = vpop.eup %4548 }
0x1d99   :  { %v1971_v43 = vmul.f32 %v4549_v6, %v4547_v55 }
0x1d9b   :  { %1985 = vperm.xlu1 %4366, %v1971_v43   ;;  %1979 = vperm.xlu0 %4365, %v1971_v43  }
0x1d9c   :  { %1974 = vperm.xlu2 %4364, %v1971_v43  }
0x1da3   :  { %4368 = vset.pattern.permute.xlu1 %v4774_v23  ;;  %2021 = vrot.lane.b32.xlu0 %v5657_v40, %s4770_s23 }
0x1da4   :  { %4367 = vset.pattern.permute.xlu2 %v4775_v11  ;;  %1997 = vperm.xlu1 %4368, %v1971_v43  }
0x1da5   :  { %1991 = vperm.xlu2 %4367, %v1971_v43   ;;  %4376 = vset.pattern.permute.xlu0 %v4771_v10 }
0x1dac   :  { %4370 = vset.pattern.permute.xlu1 %v4776_v29 }
0x1dad   :  { %4369 = vset.pattern.permute.xlu2 %v4777_v48  ;;  %2009 = vperm.xlu1 %4370, %v1971_v43  }
0x1dae   :  { %2003 = vperm.xlu2 %4369, %v1971_v43  }
0x1db5   :  { %4372 = vset.pattern.permute.xlu1 %v4773_v47 }
0x1db6   :  { %4371 = vset.pattern.permute.xlu2 %v4778_v32 }
0x1db7   :  { %2015 = vperm.xlu2 %4371, %v1971_v43  }
0x1dbf   :  { %4373 = vset.pattern.permute.xlu2 %v4772_v24 }
0x1df6   :  { %v1975_v50 = vpop.permute.xlu2 %1974 }
0x1df7   :  { %v1977_v16 = vmul.f32 %v1975_v50, %v5692_v17 }
0x1dff   :  { %v1992_v44 = vpop.permute.xlu2 %1991 }
0x1e00   :  { %v1994_v25 = vmul.f32 %v1992_v44, %v5647_v54  ;;  %v2062_v44 = vld [vmem:[#allocation8] sm:$0xff] }
0x1e01   :  { %2088 = vmatpush.msrb.mxu1 %v2062_v44  ;;  %2493 = vmatpush.msra.mxu2 %v2062_v44 }
0x1e03   :  { %2249 = vmatpush.msra.mxu1 %v5580_v51  ;;  %v4428_v51 = vld [vmem:[%s6588_s17] ss:$0 sm:$0xff] }
0x1e05   :  { %2250 = vmatpush.msra.mxu1 %v5585_v0 }
0x1e07   :  { %2251 = vmatpush.msra.mxu1 %v5587_v15 }
0x1e08   :  { %v2004_v60 = vpop.permute.xlu2 %2003 }
0x1e09   :  { %v2006_v52 = vmul.f32 %v2004_v60, %v5670_v18  ;;  %2252 = vmatpush.msra.mxu1 %v5591_v9 }
0x1e0d   :  { %v1986_v45 = vpop.permute.xlu1 %1985  ;;  %v1980_v38 = vpop.permute.xlu0 %1979 }
0x1e0e   :  { %v1982_v49 = vmul.f32 %v1980_v38, %v5655_v19  ;;  %v1988_v57 = vmul.f32 %v1986_v45, %v5651_v61 }
0x1e10   :  { %v1983_v56 = vadd.f32 %v1982_v49, %v1977_v16 }
0x1e11   :  { %v2016_v28 = vpop.permute.xlu2 %2015 }
0x1e12   :  { %v1989_v1 = vadd.f32 %v1988_v57, %v1983_v56  ;;  %v2018_v12 = vmul.f32 %v2016_v28, %v5684_v42 }
0x1e14   :  { %v1995_v39 = vadd.f32 %v1994_v25, %v1989_v1 }
0x1e15   :  { %v2022_v50 = vpop.permute.xlu0 %2021 }
0x1e16   :  { %v1998_v63 = vpop.permute.xlu1 %1997 }
0x1e17   :  { %v2000_v41 = vmul.f32 %v1998_v63, %v5674_v58 }
0x1e19   :  { %v2001_v5 = vadd.f32 %v2000_v41, %v1995_v39 }
0x1e1b   :  { %v2007_v55 = vadd.f32 %v2006_v52, %v2001_v5 }
0x1e1f   :  { %v2010_v2 = vpop.permute.xlu1 %2009 }
0x1e20   :  { %v2012_v30 = vmul.f32 %v2010_v2, %v5699_v20  ;;  %v4429_v2 = vld [vmem:[%s6584_s13] ss:$0 sm:$0xff] }
0x1e22   :  { %v2013_v6 = vadd.f32 %v2012_v30, %v2007_v55 }
0x1e24   :  { %v2019_v43 = vadd.f32 %v2018_v12, %v2013_v6 }
0x1e26   :  { %v2024_v37 = vsel %vm6596_vm0, %v2022_v50, %v2019_v43 }
0x1e27   :  { %4306 = vmatmul.msk.f32.vlgmr.msra.gmra.mxu3 %vm6595_vm5, %v2024_v37 }
0x1e28   :  { %2856 = vmatpush.msra.mxu3 %v2032_v33  ;;  %v4427_v33 = vld [vmem:[%s6586_s15] ss:$0 sm:$0xff] }
0x1e2a   :  { %2857 = vmatpush.msra.mxu3 %v2031_v26 }
0x1e2c   :  { %2858 = vmatpush.msra.mxu3 %v2030_v13 }
0x1e2e   :  { %2859 = vmatpush.msra.mxu3 %v2029_v46 }
0x1e30   :  { %2860 = vmatpush.msra.mxu3 %v2028_v34 }
0x1e32   :  { %2861 = vmatpush.msra.mxu3 %v2027_v35 }
0x1e34   :  { %2862 = vmatpush.msra.mxu3 %v2026_v36 }
0x1e36   :  { %2863 = vmatpush.msra.mxu3 %v2025_v14 }
0x1eaa   :  { %v2058_v26 = vpop.f32.mrf.mxu3 }
0x1eab   :  { %v2059_v13 = vadd.f32 %v4427_v33, %v2058_v26 }
0x1ead   :  { %4550 = vtanh.f32 %v2059_v13 }
0x1eb3   :  { %v4551_v46 = vpop.eup %4550 }
0x1eb4   :  { %4307 = vmatmul.msk.f32.vlgmr.msrb.gmra.mxu1 %vm6596_vm0, %v4551_v46 }
0x1eb5   :  { %2619 = vmatpush.msrb.mxu1 %v5583_v8 }
0x1eb7   :  { %2620 = vmatpush.msrb.mxu1 %v5578_v7 }
0x1eb9   :  { %2621 = vmatpush.msrb.mxu1 %v5576_v62 }
0x1ebb   :  { %2622 = vmatpush.msrb.mxu1 %v5574_v59 }
0x1ebc   :  { %4311 = vmatmul.msk.f32.vlgmr.msra.gmra.mxu1 %vm6596_vm0, %v2022_v50 }
0x1ebd   :  { %2623 = vmatpush.msrb.mxu1 %v5572_v4 }
0x1ebf   :  { %2624 = vmatpush.msrb.mxu1 %v5570_v3 }
0x1f31   :  { %v2090_v0 = vpop.f32.mrf.mxu1 }
0x1f32   :  { %v5785_v15 = vadd.f32 %v4428_v51, %v2090_v0 }
0x1f34   :  { %v2136_v9 = vsel %vm6603_vm6, %v5785_v15, -inf  ;;  %v2094_v34 = vsel %vm6604_vm7, %v5785_v15, -inf }
0x1f35   :  { %2137 = vmax.xlane.f32.xlu1 %v2136_v9  ;;  %2095 = vmax.xlane.f32.xlu2 %v2094_v34 }
0x1f39   :  { %v2254_v55 = vpop.f32.mrf.mxu1 }
0x1f3a   :  { %v2255_v30 = vadd.f32 %v4429_v2, %v2254_v55 }
0x1fa8   :  { %v5791_v35 = vpop.xlane.xlu1 %2137  ;;  %v5793_v36 = vpop.xlane.xlu2 %2095 }
0x1fa9   :  { %vm2139_vm5 = vcmp.eq.f32.partialorder %v5785_v15, %v5791_v35  ;;  %vm2097_vm0 = vcmp.eq.f32.partialorder %v5785_v15, %v5793_v36 }
0x1faa   :  { %v2140_v14 = vsel %vm2139_vm5, %v4961_v22, 48  ;;  %v2098_v45 = vsel %vm2097_vm0, %v4961_v22, 48  ;;  %vm2183_vm0 = vcmask 8192  }
0x1fab   :  { %v2141_v38 = vsel %vm6603_vm6, %v2140_v14, 2147483647  ;;  %v2099_v16 = vsel %vm6604_vm7, %v2098_v45, 2147483647 }
0x1fac   :  { %v2143_v49 = vshra.s32 %v2141_v38, 16  ;;  %v2101_v56 = vshra.s32 %v2099_v16, 16  ;;  %v2142_v1 = vand.u32 65535, %v2141_v38  ;;  %v2100_v63 = vand.u32 65535, %v2099_v16 }
0x1fae   :  { %v2145_v57 = vcvt.s32.f32 %v2143_v49  ;;  %v2103_v60 = vcvt.s32.f32 %v2101_v56  ;;  %v2144_v41 = vcvt.s32.f32 %v2142_v1  ;;  %v2102_v5 = vcvt.s32.f32 %v2100_v63 }
0x1fb0   :  { %2146 = vmin.xlane.f32.xlu0 %v2145_v57  ;;  %2104 = vmin.xlane.f32.xlu1 %v2103_v60 }
0x2023   :  { %v2147_v25 = vpop.xlane.xlu0 %2146  ;;  %v2105_v39 = vpop.xlane.xlu1 %2104 }
0x2024   :  { %vm2148_vm4 = vcmp.eq.f32.partialorder %v2145_v57, %v2147_v25  ;;  %vm2106_vm5 = vcmp.eq.f32.partialorder %v2103_v60, %v2105_v39  ;;  %v2153_v12 = vcvt.f32.s32 %v2147_v25  ;;  %v2111_v6 = vcvt.f32.s32 %v2105_v39 }
0x2025   :  { %v2149_v52 = vsel %vm2148_vm4, %v2144_v41, inf  ;;  %v2107_v28 = vsel %vm2106_vm5, %v2102_v5, inf }
0x2026   :  { %2150 = vmin.xlane.f32.xlu2 %v2149_v52  ;;  %2108 = vmin.xlane.f32.xlu0 %v2107_v28  ;;  %v2154_v50 = vshll.u32 %v2153_v12, 16  ;;  %v2112_v33 = vshll.u32 %v2111_v6, 16 }
0x203a   :  { %2278 = vrot.lane.b32.xlu0 %v2255_v30, %s4769_s10 }
0x2099   :  { %v2151_v43 = vpop.xlane.xlu2 %2150  ;;  %v2109_v37 = vpop.xlane.xlu0 %2108 }
0x209a   :  { %v2152_v27 = vcvt.f32.s32 %v2151_v43  ;;  %v2110_v44 = vcvt.f32.s32 %v2109_v37 }
0x209c   :  { %v2155_v26 = vadd.s32 %v2154_v50, %v2152_v27  ;;  %v2113_v13 = vadd.s32 %v2112_v33, %v2110_v44 }
0x209e   :  { %v2177_v46 = vrot.slane %v2155_v26, 1 }
0x20a0   :  { %v2178_v51 = vsel %vm1946_vm9, %v2113_v13, %v2177_v46 }
0x20a1   :  { %2196 = vperm.xlu2 %4373, %v2178_v51   ;;  %2184 = vst.msk [vmem:[%s6589_s18] sm:$0x1] %vm2183_vm0, %v2178_v51  ;;  %2187 = vperm.xlu1 %4372, %v2178_v51  }
0x20a9   :  { %4374 = vset.pattern.permute.xlu2 %v4773_v47  ;;  %4375 = vset.pattern.permute.xlu1 %v4772_v24 }
0x20fb   :  { %v2197_v0 = vpop.permute.xlu2 %2196 }
0x20fc   :  { %vm2198_vm4 = vcmp.eq.s32.totalorder %v4961_v22, %v2197_v0 }
0x20fd   :  { %v4309_v9 = vsel %vm2198_vm4, 1.0, %v4768_v31 }
0x20fe   :  { %v2201_v14 = vperm.slane %v4309_v9, 0 }
0x2100   :  { %v2202_v49 = vsel %vm238_vm3, %v2201_v14, 0.0 }
0x2113   :  { %v2188_v34 = vpop.permute.xlu1 %2187 }
0x2114   :  { %vm2189_vm5 = vcmp.eq.s32.totalorder %v4961_v22, %v2188_v34 }
0x2115   :  { %v4308_v45 = vsel %vm2189_vm5, 1.0, %v4768_v31 }
0x2116   :  { %v2192_v38 = vperm.slane %v4308_v45, 0 }
0x2118   :  { %v2193_v16 = vsel %vm6598_vm1, %v2192_v38, 0.0 }
0x2119   :  { %v2203_v56 = vadd.f32 %v2202_v49, %v2193_v16 }
0x211b   :  { %4310 = vmatmul.msk.f32.vlgmr.msrb.gmra.mxu2 %vm6599_vm11, %v2203_v56 }
0x219e   :  { %v2224_v57 = vpop.f32.mrf.mxu2 }
0x219f   :  { %v2225_v60 = vadd.f32 %v5629_v53, %v2224_v57  ;;  %v2279_v53 = vpop.permute.xlu0 %2278 }
0x21a1   :  { %v2257_v1 = vadd.f32 %v2255_v30, %v2225_v60 }
0x21a3   :  { %v4312_v63 = vmul.f32 -1.442695, %v2257_v1 }
0x21a5   :  { %4552 = vpow2.f32 %v4312_v63 }
0x21ab   :  { %v4553_v25 = vpop.eup %4552 }
0x21ac   :  { %v2261_v41 = vadd.f32 1.0, %v4553_v25 }
0x21ae   :  { %4554 = vrcp.f32 %v2261_v41  ;;  %v2273_v28 = vand.u32 2147483648, %v2261_v41  ;;  %v2271_v55 = vand.u32 2147483647, %v2261_v41  ;;  %vm2267_vm5 = vweird.f32 %v2261_v41 }
0x21b0   :  { %v2274_v6 = vor.u32 1.1754944e-38, %v2273_v28  ;;  %vm2272_vm11 = vcmp.eq.f32.partialorder %v2271_v55, 8.507059e+37 }
0x21b4   :  { %v4555_v39 = vpop.eup %4554 }
0x21b5   :  { %v2263_v5 = vmul.f32 %v4555_v39, %v2261_v41  ;;  %vm2268_vm4 = vweird.f32 %v4555_v39 }
0x21b6   :  { %vm2269_vm1 = vmor %vm2267_vm5, %vm2268_vm4  ;;  %vm6624_vm4 = vcmask 261120   ;;  %vm6625_vm5 = vcmask 523264  }
0x21b7   :  { %v2264_v52 = vsub.f32 1.0, %v2263_v5 }
0x21b9   :  { %v2265_v2 = vmul.f32 %v4555_v39, %v2264_v52 }
0x21bb   :  { %v2266_v12 = vadd.f32 %v4555_v39, %v2265_v2 }
0x21bd   :  { %v2270_v43 = vsel %vm2269_vm1, %v4555_v39, %v2266_v12  ;;  %vm6622_vm1 = vcmask 58368  }
0x21be   :  { %v2275_v30 = vsel %vm2272_vm11, %v2274_v6, %v2270_v43  ;;  %vm6623_vm11 = vmmov %vm6622_vm1 }
0x21bf   :  { %v2281_v50 = vmul.f32 %v2279_v53, %v2275_v30  ;;  %v2288_v33 = vsub.f32 1.0, %v2275_v30  ;;  %v2294_v13 = vmul.f32 %v2275_v30, %v5657_v40 }
0x21c1   :  { %2283 = vrot.lane.b32.xlu1 %v2281_v50, %s4769_s10 }
0x2233   :  { %v2284_v37 = vpop.permute.xlu1 %2283 }
0x2234   :  { %v2286_v27 = vadd.f32 %v2284_v37, %v2225_v60 }
0x2236   :  { %4556 = vtanh.f32 %v2286_v27 }
0x223c   :  { %v4557_v44 = vpop.eup %4556 }
0x223d   :  { %2290 = vrot.lane.b32.xlu0 %v4557_v44, %s4770_s23 }
0x22af   :  { %v2291_v26 = vpop.permute.xlu0 %2290 }
0x22b0   :  { %v2293_v46 = vmul.f32 %v2291_v26, %v2288_v33 }
0x22b2   :  { %v5827_v51 = vadd.f32 %v2294_v13, %v2293_v46 }
0x22b4   :  { %v2312_v0 = vmul.f32 %v5827_v51, %v5651_v61  ;;  %v2304_v9 = vmul.f32 %v5827_v51, %v5655_v19  ;;  %v2296_v34 = vmul.f32 %v5827_v51, %v5692_v17  ;;  %v2336_v40 = vmul.f32 %v5827_v51, %v5670_v18 }
0x22b5   :  { %v2328_v14 = vmul.f32 %v5827_v51, %v5674_v58  ;;  %v2320_v45 = vmul.f32 %v5827_v51, %v5647_v54  ;;  %v2352_v38 = vmul.f32 %v5827_v51, %v5684_v42  ;;  %v2344_v49 = vmul.f32 %v5827_v51, %v5699_v20 }
0x22b6   :  { %2314 = vrot.lane.b32.xlu0 %v2312_v0, %s4770_s23  ;;  %2306 = vrot.lane.b32.xlu1 %v2304_v9, %s4770_s23 }
0x22b7   :  { %2298 = vrot.lane.b32.xlu2 %v2296_v34, %s4770_s23 }
0x22be   :  { %2338 = vrot.lane.b32.xlu0 %v2336_v40, %s4770_s23  ;;  %2330 = vrot.lane.b32.xlu1 %v2328_v14, %s4770_s23 }
0x22bf   :  { %2322 = vrot.lane.b32.xlu2 %v2320_v45, %s4770_s23 }
0x22c6   :  { %2354 = vrot.lane.b32.xlu1 %v2352_v38, %s4770_s23 }
0x22c7   :  { %2346 = vrot.lane.b32.xlu2 %v2344_v49, %s4770_s23 }
0x2311   :  { %v2299_v16 = vpop.permute.xlu2 %2298 }
0x2312   :  { %v2301_v56 = vsel %vm1886_vm8, %v2299_v16, 0.0 }
0x2313   :  { %2302 = vadd.xlane.f32.xlu0 %v2301_v56 }
0x2319   :  { %v2323_v57 = vpop.permute.xlu2 %2322 }
0x231a   :  { %v2325_v60 = vsel %vm1886_vm8, %v2323_v57, 0.0 }
0x231b   :  { %2326 = vadd.xlane.f32.xlu0 %v2325_v60 }
0x2321   :  { %v2347_v1 = vpop.permute.xlu2 %2346 }
0x2322   :  { %v2349_v63 = vsel %vm1886_vm8, %v2347_v1, 0.0 }
0x2323   :  { %2350 = vadd.xlane.f32.xlu0 %v2349_v63 }
0x2328   :  { %v2315_v25 = vpop.permute.xlu0 %2314  ;;  %v2307_v41 = vpop.permute.xlu1 %2306 }
0x2329   :  { %v2317_v39 = vsel %vm1886_vm8, %v2315_v25, 0.0  ;;  %v2309_v5 = vsel %vm1886_vm8, %v2307_v41, 0.0 }
0x232a   :  { %2318 = vadd.xlane.f32.xlu1 %v2317_v39  ;;  %2310 = vadd.xlane.f32.xlu2 %v2309_v5 }
0x2330   :  { %v2339_v52 = vpop.permute.xlu0 %2338  ;;  %v2331_v28 = vpop.permute.xlu1 %2330 }
0x2331   :  { %v2341_v2 = vsel %vm1886_vm8, %v2339_v52, 0.0  ;;  %v2333_v55 = vsel %vm1886_vm8, %v2331_v28, 0.0 }
0x2332   :  { %2342 = vadd.xlane.f32.xlu1 %v2341_v2  ;;  %2334 = vadd.xlane.f32.xlu2 %v2333_v55 }
0x2338   :  { %v2355_v12 = vpop.permute.xlu1 %2354 }
0x2339   :  { %v2357_v6 = vsel %vm1886_vm8, %v2355_v12, 0.0 }
0x233a   :  { %2358 = vadd.xlane.f32.xlu2 %v2357_v6 }
0x2386   :  { %v2303_v43 = vpop.xlane.xlu0 %2302 }
0x238e   :  { %v2327_v37 = vpop.xlane.xlu0 %2326 }
0x2396   :  { %v2351_v0 = vpop.xlane.xlu0 %2350 }
0x239d   :  { %v2319_v53 = vpop.xlane.xlu1 %2318  ;;  %v2311_v30 = vpop.xlane.xlu2 %2310 }
0x239e   :  { %v2360_v50 = vsel %vm1946_vm9, %v2303_v43, %v2311_v30 }
0x239f   :  { %v2361_v27 = vsel %vm1948_vm10, %v2360_v50, %v2319_v53 }
0x23a0   :  { %v2362_v33 = vsel %vm1950_vm12, %v2361_v27, %v2327_v37 }
0x23a5   :  { %v2335_v44 = vpop.xlane.xlu2 %2334  ;;  %v2343_v26 = vpop.xlane.xlu1 %2342 }
0x23a6   :  { %v2363_v13 = vsel %vm1952_vm13, %v2362_v33, %v2335_v44 }
0x23a7   :  { %v2364_v46 = vsel %vm6602_vm14, %v2363_v13, %v2343_v26 }
0x23a8   :  { %v2365_v34 = vsel %vm6601_vm15, %v2364_v46, %v2351_v0 }
0x23ad   :  { %v2359_v9 = vpop.xlane.xlu2 %2358 }
0x23ae   :  { %v2366_v40 = vsel %vm6600_vm2, %v2365_v34, %v2359_v9 }
0x23af   :  { %v2367_v14 = vsel %vm6622_vm1, %v2366_v40, -inf  ;;  %vm6626_vm1 = vmmov %vm6624_vm4 }
0x23b0   :  { %2368 = vmax.xlane.f32.xlu1 %v2367_v14  ;;  %v2631_v14 = vld [vmem:[#allocation6 + $0x10] sm:$0xff] }
0x2423   :  { %v2369_v45 = vpop.xlane.xlu1 %2368 }
0x2424   :  { %v2370_v38 = vsub.f32 %v2366_v40, %v2369_v45  ;;  %v2632_v40 = vld [vmem:[#allocation6 + $0x18] sm:$0xff]  ;;  %v2630_v45 = vld [vmem:[#allocation6 + $0x8] sm:$0xff] }
0x2425   :  { %2651 = vmatpush.msrb.mxu2 %v2632_v40  ;;  %3053 = vmatpush.msra.mxu0 %v2632_v40 }
0x2426   :  { %v2371_v49 = vmul.f32 1.442695, %v2370_v38  ;;  %v2629_v38 = vld [vmem:[#allocation6] sm:$0xff] }
0x2427   :  { %2652 = vmatpush.msrb.mxu2 %v2631_v14  ;;  %3054 = vmatpush.msra.mxu0 %v2631_v14 }
0x2428   :  { %4558 = vpow2.f32 %v2371_v49  ;;  %v4430_v49 = vld [vmem:[%s6586_s15] ss:$0 sm:$0xff] }
0x2429   :  { %2653 = vmatpush.msrb.mxu2 %v2630_v45  ;;  %3055 = vmatpush.msra.mxu0 %v2630_v45 }
0x242b   :  { %2654 = vmatpush.msrb.mxu2 %v2629_v38  ;;  %3056 = vmatpush.msra.mxu0 %v2629_v38 }
0x242d   :  { %3455 = vmatpush.msrb.mxu0 %v2632_v40 }
0x242e   :  { %v4559_v16 = vpop.eup %4558 }
0x242f   :  { %v2373_v56 = vsel %vm6623_vm11, %v4559_v16, 0.0  ;;  %3456 = vmatpush.msrb.mxu0 %v2631_v14  ;;  %vm6627_vm11 = vmmov %vm6626_vm1 }
0x2430   :  { %2374 = vadd.xlane.f32.xlu0 %v2373_v56 }
0x2431   :  { %3457 = vmatpush.msrb.mxu0 %v2630_v45 }
0x2433   :  { %3458 = vmatpush.msrb.mxu0 %v2629_v38 }
0x24a3   :  { %v2375_v57 = vpop.xlane.xlu0 %2374 }
0x24a4   :  { %4560 = vrcp.f32 %v2375_v57 }
0x24aa   :  { %v4561_v60 = vpop.eup %4560 }
0x24ab   :  { %v2377_v1 = vmul.f32 %v4561_v60, %v4559_v16  ;;  %v4431_v60 = vld [vmem:[%s6588_s17] ss:$0 sm:$0xff] }
0x24ad   :  { %2391 = vperm.xlu0 %4376, %v2377_v1   ;;  %2385 = vperm.xlu1 %4375, %v2377_v1  }
0x24ae   :  { %2380 = vperm.xlu2 %4374, %v2377_v1  }
0x24b5   :  { %4378 = vset.pattern.permute.xlu1 %v4774_v23  ;;  %4382 = vset.pattern.permute.xlu0 %v4773_v47 }
0x24b6   :  { %4377 = vset.pattern.permute.xlu2 %v4775_v11  ;;  %2403 = vperm.xlu1 %4378, %v2377_v1  }
0x24b7   :  { %2397 = vperm.xlu2 %4377, %v2377_v1  }
0x24be   :  { %4380 = vset.pattern.permute.xlu1 %v4776_v29 }
0x24bf   :  { %4379 = vset.pattern.permute.xlu2 %v4777_v48  ;;  %2415 = vperm.xlu1 %4380, %v2377_v1  }
0x24c0   :  { %2409 = vperm.xlu2 %4379, %v2377_v1  }
0x24c7   :  { %2427 = vrot.lane.b32.xlu1 %v5827_v51, %s4770_s23 }
0x24c8   :  { %4381 = vset.pattern.permute.xlu2 %v4778_v32  ;;  %4384 = vset.pattern.permute.xlu1 %v4773_v47 }
0x24c9   :  { %2421 = vperm.xlu2 %4381, %v2377_v1  }
0x24d1   :  { %4383 = vset.pattern.permute.xlu2 %v4772_v24 }
0x2508   :  { %v2381_v63 = vpop.permute.xlu2 %2380 }
0x2509   :  { %v2383_v5 = vmul.f32 %v2381_v63, %v5692_v17 }
0x2511   :  { %v2398_v25 = vpop.permute.xlu2 %2397 }
0x2512   :  { %v2400_v43 = vmul.f32 %v2398_v25, %v5647_v54 }
0x251a   :  { %v2410_v6 = vpop.permute.xlu2 %2409 }
0x251b   :  { %v2412_v37 = vmul.f32 %v2410_v6, %v5670_v18 }
0x251f   :  { %v2386_v41 = vpop.permute.xlu1 %2385  ;;  %v2392_v52 = vpop.permute.xlu0 %2391 }
0x2520   :  { %v2388_v39 = vmul.f32 %v2386_v41, %v5655_v19  ;;  %v2394_v2 = vmul.f32 %v2392_v52, %v5651_v61 }
0x2522   :  { %v2389_v28 = vadd.f32 %v2388_v39, %v2383_v5 }
0x2523   :  { %v2422_v26 = vpop.permute.xlu2 %2421 }
0x2524   :  { %v2395_v55 = vadd.f32 %v2394_v2, %v2389_v28  ;;  %v2424_v46 = vmul.f32 %v2422_v26, %v5684_v42 }
0x2526   :  { %v2401_v30 = vadd.f32 %v2400_v43, %v2395_v55 }
0x2528   :  { %v2404_v12 = vpop.permute.xlu1 %2403 }
0x2529   :  { %v2406_v53 = vmul.f32 %v2404_v12, %v5674_v58 }
0x252b   :  { %v2407_v50 = vadd.f32 %v2406_v53, %v2401_v30 }
0x252d   :  { %v2413_v44 = vadd.f32 %v2412_v37, %v2407_v50 }
0x2531   :  { %v2416_v27 = vpop.permute.xlu1 %2415 }
0x2532   :  { %v2418_v33 = vmul.f32 %v2416_v27, %v5699_v20 }
0x2534   :  { %v2419_v13 = vadd.f32 %v2418_v33, %v2413_v44 }
0x2536   :  { %v2425_v0 = vadd.f32 %v2424_v46, %v2419_v13  ;;  %v4432_v46 = vld [vmem:[%s6584_s13] ss:$0 sm:$0xff] }
0x2539   :  { %v2428_v9 = vpop.permute.xlu1 %2427 }
0x253a   :  { %v2430_v34 = vsel %vm6624_vm4, %v2428_v9, %v2425_v0 }
0x253b   :  { %4313 = vmatmul.msk.f32.vlgmr.msrb.gmra.mxu3 %vm6625_vm5, %v2430_v34 }
0x253c   :  { %3423 = vmatpush.msrb.mxu3 %v5583_v8 }
0x253e   :  { %3424 = vmatpush.msrb.mxu3 %v5578_v7 }
0x2540   :  { %3425 = vmatpush.msrb.mxu3 %v5576_v62 }
0x2542   :  { %3426 = vmatpush.msrb.mxu3 %v5574_v59 }
0x2544   :  { %3427 = vmatpush.msrb.mxu3 %v5572_v4 }
0x2546   :  { %3428 = vmatpush.msrb.mxu3 %v5570_v3 }
0x25be   :  { %v2463_v16 = vpop.f32.mrf.mxu3 }
0x25bf   :  { %v2464_v56 = vadd.f32 %v4430_v49, %v2463_v16 }
0x25c1   :  { %4562 = vtanh.f32 %v2464_v56 }
0x25c7   :  { %v4563_v57 = vpop.eup %4562 }
0x25c8   :  { %4314 = vmatmul.msk.f32.vlgmr.msra.gmra.mxu2 %vm6626_vm1, %v4563_v57 }
0x25c9   :  { %3021 = vmatpush.msra.mxu2 %v5583_v8 }
0x25cb   :  { %3022 = vmatpush.msra.mxu2 %v5578_v7 }
0x25cd   :  { %3023 = vmatpush.msra.mxu2 %v5576_v62 }
0x25cf   :  { %3024 = vmatpush.msra.mxu2 %v5574_v59 }
0x25d0   :  { %4318 = vmatmul.msk.f32.vlgmr.msrb.gmra.mxu2 %vm6627_vm11, %v2428_v9 }
0x25d1   :  { %3025 = vmatpush.msra.mxu2 %v5572_v4 }
0x25d3   :  { %3026 = vmatpush.msra.mxu2 %v5570_v3 }
0x264b   :  { %v2495_v1 = vpop.f32.mrf.mxu2 }
0x264c   :  { %v5910_v63 = vadd.f32 %v4431_v60, %v2495_v1 }
0x264e   :  { %v2539_v25 = vsel %vm6603_vm6, %v5910_v63, -inf  ;;  %v2498_v41 = vsel %vm6604_vm7, %v5910_v63, -inf }
0x264f   :  { %2540 = vmax.xlane.f32.xlu0 %v2539_v25  ;;  %2499 = vmax.xlane.f32.xlu2 %v2498_v41 }
0x2653   :  { %v2656_v0 = vpop.f32.mrf.mxu2 }
0x2654   :  { %v2657_v9 = vadd.f32 %v4432_v46, %v2656_v0 }
0x26c2   :  { %v5916_v39 = vpop.xlane.xlu0 %2540  ;;  %v5918_v5 = vpop.xlane.xlu2 %2499 }
0x26c3   :  { %vm2542_vm4 = vcmp.eq.f32.partialorder %v5910_v63, %v5916_v39  ;;  %vm2501_vm5 = vcmp.eq.f32.partialorder %v5910_v63, %v5918_v5 }
0x26c4   :  { %v2543_v52 = vsel %vm2542_vm4, %v4961_v22, 48  ;;  %v2502_v28 = vsel %vm2501_vm5, %v4961_v22, 48 }
0x26c5   :  { %v2544_v2 = vsel %vm6603_vm6, %v2543_v52, 2147483647  ;;  %v2503_v12 = vsel %vm6604_vm7, %v2502_v28, 2147483647 }
0x26c6   :  { %v2546_v55 = vshra.s32 %v2544_v2, 16  ;;  %v2505_v6 = vshra.s32 %v2503_v12, 16  ;;  %v2545_v30 = vand.u32 65535, %v2544_v2  ;;  %v2504_v50 = vand.u32 65535, %v2503_v12 }
0x26c8   :  { %v2548_v43 = vcvt.s32.f32 %v2546_v55  ;;  %v2507_v53 = vcvt.s32.f32 %v2505_v6  ;;  %v2547_v27 = vcvt.s32.f32 %v2545_v30  ;;  %v2506_v33 = vcvt.s32.f32 %v2504_v50  ;;  %v5950_v50 = vld [vmem:[%s6583_s12] ss:$0 sm:$0xff] }
0x26ca   :  { %2549 = vmin.xlane.f32.xlu1 %v2548_v43  ;;  %2508 = vmin.xlane.f32.xlu0 %v2507_v53 }
0x273d   :  { %v2550_v37 = vpop.xlane.xlu1 %2549  ;;  %v2509_v44 = vpop.xlane.xlu0 %2508 }
0x273e   :  { %vm2551_vm1 = vcmp.eq.f32.partialorder %v2548_v43, %v2550_v37  ;;  %vm2510_vm11 = vcmp.eq.f32.partialorder %v2507_v53, %v2509_v44  ;;  %v2556_v34 = vcvt.f32.s32 %v2550_v37  ;;  %v2515_v40 = vcvt.f32.s32 %v2509_v44 }
0x273f   :  { %v2552_v26 = vsel %vm2551_vm1, %v2547_v27, inf  ;;  %v2511_v13 = vsel %vm2510_vm11, %v2506_v33, inf  ;;  %vm6628_vm1 = vcmp.eq.s32.totalorder %v4959_v21, 0  ;;  %vm6629_vm11 = vcmask 392192  }
0x2740   :  { %2553 = vmin.xlane.f32.xlu2 %v2552_v26  ;;  %2512 = vmin.xlane.f32.xlu1 %v2511_v13  ;;  %v2557_v45 = vshll.u32 %v2556_v34, 16  ;;  %v2516_v56 = vshll.u32 %v2515_v40, 16 }
0x2759   :  { %2680 = vrot.lane.b32.xlu1 %v2657_v9, %s4769_s10 }
0x27b3   :  { %v2554_v14 = vpop.xlane.xlu2 %2553  ;;  %v2513_v38 = vpop.xlane.xlu1 %2512 }
0x27b4   :  { %v2555_v49 = vcvt.f32.s32 %v2554_v14  ;;  %v2514_v16 = vcvt.f32.s32 %v2513_v38 }
0x27b6   :  { %v2558_v57 = vadd.s32 %v2557_v45, %v2555_v49  ;;  %v2517_v60 = vadd.s32 %v2516_v56, %v2514_v16 }
0x27b8   :  { %v2580_v1 = vrot.slane %v2558_v57, 1 }
0x27ba   :  { %v2581_v25 = vsel %vm1946_vm9, %v2517_v60, %v2580_v1 }
0x27bb   :  { %2598 = vperm.xlu2 %4383, %v2581_v25   ;;  %2586 = vst.msk [vmem:[%s6589_s18 + $0x1] sm:$0x1] %vm2183_vm0, %v2581_v25  ;;  %2589 = vperm.xlu0 %4382, %v2581_v25  }
0x27c3   :  { %4385 = vset.pattern.permute.xlu0 %v4771_v10 }
0x27cb   :  { %v2681_v16 = vpop.permute.xlu1 %2680 }
0x2815   :  { %v2599_v41 = vpop.permute.xlu2 %2598 }
0x2816   :  { %vm2600_vm4 = vcmp.eq.s32.totalorder %v4961_v22, %v2599_v41 }
0x2817   :  { %v4316_v52 = vsel %vm2600_vm4, 1.0, %v4768_v31 }
0x2818   :  { %v2603_v2 = vperm.slane %v4316_v52, 0 }
0x281a   :  { %v2604_v6 = vsel %vm238_vm3, %v2603_v2, 0.0 }
0x282d   :  { %v2590_v28 = vpop.permute.xlu0 %2589 }
0x282e   :  { %vm2591_vm5 = vcmp.eq.s32.totalorder %v4961_v22, %v2590_v28 }
0x282f   :  { %v4315_v55 = vsel %vm2591_vm5, 1.0, %v4768_v31 }
0x2830   :  { %v2594_v12 = vperm.slane %v4315_v55, 0 }
0x2832   :  { %v2595_v43 = vsel %vm6628_vm1, %v2594_v12, 0.0 }
0x2833   :  { %v2605_v53 = vadd.f32 %v2604_v6, %v2595_v43 }
0x2835   :  { %4317 = vmatmul.msk.f32.vlgmr.msrb.gmra.mxu1 %vm6629_vm11, %v2605_v53 }
0x28b2   :  { %v2626_v30 = vpop.f32.mrf.mxu1 }
0x28b3   :  { %v2627_v37 = vadd.f32 %v5950_v50, %v2626_v30 }
0x28b5   :  { %v2659_v27 = vadd.f32 %v2657_v9, %v2627_v37 }
0x28b7   :  { %v4319_v44 = vmul.f32 -1.442695, %v2659_v27 }
0x28b9   :  { %4564 = vpow2.f32 %v4319_v44 }
0x28bf   :  { %v4565_v33 = vpop.eup %4564 }
0x28c0   :  { %v2663_v26 = vadd.f32 1.0, %v4565_v33 }
0x28c2   :  { %4566 = vrcp.f32 %v2663_v26  ;;  %v2675_v34 = vand.u32 2147483648, %v2663_v26  ;;  %v2673_v14 = vand.u32 2147483647, %v2663_v26  ;;  %vm2669_vm5 = vweird.f32 %v2663_v26 }
0x28c4   :  { %v2676_v38 = vor.u32 1.1754944e-38, %v2675_v34  ;;  %vm2674_vm11 = vcmp.eq.f32.partialorder %v2673_v14, 8.507059e+37 }
0x28c8   :  { %v4567_v13 = vpop.eup %4566 }
0x28c9   :  { %v2665_v46 = vmul.f32 %v4567_v13, %v2663_v26  ;;  %vm2670_vm4 = vweird.f32 %v4567_v13 }
0x28ca   :  { %vm2671_vm1 = vmor %vm2669_vm5, %vm2670_vm4  ;;  %vm6630_vm4 = vcmask 58368  }
0x28cb   :  { %v2666_v0 = vsub.f32 1.0, %v2665_v46  ;;  %vm6631_vm5 = vmmov %vm6630_vm4 }
0x28cd   :  { %v2667_v40 = vmul.f32 %v4567_v13, %v2666_v0 }
0x28cf   :  { %v2668_v45 = vadd.f32 %v4567_v13, %v2667_v40 }
0x28d1   :  { %v2672_v49 = vsel %vm2671_vm1, %v4567_v13, %v2668_v45  ;;  %vm6632_vm1 = vcmask 261120  }
0x28d2   :  { %v2677_v9 = vsel %vm2674_vm11, %v2676_v38, %v2672_v49  ;;  %vm6633_vm11 = vmmov %vm6632_vm1 }
0x28d3   :  { %v2683_v56 = vmul.f32 %v2681_v16, %v2677_v9  ;;  %v2690_v25 = vsub.f32 1.0, %v2677_v9  ;;  %v2696_v52 = vmul.f32 %v2677_v9, %v5827_v51 }
0x28d5   :  { %2685 = vrot.lane.b32.xlu2 %v2683_v56, %s4769_s10 }
0x292f   :  { %v2686_v57 = vpop.permute.xlu2 %2685 }
0x2930   :  { %v2688_v60 = vadd.f32 %v2686_v57, %v2627_v37 }
0x2932   :  { %4568 = vtanh.f32 %v2688_v60 }
0x2938   :  { %v4569_v1 = vpop.eup %4568 }
0x2939   :  { %2692 = vrot.lane.b32.xlu1 %v4569_v1, %s4770_s23 }
0x29ab   :  { %v2693_v41 = vpop.permute.xlu1 %2692 }
0x29ac   :  { %v2695_v28 = vmul.f32 %v2693_v41, %v2690_v25 }
0x29ae   :  { %v5956_v2 = vadd.f32 %v2696_v52, %v2695_v28 }
0x29b0   :  { %v2714_v55 = vmul.f32 %v5956_v2, %v5651_v61  ;;  %v2706_v12 = vmul.f32 %v5956_v2, %v5655_v19  ;;  %v2698_v6 = vmul.f32 %v5956_v2, %v5692_v17  ;;  %v2738_v51 = vmul.f32 %v5956_v2, %v5670_v18 }
0x29b1   :  { %v2730_v43 = vmul.f32 %v5956_v2, %v5674_v58  ;;  %v2722_v53 = vmul.f32 %v5956_v2, %v5647_v54  ;;  %v2754_v30 = vmul.f32 %v5956_v2, %v5684_v42  ;;  %v2746_v37 = vmul.f32 %v5956_v2, %v5699_v20 }
0x29b2   :  { %2716 = vrot.lane.b32.xlu1 %v2714_v55, %s4770_s23  ;;  %2708 = vrot.lane.b32.xlu0 %v2706_v12, %s4770_s23 }
0x29b3   :  { %2700 = vrot.lane.b32.xlu2 %v2698_v6, %s4770_s23 }
0x29ba   :  { %2740 = vrot.lane.b32.xlu1 %v2738_v51, %s4770_s23  ;;  %2732 = vrot.lane.b32.xlu0 %v2730_v43, %s4770_s23 }
0x29bb   :  { %2724 = vrot.lane.b32.xlu2 %v2722_v53, %s4770_s23 }
0x29c2   :  { %2756 = vrot.lane.b32.xlu0 %v2754_v30, %s4770_s23 }
0x29c3   :  { %2748 = vrot.lane.b32.xlu2 %v2746_v37, %s4770_s23 }
0x2a0d   :  { %v2701_v27 = vpop.permute.xlu2 %2700 }
0x2a0e   :  { %v2703_v44 = vsel %vm1886_vm8, %v2701_v27, 0.0 }
0x2a0f   :  { %2704 = vadd.xlane.f32.xlu1 %v2703_v44 }
0x2a15   :  { %v2725_v33 = vpop.permute.xlu2 %2724 }
0x2a16   :  { %v2727_v45 = vsel %vm1886_vm8, %v2725_v33, 0.0 }
0x2a1d   :  { %v2749_v34 = vpop.permute.xlu2 %2748 }
0x2a1e   :  { %v2751_v38 = vsel %vm1886_vm8, %v2749_v34, 0.0 }
0x2a24   :  { %v2717_v26 = vpop.permute.xlu1 %2716  ;;  %v2709_v13 = vpop.permute.xlu0 %2708 }
0x2a25   :  { %v2711_v46 = vsel %vm1886_vm8, %v2709_v13, 0.0  ;;  %v2719_v0 = vsel %vm1886_vm8, %v2717_v26, 0.0 }
0x2a26   :  { %2720 = vadd.xlane.f32.xlu0 %v2719_v0  ;;  %2712 = vadd.xlane.f32.xlu2 %v2711_v46 }
0x2a2c   :  { %v2733_v40 = vpop.permute.xlu0 %2732  ;;  %v2741_v49 = vpop.permute.xlu1 %2740 }
0x2a2d   :  { %v2735_v14 = vsel %vm1886_vm8, %v2733_v40, 0.0  ;;  %v2743_v56 = vsel %vm1886_vm8, %v2741_v49, 0.0 }
0x2a2e   :  { %2736 = vadd.xlane.f32.xlu1 %v2735_v14  ;;  %2728 = vadd.xlane.f32.xlu2 %v2727_v45 }
0x2a2f   :  { %2752 = vadd.xlane.f32.xlu0 %v2751_v38 }
0x2a34   :  { %v2757_v16 = vpop.permute.xlu0 %2756 }
0x2a35   :  { %v2759_v9 = vsel %vm1886_vm8, %v2757_v16, 0.0 }
0x2a36   :  { %2760 = vadd.xlane.f32.xlu1 %v2759_v9  ;;  %2744 = vadd.xlane.f32.xlu2 %v2743_v56 }
0x2a82   :  { %v2705_v57 = vpop.xlane.xlu1 %2704 }
0x2a99   :  { %v2713_v60 = vpop.xlane.xlu2 %2712  ;;  %v2721_v1 = vpop.xlane.xlu0 %2720 }
0x2a9a   :  { %v2762_v52 = vsel %vm1946_vm9, %v2705_v57, %v2713_v60 }
0x2a9b   :  { %v2763_v28 = vsel %vm1948_vm10, %v2762_v52, %v2721_v1 }
0x2aa1   :  { %v2737_v25 = vpop.xlane.xlu1 %2736  ;;  %v2729_v41 = vpop.xlane.xlu2 %2728 }
0x2aa2   :  { %v2764_v55 = vsel %vm1950_vm12, %v2763_v28, %v2729_v41  ;;  %v2753_v51 = vpop.xlane.xlu0 %2752 }
0x2aa3   :  { %v2765_v12 = vsel %vm1952_vm13, %v2764_v55, %v2737_v25 }
0x2aa9   :  { %v2745_v6 = vpop.xlane.xlu2 %2744  ;;  %v2761_v53 = vpop.xlane.xlu1 %2760 }
0x2aaa   :  { %v2766_v43 = vsel %vm6602_vm14, %v2765_v12, %v2745_v6 }
0x2aab   :  { %v2767_v30 = vsel %vm6601_vm15, %v2766_v43, %v2753_v51 }
0x2aac   :  { %v2768_v37 = vsel %vm6600_vm2, %v2767_v30, %v2761_v53 }
0x2aad   :  { %v2769_v27 = vsel %vm6630_vm4, %v2768_v37, -inf  ;;  %vm6634_vm4 = vcmask 523264  }
0x2aae   :  { %2770 = vmax.xlane.f32.xlu2 %v2769_v27 }
0x2b21   :  { %v2771_v44 = vpop.xlane.xlu2 %2770 }
0x2b22   :  { %v2772_v33 = vsub.f32 %v2768_v37, %v2771_v44 }
0x2b24   :  { %v2773_v26 = vmul.f32 1.442695, %v2772_v33 }
0x2b26   :  { %4570 = vpow2.f32 %v2773_v26  ;;  %v2872_v26 = vld [vmem:[#allocation8 + $0x18] sm:$0xff] }
0x2b27   :  { %2892 = vmatpush.msra.mxu1 %v2872_v26  ;;  %3294 = vmatpush.msrb.mxu2 %v2872_v26 }
0x2b2c   :  { %v4571_v13 = vpop.eup %4570 }
0x2b2d   :  { %v2775_v46 = vsel %vm6631_vm5, %v4571_v13, 0.0  ;;  %vm6635_vm5 = vmmov %vm6632_vm1 }
0x2b2e   :  { %2776 = vadd.xlane.f32.xlu0 %v2775_v46  ;;  %v2870_v46 = vld [vmem:[#allocation8 + $0x8] sm:$0xff] }
0x2ba1   :  { %v2777_v0 = vpop.xlane.xlu0 %2776 }
0x2ba2   :  { %4572 = vrcp.f32 %v2777_v0  ;;  %v2869_v0 = vld [vmem:[#allocation8] sm:$0xff] }
0x2ba8   :  { %v4573_v34 = vpop.eup %4572 }
0x2ba9   :  { %v2779_v40 = vmul.f32 %v4573_v34, %v4571_v13  ;;  %v2871_v13 = vld [vmem:[#allocation8 + $0x10] sm:$0xff]  ;;  %v6023_v34 = vld [vmem:[%s6585_s14 + $0x38] sm:$0xff] }
0x2baa   :  { %2893 = vmatpush.msra.mxu1 %v2871_v13  ;;  %3295 = vmatpush.msrb.mxu2 %v2871_v13 }
0x2bab   :  { %2793 = vperm.xlu0 %4385, %v2779_v40   ;;  %2787 = vperm.xlu2 %4383, %v2779_v40  }
0x2bac   :  { %2782 = vperm.xlu1 %4384, %v2779_v40   ;;  %2894 = vmatpush.msra.mxu1 %v2870_v46 }
0x2bad   :  { %3296 = vmatpush.msrb.mxu2 %v2870_v46  ;;  %v4433_v46 = vld [vmem:[%s6584_s13] ss:$0 sm:$0xff] }
0x2bae   :  { %2895 = vmatpush.msra.mxu1 %v2869_v0 }
0x2baf   :  { %3297 = vmatpush.msrb.mxu2 %v2869_v0 }
0x2bb0   :  { %3258 = vmatpush.msrb.mxu1 %v6023_v34 }
0x2bb3   :  { %4387 = vset.pattern.permute.xlu2 %v4774_v23  ;;  %4391 = vset.pattern.permute.xlu0 %v4773_v47 }
0x2bb4   :  { %4386 = vset.pattern.permute.xlu1 %v4775_v11  ;;  %2805 = vperm.xlu2 %4387, %v2779_v40  }
0x2bb5   :  { %2799 = vperm.xlu1 %4386, %v2779_v40  }
0x2bbc   :  { %4389 = vset.pattern.permute.xlu2 %v4776_v29 }
0x2bbd   :  { %4388 = vset.pattern.permute.xlu1 %v4777_v48  ;;  %2817 = vperm.xlu2 %4389, %v2779_v40  }
0x2bbe   :  { %2811 = vperm.xlu1 %4388, %v2779_v40  }
0x2bc5   :  { %2829 = vrot.lane.b32.xlu2 %v5956_v2, %s4770_s23 }
0x2bc6   :  { %4390 = vset.pattern.permute.xlu1 %v4778_v32  ;;  %4394 = vset.pattern.permute.xlu2 %v4772_v24 }
0x2bc7   :  { %2823 = vperm.xlu1 %4390, %v2779_v40   ;;  %v6028_v40 = vld [vmem:[%s6585_s14 + $0x30] sm:$0xff] }
0x2bc8   :  { %3259 = vmatpush.msrb.mxu1 %v6028_v40 }
0x2bcf   :  { %4392 = vset.pattern.permute.xlu1 %v4772_v24 }
0x2c05   :  { %v2788_v14 = vpop.permute.xlu2 %2787 }
0x2c06   :  { %v2790_v57 = vmul.f32 %v2788_v14, %v5655_v19  ;;  %v6034_v14 = vld [vmem:[%s6585_s14 + $0x28] sm:$0xff] }
0x2c07   :  { %3260 = vmatpush.msrb.mxu1 %v6034_v14 }
0x2c0e   :  { %v2806_v45 = vpop.permute.xlu2 %2805 }
0x2c0f   :  { %v2808_v12 = vmul.f32 %v2806_v45, %v5674_v58  ;;  %v6041_v45 = vld [vmem:[%s6585_s14 + $0x20] sm:$0xff] }
0x2c10   :  { %3261 = vmatpush.msrb.mxu1 %v6041_v45 }
0x2c17   :  { %v2818_v38 = vpop.permute.xlu2 %2817 }
0x2c18   :  { %v2820_v53 = vmul.f32 %v2818_v38, %v5699_v20  ;;  %v6047_v38 = vld [vmem:[%s6585_s14 + $0x18] sm:$0xff] }
0x2c19   :  { %3262 = vmatpush.msrb.mxu1 %v6047_v38 }
0x2c1d   :  { %v2794_v60 = vpop.permute.xlu0 %2793 }
0x2c1e   :  { %v2783_v49 = vpop.permute.xlu1 %2782  ;;  %v2796_v25 = vmul.f32 %v2794_v60, %v5651_v61 }
0x2c1f   :  { %v2830_v16 = vpop.permute.xlu2 %2829  ;;  %v2785_v9 = vmul.f32 %v2783_v49, %v5692_v17  ;;  %v6053_v49 = vld [vmem:[%s6585_s14 + $0x10] sm:$0xff] }
0x2c20   :  { %4325 = vmatmul.msk.f32.vlgmr.msra.gmra.mxu0 %vm6632_vm1, %v2830_v16  ;;  %3263 = vmatpush.msrb.mxu1 %v6053_v49 }
0x2c21   :  { %v2791_v1 = vadd.f32 %v2790_v57, %v2785_v9  ;;  %v6064_v9 = vld [vmem:[%s6585_s14] sm:$0xff] }
0x2c23   :  { %v2797_v52 = vadd.f32 %v2796_v25, %v2791_v1  ;;  %v4435_v25 = vld [vmem:[%s6588_s17] ss:$0 sm:$0xff] }
0x2c27   :  { %v2800_v56 = vpop.permute.xlu1 %2799 }
0x2c28   :  { %v2802_v41 = vmul.f32 %v2800_v56, %v5647_v54  ;;  %v4434_v56 = vld [vmem:[%s6586_s15] ss:$0 sm:$0xff] }
0x2c2a   :  { %v2803_v28 = vadd.f32 %v2802_v41, %v2797_v52 }
0x2c2c   :  { %v2809_v51 = vadd.f32 %v2808_v12, %v2803_v28 }
0x2c30   :  { %v2812_v55 = vpop.permute.xlu1 %2811 }
0x2c31   :  { %v2814_v6 = vmul.f32 %v2812_v55, %v5670_v18 }
0x2c33   :  { %v2815_v43 = vadd.f32 %v2814_v6, %v2809_v51 }
0x2c35   :  { %v2821_v37 = vadd.f32 %v2820_v53, %v2815_v43 }
0x2c39   :  { %v2824_v30 = vpop.permute.xlu1 %2823 }
0x2c3a   :  { %v2826_v27 = vmul.f32 %v2824_v30, %v5684_v42 }
0x2c3c   :  { %v2827_v44 = vadd.f32 %v2826_v27, %v2821_v37 }
0x2c3e   :  { %v2832_v33 = vsel %vm6633_vm11, %v2830_v16, %v2827_v44  ;;  %v6058_v16 = vld [vmem:[%s6585_s14 + $0x8] sm:$0xff] }
0x2c3f   :  { %4320 = vmatmul.msk.f32.vlgmr.msra.gmra.mxu3 %vm6634_vm4, %v2832_v33  ;;  %3264 = vmatpush.msrb.mxu1 %v6058_v16 }
0x2c41   :  { %3265 = vmatpush.msrb.mxu1 %v6064_v9 }
0x2c9d   :  { %v3058_v0 = vpop.f32.mrf.mxu0 }
0x2cc2   :  { %v2865_v57 = vpop.f32.mrf.mxu3 }
0x2cc3   :  { %v2866_v60 = vadd.f32 %v4434_v56, %v2865_v57  ;;  %v3059_v56 = vadd.f32 %v4433_v46, %v3058_v0 }
0x2cc5   :  { %4574 = vtanh.f32 %v2866_v60 }
0x2ccb   :  { %v4575_v1 = vpop.eup %4574 }
0x2ccc   :  { %4321 = vmatmul.msk.f32.vlgmr.msra.gmra.mxu1 %vm6635_vm5, %v4575_v1 }
0x2ccd   :  { %3825 = vmatpush.msra.mxu1 %v5583_v8 }
0x2ccf   :  { %3826 = vmatpush.msra.mxu1 %v5578_v7 }
0x2cd1   :  { %3827 = vmatpush.msra.mxu1 %v5576_v62 }
0x2cd3   :  { %3828 = vmatpush.msra.mxu1 %v5574_v59 }
0x2cd5   :  { %3829 = vmatpush.msra.mxu1 %v5572_v4 }
0x2cd7   :  { %3830 = vmatpush.msra.mxu1 %v5570_v3 }
0x2d49   :  { %v2897_v41 = vpop.f32.mrf.mxu1 }
0x2d4a   :  { %v6081_v52 = vadd.f32 %v4435_v25, %v2897_v41 }
0x2d4c   :  { %v2941_v8 = vsel %vm6603_vm6, %v6081_v52, -inf  ;;  %v2900_v7 = vsel %vm6604_vm7, %v6081_v52, -inf }
0x2d4d   :  { %2942 = vmax.xlane.f32.xlu0 %v2941_v8  ;;  %2901 = vmax.xlane.f32.xlu1 %v2900_v7 }
0x2dc0   :  { %v6087_v59 = vpop.xlane.xlu0 %2942  ;;  %v6089_v4 = vpop.xlane.xlu1 %2901 }
0x2dc1   :  { %vm2944_vm1 = vcmp.eq.f32.partialorder %v6081_v52, %v6087_v59  ;;  %vm2903_vm11 = vcmp.eq.f32.partialorder %v6081_v52, %v6089_v4 }
0x2dc2   :  { %v2945_v3 = vsel %vm2944_vm1, %v4961_v22, 48  ;;  %v2904_v62 = vsel %vm2903_vm11, %v4961_v22, 48 }
0x2dc3   :  { %v2946_v28 = vsel %vm6603_vm6, %v2945_v3, 2147483647  ;;  %v2905_v55 = vsel %vm6604_vm7, %v2904_v62, 2147483647 }
0x2dc4   :  { %v2948_v12 = vshra.s32 %v2946_v28, 16  ;;  %v2907_v6 = vshra.s32 %v2905_v55, 16  ;;  %v2947_v53 = vand.u32 65535, %v2946_v28  ;;  %v2906_v30 = vand.u32 65535, %v2905_v55 }
0x2dc6   :  { %v2950_v51 = vcvt.s32.f32 %v2948_v12  ;;  %v2909_v43 = vcvt.s32.f32 %v2907_v6  ;;  %v2949_v44 = vcvt.s32.f32 %v2947_v53  ;;  %v2908_v33 = vcvt.s32.f32 %v2906_v30 }
0x2dc8   :  { %2951 = vmin.xlane.f32.xlu2 %v2950_v51  ;;  %2910 = vmin.xlane.f32.xlu0 %v2909_v43 }
0x2e3b   :  { %v2952_v37 = vpop.xlane.xlu2 %2951  ;;  %v2911_v27 = vpop.xlane.xlu0 %2910 }
0x2e3c   :  { %vm2912_vm4 = vcmp.eq.f32.partialorder %v2909_v43, %v2911_v27  ;;  %vm2953_vm5 = vcmp.eq.f32.partialorder %v2950_v51, %v2952_v37  ;;  %v2958_v57 = vcvt.f32.s32 %v2952_v37  ;;  %v2917_v60 = vcvt.f32.s32 %v2911_v27 }
0x2e3d   :  { %v2954_v26 = vsel %vm2953_vm5, %v2949_v44, inf  ;;  %v2913_v13 = vsel %vm2912_vm4, %v2908_v33, inf  ;;  %vm6636_vm4 = vcmp.eq.s32.totalorder %v4959_v21, 0  ;;  %vm6637_vm5 = vcmask 392192  }
0x2e3e   :  { %2955 = vmin.xlane.f32.xlu1 %v2954_v26  ;;  %2914 = vmin.xlane.f32.xlu2 %v2913_v13  ;;  %v2959_v41 = vshll.u32 %v2958_v57, 16  ;;  %v2918_v3 = vshll.u32 %v2917_v60, 16 }
0x2e56   :  { %3082 = vrot.lane.b32.xlu2 %v3059_v56, %s4769_s10 }
0x2eb1   :  { %v2915_v1 = vpop.xlane.xlu2 %2914  ;;  %v2956_v25 = vpop.xlane.xlu1 %2955 }
0x2eb2   :  { %v2916_v8 = vcvt.f32.s32 %v2915_v1  ;;  %v2957_v7 = vcvt.f32.s32 %v2956_v25 }
0x2eb4   :  { %v2960_v62 = vadd.s32 %v2959_v41, %v2957_v7  ;;  %v2919_v28 = vadd.s32 %v2918_v3, %v2916_v8 }
0x2eb6   :  { %v2982_v55 = vrot.slane %v2960_v62, 1 }
0x2eb8   :  { %v2983_v12 = vsel %vm1946_vm9, %v2919_v28, %v2982_v55 }
0x2eb9   :  { %3000 = vperm.xlu1 %4392, %v2983_v12   ;;  %2988 = vst.msk [vmem:[%s6589_s18 + $0x2] sm:$0x1] %vm2183_vm0, %v2983_v12  ;;  %2991 = vperm.xlu0 %4391, %v2983_v12   ;;  %v3083_v25 = vpop.permute.xlu2 %3082 }
0x2ec1   :  { %4393 = vset.pattern.permute.xlu1 %v4773_v47  ;;  %4395 = vset.pattern.permute.xlu0 %v4771_v10 }
0x2f2b   :  { %v3001_v6 = vpop.permute.xlu1 %3000  ;;  %v2992_v51 = vpop.permute.xlu0 %2991 }
0x2f2c   :  { %vm3002_vm1 = vcmp.eq.s32.totalorder %v4961_v22, %v3001_v6  ;;  %vm2993_vm11 = vcmp.eq.s32.totalorder %v4961_v22, %v2992_v51 }
0x2f2d   :  { %v4323_v43 = vsel %vm3002_vm1, 1.0, %v4768_v31  ;;  %v4322_v53 = vsel %vm2993_vm11, 1.0, %v4768_v31 }
0x2f2e   :  { %v3005_v30 = vperm.slane %v4323_v43, 0  ;;  %v2996_v37 = vperm.slane %v4322_v53, 0 }
0x2f30   :  { %v3006_v27 = vsel %vm238_vm3, %v3005_v30, 0.0  ;;  %v2997_v44 = vsel %vm6636_vm4, %v2996_v37, 0.0 }
0x2f31   :  { %v3007_v33 = vadd.f32 %v3006_v27, %v2997_v44 }
0x2f33   :  { %4324 = vmatmul.msk.f32.vlgmr.msra.gmra.mxu2 %vm6637_vm5, %v3007_v33 }
0x2f34   :  { %3660 = vmatpush.msra.mxu2 %v6023_v34 }
0x2f36   :  { %3661 = vmatpush.msra.mxu2 %v6028_v40 }
0x2f38   :  { %3662 = vmatpush.msra.mxu2 %v6034_v14 }
0x2f3a   :  { %3663 = vmatpush.msra.mxu2 %v6041_v45 }
0x2f3c   :  { %3664 = vmatpush.msra.mxu2 %v6047_v38 }
0x2f3e   :  { %3665 = vmatpush.msra.mxu2 %v6053_v49 }
0x2f40   :  { %3666 = vmatpush.msra.mxu2 %v6058_v16 }
0x2f42   :  { %3667 = vmatpush.msra.mxu2 %v6064_v9 }
0x2fb6   :  { %v3028_v26 = vpop.f32.mrf.mxu2 }
0x2fb7   :  { %v3029_v13 = vadd.f32 %v5950_v50, %v3028_v26 }
0x2fb9   :  { %v3061_v46 = vadd.f32 %v3059_v56, %v3029_v13 }
0x2fbb   :  { %v4326_v0 = vmul.f32 -1.442695, %v3061_v46 }
0x2fbd   :  { %4576 = vpow2.f32 %v4326_v0 }
0x2fc3   :  { %v4577_v34 = vpop.eup %4576 }
0x2fc4   :  { %v3065_v40 = vadd.f32 1.0, %v4577_v34 }
0x2fc6   :  { %4578 = vrcp.f32 %v3065_v40  ;;  %v3077_v60 = vand.u32 2147483648, %v3065_v40  ;;  %v3075_v49 = vand.u32 2147483647, %v3065_v40  ;;  %vm3071_vm11 = vweird.f32 %v3065_v40 }
0x2fc8   :  { %v3078_v16 = vor.u32 1.1754944e-38, %v3077_v60  ;;  %vm3076_vm5 = vcmp.eq.f32.partialorder %v3075_v49, 8.507059e+37 }
0x2fcc   :  { %v4579_v14 = vpop.eup %4578 }
0x2fcd   :  { %v3067_v57 = vmul.f32 %v4579_v14, %v3065_v40  ;;  %vm3072_vm1 = vweird.f32 %v4579_v14 }
0x2fce   :  { %vm3073_vm4 = vmor %vm3071_vm11, %vm3072_vm1  ;;  %vm6638_vm1 = vcmask 58368  }
0x2fcf   :  { %v3068_v45 = vsub.f32 1.0, %v3067_v57  ;;  %vm6639_vm11 = vmmov %vm6638_vm1 }
0x2fd1   :  { %v3069_v38 = vmul.f32 %v4579_v14, %v3068_v45 }
0x2fd3   :  { %v3070_v1 = vadd.f32 %v4579_v14, %v3069_v38 }
0x2fd5   :  { %v3074_v9 = vsel %vm3073_vm4, %v4579_v14, %v3070_v1  ;;  %vm6640_vm4 = vcmask 261120  }
0x2fd6   :  { %v3079_v56 = vsel %vm3076_vm5, %v3078_v16, %v3074_v9  ;;  %vm6641_vm5 = vmmov %vm6640_vm4 }
0x2fd7   :  { %v3085_v41 = vmul.f32 %v3083_v25, %v3079_v56  ;;  %v3092_v62 = vsub.f32 1.0, %v3079_v56  ;;  %v3098_v55 = vmul.f32 %v3079_v56, %v5956_v2 }
0x2fd9   :  { %3087 = vrot.lane.b32.xlu1 %v3085_v41, %s4769_s10 }
0x304b   :  { %v3088_v8 = vpop.permute.xlu1 %3087 }
0x304c   :  { %v3090_v7 = vadd.f32 %v3088_v8, %v3029_v13 }
0x304e   :  { %4580 = vtanh.f32 %v3090_v7 }
0x3054   :  { %v4581_v3 = vpop.eup %4580 }
0x3055   :  { %3094 = vrot.lane.b32.xlu2 %v4581_v3, %s4770_s23 }
0x30af   :  { %v3095_v28 = vpop.permute.xlu2 %3094 }
0x30b0   :  { %v3097_v12 = vmul.f32 %v3095_v28, %v3092_v62 }
0x30b2   :  { %v6131_v6 = vadd.f32 %v3098_v55, %v3097_v12 }
0x30b4   :  { %v3116_v51 = vmul.f32 %v6131_v6, %v5651_v61  ;;  %v3108_v43 = vmul.f32 %v6131_v6, %v5655_v19  ;;  %v3100_v53 = vmul.f32 %v6131_v6, %v5692_v17  ;;  %v3140_v2 = vmul.f32 %v6131_v6, %v5670_v18 }
0x30b5   :  { %v3132_v30 = vmul.f32 %v6131_v6, %v5674_v58  ;;  %v3124_v37 = vmul.f32 %v6131_v6, %v5647_v54  ;;  %v3156_v27 = vmul.f32 %v6131_v6, %v5684_v42  ;;  %v3148_v44 = vmul.f32 %v6131_v6, %v5699_v20 }
0x30b6   :  { %3118 = vrot.lane.b32.xlu0 %v3116_v51, %s4770_s23  ;;  %3110 = vrot.lane.b32.xlu2 %v3108_v43, %s4770_s23 }
0x30b7   :  { %3102 = vrot.lane.b32.xlu1 %v3100_v53, %s4770_s23 }
0x30be   :  { %3142 = vrot.lane.b32.xlu0 %v3140_v2, %s4770_s23  ;;  %3134 = vrot.lane.b32.xlu2 %v3132_v30, %s4770_s23 }
0x30bf   :  { %3126 = vrot.lane.b32.xlu1 %v3124_v37, %s4770_s23 }
0x30c6   :  { %3158 = vrot.lane.b32.xlu2 %v3156_v27, %s4770_s23 }
0x30c7   :  { %3150 = vrot.lane.b32.xlu1 %v3148_v44, %s4770_s23 }
0x3110   :  { %v3111_v33 = vpop.permute.xlu2 %3110 }
0x3111   :  { %v3113_v26 = vsel %vm1886_vm8, %v3111_v33, 0.0 }
0x3112   :  { %3114 = vadd.xlane.f32.xlu1 %v3113_v26 }
0x3118   :  { %v3135_v13 = vpop.permute.xlu2 %3134 }
0x3119   :  { %v3137_v46 = vsel %vm1886_vm8, %v3135_v13, 0.0 }
0x311a   :  { %3138 = vadd.xlane.f32.xlu1 %v3137_v46 }
0x3120   :  { %v3159_v0 = vpop.permute.xlu2 %3158 }
0x3121   :  { %v3161_v34 = vsel %vm1886_vm8, %v3159_v0, 0.0 }
0x3122   :  { %3162 = vadd.xlane.f32.xlu1 %v3161_v34 }
0x3128   :  { %v3119_v40 = vpop.permute.xlu0 %3118 }
0x3129   :  { %v3121_v14 = vsel %vm1886_vm8, %v3119_v40, 0.0  ;;  %v3103_v57 = vpop.permute.xlu1 %3102 }
0x312a   :  { %v3105_v45 = vsel %vm1886_vm8, %v3103_v57, 0.0  ;;  %3122 = vadd.xlane.f32.xlu2 %v3121_v14 }
0x312b   :  { %3106 = vadd.xlane.f32.xlu0 %v3105_v45 }
0x3130   :  { %v3143_v60 = vpop.permute.xlu0 %3142 }
0x3131   :  { %v3145_v38 = vsel %vm1886_vm8, %v3143_v60, 0.0  ;;  %v3127_v49 = vpop.permute.xlu1 %3126 }
0x3132   :  { %v3129_v1 = vsel %vm1886_vm8, %v3127_v49, 0.0  ;;  %3146 = vadd.xlane.f32.xlu2 %v3145_v38 }
0x3133   :  { %3130 = vadd.xlane.f32.xlu0 %v3129_v1 }
0x3139   :  { %v3151_v16 = vpop.permute.xlu1 %3150 }
0x313a   :  { %v3153_v9 = vsel %vm1886_vm8, %v3151_v16, 0.0 }
0x313b   :  { %3154 = vadd.xlane.f32.xlu0 %v3153_v9 }
0x3185   :  { %v3115_v25 = vpop.xlane.xlu1 %3114 }
0x318d   :  { %v3139_v7 = vpop.xlane.xlu1 %3138 }
0x3195   :  { %v3163_v53 = vpop.xlane.xlu1 %3162 }
0x319d   :  { %v3123_v41 = vpop.xlane.xlu2 %3122 }
0x319e   :  { %v3107_v56 = vpop.xlane.xlu0 %3106 }
0x319f   :  { %v3164_v8 = vsel %vm1946_vm9, %v3107_v56, %v3115_v25 }
0x31a0   :  { %v3165_v62 = vsel %vm1948_vm10, %v3164_v8, %v3123_v41 }
0x31a5   :  { %v3147_v12 = vpop.xlane.xlu2 %3146 }
0x31a6   :  { %v3131_v3 = vpop.xlane.xlu0 %3130 }
0x31a7   :  { %v3166_v28 = vsel %vm1950_vm12, %v3165_v62, %v3131_v3 }
0x31a8   :  { %v3167_v55 = vsel %vm1952_vm13, %v3166_v28, %v3139_v7 }
0x31a9   :  { %v3168_v43 = vsel %vm6602_vm14, %v3167_v55, %v3147_v12 }
0x31ae   :  { %v3155_v51 = vpop.xlane.xlu0 %3154 }
0x31af   :  { %v3169_v2 = vsel %vm6601_vm15, %v3168_v43, %v3155_v51 }
0x31b0   :  { %v3170_v30 = vsel %vm6600_vm2, %v3169_v2, %v3163_v53 }
0x31b1   :  { %v3171_v37 = vsel %vm6638_vm1, %v3170_v30, -inf  ;;  %vm6642_vm1 = vcmask 523264  }
0x31b2   :  { %3172 = vmax.xlane.f32.xlu2 %v3171_v37  ;;  %v4437_v37 = vld [vmem:[%s6586_s15] ss:$0 sm:$0xff] }
0x3225   :  { %v3173_v27 = vpop.xlane.xlu2 %3172 }
0x3226   :  { %v3174_v44 = vsub.f32 %v3170_v30, %v3173_v27 }
0x3228   :  { %v3175_v33 = vmul.f32 1.442695, %v3174_v44 }
0x322a   :  { %4582 = vpow2.f32 %v3175_v33 }
0x3230   :  { %v4583_v26 = vpop.eup %4582 }
0x3231   :  { %v3177_v13 = vsel %vm6639_vm11, %v4583_v26, 0.0  ;;  %vm6643_vm11 = vmmov %vm6640_vm4 }
0x3232   :  { %3178 = vadd.xlane.f32.xlu0 %v3177_v13 }
0x32a5   :  { %v3179_v46 = vpop.xlane.xlu0 %3178 }
0x32a6   :  { %4584 = vrcp.f32 %v3179_v46 }
0x32ac   :  { %v4585_v0 = vpop.eup %4584 }
0x32ad   :  { %v3181_v34 = vmul.f32 %v4585_v0, %v4583_v26  ;;  %v4438_v26 = vld [vmem:[%s6588_s17] ss:$0 sm:$0xff] }
0x32af   :  { %3195 = vperm.xlu0 %4395, %v3181_v34   ;;  %3189 = vperm.xlu2 %4394, %v3181_v34  }
0x32b0   :  { %3184 = vperm.xlu1 %4393, %v3181_v34  }
0x32b7   :  { %4397 = vset.pattern.permute.xlu2 %v4774_v23  ;;  %4401 = vset.pattern.permute.xlu0 %v4773_v47 }
0x32b8   :  { %4396 = vset.pattern.permute.xlu1 %v4775_v11  ;;  %3207 = vperm.xlu2 %4397, %v3181_v34  }
0x32b9   :  { %3201 = vperm.xlu1 %4396, %v3181_v34  }
0x32c0   :  { %4399 = vset.pattern.permute.xlu2 %v4776_v29 }
0x32c1   :  { %4398 = vset.pattern.permute.xlu1 %v4777_v48  ;;  %3219 = vperm.xlu2 %4399, %v3181_v34  }
0x32c2   :  { %3213 = vperm.xlu1 %4398, %v3181_v34  }
0x32c9   :  { %3231 = vrot.lane.b32.xlu2 %v6131_v6, %s4770_s23 }
0x32ca   :  { %4400 = vset.pattern.permute.xlu1 %v4778_v32  ;;  %4403 = vset.pattern.permute.xlu2 %v4773_v47 }
0x32cb   :  { %3225 = vperm.xlu1 %4400, %v3181_v34  }
0x32d3   :  { %4402 = vset.pattern.permute.xlu1 %v4772_v24 }
0x3309   :  { %v3190_v40 = vpop.permute.xlu2 %3189 }
0x330a   :  { %v3192_v1 = vmul.f32 %v3190_v40, %v5655_v19 }
0x3312   :  { %v3208_v14 = vpop.permute.xlu2 %3207 }
0x3313   :  { %v3210_v3 = vmul.f32 %v3208_v14, %v5674_v58 }
0x331b   :  { %v3220_v57 = vpop.permute.xlu2 %3219 }
0x331c   :  { %v3222_v12 = vmul.f32 %v3220_v57, %v5699_v20 }
0x3321   :  { %v3196_v16 = vpop.permute.xlu0 %3195 }
0x3322   :  { %v3185_v45 = vpop.permute.xlu1 %3184  ;;  %v3198_v25 = vmul.f32 %v3196_v16, %v5651_v61 }
0x3323   :  { %v3232_v60 = vpop.permute.xlu2 %3231  ;;  %v3187_v38 = vmul.f32 %v3185_v45, %v5692_v17 }
0x3324   :  { %4332 = vmatmul.msk.f32.vlgmr.msrb.gmra.mxu0 %vm6640_vm4, %v3232_v60 }
0x3325   :  { %v3193_v9 = vadd.f32 %v3192_v1, %v3187_v38 }
0x3327   :  { %v3199_v41 = vadd.f32 %v3198_v25, %v3193_v9 }
0x332b   :  { %v3202_v49 = vpop.permute.xlu1 %3201 }
0x332c   :  { %v3204_v56 = vmul.f32 %v3202_v49, %v5647_v54 }
0x332e   :  { %v3205_v8 = vadd.f32 %v3204_v56, %v3199_v41 }
0x3330   :  { %v3211_v28 = vadd.f32 %v3210_v3, %v3205_v8 }
0x3334   :  { %v3214_v7 = vpop.permute.xlu1 %3213 }
0x3335   :  { %v3216_v62 = vmul.f32 %v3214_v7, %v5670_v18 }
0x3337   :  { %v3217_v55 = vadd.f32 %v3216_v62, %v3211_v28 }
0x3339   :  { %v3223_v43 = vadd.f32 %v3222_v12, %v3217_v55  ;;  %v4436_v55 = vld [vmem:[%s6584_s13] ss:$0 sm:$0xff] }
0x333d   :  { %v3226_v51 = vpop.permute.xlu1 %3225 }
0x333e   :  { %v3228_v53 = vmul.f32 %v3226_v51, %v5684_v42 }
0x3340   :  { %v3229_v2 = vadd.f32 %v3228_v53, %v3223_v43 }
0x3342   :  { %v3234_v30 = vsel %vm6641_vm5, %v3232_v60, %v3229_v2 }
0x3343   :  { %4327 = vmatmul.msk.f32.vlgmr.msrb.gmra.mxu1 %vm6642_vm1, %v3234_v30 }
0x33a1   :  { %v3460_v12 = vpop.f32.mrf.mxu0 }
0x33a2   :  { %v3461_v51 = vadd.f32 %v4436_v55, %v3460_v12 }
0x33c0   :  { %v3267_v27 = vpop.f32.mrf.mxu1 }
0x33c1   :  { %v3268_v44 = vadd.f32 %v4437_v37, %v3267_v27 }
0x33c3   :  { %4586 = vtanh.f32 %v3268_v44 }
0x33c9   :  { %v4587_v33 = vpop.eup %4586 }
0x33ca   :  { %4328 = vmatmul.msk.f32.vlgmr.msrb.gmra.mxu2 %vm6643_vm11, %v4587_v33 }
0x344d   :  { %v3299_v13 = vpop.f32.mrf.mxu2 }
0x344e   :  { %v6202_v46 = vadd.f32 %v4438_v26, %v3299_v13 }
0x3450   :  { %v3343_v0 = vsel %vm6603_vm6, %v6202_v46, -inf  ;;  %v3302_v34 = vsel %vm6604_vm7, %v6202_v46, -inf }
0x3451   :  { %3344 = vmax.xlane.f32.xlu0 %v3343_v0  ;;  %3303 = vmax.xlane.f32.xlu1 %v3302_v34 }
0x34c4   :  { %v6208_v40 = vpop.xlane.xlu0 %3344  ;;  %v6210_v14 = vpop.xlane.xlu1 %3303 }
0x34c5   :  { %vm3346_vm4 = vcmp.eq.f32.partialorder %v6202_v46, %v6208_v40  ;;  %vm3305_vm5 = vcmp.eq.f32.partialorder %v6202_v46, %v6210_v14 }
0x34c6   :  { %v3347_v57 = vsel %vm3346_vm4, %v4961_v22, 48  ;;  %v3306_v45 = vsel %vm3305_vm5, %v4961_v22, 48 }
0x34c7   :  { %v3348_v60 = vsel %vm6603_vm6, %v3347_v57, 2147483647  ;;  %v3307_v38 = vsel %vm6604_vm7, %v3306_v45, 2147483647 }
0x34c8   :  { %v3350_v49 = vshra.s32 %v3348_v60, 16  ;;  %v3309_v1 = vshra.s32 %v3307_v38, 16  ;;  %v3349_v25 = vand.u32 65535, %v3348_v60  ;;  %v3308_v56 = vand.u32 65535, %v3307_v38 }
0x34ca   :  { %v3352_v16 = vcvt.s32.f32 %v3350_v49  ;;  %v3311_v9 = vcvt.s32.f32 %v3309_v1  ;;  %v3351_v7 = vcvt.s32.f32 %v3349_v25  ;;  %v3310_v3 = vcvt.s32.f32 %v3308_v56 }
0x34cc   :  { %3353 = vmin.xlane.f32.xlu2 %v3352_v16  ;;  %3312 = vmin.xlane.f32.xlu0 %v3311_v9 }
0x353f   :  { %v3354_v41 = vpop.xlane.xlu2 %3353  ;;  %v3313_v8 = vpop.xlane.xlu0 %3312 }
0x3540   :  { %vm3355_vm1 = vcmp.eq.f32.partialorder %v3352_v16, %v3354_v41  ;;  %vm3314_vm11 = vcmp.eq.f32.partialorder %v3311_v9, %v3313_v8  ;;  %v3360_v43 = vcvt.f32.s32 %v3354_v41  ;;  %v3319_v53 = vcvt.f32.s32 %v3313_v8 }
0x3541   :  { %v3356_v62 = vsel %vm3355_vm1, %v3351_v7, inf  ;;  %v3315_v28 = vsel %vm3314_vm11, %v3310_v3, inf  ;;  %vm6644_vm1 = vcmp.eq.s32.totalorder %v4959_v21, 0  ;;  %vm6645_vm11 = vcmask 392192  }
0x3542   :  { %3357 = vmin.xlane.f32.xlu1 %v3356_v62  ;;  %3316 = vmin.xlane.f32.xlu2 %v3315_v28  ;;  %v3361_v37 = vshll.u32 %v3360_v43, 16  ;;  %v3320_v33 = vshll.u32 %v3319_v53, 16 }
0x355a   :  { %3484 = vrot.lane.b32.xlu2 %v3461_v51, %s4769_s10 }
0x35b5   :  { %v3317_v2 = vpop.xlane.xlu2 %3316  ;;  %v3358_v30 = vpop.xlane.xlu1 %3357 }
0x35b6   :  { %v3318_v27 = vcvt.f32.s32 %v3317_v2  ;;  %v3359_v44 = vcvt.f32.s32 %v3358_v30 }
0x35b8   :  { %v3362_v26 = vadd.s32 %v3361_v37, %v3359_v44  ;;  %v3321_v13 = vadd.s32 %v3320_v33, %v3318_v27 }
0x35ba   :  { %v3384_v0 = vrot.slane %v3362_v26, 1 }
0x35bc   :  { %v3385_v34 = vsel %vm1946_vm9, %v3321_v13, %v3384_v0 }
0x35bd   :  { %3402 = vperm.xlu1 %4402, %v3385_v34   ;;  %3390 = vst.msk [vmem:[%s6589_s18 + $0x3] sm:$0x1] %vm2183_vm0, %v3385_v34  ;;  %3393 = vperm.xlu0 %4401, %v3385_v34  }
0x35c5   :  { %4404 = vset.pattern.permute.xlu0 %v4771_v10 }
0x362f   :  { %v3403_v57 = vpop.permute.xlu1 %3402  ;;  %v3394_v45 = vpop.permute.xlu0 %3393 }
0x3630   :  { %vm3404_vm4 = vcmp.eq.s32.totalorder %v4961_v22, %v3403_v57  ;;  %vm3395_vm5 = vcmp.eq.s32.totalorder %v4961_v22, %v3394_v45 }
0x3631   :  { %v4330_v60 = vsel %vm3404_vm4, 1.0, %v4768_v31  ;;  %v4329_v38 = vsel %vm3395_vm5, 1.0, %v4768_v31 }
0x3632   :  { %v3407_v49 = vperm.slane %v4330_v60, 0  ;;  %v3398_v1 = vperm.slane %v4329_v38, 0 }
0x3634   :  { %v3408_v16 = vsel %vm238_vm3, %v3407_v49, 0.0  ;;  %v3399_v9 = vsel %vm6644_vm1, %v3398_v1, 0.0 }
0x3635   :  { %v3409_v25 = vadd.f32 %v3408_v16, %v3399_v9 }
0x3637   :  { %4331 = vmatmul.msk.f32.vlgmr.msrb.gmra.mxu3 %vm6645_vm11, %v3409_v25 }
0x36ba   :  { %v3430_v56 = vpop.f32.mrf.mxu3 }
0x36bb   :  { %v3431_v41 = vadd.f32 %v5950_v50, %v3430_v56  ;;  %v3485_v50 = vpop.permute.xlu2 %3484 }
0x36bd   :  { %v3463_v8 = vadd.f32 %v3461_v51, %v3431_v41 }
0x36bf   :  { %v4333_v7 = vmul.f32 -1.442695, %v3463_v8 }
0x36c1   :  { %4588 = vpow2.f32 %v4333_v7 }
0x36c7   :  { %v4589_v3 = vpop.eup %4588 }
0x36c8   :  { %v3467_v62 = vadd.f32 1.0, %v4589_v3 }
0x36ca   :  { %4590 = vrcp.f32 %v3467_v62  ;;  %v3479_v43 = vand.u32 2147483648, %v3467_v62  ;;  %v3477_v2 = vand.u32 2147483647, %v3467_v62  ;;  %vm3473_vm5 = vweird.f32 %v3467_v62 }
0x36cc   :  { %v3480_v37 = vor.u32 1.1754944e-38, %v3479_v43  ;;  %vm3478_vm11 = vcmp.eq.f32.partialorder %v3477_v2, 8.507059e+37 }
0x36d0   :  { %v4591_v28 = vpop.eup %4590 }
0x36d1   :  { %v3469_v55 = vmul.f32 %v4591_v28, %v3467_v62  ;;  %vm3474_vm4 = vweird.f32 %v4591_v28 }
0x36d2   :  { %vm3475_vm1 = vmor %vm3473_vm5, %vm3474_vm4  ;;  %vm6646_vm4 = vcmask 58368  }
0x36d3   :  { %v3470_v12 = vsub.f32 1.0, %v3469_v55  ;;  %vm6647_vm5 = vmmov %vm6646_vm4 }
0x36d5   :  { %v3471_v53 = vmul.f32 %v4591_v28, %v3470_v12 }
0x36d7   :  { %v3472_v30 = vadd.f32 %v4591_v28, %v3471_v53 }
0x36d9   :  { %v3476_v27 = vsel %vm3475_vm1, %v4591_v28, %v3472_v30  ;;  %vm6648_vm1 = vcmask 261120  }
0x36da   :  { %v3481_v51 = vsel %vm3478_vm11, %v3480_v37, %v3476_v27  ;;  %vm6649_vm11 = vmmov %vm6648_vm1 }
0x36db   :  { %v3487_v44 = vmul.f32 %v3485_v50, %v3481_v51  ;;  %v3494_v0 = vsub.f32 1.0, %v3481_v51  ;;  %v3500_v57 = vmul.f32 %v3481_v51, %v6131_v6 }
0x36dd   :  { %3489 = vrot.lane.b32.xlu1 %v3487_v44, %s4769_s10 }
0x374f   :  { %v3490_v33 = vpop.permute.xlu1 %3489 }
0x3750   :  { %v3492_v26 = vadd.f32 %v3490_v33, %v3431_v41 }
0x3752   :  { %4592 = vtanh.f32 %v3492_v26 }
0x3758   :  { %v4593_v13 = vpop.eup %4592 }
0x3759   :  { %3496 = vrot.lane.b32.xlu2 %v4593_v13, %s4770_s23 }
0x37b3   :  { %v3497_v34 = vpop.permute.xlu2 %3496 }
0x37b4   :  { %v3499_v45 = vmul.f32 %v3497_v34, %v3494_v0 }
0x37b6   :  { %v6243_v60 = vadd.f32 %v3500_v57, %v3499_v45 }
0x37b8   :  { %v3518_v38 = vmul.f32 %v6243_v60, %v5651_v61  ;;  %v3510_v49 = vmul.f32 %v6243_v60, %v5655_v19  ;;  %v3502_v1 = vmul.f32 %v6243_v60, %v5692_v17  ;;  %v3542_v6 = vmul.f32 %v6243_v60, %v5670_v18 }
0x37b9   :  { %v3534_v16 = vmul.f32 %v6243_v60, %v5674_v58  ;;  %v3526_v9 = vmul.f32 %v6243_v60, %v5647_v54  ;;  %v3558_v25 = vmul.f32 %v6243_v60, %v5684_v42  ;;  %v3550_v56 = vmul.f32 %v6243_v60, %v5699_v20 }
0x37ba   :  { %3520 = vrot.lane.b32.xlu0 %v3518_v38, %s4770_s23  ;;  %3512 = vrot.lane.b32.xlu2 %v3510_v49, %s4770_s23 }
0x37bb   :  { %3504 = vrot.lane.b32.xlu1 %v3502_v1, %s4770_s23 }
0x37c2   :  { %3544 = vrot.lane.b32.xlu0 %v3542_v6, %s4770_s23  ;;  %3536 = vrot.lane.b32.xlu2 %v3534_v16, %s4770_s23 }
0x37c3   :  { %3528 = vrot.lane.b32.xlu1 %v3526_v9, %s4770_s23 }
0x37ca   :  { %3560 = vrot.lane.b32.xlu2 %v3558_v25, %s4770_s23 }
0x37cb   :  { %3552 = vrot.lane.b32.xlu1 %v3550_v56, %s4770_s23 }
0x3814   :  { %v3513_v41 = vpop.permute.xlu2 %3512 }
0x3815   :  { %v3515_v8 = vsel %vm1886_vm8, %v3513_v41, 0.0 }
0x3816   :  { %3516 = vadd.xlane.f32.xlu1 %v3515_v8 }
0x381c   :  { %v3537_v55 = vpop.permute.xlu2 %3536 }
0x381d   :  { %v3539_v43 = vsel %vm1886_vm8, %v3537_v55, 0.0 }
0x3824   :  { %v3561_v37 = vpop.permute.xlu2 %3560 }
0x3825   :  { %v3563_v27 = vsel %vm1886_vm8, %v3561_v37, 0.0  ;;  %v3835_v37 = vld [vmem:[#allocation6] sm:$0xff] }
0x382c   :  { %v3521_v7 = vpop.permute.xlu0 %3520 }
0x382d   :  { %v3523_v3 = vsel %vm1886_vm8, %v3521_v7, 0.0  ;;  %v3505_v62 = vpop.permute.xlu1 %3504 }
0x382e   :  { %v3507_v28 = vsel %vm1886_vm8, %v3505_v62, 0.0  ;;  %3524 = vadd.xlane.f32.xlu2 %v3523_v3 }
0x382f   :  { %3508 = vadd.xlane.f32.xlu0 %v3507_v28 }
0x3834   :  { %v3545_v12 = vpop.permute.xlu0 %3544 }
0x3835   :  { %v3547_v53 = vsel %vm1886_vm8, %v3545_v12, 0.0  ;;  %v3529_v2 = vpop.permute.xlu1 %3528 }
0x3836   :  { %v3531_v30 = vsel %vm1886_vm8, %v3529_v2, 0.0  ;;  %3540 = vadd.xlane.f32.xlu2 %v3539_v43  ;;  %3548 = vadd.xlane.f32.xlu1 %v3547_v53  ;;  %v3838_v43 = vld [vmem:[#allocation6 + $0x18] sm:$0xff]  ;;  %v3837_v2 = vld [vmem:[#allocation6 + $0x10] sm:$0xff] }
0x3837   :  { %3532 = vadd.xlane.f32.xlu0 %v3531_v30  ;;  %3857 = vmatpush.msra.mxu3 %v3838_v43  ;;  %v3836_v30 = vld [vmem:[#allocation6 + $0x8] sm:$0xff]  ;;  %v4440_v43 = vld [vmem:[%s6586_s15] ss:$0 sm:$0xff] }
0x3839   :  { %3858 = vmatpush.msra.mxu3 %v3837_v2 }
0x383b   :  { %3859 = vmatpush.msra.mxu3 %v3836_v30 }
0x383d   :  { %v3553_v50 = vpop.permute.xlu1 %3552  ;;  %3860 = vmatpush.msra.mxu3 %v3835_v37  ;;  %v4441_v37 = vld [vmem:[%s6588_s17] ss:$0 sm:$0xff] }
0x383e   :  { %v3555_v51 = vsel %vm1886_vm8, %v3553_v50, 0.0  ;;  %3564 = vadd.xlane.f32.xlu2 %v3563_v27 }
0x383f   :  { %3556 = vadd.xlane.f32.xlu0 %v3555_v51 }
0x3889   :  { %v3517_v26 = vpop.xlane.xlu1 %3516 }
0x38a1   :  { %v3525_v44 = vpop.xlane.xlu2 %3524 }
0x38a2   :  { %v3509_v33 = vpop.xlane.xlu0 %3508 }
0x38a3   :  { %v3566_v13 = vsel %vm1946_vm9, %v3509_v33, %v3517_v26 }
0x38a4   :  { %v3567_v57 = vsel %vm1948_vm10, %v3566_v13, %v3525_v44 }
0x38a9   :  { %v3541_v0 = vpop.xlane.xlu2 %3540  ;;  %v3549_v49 = vpop.xlane.xlu1 %3548 }
0x38aa   :  { %v3533_v34 = vpop.xlane.xlu0 %3532 }
0x38ab   :  { %v3568_v45 = vsel %vm1950_vm12, %v3567_v57, %v3533_v34 }
0x38ac   :  { %v3569_v38 = vsel %vm1952_vm13, %v3568_v45, %v3541_v0 }
0x38ad   :  { %v3570_v6 = vsel %vm6602_vm14, %v3569_v38, %v3549_v49 }
0x38b1   :  { %v3565_v1 = vpop.xlane.xlu2 %3564 }
0x38b2   :  { %v3557_v16 = vpop.xlane.xlu0 %3556 }
0x38b3   :  { %v3571_v9 = vsel %vm6601_vm15, %v3570_v6, %v3557_v16 }
0x38b4   :  { %v3572_v25 = vsel %vm6600_vm2, %v3571_v9, %v3565_v1 }
0x38b5   :  { %v3573_v56 = vsel %vm6646_vm4, %v3572_v25, -inf  ;;  %vm6650_vm4 = vcmask 523264  }
0x38b6   :  { %3574 = vmax.xlane.f32.xlu1 %v3573_v56 }
0x3929   :  { %v3575_v41 = vpop.xlane.xlu1 %3574 }
0x392a   :  { %v3576_v8 = vsub.f32 %v3572_v25, %v3575_v41 }
0x392c   :  { %v3577_v7 = vmul.f32 1.442695, %v3576_v8 }
0x392e   :  { %4594 = vpow2.f32 %v3577_v7 }
0x3934   :  { %v4595_v3 = vpop.eup %4594 }
0x3935   :  { %v3579_v62 = vsel %vm6647_vm5, %v4595_v3, 0.0  ;;  %vm6651_vm5 = vmmov %vm6648_vm1 }
0x3936   :  { %3580 = vadd.xlane.f32.xlu0 %v3579_v62  ;;  %v3676_v62 = vld [vmem:[#allocation8 + $0x18] sm:$0xff] }
0x3937   :  { %3696 = vmatpush.msra.mxu0 %v3676_v62  ;;  %4098 = vmatpush.msrb.mxu3 %v3676_v62 }
0x39a9   :  { %v3581_v28 = vpop.xlane.xlu0 %3580 }
0x39aa   :  { %4596 = vrcp.f32 %v3581_v28  ;;  %v3675_v28 = vld [vmem:[#allocation8 + $0x10] sm:$0xff] }
0x39ab   :  { %3697 = vmatpush.msra.mxu0 %v3675_v28  ;;  %4099 = vmatpush.msrb.mxu3 %v3675_v28 }
0x39b0   :  { %v4597_v55 = vpop.eup %4596 }
0x39b1   :  { %v3583_v12 = vmul.f32 %v4597_v55, %v4595_v3  ;;  %v3674_v55 = vld [vmem:[#allocation8 + $0x8] sm:$0xff] }
0x39b2   :  { %3698 = vmatpush.msra.mxu0 %v3674_v55  ;;  %4100 = vmatpush.msrb.mxu3 %v3674_v55 }
0x39b3   :  { %3597 = vperm.xlu0 %4404, %v3583_v12   ;;  %3591 = vperm.xlu1 %4402, %v3583_v12  }
0x39b4   :  { %3586 = vperm.xlu2 %4403, %v3583_v12  }
0x39bb   :  { %4406 = vset.pattern.permute.xlu1 %v4774_v23  ;;  %4410 = vset.pattern.permute.xlu0 %v4773_v47 }
0x39bc   :  { %4405 = vset.pattern.permute.xlu2 %v4775_v11  ;;  %3609 = vperm.xlu1 %4406, %v3583_v12  }
0x39bd   :  { %3603 = vperm.xlu2 %4405, %v3583_v12  }
0x39c4   :  { %4408 = vset.pattern.permute.xlu1 %v4776_v29 }
0x39c5   :  { %4407 = vset.pattern.permute.xlu2 %v4777_v48  ;;  %3621 = vperm.xlu1 %4408, %v3583_v12  }
0x39c6   :  { %3615 = vperm.xlu2 %4407, %v3583_v12  }
0x39cd   :  { %3633 = vrot.lane.b32.xlu1 %v6243_v60, %s4770_s23 }
0x39ce   :  { %4409 = vset.pattern.permute.xlu2 %v4778_v32  ;;  %4414 = vset.pattern.permute.xlu1 %v4771_v10 }
0x39cf   :  { %3627 = vperm.xlu2 %4409, %v3583_v12   ;;  %v3673_v12 = vld [vmem:[#allocation8] sm:$0xff] }
0x39d0   :  { %3699 = vmatpush.msra.mxu0 %v3673_v12  ;;  %4101 = vmatpush.msrb.mxu3 %v3673_v12 }
0x39d7   :  { %4411 = vset.pattern.permute.xlu2 %v4772_v24 }
0x3a0e   :  { %v3587_v53 = vpop.permute.xlu2 %3586 }
0x3a0f   :  { %v3589_v44 = vmul.f32 %v3587_v53, %v5692_v17 }
0x3a17   :  { %v3604_v27 = vpop.permute.xlu2 %3603 }
0x3a18   :  { %v3606_v57 = vmul.f32 %v3604_v27, %v5647_v54 }
0x3a20   :  { %v3616_v34 = vpop.permute.xlu2 %3615 }
0x3a21   :  { %v3618_v1 = vmul.f32 %v3616_v34, %v5670_v18 }
0x3a25   :  { %v3592_v50 = vpop.permute.xlu1 %3591  ;;  %v3598_v33 = vpop.permute.xlu0 %3597 }
0x3a26   :  { %v3594_v51 = vmul.f32 %v3592_v50, %v5655_v19  ;;  %v3600_v26 = vmul.f32 %v3598_v33, %v5651_v61 }
0x3a28   :  { %v3595_v10 = vadd.f32 %v3594_v51, %v3589_v44 }
0x3a29   :  { %v3628_v25 = vpop.permute.xlu2 %3627 }
0x3a2a   :  { %v3601_v13 = vadd.f32 %v3600_v26, %v3595_v10  ;;  %v3630_v41 = vmul.f32 %v3628_v25, %v5684_v42 }
0x3a2c   :  { %v3607_v38 = vadd.f32 %v3606_v57, %v3601_v13 }
0x3a2e   :  { %v3610_v0 = vpop.permute.xlu1 %3609 }
0x3a2f   :  { %v3612_v45 = vmul.f32 %v3610_v0, %v5674_v58 }
0x3a31   :  { %v3613_v49 = vadd.f32 %v3612_v45, %v3607_v38 }
0x3a33   :  { %v3619_v16 = vadd.f32 %v3618_v1, %v3613_v49  ;;  %v2114_v1 = vsub.f32 %v5785_v15, %v5793_v36  ;;  %v2518_v36 = vsub.f32 %v5910_v63, %v5918_v5 }
0x3a37   :  { %v3622_v6 = vpop.permute.xlu1 %3621 }
0x3a38   :  { %v3624_v9 = vmul.f32 %v3622_v6, %v5699_v20 }
0x3a3a   :  { %v3625_v56 = vadd.f32 %v3624_v9, %v3619_v16  ;;  %v2115_v9 = vmul.f32 1.442695, %v2114_v1 }
0x3a3c   :  { %v3631_v8 = vadd.f32 %v3630_v41, %v3625_v56 }
0x3a3f   :  { %v3634_v7 = vpop.permute.xlu1 %3633 }
0x3a40   :  { %v3636_v3 = vsel %vm6648_vm1, %v3634_v7, %v3631_v8  ;;  %4339 = vmatmul.msk.f32.vlgmr.msra.gmra.mxu3 %vm6649_vm11, %v3634_v7  ;;  %v2156_v7 = vsub.f32 %v5785_v15, %v5791_v35  ;;  %v2920_v15 = vsub.f32 %v6081_v52, %v6089_v4 }
0x3a41   :  { %4334 = vmatmul.msk.f32.vlgmr.msra.gmra.mxu2 %vm6650_vm4, %v3636_v3 }
0x3a42   :  { %v2157_v28 = vmul.f32 1.442695, %v2156_v7 }
0x3ac4   :  { %v3669_v53 = vpop.f32.mrf.mxu2 }
0x3ac5   :  { %v3670_v2 = vadd.f32 %v4440_v43, %v3669_v53  ;;  %v2519_v43 = vmul.f32 1.442695, %v2518_v36 }
0x3ac7   :  { %4598 = vtanh.f32 %v3670_v2  ;;  %v2921_v2 = vmul.f32 1.442695, %v2920_v15 }
0x3ac8   :  { %4600 = vpow2.f32 %v2115_v9 }
0x3ac9   :  { %4602 = vpow2.f32 %v2157_v28 }
0x3aca   :  { %4604 = vpow2.f32 %v2519_v43 }
0x3acb   :  { %4606 = vpow2.f32 %v2921_v2 }
0x3acd   :  { %v4599_v30 = vpop.eup %4598 }
0x3ace   :  { %4335 = vmatmul.msk.f32.vlgmr.msra.gmra.mxu0 %vm6651_vm5, %v4599_v30  ;;  %v4601_v55 = vpop.eup %4600 }
0x3acf   :  { %v2117_v12 = vsel %vm6604_vm7, %v4601_v55, 0.0  ;;  %v4603_v53 = vpop.eup %4602 }
0x3ad0   :  { %v2159_v35 = vsel %vm6603_vm6, %v4603_v53, 0.0  ;;  %v4605_v30 = vpop.eup %4604 }
0x3ad1   :  { %v2521_v5 = vsel %vm6604_vm7, %v4605_v30, 0.0 }
0x3b4b   :  { %v3701_v27 = vpop.f32.mrf.mxu0 }
0x3b4c   :  { %v6314_v50 = vadd.f32 %v4441_v37, %v3701_v27  ;;  %v2961_v37 = vsub.f32 %v6081_v52, %v6087_v59 }
0x3b4e   :  { %v3745_v51 = vsel %vm6603_vm6, %v6314_v50, -inf  ;;  %v3704_v44 = vsel %vm6604_vm7, %v6314_v50, -inf  ;;  %v2962_v27 = vmul.f32 1.442695, %v2961_v37 }
0x3b4f   :  { %3746 = vmax.xlane.f32.xlu0 %v3745_v51  ;;  %3705 = vmax.xlane.f32.xlu2 %v3704_v44  ;;  %v4607_v51 = vpop.eup %4606  ;;  %v3363_v44 = vsub.f32 %v6202_v46, %v6208_v40 }
0x3b50   :  { %4608 = vpow2.f32 %v2962_v27  ;;  %v2923_v4 = vsel %vm6604_vm7, %v4607_v51, 0.0 }
0x3bc2   :  { %v6320_v33 = vpop.xlane.xlu0 %3746  ;;  %v3706_v10 = vpop.xlane.xlu2 %3705 }
0x3bc3   :  { %vm3748_vm1 = vcmp.eq.f32.partialorder %v6314_v50, %v6320_v33  ;;  %vm3707_vm11 = vcmp.eq.f32.partialorder %v6314_v50, %v3706_v10 }
0x3bc4   :  { %v3749_v26 = vsel %vm3748_vm1, %v4961_v22, 48  ;;  %v3708_v13 = vsel %vm3707_vm11, %v4961_v22, 48 }
0x3bc5   :  { %v3750_v0 = vsel %vm6603_vm6, %v3749_v26, 2147483647  ;;  %v3709_v34 = vsel %vm6604_vm7, %v3708_v13, 2147483647  ;;  %v3364_v26 = vmul.f32 1.442695, %v3363_v44  ;;  %v4609_v13 = vpop.eup %4608 }
0x3bc6   :  { %v3752_v57 = vshra.s32 %v3750_v0, 16  ;;  %v3711_v45 = vshra.s32 %v3709_v34, 16  ;;  %v3751_v6 = vand.u32 65535, %v3750_v0  ;;  %v3710_v16 = vand.u32 65535, %v3709_v34 }
0x3bc7   :  { %4610 = vpow2.f32 %v3364_v26  ;;  %v3724_v0 = vsub.f32 %v6314_v50, %v3706_v10  ;;  %v2964_v52 = vsel %vm6603_vm6, %v4609_v13, 0.0  ;;  %v2559_v26 = vsub.f32 %v5910_v63, %v5916_v39 }
0x3bc8   :  { %v3754_v38 = vcvt.s32.f32 %v3752_v57  ;;  %v3713_v49 = vcvt.s32.f32 %v3711_v45  ;;  %v3753_v41 = vcvt.s32.f32 %v3751_v6  ;;  %v3712_v8 = vcvt.s32.f32 %v3710_v16 }
0x3bc9   :  { %v3725_v59 = vmul.f32 1.442695, %v3724_v0  ;;  %v3765_v57 = vsub.f32 %v6314_v50, %v6320_v33  ;;  %v3322_v0 = vsub.f32 %v6202_v46, %v6210_v14 }
0x3bca   :  { %3755 = vmin.xlane.f32.xlu1 %v3754_v38  ;;  %3714 = vmin.xlane.f32.xlu0 %v3713_v49 }
0x3bcb   :  { %4612 = vpow2.f32 %v3725_v59  ;;  %v3766_v40 = vmul.f32 1.442695, %v3765_v57 }
0x3bcd   :  { %v4611_v34 = vpop.eup %4610  ;;  %4614 = vpow2.f32 %v3766_v40 }
0x3bce   :  { %v3366_v45 = vsel %vm6603_vm6, %v4611_v34, 0.0 }
0x3c3d   :  { %v3756_v25 = vpop.xlane.xlu1 %3755  ;;  %v3715_v56 = vpop.xlane.xlu0 %3714 }
0x3c3e   :  { %vm3757_vm4 = vcmp.eq.f32.partialorder %v3754_v38, %v3756_v25  ;;  %vm3716_vm5 = vcmp.eq.f32.partialorder %v3713_v49, %v3715_v56  ;;  %v4613_v38 = vpop.eup %4612  ;;  %v3762_v6 = vcvt.f32.s32 %v3756_v25  ;;  %v3721_v16 = vcvt.f32.s32 %v3715_v56 }
0x3c3f   :  { %v3758_v3 = vsel %vm3757_vm4, %v3753_v41, inf  ;;  %v3717_v62 = vsel %vm3716_vm5, %v3712_v8, inf  ;;  %v3727_v49 = vsel %vm6604_vm7, %v4613_v38, 0.0  ;;  %v4615_v1 = vpop.eup %4614  ;;  %v2560_v38 = vmul.f32 1.442695, %v2559_v26 }
0x3c40   :  { %3759 = vmin.xlane.f32.xlu2 %v3758_v3  ;;  %3718 = vmin.xlane.f32.xlu1 %v3717_v62  ;;  %v3768_v10 = vsel %vm6603_vm6, %v4615_v1, 0.0  ;;  %v3763_v8 = vshll.u32 %v3762_v6, 16  ;;  %v3722_v7 = vshll.u32 %v3721_v16, 16  ;;  %v3323_v1 = vmul.f32 1.442695, %v3322_v0 }
0x3c41   :  { %v4439_v26 = vld [vmem:[%s6584_s13] ss:$0 sm:$0xff] }
0x3c48   :  { %2118 = vadd.xlane.f32.xlu1 %v2117_v12 }
0x3c50   :  { %2160 = vadd.xlane.f32.xlu1 %v2159_v35 }
0x3c58   :  { %2522 = vadd.xlane.f32.xlu1 %v2521_v5 }
0x3c60   :  { %2924 = vadd.xlane.f32.xlu1 %v2923_v4 }
0x3c68   :  { %2965 = vadd.xlane.f32.xlu1 %v2964_v52 }
0x3c70   :  { %3367 = vadd.xlane.f32.xlu1 %v3366_v45 }
0x3c78   :  { %3728 = vadd.xlane.f32.xlu1 %v3727_v49 }
0x3c80   :  { %3769 = vadd.xlane.f32.xlu1 %v3768_v10 }
0x3cb3   :  { %v3719_v9 = vpop.xlane.xlu1 %3718  ;;  %v3760_v41 = vpop.xlane.xlu2 %3759 }
0x3cb4   :  { %v3720_v50 = vcvt.f32.s32 %v3719_v9  ;;  %v3761_v33 = vcvt.f32.s32 %v3760_v41 }
0x3cb6   :  { %v3764_v3 = vadd.s32 %v3763_v8, %v3761_v33  ;;  %v3723_v62 = vadd.s32 %v3722_v7, %v3720_v50 }
0x3cb8   :  { %v3786_v28 = vrot.slane %v3764_v3, 1 }
0x3cba   :  { %v3787_v55 = vsel %vm1946_vm9, %v3723_v62, %v3786_v28 }
0x3cbb   :  { %v2119_v36 = vpop.xlane.xlu1 %2118  ;;  %3804 = vperm.xlu2 %4411, %v3787_v55   ;;  %3792 = vst.msk [vmem:[%s6589_s18 + $0x4] sm:$0x1] %vm2183_vm0, %v3787_v55  ;;  %3795 = vperm.xlu0 %4410, %v3787_v55  }
0x3cbc   :  { %4616 = vrcp.f32 %v2119_v36  ;;  %vm2125_vm4 = vweird.f32 %v2119_v36  ;;  %v2131_v44 = vand.u32 2147483648, %v2119_v36 }
0x3cbe   :  { %v2132_v57 = vor.u32 1.1754944e-38, %v2131_v44 }
0x3cc2   :  { %v4617_v25 = vpop.eup %4616 }
0x3cc3   :  { %v2121_v56 = vmul.f32 %v4617_v25, %v2119_v36  ;;  %v2161_v12 = vpop.xlane.xlu1 %2160  ;;  %4412 = vset.pattern.permute.xlu2 %v4773_v47  ;;  %4416 = vset.pattern.permute.xlu0 %v4774_v23  ;;  %vm2126_vm1 = vweird.f32 %v4617_v25  ;;  %v2129_v23 = vand.u32 2147483647, %v2119_v36 }
0x3cc4   :  { %4618 = vrcp.f32 %v2161_v12  ;;  %v2173_v37 = vand.u32 2147483648, %v2161_v12  ;;  %v2171_v51 = vand.u32 2147483647, %v2161_v12  ;;  %vm6361_vm5 = vmor %vm2125_vm4, %vm2126_vm1  ;;  %vm2167_vm2 = vweird.f32 %v2161_v12 }
0x3cc5   :  { %v2122_v43 = vsub.f32 1.0, %v2121_v56  ;;  %vm2130_vm1 = vcmp.eq.f32.partialorder %v2129_v23, 8.507059e+37 }
0x3cc6   :  { %v2174_v13 = vor.u32 1.1754944e-38, %v2173_v37  ;;  %vm2172_vm14 = vcmp.eq.f32.partialorder %v2171_v51, 8.507059e+37 }
0x3cc7   :  { %v2123_v15 = vmul.f32 %v4617_v25, %v2122_v43 }
0x3cc9   :  { %v2124_v5 = vadd.f32 %v4617_v25, %v2123_v15 }
0x3cca   :  { %v4619_v53 = vpop.eup %4618 }
0x3ccb   :  { %v2163_v35 = vmul.f32 %v4619_v53, %v2161_v12  ;;  %v6359_v2 = vpop.xlane.xlu1 %2522  ;;  %vm2168_vm11 = vweird.f32 %v4619_v53  ;;  %v2128_v52 = vsel %vm6361_vm5, %v4617_v25, %v2124_v5 }
0x3ccc   :  { %vm2169_vm15 = vmor %vm2167_vm2, %vm2168_vm11  ;;  %v2133_v49 = vsel %vm2130_vm1, %v2132_v57, %v2128_v52 }
0x3ccd   :  { %v2164_v30 = vsub.f32 1.0, %v2163_v35 }
0x3ccf   :  { %v2165_v27 = vmul.f32 %v4619_v53, %v2164_v30 }
0x3cd1   :  { %v2166_v4 = vadd.f32 %v4619_v53, %v2165_v27 }
0x3cd3   :  { %v2170_v59 = vsel %vm2169_vm15, %v4619_v53, %v2166_v4  ;;  %v2925_v34 = vpop.xlane.xlu1 %2924 }
0x3cd4   :  { %v2175_v45 = vsel %vm2172_vm14, %v2174_v13, %v2170_v59  ;;  %4620 = vrcp.f32 %v2925_v34  ;;  %vm2931_vm2 = vweird.f32 %v2925_v34  ;;  %v2937_v25 = vand.u32 2147483648, %v2925_v34  ;;  %v3862_v13 = vpop.f32.mrf.mxu3 }
0x3cd5   :  { %v2180_v40 = vrot.slane %v2175_v45, 1  ;;  %4622 = vpow2.f32 %v2560_v38  ;;  %v2935_v12 = vand.u32 2147483647, %v2925_v34  ;;  %v6394_v59 = vadd.f32 %v4439_v26, %v3862_v13 }
0x3cd6   :  { %4624 = vpow2.f32 %v3323_v1  ;;  %v2938_v37 = vor.u32 1.1754944e-38, %v2937_v25 }
0x3cd7   :  { %v2182_v63 = vsel %vm1946_vm9, %v2133_v49, %v2180_v40 }
0x3cd8   :  { %2185 = vst.msk [vmem:[%s6654_s20] sm:$0x1] %vm2183_vm0, %v2182_v63 }
0x3cda   :  { %v4621_v39 = vpop.eup %4620 }
0x3cdb   :  { %v2927_v46 = vmul.f32 %v4621_v39, %v2925_v34  ;;  %v2966_v14 = vpop.xlane.xlu1 %2965  ;;  %v4623_v6 = vpop.eup %4622  ;;  %vm2932_vm14 = vweird.f32 %v4621_v39 }
0x3cdc   :  { %4626 = vrcp.f32 %v2966_v14  ;;  %v4625_v16 = vpop.eup %4624  ;;  %v2562_v33 = vsel %vm6603_vm6, %v4623_v6, 0.0  ;;  %v2978_v62 = vand.u32 2147483648, %v2966_v14  ;;  %v2976_v36 = vand.u32 2147483647, %v2966_v14  ;;  %vm6380_vm11 = vmor %vm2931_vm2, %vm2932_vm14 }
0x3cdd   :  { %v2928_v10 = vsub.f32 1.0, %v2927_v46  ;;  %v3325_v7 = vsel %vm6604_vm7, %v4625_v16, 0.0  ;;  %vm2972_vm4 = vweird.f32 %v2966_v14  ;;  %vm2936_vm6 = vcmp.eq.f32.partialorder %v2935_v12, 8.507059e+37 }
0x3cde   :  { %v2979_v53 = vor.u32 1.1754944e-38, %v2978_v62  ;;  %vm2977_vm1 = vcmp.eq.f32.partialorder %v2976_v36, 8.507059e+37 }
0x3cdf   :  { %v2929_v41 = vmul.f32 %v4621_v39, %v2928_v10 }
0x3ce1   :  { %v2930_v28 = vadd.f32 %v4621_v39, %v2929_v41 }
0x3ce2   :  { %v4627_v9 = vpop.eup %4626 }
0x3ce3   :  { %v2968_v8 = vmul.f32 %v4627_v9, %v2966_v14  ;;  %v6376_v50 = vpop.xlane.xlu1 %3367  ;;  %vm2973_vm15 = vweird.f32 %v4627_v9  ;;  %v2934_v15 = vsel %vm6380_vm11, %v4621_v39, %v2930_v28 }
0x3ce4   :  { %2563 = vadd.xlane.f32.xlu2 %v2562_v33  ;;  %vm2974_vm5 = vmor %vm2972_vm4, %vm2973_vm15  ;;  %v2939_v51 = vsel %vm2936_vm6, %v2938_v37, %v2934_v15  ;;  %v3378_v26 = vand.u32 2147483647, %v6376_v50 }
0x3ce5   :  { %v2969_v3 = vsub.f32 1.0, %v2968_v8  ;;  %3326 = vadd.xlane.f32.xlu0 %v3325_v7 }
0x3ce7   :  { %v2970_v55 = vmul.f32 %v4627_v9, %v2969_v3 }
0x3ce9   :  { %v2971_v43 = vadd.f32 %v4627_v9, %v2970_v55 }
0x3ceb   :  { %v2975_v35 = vsel %vm2974_vm5, %v4627_v9, %v2971_v43  ;;  %v3729_v30 = vpop.xlane.xlu1 %3728 }
0x3cec   :  { %v2980_v5 = vsel %vm2977_vm1, %v2979_v53, %v2975_v35  ;;  %4628 = vrcp.f32 %v3729_v30  ;;  %vm3735_vm15 = vweird.f32 %v3729_v30  ;;  %v3741_v63 = vand.u32 2147483648, %v3729_v30 }
0x3ced   :  { %v2985_v27 = vrot.slane %v2980_v5, 1  ;;  %v3739_v39 = vand.u32 2147483647, %v3729_v30 }
0x3cee   :  { %v3742_v16 = vor.u32 1.1754944e-38, %v3741_v63 }
0x3cef   :  { %v2987_v44 = vsel %vm1946_vm9, %v2939_v51, %v2985_v27  ;;  %vm3740_vm1 = vcmp.eq.f32.partialorder %v3739_v39, 8.507059e+37 }
0x3cf0   :  { %2989 = vst.msk [vmem:[%s6654_s20 + $0x2] sm:$0x1] %vm2183_vm0, %v2987_v44 }
0x3cf2   :  { %v4629_v47 = vpop.eup %4628 }
0x3cf3   :  { %v3731_v23 = vmul.f32 %v4629_v47, %v3729_v30  ;;  %v3770_v4 = vpop.xlane.xlu1 %3769  ;;  %vm3736_vm6 = vweird.f32 %v4629_v47 }
0x3cf4   :  { %4630 = vrcp.f32 %v3770_v4  ;;  %v3782_v40 = vand.u32 2147483648, %v3770_v4  ;;  %v3780_v1 = vand.u32 2147483647, %v3770_v4  ;;  %vm3737_vm2 = vmor %vm3735_vm15, %vm3736_vm6  ;;  %vm3776_vm11 = vweird.f32 %v3770_v4 }
0x3cf5   :  { %v3732_v0 = vsub.f32 1.0, %v3731_v23  ;;  %vm6657_vm15 = vcmp.eq.s32.totalorder %v4959_v21, 0  ;;  %4632 = vrcp.f32 %v6376_v50 }
0x3cf6   :  { %v3783_v14 = vor.u32 1.1754944e-38, %v3782_v40  ;;  %vm3781_vm5 = vcmp.eq.f32.partialorder %v3780_v1, 8.507059e+37  ;;  %4634 = vrcp.f32 %v6359_v2 }
0x3cf7   :  { %v3733_v34 = vmul.f32 %v4629_v47, %v3732_v0 }
0x3cf9   :  { %v3734_v38 = vadd.f32 %v4629_v47, %v3733_v34 }
0x3cfa   :  { %v4631_v52 = vpop.eup %4630 }
0x3cfb   :  { %v3772_v57 = vmul.f32 %v4631_v52, %v3770_v4  ;;  %vm3777_vm14 = vweird.f32 %v4631_v52  ;;  %v3738_v10 = vsel %vm3737_vm2, %v4629_v47, %v3734_v38  ;;  %vm6658_vm2 = vcmask 392192   ;;  %v4633_v43 = vpop.eup %4632 }
0x3cfc   :  { %3886 = vrot.lane.b32.xlu2 %v6394_v59, %s4769_s10  ;;  %vm3778_vm4 = vmor %vm3776_vm11, %vm3777_vm14  ;;  %v3743_v8 = vsel %vm3740_vm1, %v3742_v16, %v3738_v10  ;;  %v4635_v53 = vpop.eup %4634  ;;  %v3370_v15 = vmul.f32 %v4633_v43, %v6376_v50  ;;  %v3380_v47 = vand.u32 2147483648, %v6376_v50  ;;  %vm2529_vm11 = vweird.f32 %v6359_v2 }
0x3cfd   :  { %v3773_v45 = vsub.f32 1.0, %v3772_v57  ;;  %v2533_v10 = vand.u32 2147483647, %v6359_v2 }
0x3cfe   :  { %v3371_v35 = vsub.f32 1.0, %v3370_v15  ;;  %v3381_v40 = vor.u32 1.1754944e-38, %v3380_v47 }
0x3cff   :  { %v3774_v49 = vmul.f32 %v4631_v52, %v3773_v45 }
0x3d00   :  { %v3372_v21 = vmul.f32 %v4633_v43, %v3371_v35 }
0x3d01   :  { %v3775_v46 = vadd.f32 %v4631_v52, %v3774_v49 }
0x3d02   :  { %v3373_v44 = vadd.f32 %v4633_v43, %v3372_v21 }
0x3d03   :  { %v3779_v6 = vsel %vm3778_vm4, %v4631_v52, %v3775_v46  ;;  %vm3374_vm4 = vweird.f32 %v6376_v50  ;;  %v2535_v52 = vand.u32 2147483648, %v6359_v2 }
0x3d04   :  { %v3784_v9 = vsel %vm3781_vm5, %v3783_v14, %v3779_v6  ;;  %vm2530_vm5 = vweird.f32 %v4635_v53 }
0x3d05   :  { %v3789_v41 = vrot.slane %v3784_v9, 1  ;;  %v2536_v9 = vor.u32 1.1754944e-38, %v2535_v52 }
0x3d07   :  { %v3791_v33 = vsel %vm1946_vm9, %v3743_v8, %v3789_v41 }
0x3d08   :  { %3793 = vst.msk [vmem:[%s6654_s20 + $0x4] sm:$0x1] %vm2183_vm0, %v3791_v33 }
0x3d15   :  { %v3805_v7 = vpop.permute.xlu2 %3804 }
0x3d16   :  { %vm3806_vm6 = vcmp.eq.s32.totalorder %v4961_v22, %v3805_v7 }
0x3d17   :  { %v4337_v3 = vsel %vm3806_vm6, 1.0, %v4768_v31 }
0x3d18   :  { %v3809_v28 = vperm.slane %v4337_v3, 0 }
0x3d1a   :  { %v3810_v25 = vsel %vm238_vm3, %v3809_v28, 0.0  ;;  %vm3375_vm3 = vweird.f32 %v4633_v43 }
0x3d1b   :  { %vm6421_vm1 = vmor %vm3374_vm4, %vm3375_vm3 }
0x3d1c   :  { %v3377_v45 = vsel %vm6421_vm1, %v4633_v43, %v3373_v44 }
0x3d2d   :  { %v3796_v62 = vpop.permute.xlu0 %3795 }
0x3d2e   :  { %vm3797_vm14 = vcmp.eq.s32.totalorder %v4961_v22, %v3796_v62 }
0x3d2f   :  { %v4336_v55 = vsel %vm3797_vm14, 1.0, %v4768_v31  ;;  %v2525_v31 = vmul.f32 %v4635_v53, %v6359_v2  ;;  %vm3379_vm14 = vcmp.eq.f32.partialorder %v3378_v26, 8.507059e+37 }
0x3d30   :  { %v3800_v36 = vperm.slane %v4336_v55, 0  ;;  %v3382_v6 = vsel %vm3379_vm14, %v3381_v40, %v3377_v45  ;;  %vm2534_vm14 = vcmp.eq.f32.partialorder %v2533_v10, 8.507059e+37 }
0x3d31   :  { %v2526_v5 = vsub.f32 1.0, %v2525_v31  ;;  %v3387_v62 = vrot.slane %v3382_v6, 1 }
0x3d32   :  { %v3801_v56 = vsel %vm6657_vm15, %v3800_v36, 0.0 }
0x3d33   :  { %v3811_v12 = vadd.f32 %v3810_v25, %v3801_v56  ;;  %v2527_v27 = vmul.f32 %v4635_v53, %v2526_v5 }
0x3d35   :  { %4338 = vmatmul.msk.f32.vlgmr.msra.gmra.mxu1 %vm6658_vm2, %v3811_v12  ;;  %v2528_v0 = vadd.f32 %v4635_v53, %v2527_v27  ;;  %vm6430_vm2 = vmor %vm2529_vm11, %vm2530_vm5 }
0x3d37   :  { %v2532_v33 = vsel %vm6430_vm2, %v4635_v53, %v2528_v0  ;;  %v4671_v53 = vld [vmem:[%s6583_s12] ss:$0 sm:$0xff] }
0x3d38   :  { %v2537_v25 = vsel %vm2534_vm14, %v2536_v9, %v2532_v33  ;;  %vm6672_vm14 = vcmask 386049  }
0x3d57   :  { %v2564_v30 = vpop.xlane.xlu2 %2563 }
0x3d58   :  { %4636 = vrcp.f32 %v2564_v30  ;;  %v3327_v37 = vpop.xlane.xlu0 %3326  ;;  %v2576_v38 = vand.u32 2147483648, %v2564_v30  ;;  %v2574_v63 = vand.u32 2147483647, %v2564_v30  ;;  %vm2570_vm3 = vweird.f32 %v2564_v30 }
0x3d59   :  { %4638 = vrcp.f32 %v3327_v37  ;;  %v3339_v50 = vand.u32 2147483648, %v3327_v37  ;;  %v3337_v46 = vand.u32 2147483647, %v3327_v37  ;;  %vm3333_vm1 = vweird.f32 %v3327_v37 }
0x3d5a   :  { %v2577_v41 = vor.u32 1.1754944e-38, %v2576_v38  ;;  %vm2575_vm7 = vcmp.eq.f32.partialorder %v2574_v63, 8.507059e+37 }
0x3d5b   :  { %v3340_v3 = vor.u32 1.1754944e-38, %v3339_v50  ;;  %vm3338_vm5 = vcmp.eq.f32.partialorder %v3337_v46, 8.507059e+37 }
0x3d5e   :  { %v4637_v51 = vpop.eup %4636 }
0x3d5f   :  { %v4639_v23 = vpop.eup %4638  ;;  %v2566_v4 = vmul.f32 %v4637_v51, %v2564_v30  ;;  %vm2571_vm6 = vweird.f32 %v4637_v51 }
0x3d60   :  { %v3329_v13 = vmul.f32 %v4639_v23, %v3327_v37  ;;  %vm3334_vm15 = vweird.f32 %v4639_v23  ;;  %vm2572_vm4 = vmor %vm2570_vm3, %vm2571_vm6  ;;  %vm6663_vm3 = vcmask 39936  }
0x3d61   :  { %v2567_v57 = vsub.f32 1.0, %v2566_v4  ;;  %vm3335_vm11 = vmor %vm3333_vm1, %vm3334_vm15  ;;  %vm6665_vm1 = vcmask 56320  }
0x3d62   :  { %v3330_v49 = vsub.f32 1.0, %v3329_v13  ;;  %v3887_v13 = vpop.permute.xlu2 %3886 }
0x3d63   :  { %v2568_v1 = vmul.f32 %v4637_v51, %v2567_v57 }
0x3d64   :  { %v3331_v39 = vmul.f32 %v4639_v23, %v3330_v49 }
0x3d65   :  { %v2569_v16 = vadd.f32 %v4637_v51, %v2568_v1 }
0x3d66   :  { %v3332_v8 = vadd.f32 %v4639_v23, %v3331_v39 }
0x3d67   :  { %v2573_v7 = vsel %vm2572_vm4, %v4637_v51, %v2569_v16  ;;  %vm6664_vm4 = vcmask 48128  }
0x3d68   :  { %v2578_v28 = vsel %vm2575_vm7, %v2577_v41, %v2573_v7  ;;  %v3336_v55 = vsel %vm3335_vm11, %v4639_v23, %v3332_v8 }
0x3d69   :  { %v2583_v2 = vrot.slane %v2578_v28, 1  ;;  %v3341_v36 = vsel %vm3338_vm5, %v3340_v3, %v3336_v55  ;;  %vm6671_vm5 = vcmask 385024  }
0x3d6a   :  { %v3389_v56 = vsel %vm1946_vm9, %v3341_v36, %v3387_v62 }
0x3d6b   :  { %v2585_v12 = vsel %vm1946_vm9, %v2537_v25, %v2583_v2  ;;  %3391 = vst.msk [vmem:[%s6654_s20 + $0x3] sm:$0x1] %vm2183_vm0, %v3389_v56 }
0x3d6c   :  { %2587 = vst.msk [vmem:[%s6654_s20 + $0x1] sm:$0x1] %vm2183_vm0, %v2585_v12 }
0x3db2   :  { %v3832_v43 = vpop.f32.mrf.mxu1 }
0x3db3   :  { %v3833_v15 = vadd.f32 %v4671_v53, %v3832_v43 }
0x3db5   :  { %v3865_v31 = vadd.f32 %v6394_v59, %v3833_v15 }
0x3db7   :  { %v4340_v35 = vmul.f32 -1.442695, %v3865_v31 }
0x3db9   :  { %4640 = vpow2.f32 %v4340_v35 }
0x3dbf   :  { %v4641_v30 = vpop.eup %4640 }
0x3dc0   :  { %v3869_v37 = vadd.f32 1.0, %v4641_v30 }
0x3dc2   :  { %4642 = vrcp.f32 %v3869_v37  ;;  %v3881_v51 = vand.u32 2147483648, %v3869_v37  ;;  %v3879_v47 = vand.u32 2147483647, %v3869_v37  ;;  %vm3875_vm6 = vweird.f32 %v3869_v37 }
0x3dc4   :  { %v3882_v4 = vor.u32 1.1754944e-38, %v3881_v51  ;;  %vm3880_vm2 = vcmp.eq.f32.partialorder %v3879_v47, 8.507059e+37 }
0x3dc8   :  { %v4643_v5 = vpop.eup %4642 }
0x3dc9   :  { %v3871_v21 = vmul.f32 %v4643_v5, %v3869_v37  ;;  %vm3876_vm7 = vweird.f32 %v4643_v5 }
0x3dca   :  { %vm3877_vm15 = vmor %vm3875_vm6, %vm3876_vm7 }
0x3dcb   :  { %v3872_v27 = vsub.f32 1.0, %v3871_v21  ;;  %vm6673_vm6 = vmmov %vm6671_vm5 }
0x3dcd   :  { %v3873_v44 = vmul.f32 %v4643_v5, %v3872_v27 }
0x3dcf   :  { %v3874_v23 = vadd.f32 %v4643_v5, %v3873_v44 }
0x3dd1   :  { %v3878_v26 = vsel %vm3877_vm15, %v4643_v5, %v3874_v23 }
0x3dd2   :  { %v3883_v59 = vsel %vm3880_vm2, %v3882_v4, %v3878_v26  ;;  %vm6674_vm2 = vmmov %vm6672_vm14 }
0x3dd3   :  { %v3889_v0 = vmul.f32 %v3887_v13, %v3883_v59  ;;  %v3896_v45 = vsub.f32 1.0, %v3883_v59  ;;  %v3902_v38 = vmul.f32 %v3883_v59, %v6243_v60 }
0x3dd5   :  { %3891 = vrot.lane.b32.xlu1 %v3889_v0, %s4769_s10 }
0x3e47   :  { %v3892_v52 = vpop.permute.xlu1 %3891 }
0x3e48   :  { %v3894_v34 = vadd.f32 %v3892_v52, %v3833_v15 }
0x3e4a   :  { %4644 = vtanh.f32 %v3894_v34 }
0x3e50   :  { %v4645_v57 = vpop.eup %4644 }
0x3e51   :  { %3898 = vrot.lane.b32.xlu0 %v4645_v57, %s4770_s23 }
0x3ec3   :  { %v3899_v40 = vpop.permute.xlu0 %3898 }
0x3ec4   :  { %v3901_v49 = vmul.f32 %v3899_v40, %v3896_v45 }
0x3ec6   :  { %v6455_v1 = vadd.f32 %v3902_v38, %v3901_v49  ;;  %v4042_v49 = vld [vmem:[%s6585_s14 + $0x18] sm:$0xff] }
0x3ec8   :  { %v3936_v63 = vmul.f32 %v6455_v1, %v5674_v58  ;;  %v3928_v50 = vmul.f32 %v6455_v1, %v5647_v54  ;;  %v3904_v39 = vmul.f32 %v6455_v1, %v5692_v17  ;;  %v3944_v60 = vmul.f32 %v6455_v1, %v5670_v18 }
0x3ec9   :  { %v3912_v46 = vmul.f32 %v6455_v1, %v5655_v19  ;;  %v3952_v14 = vmul.f32 %v6455_v1, %v5699_v20  ;;  %v3920_v10 = vmul.f32 %v6455_v1, %v5651_v61  ;;  %v3960_v56 = vmul.f32 %v6455_v1, %v5684_v42 }
0x3eca   :  { %3938 = vrot.lane.b32.xlu0 %v3936_v63, %s4770_s23  ;;  %3930 = vrot.lane.b32.xlu1 %v3928_v50, %s4770_s23  ;;  %v4040_v50 = vld [vmem:[%s6585_s14 + $0x8] sm:$0xff] }
0x3ecb   :  { %3906 = vrot.lane.b32.xlu2 %v3904_v39, %s4770_s23  ;;  %v4039_v39 = vld [vmem:[%s6585_s14] sm:$0xff] }
0x3ed2   :  { %3946 = vrot.lane.b32.xlu1 %v3944_v60, %s4770_s23 }
0x3ed3   :  { %3914 = vrot.lane.b32.xlu2 %v3912_v46, %s4770_s23 }
0x3eda   :  { %3954 = vrot.lane.b32.xlu1 %v3952_v14, %s4770_s23 }
0x3edb   :  { %3922 = vrot.lane.b32.xlu2 %v3920_v10, %s4770_s23 }
0x3f25   :  { %v3907_v6 = vpop.permute.xlu2 %3906 }
0x3f26   :  { %v3909_v16 = vsel %vm1886_vm8, %v3907_v6, 0.0 }
0x3f27   :  { %3910 = vadd.xlane.f32.xlu1 %v3909_v16 }
0x3f2d   :  { %v3915_v9 = vpop.permute.xlu2 %3914 }
0x3f2e   :  { %v3917_v41 = vsel %vm1886_vm8, %v3915_v9, 0.0 }
0x3f2f   :  { %3918 = vadd.xlane.f32.xlu0 %v3917_v41 }
0x3f35   :  { %v3923_v8 = vpop.permute.xlu2 %3922 }
0x3f36   :  { %v3925_v33 = vsel %vm1886_vm8, %v3923_v8, 0.0 }
0x3f37   :  { %3926 = vadd.xlane.f32.xlu2 %v3925_v33 }
0x3f3c   :  { %v3939_v7 = vpop.permute.xlu0 %3938  ;;  %v3931_v3 = vpop.permute.xlu1 %3930 }
0x3f3d   :  { %v3941_v62 = vsel %vm1886_vm8, %v3939_v7, 0.0  ;;  %v3933_v28 = vsel %vm1886_vm8, %v3931_v3, 0.0 }
0x3f3e   :  { %3934 = vadd.xlane.f32.xlu0 %v3933_v28 }
0x3f3f   :  { %3942 = vadd.xlane.f32.xlu2 %v3941_v62 }
0x3f44   :  { %v3947_v55 = vpop.permute.xlu1 %3946 }
0x3f45   :  { %v3949_v2 = vsel %vm1886_vm8, %v3947_v55, 0.0 }
0x3f47   :  { %3950 = vadd.xlane.f32.xlu2 %v3949_v2 }
0x3f4c   :  { %v3955_v36 = vpop.permute.xlu1 %3954 }
0x3f4d   :  { %v3957_v25 = vsel %vm1886_vm8, %v3955_v36, 0.0 }
0x3f4f   :  { %3958 = vadd.xlane.f32.xlu2 %v3957_v25 }
0x3f52   :  { %3962 = vrot.lane.b32.xlu0 %v3960_v56, %s4770_s23 }
0x3f9a   :  { %v3911_v53 = vpop.xlane.xlu1 %3910 }
0x3fa2   :  { %v3919_v12 = vpop.xlane.xlu0 %3918 }
0x3fa3   :  { %v3968_v15 = vsel %vm1946_vm9, %v3911_v53, %v3919_v12 }
0x3faa   :  { %v3927_v43 = vpop.xlane.xlu2 %3926 }
0x3fab   :  { %v3969_v31 = vsel %vm1948_vm10, %v3968_v15, %v3927_v43  ;;  %vm6666_vm10 = vcmask 58368  }
0x3fb1   :  { %v3935_v35 = vpop.xlane.xlu0 %3934 }
0x3fb2   :  { %v3970_v30 = vsel %vm1950_vm12, %v3969_v31, %v3935_v35  ;;  %v3943_v21 = vpop.xlane.xlu2 %3942  ;;  %vm6668_vm12 = vcmask 261120  }
0x3fb3   :  { %v3971_v44 = vsel %vm1952_vm13, %v3970_v30, %v3943_v21  ;;  %vm6669_vm13 = vcmask 523264   ;;  %vm6670_vm11 = vmmov %vm6668_vm12 }
0x3fba   :  { %v3951_v27 = vpop.xlane.xlu2 %3950 }
0x3fbb   :  { %v3972_v47 = vsel %vm6663_vm3, %v3971_v44, %v3951_v27  ;;  %vm6675_vm3 = vmmov %vm6671_vm5 }
0x3fc2   :  { %v3959_v51 = vpop.xlane.xlu2 %3958 }
0x3fc3   :  { %v3973_v23 = vsel %vm6664_vm4, %v3972_v47, %v3959_v51 }
0x3fc4   :  { %v3963_v37 = vpop.permute.xlu0 %3962 }
0x3fc5   :  { %v3965_v5 = vsel %vm1886_vm8, %v3963_v37, 0.0  ;;  %vm6667_vm8 = vmmov %vm6666_vm10 }
0x3fc6   :  { %3966 = vadd.xlane.f32.xlu1 %v3965_v5 }
0x4039   :  { %v3967_v4 = vpop.xlane.xlu1 %3966 }
0x403a   :  { %v3974_v26 = vsel %vm6665_vm1, %v3973_v23, %v3967_v4  ;;  %vm6676_vm1 = vmmov %vm6674_vm2 }
0x403b   :  { %v3975_v13 = vsel %vm6666_vm10, %v3974_v26, -inf }
0x403c   :  { %3976 = vmax.xlane.f32.xlu0 %v3975_v13 }
0x40af   :  { %v3977_v59 = vpop.xlane.xlu0 %3976 }
0x40b0   :  { %v3978_v0 = vsub.f32 %v3974_v26, %v3977_v59 }
0x40b2   :  { %v3979_v52 = vmul.f32 1.442695, %v3978_v0 }
0x40b4   :  { %4646 = vpow2.f32 %v3979_v52 }
0x40ba   :  { %v4647_v34 = vpop.eup %4646 }
0x40bb   :  { %v3981_v57 = vsel %vm6667_vm8, %v4647_v34, 0.0 }
0x40bc   :  { %3982 = vadd.xlane.f32.xlu2 %v3981_v57 }
0x412f   :  { %v3983_v45 = vpop.xlane.xlu2 %3982 }
0x4130   :  { %4648 = vrcp.f32 %v3983_v45 }
0x4136   :  { %v4649_v40 = vpop.eup %4648 }
0x4137   :  { %v3985_v38 = vmul.f32 %v4649_v40, %v4647_v34 }
0x4139   :  { %4011 = vperm.xlu0 %4416, %v3985_v38   ;;  %3999 = vperm.xlu1 %4414, %v3985_v38  }
0x413a   :  { %3988 = vperm.xlu2 %4412, %v3985_v38  }
0x4141   :  { %4419 = vset.pattern.permute.xlu1 %v4778_v32  ;;  %4420 = vset.pattern.permute.xlu0 %v4778_v32  ;;  %v4046_v32 = vld [vmem:[%s6585_s14 + $0x38] sm:$0xff] }
0x4142   :  { %4413 = vset.pattern.permute.xlu2 %v4772_v24  ;;  %4029 = vperm.xlu1 %4419, %v3985_v38  }
0x4143   :  { %3993 = vperm.xlu2 %4413, %v3985_v38   ;;  %4062 = vmatpush.msrb.mxu0 %v4046_v32 }
0x414b   :  { %4415 = vset.pattern.permute.xlu2 %v4775_v11  ;;  %v4045_v11 = vld [vmem:[%s6585_s14 + $0x30] sm:$0xff] }
0x414c   :  { %4005 = vperm.xlu2 %4415, %v3985_v38   ;;  %4063 = vmatpush.msrb.mxu0 %v4045_v11 }
0x4154   :  { %4417 = vset.pattern.permute.xlu2 %v4777_v48  ;;  %v4044_v48 = vld [vmem:[%s6585_s14 + $0x28] sm:$0xff] }
0x4155   :  { %4017 = vperm.xlu2 %4417, %v3985_v38   ;;  %4064 = vmatpush.msrb.mxu0 %v4044_v48 }
0x415d   :  { %4418 = vset.pattern.permute.xlu2 %v4776_v29  ;;  %v4043_v29 = vld [vmem:[%s6585_s14 + $0x20] sm:$0xff] }
0x415e   :  { %4023 = vperm.xlu2 %4418, %v3985_v38   ;;  %4065 = vmatpush.msrb.mxu0 %v4043_v29 }
0x4160   :  { %4066 = vmatpush.msrb.mxu0 %v4042_v49 }
0x4166   :  { %4035 = vrot.lane.b32.xlu2 %v6455_v1, %s4770_s23  ;;  %v4041_v1 = vld [vmem:[%s6585_s14 + $0x10] sm:$0xff] }
0x4167   :  { %4067 = vmatpush.msrb.mxu0 %v4041_v1 }
0x4169   :  { %4068 = vmatpush.msrb.mxu0 %v4040_v50 }
0x416b   :  { %4069 = vmatpush.msrb.mxu0 %v4039_v39 }
0x4194   :  { %v3989_v24 = vpop.permute.xlu2 %3988 }
0x4195   :  { %v3991_v14 = vmul.f32 %v3989_v24, %v5692_v17 }
0x419d   :  { %v3994_v63 = vpop.permute.xlu2 %3993 }
0x419e   :  { %v3996_v46 = vmul.f32 %v3994_v63, %v5655_v19 }
0x41a0   :  { %v3997_v6 = vadd.f32 %v3996_v46, %v3991_v14 }
0x41a6   :  { %v4006_v60 = vpop.permute.xlu2 %4005 }
0x41a7   :  { %v4008_v41 = vmul.f32 %v4006_v60, %v5647_v54 }
0x41ab   :  { %v4000_v10 = vpop.permute.xlu1 %3999  ;;  %v4012_v33 = vpop.permute.xlu0 %4011 }
0x41ac   :  { %v4002_v16 = vmul.f32 %v4000_v10, %v5651_v61  ;;  %v4014_v3 = vmul.f32 %v4012_v33, %v5674_v58  ;;  %v4442_v58 = vld [vmem:[%s6586_s15] ss:$0 sm:$0xff] }
0x41ae   :  { %v4003_v9 = vadd.f32 %v4002_v16, %v3997_v6 }
0x41af   :  { %v4018_v8 = vpop.permute.xlu2 %4017 }
0x41b0   :  { %v4009_v7 = vadd.f32 %v4008_v41, %v4003_v9  ;;  %v4020_v28 = vmul.f32 %v4018_v8, %v5670_v18 }
0x41b2   :  { %v4015_v62 = vadd.f32 %v4014_v3, %v4009_v7 }
0x41b4   :  { %v4021_v2 = vadd.f32 %v4020_v28, %v4015_v62  ;;  %v4030_v17 = vpop.permute.xlu1 %4029 }
0x41b5   :  { %v4032_v25 = vmul.f32 %v4030_v17, %v5684_v42  ;;  %v4443_v42 = vld [vmem:[%s6588_s17] ss:$0 sm:$0xff] }
0x41b8   :  { %v4024_v55 = vpop.permute.xlu2 %4023 }
0x41b9   :  { %v4026_v19 = vmul.f32 %v4024_v55, %v5699_v20 }
0x41bb   :  { %v4027_v36 = vadd.f32 %v4026_v19, %v4021_v2 }
0x41bd   :  { %v4033_v61 = vadd.f32 %v4032_v25, %v4027_v36 }
0x41c0   :  { %v4036_v56 = vpop.permute.xlu2 %4035 }
0x41c1   :  { %v4038_v54 = vsel %vm6668_vm12, %v4036_v56, %v4033_v61 }
0x41c2   :  { %4341 = vmatmul.msk.f32.vlgmr.msrb.gmra.mxu0 %vm6669_vm13, %v4038_v54 }
0x423f   :  { %v4071_v12 = vpop.f32.mrf.mxu0 }
0x4240   :  { %v4072_v18 = vadd.f32 %v4442_v58, %v4071_v12 }
0x4242   :  { %4650 = vtanh.f32 %v4072_v18 }
0x4248   :  { %v4651_v43 = vpop.eup %4650 }
0x4249   :  { %4342 = vmatmul.msk.f32.vlgmr.msrb.gmra.mxu3 %vm6670_vm11, %v4651_v43 }
0x42cc   :  { %v4103_v20 = vpop.f32.mrf.mxu3 }
0x42cd   :  { %v4104_v53 = vadd.f32 %v4443_v42, %v4103_v20 }
0x42cf   :  { %v4106_v15 = vsel %vm6671_vm5, %v4104_v53, -inf  ;;  %v4147_v31 = vsel %vm6672_vm14, %v4104_v53, -inf }
0x42d0   :  { %4107 = vmax.xlane.f32.xlu1 %v4106_v15 }
0x42d8   :  { %4148 = vmax.xlane.f32.xlu1 %v4147_v31 }
0x4343   :  { %v4108_v35 = vpop.xlane.xlu1 %4107 }
0x4344   :  { %vm4109_vm7 = vcmp.eq.f32.partialorder %v4104_v53, %v4108_v35  ;;  %v4126_v30 = vsub.f32 %v4104_v53, %v4108_v35 }
0x4345   :  { %v4110_v37 = vsel %vm4109_vm7, %v4961_v22, 48 }
0x4346   :  { %v4111_v5 = vsel %vm6673_vm6, %v4110_v37, 2147483647  ;;  %v4127_v21 = vmul.f32 1.442695, %v4126_v30 }
0x4347   :  { %v4113_v27 = vshra.s32 %v4111_v5, 16  ;;  %v4112_v52 = vand.u32 65535, %v4111_v5 }
0x4348   :  { %4652 = vpow2.f32 %v4127_v21 }
0x4349   :  { %v4115_v51 = vcvt.s32.f32 %v4113_v27  ;;  %v4114_v45 = vcvt.s32.f32 %v4112_v52 }
0x434b   :  { %4116 = vmin.xlane.f32.xlu2 %v4115_v51  ;;  %v4149_v44 = vpop.xlane.xlu1 %4148 }
0x434c   :  { %vm4150_vm15 = vcmp.eq.f32.partialorder %v4104_v53, %v4149_v44  ;;  %v4167_v0 = vsub.f32 %v4104_v53, %v4149_v44 }
0x434d   :  { %v4151_v23 = vsel %vm4150_vm15, %v4961_v22, 48 }
0x434e   :  { %v4653_v47 = vpop.eup %4652  ;;  %v4152_v4 = vsel %vm6674_vm2, %v4151_v23, 2147483647  ;;  %v4168_v34 = vmul.f32 1.442695, %v4167_v0 }
0x434f   :  { %v4129_v26 = vsel %vm6675_vm3, %v4653_v47, 0.0  ;;  %v4154_v13 = vshra.s32 %v4152_v4, 16  ;;  %v4153_v24 = vand.u32 65535, %v4152_v4 }
0x4350   :  { %4654 = vpow2.f32 %v4168_v34 }
0x4351   :  { %v4156_v59 = vcvt.s32.f32 %v4154_v13  ;;  %v4155_v48 = vcvt.s32.f32 %v4153_v24 }
0x4353   :  { %4130 = vadd.xlane.f32.xlu2 %v4129_v26 }
0x4356   :  { %v4655_v38 = vpop.eup %4654 }
0x4357   :  { %v4170_v22 = vsel %vm6676_vm1, %v4655_v38, 0.0 }
0x435b   :  { %4157 = vmin.xlane.f32.xlu2 %v4156_v59 }
0x43be   :  { %v4117_v57 = vpop.xlane.xlu2 %4116 }
0x43bf   :  { %vm4118_vm4 = vcmp.eq.f32.partialorder %v4115_v51, %v4117_v57  ;;  %v4123_v14 = vcvt.f32.s32 %v4117_v57 }
0x43c0   :  { %v4119_v40 = vsel %vm4118_vm4, %v4114_v45, inf }
0x43c1   :  { %4120 = vmin.xlane.f32.xlu0 %v4119_v40  ;;  %v4124_v7 = vshll.u32 %v4123_v14, 16 }
0x43c6   :  { %v4131_v32 = vpop.xlane.xlu2 %4130 }
0x43c7   :  { %4656 = vrcp.f32 %v4131_v32  ;;  %vm4137_vm13 = vweird.f32 %v4131_v32  ;;  %v4143_v19 = vand.u32 2147483648, %v4131_v32  ;;  %v4141_v61 = vand.u32 2147483647, %v4131_v32 }
0x43c9   :  { %4171 = vadd.xlane.f32.xlu0 %v4170_v22  ;;  %v4144_v43 = vor.u32 1.1754944e-38, %v4143_v19  ;;  %vm4142_vm6 = vcmp.eq.f32.partialorder %v4141_v61, 8.507059e+37 }
0x43cd   :  { %v4657_v1 = vpop.eup %4656 }
0x43ce   :  { %v4158_v11 = vpop.xlane.xlu2 %4157  ;;  %v4133_v63 = vmul.f32 %v4657_v1, %v4131_v32  ;;  %vm4138_vm8 = vweird.f32 %v4657_v1 }
0x43cf   :  { %vm4159_vm10 = vcmp.eq.f32.partialorder %v4156_v59, %v4158_v11  ;;  %v4164_v60 = vcvt.f32.s32 %v4158_v11  ;;  %vm6555_vm11 = vmor %vm4137_vm13, %vm4138_vm8 }
0x43d0   :  { %v4160_v29 = vsel %vm4159_vm10, %v4155_v48, inf  ;;  %v4134_v39 = vsub.f32 1.0, %v4133_v63 }
0x43d1   :  { %4161 = vmin.xlane.f32.xlu1 %v4160_v29  ;;  %v4165_v9 = vshll.u32 %v4164_v60, 16 }
0x43d2   :  { %v4135_v10 = vmul.f32 %v4657_v1, %v4134_v39 }
0x43d4   :  { %v4136_v28 = vadd.f32 %v4657_v1, %v4135_v10 }
0x43d6   :  { %v4140_v12 = vsel %vm6555_vm11, %v4657_v1, %v4136_v28 }
0x43d7   :  { %v4145_v53 = vsel %vm4142_vm6, %v4144_v43, %v4140_v12 }
0x4434   :  { %v4121_v49 = vpop.xlane.xlu0 %4120 }
0x4435   :  { %v4122_v41 = vcvt.f32.s32 %v4121_v49 }
0x4437   :  { %v4125_v17 = vadd.s32 %v4124_v7, %v4122_v41 }
0x443c   :  { %v4172_v50 = vpop.xlane.xlu0 %4171 }
0x443d   :  { %4658 = vrcp.f32 %v4172_v50  ;;  %v4184_v3 = vand.u32 2147483648, %v4172_v50  ;;  %v4182_v2 = vand.u32 2147483647, %v4172_v50  ;;  %vm4178_vm5 = vweird.f32 %v4172_v50 }
0x443f   :  { %v4185_v54 = vor.u32 1.1754944e-38, %v4184_v3  ;;  %vm4183_vm7 = vcmp.eq.f32.partialorder %v4182_v2, 8.507059e+37 }
0x4443   :  { %v4659_v46 = vpop.eup %4658 }
0x4444   :  { %v4174_v6 = vmul.f32 %v4659_v46, %v4172_v50  ;;  %v4162_v16 = vpop.xlane.xlu1 %4161  ;;  %vm4179_vm12 = vweird.f32 %v4659_v46 }
0x4445   :  { %v4163_v8 = vcvt.f32.s32 %v4162_v16  ;;  %vm4180_vm14 = vmor %vm4178_vm5, %vm4179_vm12 }
0x4446   :  { %v4175_v33 = vsub.f32 1.0, %v4174_v6 }
0x4447   :  { %v4166_v62 = vadd.s32 %v4165_v9, %v4163_v8 }
0x4448   :  { %v4176_v55 = vmul.f32 %v4659_v46, %v4175_v33 }
0x4449   :  { %v4188_v36 = vrot.slane %v4166_v62, 1 }
0x444a   :  { %v4177_v56 = vadd.f32 %v4659_v46, %v4176_v55 }
0x444b   :  { %v4189_v58 = vsel %vm1946_vm9, %v4125_v17, %v4188_v36 }
0x444c   :  { %v4181_v18 = vsel %vm4180_vm14, %v4659_v46, %v4177_v56  ;;  %4194 = vst.msk [vmem:[%s6589_s18 + $0x5] sm:$0x1] %vm2183_vm0, %v4189_v58 }
0x444d   :  { %v4186_v42 = vsel %vm4183_vm7, %v4185_v54, %v4181_v18 }
0x444e   :  { %v4191_v20 = vrot.slane %v4186_v42, 1 }
0x4450   :  { %v4193_v15 = vsel %vm1946_vm9, %v4145_v53, %v4191_v20 }
0x4451   :  { %4195 = vst.msk [vmem:[%s6654_s20 + $0x5] sm:$0x1] %vm2183_vm0, %v4193_v15 }
0x4452   :  { %4204 = vsyncpa [#allocation3], 1 }
0x4453   :  { %4205 = vsyncpa [#allocation7], 1 }
0x4454   :  { %4206 = vsyncpa [#allocation4], 1 }

</bundles_post_ra>
